<compile_context>
chip_gen: v7x
topology: tpu7x:2x2x1
jax: 0.10.0
libtpu: 0.0.40
codegen_flags: <defaults>
</compile_context>

<pallas_src>
import functools

import jax
import jax.numpy as jnp
from jax.experimental import pallas as pl
from jax.experimental.pallas import tpu as pltpu


def _round_up(x, m):
    return ((x + m - 1) // m) * m


# ----------------------------------------------------------------------------
# Tile planning (all static Python ints)
# ----------------------------------------------------------------------------
def _choose_tk(k):
    """Fat K tiles; whole K when small, otherwise a divisor to avoid padding."""
    if k <= 2048:
        return _round_up(k, 128)
    for tk in (1024, 512, 384, 256):
        if k % tk == 0:
            return tk
    return 512


def _choose_tn(n):
    return 128 if n <= 128 else 256


def _choose_tm(m):
    mp = _round_up(m, 8)
    if mp <= 256:
        return mp, mp
    return 256, _round_up(m, 256)


# ----------------------------------------------------------------------------
# Pallas kernels
# ----------------------------------------------------------------------------
def _matmul_bias_kernel(a_ref, b_ref, bias_ref, o_ref, acc_ref, *, apply_relu):
    """C[i,j] = relu?(sum_k A[i,k] B[k,j] + bias[j]); K is the LAST grid axis."""
    k = pl.program_id(2)

    @pl.when(k == 0)
    def _():
        acc_ref[...] = jnp.zeros_like(acc_ref)

    acc_ref[...] += jnp.dot(a_ref[...], b_ref[...],
                            preferred_element_type=jnp.float32)

    @pl.when(k == pl.num_programs(2) - 1)
    def _():
        out = acc_ref[...] + bias_ref[...]
        if apply_relu:
            out = jnp.maximum(out, 0.0)
        o_ref[...] = out.astype(o_ref.dtype)


def _mlp_head_kernel(x_ref, w2_ref, b2_ref, w3_ref, b3_ref, o_ref):
    """Fused Linear(512,128)+ReLU+Linear(128,NC) — both matmuls in one call."""
    h = jnp.dot(x_ref[...], w2_ref[...], preferred_element_type=jnp.float32)
    h = jnp.maximum(h + b2_ref[...], 0.0).astype(jnp.bfloat16)
    o_ref[...] = (jnp.dot(h, w3_ref[...], preferred_element_type=jnp.float32)
                  + b3_ref[...]).astype(o_ref.dtype)


def _maxpool_kernel(x_ref, o_ref):
    """x_ref: (TAPS, TM, C) window taps; o_ref: (TM, C) elementwise max."""
    acc = x_ref[0]
    for t in range(1, x_ref.shape[0]):
        acc = jnp.maximum(acc, x_ref[t])
    o_ref[...] = acc


# ----------------------------------------------------------------------------
# Pallas wrappers
# ----------------------------------------------------------------------------
def matmul_bias(a, w_p, b_p, n_out, relu, out_dtype=jnp.float32):
    """a: (M, K), w_p: (KP, NP) bf16 pre-padded, b_p: (1, NP) f32 pre-padded."""
    m, k = a.shape
    tk = _choose_tk(k)
    kp = _round_up(k, tk)
    kp_w, np_ = w_p.shape
    assert kp_w == kp, (kp_w, kp)
    tn = _choose_tn(n_out)
    assert np_ % tn == 0 and np_ >= n_out
    tm, mp = _choose_tm(m)

    a_p = a.astype(jnp.bfloat16)
    if mp != m or kp != k:
        a_p = jnp.pad(a_p, ((0, mp - m), (0, kp - k)))

    grid = (mp // tm, np_ // tn, kp // tk)
    out = pl.pallas_call(
        functools.partial(_matmul_bias_kernel, apply_relu=relu),
        out_shape=jax.ShapeDtypeStruct((mp, np_), out_dtype),
        grid_spec=pltpu.PrefetchScalarGridSpec(
            num_scalar_prefetch=0,
            grid=grid,
            in_specs=[
                pl.BlockSpec((tm, tk), lambda i, j, kk: (i, kk)),
                pl.BlockSpec((tk, tn), lambda i, j, kk: (kk, j)),
                pl.BlockSpec((1, tn), lambda i, j, kk: (0, j)),
            ],
            out_specs=pl.BlockSpec((tm, tn), lambda i, j, kk: (i, j)),
            scratch_shapes=[pltpu.VMEM((tm, tn), jnp.float32)],
        ),
        compiler_params=pltpu.CompilerParams(
            dimension_semantics=("parallel", "parallel", "arbitrary")),
    )(a_p, w_p, b_p)
    return out[:m, :n_out]


def mlp_head(x, head, num_class):
    """Fused fc2 + ReLU + fc3 (tiny; one pallas_call, no K grid)."""
    m, k = x.shape
    h_dim = head["w2"].shape[1]
    ncp = head["w3"].shape[1]
    tm, mp = _choose_tm(m)
    x_p = x.astype(jnp.bfloat16)
    if mp != m:
        x_p = jnp.pad(x_p, ((0, mp - m), (0, 0)))
    out = pl.pallas_call(
        _mlp_head_kernel,
        out_shape=jax.ShapeDtypeStruct((mp, ncp), jnp.float32),
        grid_spec=pltpu.PrefetchScalarGridSpec(
            num_scalar_prefetch=0,
            grid=(mp // tm,),
            in_specs=[
                pl.BlockSpec((tm, k), lambda i: (i, 0)),
                pl.BlockSpec((k, h_dim), lambda i: (0, 0)),
                pl.BlockSpec((1, h_dim), lambda i: (0, 0)),
                pl.BlockSpec((h_dim, ncp), lambda i: (0, 0)),
                pl.BlockSpec((1, ncp), lambda i: (0, 0)),
            ],
            out_specs=pl.BlockSpec((tm, ncp), lambda i: (i, 0)),
        ),
        compiler_params=pltpu.CompilerParams(
            dimension_semantics=("parallel",)),
    )(x_p, head["w2"], head["b2"], head["w3"], head["b3"])
    return out[:m, :num_class]


def _im2col(x, kh, kw, stride, pad):
    """x: (N, H, W, C) -> (N*HO*WO, KH*KW*C) patches in (kh, kw, c) order."""
    n, h, w, c = x.shape
    xp = jnp.pad(x, ((0, 0), (pad, pad), (pad, pad), (0, 0)))
    hp, wp = h + 2 * pad, w + 2 * pad
    ho = (hp - kh) // stride + 1
    wo = (wp - kw) // stride + 1
    slabs = []
    for i in range(kh):
        for j in range(kw):
            v = xp[:, i:i + stride * (ho - 1) + 1:stride,
                   j:j + stride * (wo - 1) + 1:stride, :]
            slabs.append(v)
    patches = jnp.stack(slabs, axis=3)                  # (n, ho, wo, kh*kw, c)
    return patches.reshape(n * ho * wo, kh * kw * c), ho, wo


def conv2d(x, w_p, b_p, cfg):
    """x: NHWC bf16; w_p/b_p pre-laid-out (K, OC) matrices; cfg static ints."""
    n = x.shape[0]
    patches, ho, wo = _im2col(x, cfg["kh"], cfg["kw"], cfg["stride"], cfg["pad"])
    out = matmul_bias(patches, w_p, b_p, cfg["oc"], relu=True,
                      out_dtype=jnp.bfloat16)
    return out.reshape(n, ho, wo, cfg["oc"])


def maxpool_3x3_s2(x):
    """x: (N, H, W, C) NHWC, kernel 3, stride 2, no padding; tiled over rows."""
    n, h, w, c = x.shape
    ho = (h - 3) // 2 + 1
    wo = (w - 3) // 2 + 1
    m = n * ho * wo
    taps = []
    for kh_ in range(3):
        for kw_ in range(3):
            v = x[:, kh_:kh_ + 2 * (ho - 1) + 1:2,
                  kw_:kw_ + 2 * (wo - 1) + 1:2, :]
            taps.append(v.reshape(m, c))
    stacked = jnp.stack(taps, axis=0)                   # (9, M, C)

    mp = _round_up(m, 8)
    if mp <= 512:
        tmb = mp
    else:
        tmb = 512
        mp = _round_up(m, 512)
    if mp != m:
        stacked = jnp.pad(stacked, ((0, 0), (0, mp - m), (0, 0)))

    out = pl.pallas_call(
        _maxpool_kernel,
        out_shape=jax.ShapeDtypeStruct((mp, c), x.dtype),
        grid_spec=pltpu.PrefetchScalarGridSpec(
            num_scalar_prefetch=0,
            grid=(mp // tmb,),
            in_specs=[pl.BlockSpec((9, tmb, c), lambda i: (0, i, 0))],
            out_specs=pl.BlockSpec((tmb, c), lambda i: (i, 0)),
        ),
        compiler_params=pltpu.CompilerParams(
            dimension_semantics=("parallel",)),
    )(stacked)
    return out[:m].reshape(n, ho, wo, c)


def adaptive_avg_pool_nhwc(x, out_h, out_w):
    # Tiny window-average glue (matches torch AdaptiveAvgPool2d semantics).
    n, h, w, c = x.shape
    rows = []
    for i in range(out_h):
        h0 = (i * h) // out_h
        h1 = -((-(i + 1) * h) // out_h)
        cols = []
        for j in range(out_w):
            w0 = (j * w) // out_w
            w1 = -((-(j + 1) * w) // out_w)
            cols.append(jnp.mean(x[:, h0:h1, w0:w1, :].astype(jnp.float32),
                                 axis=(1, 2)))
        rows.append(jnp.stack(cols, axis=1))
    return jnp.stack(rows, axis=1)                      # (n, out_h, out_w, c) f32


# ----------------------------------------------------------------------------
# Parameters: random init + one-time layout preparation (outside jit)
# ----------------------------------------------------------------------------
_CONV_CFG = {
    "conv1": dict(kh=11, kw=11, ic=3,   oc=64,  stride=4, pad=2),
    "conv2": dict(kh=5,  kw=5,  ic=64,  oc=192, stride=1, pad=2),
    "conv3": dict(kh=3,  kw=3,  ic=192, oc=384, stride=1, pad=1),
    "conv4": dict(kh=3,  kw=3,  ic=384, oc=256, stride=1, pad=1),
    "conv5": dict(kh=3,  kw=3,  ic=256, oc=256, stride=1, pad=1),
}


def init_params(key, num_class):
    ks = jax.random.split(key, 16)

    def conv_p(kw_, kb_, oc, ic, kh, kwid):
        fan_in = ic * kh * kwid
        w = jax.random.normal(kw_, (oc, ic, kh, kwid), jnp.float32) / jnp.sqrt(fan_in)
        b = jax.random.normal(kb_, (oc,), jnp.float32) * 0.01
        return w, b

    def lin_p(kw_, kb_, out_f, in_f):
        w = jax.random.normal(kw_, (out_f, in_f), jnp.float32) / jnp.sqrt(in_f)
        b = jax.random.normal(kb_, (out_f,), jnp.float32) * 0.01
        return w, b

    p = {}
    p["conv1"] = conv_p(ks[0], ks[1], 64, 3, 11, 11)
    p["conv2"] = conv_p(ks[2], ks[3], 192, 64, 5, 5)
    p["conv3"] = conv_p(ks[4], ks[5], 384, 192, 3, 3)
    p["conv4"] = conv_p(ks[6], ks[7], 256, 384, 3, 3)
    p["conv5"] = conv_p(ks[8], ks[9], 256, 256, 3, 3)
    p["fc1"] = lin_p(ks[10], ks[11], 512, 256 * 6 * 6)
    p["fc2"] = lin_p(ks[12], ks[13], 128, 512)
    p["fc3"] = lin_p(ks[14], ks[15], num_class, 128)
    return p


def _prepare_matmul_weight(w_kn, bias):
    """(K, N) f32 weight + (N,) bias -> padded bf16 weight, padded f32 bias."""
    k, n = w_kn.shape
    tk = _choose_tk(k)
    kp = _round_up(k, tk)
    tn = _choose_tn(n)
    np_ = _round_up(n, tn)
    wp = jnp.pad(w_kn, ((0, kp - k), (0, np_ - n))).astype(jnp.bfloat16)
    bp = jnp.pad(bias, (0, np_ - n)).reshape(1, np_).astype(jnp.float32)
    return wp, bp


def prepare_params(params, num_class):
    """One-time weight layout (transpose + pad + bf16 cast), done outside jit."""
    prep = {}
    for name, cfg in _CONV_CFG.items():
        w, b = params[name]
        oc, ic, kh, kw = w.shape
        wmat = jnp.transpose(w, (2, 3, 1, 0)).reshape(kh * kw * ic, oc)
        prep[name] = _prepare_matmul_weight(wmat, b)
    w1, b1 = params["fc1"]
    prep["fc1"] = _prepare_matmul_weight(w1.T, b1)
    w2, b2 = params["fc2"]
    w3, b3 = params["fc3"]
    ncp = _round_up(num_class, 128)
    prep["head"] = dict(
        w2=w2.T.astype(jnp.bfloat16),
        b2=b2.reshape(1, -1).astype(jnp.float32),
        w3=jnp.pad(w3.T, ((0, 0), (0, ncp - num_class))).astype(jnp.bfloat16),
        b3=jnp.pad(b3, (0, ncp - num_class)).reshape(1, ncp).astype(jnp.float32),
    )
    return prep


# ----------------------------------------------------------------------------
# AlexNet forward
# ----------------------------------------------------------------------------
def alexnet_forward(prep, x_nchw, num_class):
    # layout: convert NCHW -> NHWC (bf16 activations) for the feature extractor.
    x = jnp.transpose(x_nchw, (0, 2, 3, 1)).astype(jnp.bfloat16)

    # features
    x = conv2d(x, *prep["conv1"], _CONV_CFG["conv1"])
    x = maxpool_3x3_s2(x)
    x = conv2d(x, *prep["conv2"], _CONV_CFG["conv2"])
    x = maxpool_3x3_s2(x)
    x = conv2d(x, *prep["conv3"], _CONV_CFG["conv3"])
    x = conv2d(x, *prep["conv4"], _CONV_CFG["conv4"])
    x = conv2d(x, *prep["conv5"], _CONV_CFG["conv5"])
    x = maxpool_3x3_s2(x)

    # avgpool to 6x6 (TODO(synk): adaptive average pool kept in plain JAX glue)
    x = adaptive_avg_pool_nhwc(x, 6, 6)                 # (N, 6, 6, 256) f32

    # flatten in PyTorch (C, H, W) order
    x = jnp.transpose(x, (0, 3, 1, 2)).reshape(x.shape[0], 256 * 6 * 6)

    # classifier: fc1 via tiled matmul; fc2+ReLU+fc3 fused in one kernel.
    x = matmul_bias(x, *prep["fc1"], 512, relu=True, out_dtype=jnp.bfloat16)
    return mlp_head(x, prep["head"], num_class)


if __name__ == "__main__":
    num_class = 10
    key = jax.random.PRNGKey(0)
    k_param, k_input = jax.random.split(key)

    params = init_params(k_param, num_class)
    prep = prepare_params(params, num_class)            # one-time layout, outside jit

    # Small input (batch=2, 3x64x64 NCHW); final pooled feature map is 1x1x256,
    # adaptive avgpool upsamples it to 6x6x256 exactly as PyTorch would.
    x = jax.random.normal(k_input, (2, 3, 64, 64), jnp.float32)

    fwd = jax.jit(lambda p, xx: alexnet_forward(p, xx, num_class))
    out = fwd(prep, x)
    out = jax.block_until_ready(out)
    assert out.shape == (2, num_class), out.shape
    assert out.dtype == jnp.float32
    print("KERNEL_OK")
</pallas_src>

<mosaic_0001>
module attributes {stable_mosaic.version = 11 : i64} {
  func.func @_matmul_bias_kernel(%arg0: i32, %arg1: i32, %arg2: i32, %arg3: memref<256x384xbf16, #tpu.memory_space<vmem>>, %arg4: memref<384x128xbf16, #tpu.memory_space<vmem>>, %arg5: memref<1x128xf32, #tpu.memory_space<vmem>>, %arg6: memref<256x128xbf16, #tpu.memory_space<vmem>>, %arg7: memref<256x128xf32, #tpu.memory_space<vmem>>) attributes {dimension_semantics = [#tpu.dimension_semantics<parallel>, #tpu.dimension_semantics<parallel>, #tpu.dimension_semantics<arbitrary>], iteration_bounds = array<i64: 2, 1, 1>, scalar_prefetch = 0 : i64, scratch_operands = 1 : i64, tpu.core_type = #tpu.core_type<tc>, window_params = [{transform_indices = @transform_0, window_bounds = array<i64: 256, 384>}, {transform_indices = @transform_1, window_bounds = array<i64: 384, 128>}, {transform_indices = @transform_2, window_bounds = array<i64: 1, 128>}, {transform_indices = @transform_3, window_bounds = array<i64: 256, 128>}]} {
    %c0_i32 = arith.constant 0 : i32
    %0 = arith.cmpi eq, %arg2, %c0_i32 : i32
    %1 = arith.extui %0 : i1 to i32
    %c0_i32_0 = arith.constant 0 : i32
    %2 = arith.cmpi ne, %1, %c0_i32_0 : i32
    scf.if %2 {
      %cst_10 = arith.constant 0.000000e+00 : f32
      %12 = vector.broadcast %cst_10 : f32 to vector<256x128xf32>
      %c0_11 = arith.constant 0 : index
      %c0_12 = arith.constant 0 : index
      %13 = vector.load %arg7[%c0_11, %c0_12] : memref<256x128xf32, #tpu.memory_space<vmem>>, vector<256x128xf32>
      tpu.vector_store %arg7[%c0_11, %c0_12], %12 {strides = array<i32>} : memref<256x128xf32, #tpu.memory_space<vmem>>, vector<256x128xf32>,
    } else {
    }
    %c0 = arith.constant 0 : index
    %c0_1 = arith.constant 0 : index
    %3 = vector.load %arg7[%c0, %c0_1] : memref<256x128xf32, #tpu.memory_space<vmem>>, vector<256x128xf32>
    %c0_2 = arith.constant 0 : index
    %c0_3 = arith.constant 0 : index
    %4 = vector.load %arg3[%c0_2, %c0_3] : memref<256x384xbf16, #tpu.memory_space<vmem>>, vector<256x384xbf16>
    %c0_4 = arith.constant 0 : index
    %c0_5 = arith.constant 0 : index
    %5 = vector.load %arg4[%c0_4, %c0_5] : memref<384x128xbf16, #tpu.memory_space<vmem>>, vector<384x128xbf16>
    %cst = arith.constant dense<0.000000e+00> : vector<256x128xf32>
    %6 = tpu.matmul %4, %5, %cst {dimension_numbers = #tpu.dot_dimension_numbers<[1], [0], [0], [1], [0, 0, 1, 1], [], []>} : vector<256x384xbf16>, vector<384x128xbf16>, vector<256x128xf32> -> vector<256x128xf32>
    %7 = arith.addf %3, %6 : vector<256x128xf32>
    %c0_6 = arith.constant 0 : index
    %c0_7 = arith.constant 0 : index
    %8 = vector.load %arg7[%c0_6, %c0_7] : memref<256x128xf32, #tpu.memory_space<vmem>>, vector<256x128xf32>
    tpu.vector_store %arg7[%c0_6, %c0_7], %7 {strides = array<i32>} : memref<256x128xf32, #tpu.memory_space<vmem>>, vector<256x128xf32>,
    %c0_i32_8 = arith.constant 0 : i32
    %9 = arith.cmpi eq, %arg2, %c0_i32_8 : i32
    %10 = arith.extui %9 : i1 to i32
    %c0_i32_9 = arith.constant 0 : i32
    %11 = arith.cmpi ne, %10, %c0_i32_9 : i32
    scf.if %11 {
      %c0_10 = arith.constant 0 : index
      %c0_11 = arith.constant 0 : index
      %12 = vector.load %arg7[%c0_10, %c0_11] : memref<256x128xf32, #tpu.memory_space<vmem>>, vector<256x128xf32>
      %c0_12 = arith.constant 0 : index
      %c0_13 = arith.constant 0 : index
      %13 = vector.load %arg5[%c0_12, %c0_13] : memref<1x128xf32, #tpu.memory_space<vmem>>, vector<1x128xf32>
      %14 = vector.broadcast %13 : vector<1x128xf32> to vector<256x128xf32>
      %15 = arith.addf %12, %14 : vector<256x128xf32>
      %cst_14 = arith.constant 0.000000e+00 : f32
      %16 = vector.broadcast %cst_14 : f32 to vector<256x128xf32>
      %17 = arith.maximumf %15, %16 : vector<256x128xf32>
      %18 = arith.truncf %17 : vector<256x128xf32> to vector<256x128xbf16>
      %c0_15 = arith.constant 0 : index
      %c0_16 = arith.constant 0 : index
      %19 = vector.load %arg6[%c0_15, %c0_16] : memref<256x128xbf16, #tpu.memory_space<vmem>>, vector<256x128xbf16>
      tpu.vector_store %arg6[%c0_15, %c0_16], %18 {strides = array<i32>} : memref<256x128xbf16, #tpu.memory_space<vmem>>, vector<256x128xbf16>,
    } else {
    }
    return
  }
  func.func @transform_0(%arg0: i32, %arg1: i32, %arg2: i32) -> (i32, i32) {
    %c0_i32 = arith.constant 0 : i32
    return %arg0, %arg2 : i32, i32
  }
  func.func @transform_1(%arg0: i32, %arg1: i32, %arg2: i32) -> (i32, i32) {
    %c0_i32 = arith.constant 0 : i32
    return %arg2, %arg1 : i32, i32
  }
  func.func @transform_2(%arg0: i32, %arg1: i32, %arg2: i32) -> (i32, i32) {
    %c0_i32 = arith.constant 0 : i32
    %c0_i32_0 = arith.constant 0 : i32
    return %c0_i32, %arg1 : i32, i32
  }
  func.func @transform_3(%arg0: i32, %arg1: i32, %arg2: i32) -> (i32, i32) {
    %c0_i32 = arith.constant 0 : i32
    return %arg0, %arg1 : i32, i32
  }
}

module attributes {stable_mosaic.version = 11 : i64} {
  func.func @_maxpool_kernel(%arg0: i32, %arg1: memref<9x104x64xbf16, #tpu.memory_space<vmem>>, %arg2: memref<104x64xbf16, #tpu.memory_space<vmem>>) attributes {dimension_semantics = [#tpu.dimension_semantics<parallel>], iteration_bounds = array<i64: 1>, scalar_prefetch = 0 : i64, scratch_operands = 0 : i64, tpu.core_type = #tpu.core_type<tc>, window_params = [{transform_indices = @transform_0, window_bounds = array<i64: 9, 104, 64>}, {transform_indices = @transform_1, window_bounds = array<i64: 104, 64>}]} {
    %c0 = arith.constant 0 : index
    %c0_0 = arith.constant 0 : index
    %c0_1 = arith.constant 0 : index
    %0 = vector.load %arg1[%c0, %c0_0, %c0_1] : memref<9x104x64xbf16, #tpu.memory_space<vmem>>, vector<1x104x64xbf16>
    %1 = vector.shape_cast %0 : vector<1x104x64xbf16> to vector<104x64xbf16>
    %c1 = arith.constant 1 : index
    %c0_2 = arith.constant 0 : index
    %c0_3 = arith.constant 0 : index
    %2 = vector.load %arg1[%c1, %c0_2, %c0_3] : memref<9x104x64xbf16, #tpu.memory_space<vmem>>, vector<1x104x64xbf16>
    %3 = vector.shape_cast %2 : vector<1x104x64xbf16> to vector<104x64xbf16>
    %4 = arith.maximumf %1, %3 : vector<104x64xbf16>
    %c2 = arith.constant 2 : index
    %c0_4 = arith.constant 0 : index
    %c0_5 = arith.constant 0 : index
    %5 = vector.load %arg1[%c2, %c0_4, %c0_5] : memref<9x104x64xbf16, #tpu.memory_space<vmem>>, vector<1x104x64xbf16>
    %6 = vector.shape_cast %5 : vector<1x104x64xbf16> to vector<104x64xbf16>
    %7 = arith.maximumf %4, %6 : vector<104x64xbf16>
    %c3 = arith.constant 3 : index
    %c0_6 = arith.constant 0 : index
    %c0_7 = arith.constant 0 : index
    %8 = vector.load %arg1[%c3, %c0_6, %c0_7] : memref<9x104x64xbf16, #tpu.memory_space<vmem>>, vector<1x104x64xbf16>
    %9 = vector.shape_cast %8 : vector<1x104x64xbf16> to vector<104x64xbf16>
    %10 = arith.maximumf %7, %9 : vector<104x64xbf16>
    %c4 = arith.constant 4 : index
    %c0_8 = arith.constant 0 : index
    %c0_9 = arith.constant 0 : index
    %11 = vector.load %arg1[%c4, %c0_8, %c0_9] : memref<9x104x64xbf16, #tpu.memory_space<vmem>>, vector<1x104x64xbf16>
    %12 = vector.shape_cast %11 : vector<1x104x64xbf16> to vector<104x64xbf16>
    %13 = arith.maximumf %10, %12 : vector<104x64xbf16>
    %c5 = arith.constant 5 : index
    %c0_10 = arith.constant 0 : index
    %c0_11 = arith.constant 0 : index
    %14 = vector.load %arg1[%c5, %c0_10, %c0_11] : memref<9x104x64xbf16, #tpu.memory_space<vmem>>, vector<1x104x64xbf16>
    %15 = vector.shape_cast %14 : vector<1x104x64xbf16> to vector<104x64xbf16>
    %16 = arith.maximumf %13, %15 : vector<104x64xbf16>
    %c6 = arith.constant 6 : index
    %c0_12 = arith.constant 0 : index
    %c0_13 = arith.constant 0 : index
    %17 = vector.load %arg1[%c6, %c0_12, %c0_13] : memref<9x104x64xbf16, #tpu.memory_space<vmem>>, vector<1x104x64xbf16>
    %18 = vector.shape_cast %17 : vector<1x104x64xbf16> to vector<104x64xbf16>
    %19 = arith.maximumf %16, %18 : vector<104x64xbf16>
    %c7 = arith.constant 7 : index
    %c0_14 = arith.constant 0 : index
    %c0_15 = arith.constant 0 : index
    %20 = vector.load %arg1[%c7, %c0_14, %c0_15] : memref<9x104x64xbf16, #tpu.memory_space<vmem>>, vector<1x104x64xbf16>
    %21 = vector.shape_cast %20 : vector<1x104x64xbf16> to vector<104x64xbf16>
    %22 = arith.maximumf %19, %21 : vector<104x64xbf16>
    %c8 = arith.constant 8 : index
    %c0_16 = arith.constant 0 : index
    %c0_17 = arith.constant 0 : index
    %23 = vector.load %arg1[%c8, %c0_16, %c0_17] : memref<9x104x64xbf16, #tpu.memory_space<vmem>>, vector<1x104x64xbf16>
    %24 = vector.shape_cast %23 : vector<1x104x64xbf16> to vector<104x64xbf16>
    %25 = arith.maximumf %22, %24 : vector<104x64xbf16>
    %c0_18 = arith.constant 0 : index
    %c0_19 = arith.constant 0 : index
    %26 = vector.load %arg2[%c0_18, %c0_19] : memref<104x64xbf16, #tpu.memory_space<vmem>>, vector<104x64xbf16>
    tpu.vector_store %arg2[%c0_18, %c0_19], %25 {strides = array<i32>} : memref<104x64xbf16, #tpu.memory_space<vmem>>, vector<104x64xbf16>,
    return
  }
  func.func @transform_0(%arg0: i32) -> (i32, i32, i32) {
    %c0_i32 = arith.constant 0 : i32
    %c0_i32_0 = arith.constant 0 : i32
    %c0_i32_1 = arith.constant 0 : i32
    return %c0_i32, %arg0, %c0_i32_0 : i32, i32, i32
  }
  func.func @transform_1(%arg0: i32) -> (i32, i32) {
    %c0_i32 = arith.constant 0 : i32
    %c0_i32_0 = arith.constant 0 : i32
    return %arg0, %c0_i32 : i32, i32
  }
}

module attributes {stable_mosaic.version = 11 : i64} {
  func.func @_matmul_bias_kernel(%arg0: i32, %arg1: i32, %arg2: i32, %arg3: memref<104x1664xbf16, #tpu.memory_space<vmem>>, %arg4: memref<1664x256xbf16, #tpu.memory_space<vmem>>, %arg5: memref<1x256xf32, #tpu.memory_space<vmem>>, %arg6: memref<104x256xbf16, #tpu.memory_space<vmem>>, %arg7: memref<104x256xf32, #tpu.memory_space<vmem>>) attributes {dimension_semantics = [#tpu.dimension_semantics<parallel>, #tpu.dimension_semantics<parallel>, #tpu.dimension_semantics<arbitrary>], iteration_bounds = array<i64: 1, 1, 1>, scalar_prefetch = 0 : i64, scratch_operands = 1 : i64, tpu.core_type = #tpu.core_type<tc>, window_params = [{transform_indices = @transform_0, window_bounds = array<i64: 104, 1664>}, {transform_indices = @transform_1, window_bounds = array<i64: 1664, 256>}, {transform_indices = @transform_2, window_bounds = array<i64: 1, 256>}, {transform_indices = @transform_3, window_bounds = array<i64: 104, 256>}]} {
    %c0_i32 = arith.constant 0 : i32
    %0 = arith.cmpi eq, %arg2, %c0_i32 : i32
    %1 = arith.extui %0 : i1 to i32
    %c0_i32_0 = arith.constant 0 : i32
    %2 = arith.cmpi ne, %1, %c0_i32_0 : i32
    scf.if %2 {
      %cst_10 = arith.constant 0.000000e+00 : f32
      %12 = vector.broadcast %cst_10 : f32 to vector<104x256xf32>
      %c0_11 = arith.constant 0 : index
      %c0_12 = arith.constant 0 : index
      %13 = vector.load %arg7[%c0_11, %c0_12] : memref<104x256xf32, #tpu.memory_space<vmem>>, vector<104x256xf32>
      tpu.vector_store %arg7[%c0_11, %c0_12], %12 {strides = array<i32>} : memref<104x256xf32, #tpu.memory_space<vmem>>, vector<104x256xf32>,
    } else {
    }
    %c0 = arith.constant 0 : index
    %c0_1 = arith.constant 0 : index
    %3 = vector.load %arg7[%c0, %c0_1] : memref<104x256xf32, #tpu.memory_space<vmem>>, vector<104x256xf32>
    %c0_2 = arith.constant 0 : index
    %c0_3 = arith.constant 0 : index
    %4 = vector.load %arg3[%c0_2, %c0_3] : memref<104x1664xbf16, #tpu.memory_space<vmem>>, vector<104x1664xbf16>
    %c0_4 = arith.constant 0 : index
    %c0_5 = arith.constant 0 : index
    %5 = vector.load %arg4[%c0_4, %c0_5] : memref<1664x256xbf16, #tpu.memory_space<vmem>>, vector<1664x256xbf16>
    %cst = arith.constant dense<0.000000e+00> : vector<104x256xf32>
    %6 = tpu.matmul %4, %5, %cst {dimension_numbers = #tpu.dot_dimension_numbers<[1], [0], [0], [1], [0, 0, 1, 1], [], []>} : vector<104x1664xbf16>, vector<1664x256xbf16>, vector<104x256xf32> -> vector<104x256xf32>
    %7 = arith.addf %3, %6 : vector<104x256xf32>
    %c0_6 = arith.constant 0 : index
    %c0_7 = arith.constant 0 : index
    %8 = vector.load %arg7[%c0_6, %c0_7] : memref<104x256xf32, #tpu.memory_space<vmem>>, vector<104x256xf32>
    tpu.vector_store %arg7[%c0_6, %c0_7], %7 {strides = array<i32>} : memref<104x256xf32, #tpu.memory_space<vmem>>, vector<104x256xf32>,
    %c0_i32_8 = arith.constant 0 : i32
    %9 = arith.cmpi eq, %arg2, %c0_i32_8 : i32
    %10 = arith.extui %9 : i1 to i32
    %c0_i32_9 = arith.constant 0 : i32
    %11 = arith.cmpi ne, %10, %c0_i32_9 : i32
    scf.if %11 {
      %c0_10 = arith.constant 0 : index
      %c0_11 = arith.constant 0 : index
      %12 = vector.load %arg7[%c0_10, %c0_11] : memref<104x256xf32, #tpu.memory_space<vmem>>, vector<104x256xf32>
      %c0_12 = arith.constant 0 : index
      %c0_13 = arith.constant 0 : index
      %13 = vector.load %arg5[%c0_12, %c0_13] : memref<1x256xf32, #tpu.memory_space<vmem>>, vector<1x256xf32>
      %14 = vector.broadcast %13 : vector<1x256xf32> to vector<104x256xf32>
      %15 = arith.addf %12, %14 : vector<104x256xf32>
      %cst_14 = arith.constant 0.000000e+00 : f32
      %16 = vector.broadcast %cst_14 : f32 to vector<104x256xf32>
      %17 = arith.maximumf %15, %16 : vector<104x256xf32>
      %18 = arith.truncf %17 : vector<104x256xf32> to vector<104x256xbf16>
      %c0_15 = arith.constant 0 : index
      %c0_16 = arith.constant 0 : index
      %19 = vector.load %arg6[%c0_15, %c0_16] : memref<104x256xbf16, #tpu.memory_space<vmem>>, vector<104x256xbf16>
      tpu.vector_store %arg6[%c0_15, %c0_16], %18 {strides = array<i32>} : memref<104x256xbf16, #tpu.memory_space<vmem>>, vector<104x256xbf16>,
    } else {
    }
    return
  }
  func.func @transform_0(%arg0: i32, %arg1: i32, %arg2: i32) -> (i32, i32) {
    %c0_i32 = arith.constant 0 : i32
    return %arg0, %arg2 : i32, i32
  }
  func.func @transform_1(%arg0: i32, %arg1: i32, %arg2: i32) -> (i32, i32) {
    %c0_i32 = arith.constant 0 : i32
    return %arg2, %arg1 : i32, i32
  }
  func.func @transform_2(%arg0: i32, %arg1: i32, %arg2: i32) -> (i32, i32) {
    %c0_i32 = arith.constant 0 : i32
    %c0_i32_0 = arith.constant 0 : i32
    return %c0_i32, %arg1 : i32, i32
  }
  func.func @transform_3(%arg0: i32, %arg1: i32, %arg2: i32) -> (i32, i32) {
    %c0_i32 = arith.constant 0 : i32
    return %arg0, %arg1 : i32, i32
  }
}

module attributes {stable_mosaic.version = 11 : i64} {
  func.func @_maxpool_kernel(%arg0: i32, %arg1: memref<9x24x192xbf16, #tpu.memory_space<vmem>>, %arg2: memref<24x192xbf16, #tpu.memory_space<vmem>>) attributes {dimension_semantics = [#tpu.dimension_semantics<parallel>], iteration_bounds = array<i64: 1>, scalar_prefetch = 0 : i64, scratch_operands = 0 : i64, tpu.core_type = #tpu.core_type<tc>, window_params = [{transform_indices = @transform_0, window_bounds = array<i64: 9, 24, 192>}, {transform_indices = @transform_1, window_bounds = array<i64: 24, 192>}]} {
    %c0 = arith.constant 0 : index
    %c0_0 = arith.constant 0 : index
    %c0_1 = arith.constant 0 : index
    %0 = vector.load %arg1[%c0, %c0_0, %c0_1] : memref<9x24x192xbf16, #tpu.memory_space<vmem>>, vector<1x24x192xbf16>
    %1 = vector.shape_cast %0 : vector<1x24x192xbf16> to vector<24x192xbf16>
    %c1 = arith.constant 1 : index
    %c0_2 = arith.constant 0 : index
    %c0_3 = arith.constant 0 : index
    %2 = vector.load %arg1[%c1, %c0_2, %c0_3] : memref<9x24x192xbf16, #tpu.memory_space<vmem>>, vector<1x24x192xbf16>
    %3 = vector.shape_cast %2 : vector<1x24x192xbf16> to vector<24x192xbf16>
    %4 = arith.maximumf %1, %3 : vector<24x192xbf16>
    %c2 = arith.constant 2 : index
    %c0_4 = arith.constant 0 : index
    %c0_5 = arith.constant 0 : index
    %5 = vector.load %arg1[%c2, %c0_4, %c0_5] : memref<9x24x192xbf16, #tpu.memory_space<vmem>>, vector<1x24x192xbf16>
    %6 = vector.shape_cast %5 : vector<1x24x192xbf16> to vector<24x192xbf16>
    %7 = arith.maximumf %4, %6 : vector<24x192xbf16>
    %c3 = arith.constant 3 : index
    %c0_6 = arith.constant 0 : index
    %c0_7 = arith.constant 0 : index
    %8 = vector.load %arg1[%c3, %c0_6, %c0_7] : memref<9x24x192xbf16, #tpu.memory_space<vmem>>, vector<1x24x192xbf16>
    %9 = vector.shape_cast %8 : vector<1x24x192xbf16> to vector<24x192xbf16>
    %10 = arith.maximumf %7, %9 : vector<24x192xbf16>
    %c4 = arith.constant 4 : index
    %c0_8 = arith.constant 0 : index
    %c0_9 = arith.constant 0 : index
    %11 = vector.load %arg1[%c4, %c0_8, %c0_9] : memref<9x24x192xbf16, #tpu.memory_space<vmem>>, vector<1x24x192xbf16>
    %12 = vector.shape_cast %11 : vector<1x24x192xbf16> to vector<24x192xbf16>
    %13 = arith.maximumf %10, %12 : vector<24x192xbf16>
    %c5 = arith.constant 5 : index
    %c0_10 = arith.constant 0 : index
    %c0_11 = arith.constant 0 : index
    %14 = vector.load %arg1[%c5, %c0_10, %c0_11] : memref<9x24x192xbf16, #tpu.memory_space<vmem>>, vector<1x24x192xbf16>
    %15 = vector.shape_cast %14 : vector<1x24x192xbf16> to vector<24x192xbf16>
    %16 = arith.maximumf %13, %15 : vector<24x192xbf16>
    %c6 = arith.constant 6 : index
    %c0_12 = arith.constant 0 : index
    %c0_13 = arith.constant 0 : index
    %17 = vector.load %arg1[%c6, %c0_12, %c0_13] : memref<9x24x192xbf16, #tpu.memory_space<vmem>>, vector<1x24x192xbf16>
    %18 = vector.shape_cast %17 : vector<1x24x192xbf16> to vector<24x192xbf16>
    %19 = arith.maximumf %16, %18 : vector<24x192xbf16>
    %c7 = arith.constant 7 : index
    %c0_14 = arith.constant 0 : index
    %c0_15 = arith.constant 0 : index
    %20 = vector.load %arg1[%c7, %c0_14, %c0_15] : memref<9x24x192xbf16, #tpu.memory_space<vmem>>, vector<1x24x192xbf16>
    %21 = vector.shape_cast %20 : vector<1x24x192xbf16> to vector<24x192xbf16>
    %22 = arith.maximumf %19, %21 : vector<24x192xbf16>
    %c8 = arith.constant 8 : index
    %c0_16 = arith.constant 0 : index
    %c0_17 = arith.constant 0 : index
    %23 = vector.load %arg1[%c8, %c0_16, %c0_17] : memref<9x24x192xbf16, #tpu.memory_space<vmem>>, vector<1x24x192xbf16>
    %24 = vector.shape_cast %23 : vector<1x24x192xbf16> to vector<24x192xbf16>
    %25 = arith.maximumf %22, %24 : vector<24x192xbf16>
    %c0_18 = arith.constant 0 : index
    %c0_19 = arith.constant 0 : index
    %26 = vector.load %arg2[%c0_18, %c0_19] : memref<24x192xbf16, #tpu.memory_space<vmem>>, vector<24x192xbf16>
    tpu.vector_store %arg2[%c0_18, %c0_19], %25 {strides = array<i32>} : memref<24x192xbf16, #tpu.memory_space<vmem>>, vector<24x192xbf16>,
    return
  }
  func.func @transform_0(%arg0: i32) -> (i32, i32, i32) {
    %c0_i32 = arith.constant 0 : i32
    %c0_i32_0 = arith.constant 0 : i32
    %c0_i32_1 = arith.constant 0 : i32
    return %c0_i32, %arg0, %c0_i32_0 : i32, i32, i32
  }
  func.func @transform_1(%arg0: i32) -> (i32, i32) {
    %c0_i32 = arith.constant 0 : i32
    %c0_i32_0 = arith.constant 0 : i32
    return %arg0, %c0_i32 : i32, i32
  }
}

module attributes {stable_mosaic.version = 11 : i64} {
  func.func @_matmul_bias_kernel(%arg0: i32, %arg1: i32, %arg2: i32, %arg3: memref<24x1792xbf16, #tpu.memory_space<vmem>>, %arg4: memref<1792x256xbf16, #tpu.memory_space<vmem>>, %arg5: memref<1x256xf32, #tpu.memory_space<vmem>>, %arg6: memref<24x256xbf16, #tpu.memory_space<vmem>>, %arg7: memref<24x256xf32, #tpu.memory_space<vmem>>) attributes {dimension_semantics = [#tpu.dimension_semantics<parallel>, #tpu.dimension_semantics<parallel>, #tpu.dimension_semantics<arbitrary>], iteration_bounds = array<i64: 1, 2, 1>, scalar_prefetch = 0 : i64, scratch_operands = 1 : i64, tpu.core_type = #tpu.core_type<tc>, window_params = [{transform_indices = @transform_0, window_bounds = array<i64: 24, 1792>}, {transform_indices = @transform_1, window_bounds = array<i64: 1792, 256>}, {transform_indices = @transform_2, window_bounds = array<i64: 1, 256>}, {transform_indices = @transform_3, window_bounds = array<i64: 24, 256>}]} {
    %c0_i32 = arith.constant 0 : i32
    %0 = arith.cmpi eq, %arg2, %c0_i32 : i32
    %1 = arith.extui %0 : i1 to i32
    %c0_i32_0 = arith.constant 0 : i32
    %2 = arith.cmpi ne, %1, %c0_i32_0 : i32
    scf.if %2 {
      %cst_10 = arith.constant 0.000000e+00 : f32
      %12 = vector.broadcast %cst_10 : f32 to vector<24x256xf32>
      %c0_11 = arith.constant 0 : index
      %c0_12 = arith.constant 0 : index
      %13 = vector.load %arg7[%c0_11, %c0_12] : memref<24x256xf32, #tpu.memory_space<vmem>>, vector<24x256xf32>
      tpu.vector_store %arg7[%c0_11, %c0_12], %12 {strides = array<i32>} : memref<24x256xf32, #tpu.memory_space<vmem>>, vector<24x256xf32>,
    } else {
    }
    %c0 = arith.constant 0 : index
    %c0_1 = arith.constant 0 : index
    %3 = vector.load %arg7[%c0, %c0_1] : memref<24x256xf32, #tpu.memory_space<vmem>>, vector<24x256xf32>
    %c0_2 = arith.constant 0 : index
    %c0_3 = arith.constant 0 : index
    %4 = vector.load %arg3[%c0_2, %c0_3] : memref<24x1792xbf16, #tpu.memory_space<vmem>>, vector<24x1792xbf16>
    %c0_4 = arith.constant 0 : index
    %c0_5 = arith.constant 0 : index
    %5 = vector.load %arg4[%c0_4, %c0_5] : memref<1792x256xbf16, #tpu.memory_space<vmem>>, vector<1792x256xbf16>
    %cst = arith.constant dense<0.000000e+00> : vector<24x256xf32>
    %6 = tpu.matmul %4, %5, %cst {dimension_numbers = #tpu.dot_dimension_numbers<[1], [0], [0], [1], [0, 0, 1, 1], [], []>} : vector<24x1792xbf16>, vector<1792x256xbf16>, vector<24x256xf32> -> vector<24x256xf32>
    %7 = arith.addf %3, %6 : vector<24x256xf32>
    %c0_6 = arith.constant 0 : index
    %c0_7 = arith.constant 0 : index
    %8 = vector.load %arg7[%c0_6, %c0_7] : memref<24x256xf32, #tpu.memory_space<vmem>>, vector<24x256xf32>
    tpu.vector_store %arg7[%c0_6, %c0_7], %7 {strides = array<i32>} : memref<24x256xf32, #tpu.memory_space<vmem>>, vector<24x256xf32>,
    %c0_i32_8 = arith.constant 0 : i32
    %9 = arith.cmpi eq, %arg2, %c0_i32_8 : i32
    %10 = arith.extui %9 : i1 to i32
    %c0_i32_9 = arith.constant 0 : i32
    %11 = arith.cmpi ne, %10, %c0_i32_9 : i32
    scf.if %11 {
      %c0_10 = arith.constant 0 : index
      %c0_11 = arith.constant 0 : index
      %12 = vector.load %arg7[%c0_10, %c0_11] : memref<24x256xf32, #tpu.memory_space<vmem>>, vector<24x256xf32>
      %c0_12 = arith.constant 0 : index
      %c0_13 = arith.constant 0 : index
      %13 = vector.load %arg5[%c0_12, %c0_13] : memref<1x256xf32, #tpu.memory_space<vmem>>, vector<1x256xf32>
      %14 = vector.broadcast %13 : vector<1x256xf32> to vector<24x256xf32>
      %15 = arith.addf %12, %14 : vector<24x256xf32>
      %cst_14 = arith.constant 0.000000e+00 : f32
      %16 = vector.broadcast %cst_14 : f32 to vector<24x256xf32>
      %17 = arith.maximumf %15, %16 : vector<24x256xf32>
      %18 = arith.truncf %17 : vector<24x256xf32> to vector<24x256xbf16>
      %c0_15 = arith.constant 0 : index
      %c0_16 = arith.constant 0 : index
      %19 = vector.load %arg6[%c0_15, %c0_16] : memref<24x256xbf16, #tpu.memory_space<vmem>>, vector<24x256xbf16>
      tpu.vector_store %arg6[%c0_15, %c0_16], %18 {strides = array<i32>} : memref<24x256xbf16, #tpu.memory_space<vmem>>, vector<24x256xbf16>,
    } else {
    }
    return
  }
  func.func @transform_0(%arg0: i32, %arg1: i32, %arg2: i32) -> (i32, i32) {
    %c0_i32 = arith.constant 0 : i32
    return %arg0, %arg2 : i32, i32
  }
  func.func @transform_1(%arg0: i32, %arg1: i32, %arg2: i32) -> (i32, i32) {
    %c0_i32 = arith.constant 0 : i32
    return %arg2, %arg1 : i32, i32
  }
  func.func @transform_2(%arg0: i32, %arg1: i32, %arg2: i32) -> (i32, i32) {
    %c0_i32 = arith.constant 0 : i32
    %c0_i32_0 = arith.constant 0 : i32
    return %c0_i32, %arg1 : i32, i32
  }
  func.func @transform_3(%arg0: i32, %arg1: i32, %arg2: i32) -> (i32, i32) {
    %c0_i32 = arith.constant 0 : i32
    return %arg0, %arg1 : i32, i32
  }
}

module attributes {stable_mosaic.version = 11 : i64} {
  func.func @_matmul_bias_kernel(%arg0: i32, %arg1: i32, %arg2: i32, %arg3: memref<24x384xbf16, #tpu.memory_space<vmem>>, %arg4: memref<384x256xbf16, #tpu.memory_space<vmem>>, %arg5: memref<1x256xf32, #tpu.memory_space<vmem>>, %arg6: memref<24x256xbf16, #tpu.memory_space<vmem>>, %arg7: memref<24x256xf32, #tpu.memory_space<vmem>>) attributes {dimension_semantics = [#tpu.dimension_semantics<parallel>, #tpu.dimension_semantics<parallel>, #tpu.dimension_semantics<arbitrary>], iteration_bounds = array<i64: 1, 1, 9>, scalar_prefetch = 0 : i64, scratch_operands = 1 : i64, tpu.core_type = #tpu.core_type<tc>, window_params = [{transform_indices = @transform_0, window_bounds = array<i64: 24, 384>}, {transform_indices = @transform_1, window_bounds = array<i64: 384, 256>}, {transform_indices = @transform_2, window_bounds = array<i64: 1, 256>}, {transform_indices = @transform_3, window_bounds = array<i64: 24, 256>}]} {
    %c0_i32 = arith.constant 0 : i32
    %0 = arith.cmpi eq, %arg2, %c0_i32 : i32
    %1 = arith.extui %0 : i1 to i32
    %c0_i32_0 = arith.constant 0 : i32
    %2 = arith.cmpi ne, %1, %c0_i32_0 : i32
    scf.if %2 {
      %cst_9 = arith.constant 0.000000e+00 : f32
      %12 = vector.broadcast %cst_9 : f32 to vector<24x256xf32>
      %c0_10 = arith.constant 0 : index
      %c0_11 = arith.constant 0 : index
      %13 = vector.load %arg7[%c0_10, %c0_11] : memref<24x256xf32, #tpu.memory_space<vmem>>, vector<24x256xf32>
      tpu.vector_store %arg7[%c0_10, %c0_11], %12 {strides = array<i32>} : memref<24x256xf32, #tpu.memory_space<vmem>>, vector<24x256xf32>,
    } else {
    }
    %c0 = arith.constant 0 : index
    %c0_1 = arith.constant 0 : index
    %3 = vector.load %arg7[%c0, %c0_1] : memref<24x256xf32, #tpu.memory_space<vmem>>, vector<24x256xf32>
    %c0_2 = arith.constant 0 : index
    %c0_3 = arith.constant 0 : index
    %4 = vector.load %arg3[%c0_2, %c0_3] : memref<24x384xbf16, #tpu.memory_space<vmem>>, vector<24x384xbf16>
    %c0_4 = arith.constant 0 : index
    %c0_5 = arith.constant 0 : index
    %5 = vector.load %arg4[%c0_4, %c0_5] : memref<384x256xbf16, #tpu.memory_space<vmem>>, vector<384x256xbf16>
    %cst = arith.constant dense<0.000000e+00> : vector<24x256xf32>
    %6 = tpu.matmul %4, %5, %cst {dimension_numbers = #tpu.dot_dimension_numbers<[1], [0], [0], [1], [0, 0, 1, 1], [], []>} : vector<24x384xbf16>, vector<384x256xbf16>, vector<24x256xf32> -> vector<24x256xf32>
    %7 = arith.addf %3, %6 : vector<24x256xf32>
    %c0_6 = arith.constant 0 : index
    %c0_7 = arith.constant 0 : index
    %8 = vector.load %arg7[%c0_6, %c0_7] : memref<24x256xf32, #tpu.memory_space<vmem>>, vector<24x256xf32>
    tpu.vector_store %arg7[%c0_6, %c0_7], %7 {strides = array<i32>} : memref<24x256xf32, #tpu.memory_space<vmem>>, vector<24x256xf32>,
    %c8_i32 = arith.constant 8 : i32
    %9 = arith.cmpi eq, %arg2, %c8_i32 : i32
    %10 = arith.extui %9 : i1 to i32
    %c0_i32_8 = arith.constant 0 : i32
    %11 = arith.cmpi ne, %10, %c0_i32_8 : i32
    scf.if %11 {
      %c0_9 = arith.constant 0 : index
      %c0_10 = arith.constant 0 : index
      %12 = vector.load %arg7[%c0_9, %c0_10] : memref<24x256xf32, #tpu.memory_space<vmem>>, vector<24x256xf32>
      %c0_11 = arith.constant 0 : index
      %c0_12 = arith.constant 0 : index
      %13 = vector.load %arg5[%c0_11, %c0_12] : memref<1x256xf32, #tpu.memory_space<vmem>>, vector<1x256xf32>
      %14 = vector.broadcast %13 : vector<1x256xf32> to vector<24x256xf32>
      %15 = arith.addf %12, %14 : vector<24x256xf32>
      %cst_13 = arith.constant 0.000000e+00 : f32
      %16 = vector.broadcast %cst_13 : f32 to vector<24x256xf32>
      %17 = arith.maximumf %15, %16 : vector<24x256xf32>
      %18 = arith.truncf %17 : vector<24x256xf32> to vector<24x256xbf16>
      %c0_14 = arith.constant 0 : index
      %c0_15 = arith.constant 0 : index
      %19 = vector.load %arg6[%c0_14, %c0_15] : memref<24x256xbf16, #tpu.memory_space<vmem>>, vector<24x256xbf16>
      tpu.vector_store %arg6[%c0_14, %c0_15], %18 {strides = array<i32>} : memref<24x256xbf16, #tpu.memory_space<vmem>>, vector<24x256xbf16>,
    } else {
    }
    return
  }
  func.func @transform_0(%arg0: i32, %arg1: i32, %arg2: i32) -> (i32, i32) {
    %c0_i32 = arith.constant 0 : i32
    return %arg0, %arg2 : i32, i32
  }
  func.func @transform_1(%arg0: i32, %arg1: i32, %arg2: i32) -> (i32, i32) {
    %c0_i32 = arith.constant 0 : i32
    return %arg2, %arg1 : i32, i32
  }
  func.func @transform_2(%arg0: i32, %arg1: i32, %arg2: i32) -> (i32, i32) {
    %c0_i32 = arith.constant 0 : i32
    %c0_i32_0 = arith.constant 0 : i32
    return %c0_i32, %arg1 : i32, i32
  }
  func.func @transform_3(%arg0: i32, %arg1: i32, %arg2: i32) -> (i32, i32) {
    %c0_i32 = arith.constant 0 : i32
    return %arg0, %arg1 : i32, i32
  }
}

module attributes {stable_mosaic.version = 11 : i64} {
  func.func @_matmul_bias_kernel(%arg0: i32, %arg1: i32, %arg2: i32, %arg3: memref<24x384xbf16, #tpu.memory_space<vmem>>, %arg4: memref<384x256xbf16, #tpu.memory_space<vmem>>, %arg5: memref<1x256xf32, #tpu.memory_space<vmem>>, %arg6: memref<24x256xbf16, #tpu.memory_space<vmem>>, %arg7: memref<24x256xf32, #tpu.memory_space<vmem>>) attributes {dimension_semantics = [#tpu.dimension_semantics<parallel>, #tpu.dimension_semantics<parallel>, #tpu.dimension_semantics<arbitrary>], iteration_bounds = array<i64: 1, 1, 6>, scalar_prefetch = 0 : i64, scratch_operands = 1 : i64, tpu.core_type = #tpu.core_type<tc>, window_params = [{transform_indices = @transform_0, window_bounds = array<i64: 24, 384>}, {transform_indices = @transform_1, window_bounds = array<i64: 384, 256>}, {transform_indices = @transform_2, window_bounds = array<i64: 1, 256>}, {transform_indices = @transform_3, window_bounds = array<i64: 24, 256>}]} {
    %c0_i32 = arith.constant 0 : i32
    %0 = arith.cmpi eq, %arg2, %c0_i32 : i32
    %1 = arith.extui %0 : i1 to i32
    %c0_i32_0 = arith.constant 0 : i32
    %2 = arith.cmpi ne, %1, %c0_i32_0 : i32
    scf.if %2 {
      %cst_9 = arith.constant 0.000000e+00 : f32
      %12 = vector.broadcast %cst_9 : f32 to vector<24x256xf32>
      %c0_10 = arith.constant 0 : index
      %c0_11 = arith.constant 0 : index
      %13 = vector.load %arg7[%c0_10, %c0_11] : memref<24x256xf32, #tpu.memory_space<vmem>>, vector<24x256xf32>
      tpu.vector_store %arg7[%c0_10, %c0_11], %12 {strides = array<i32>} : memref<24x256xf32, #tpu.memory_space<vmem>>, vector<24x256xf32>,
    } else {
    }
    %c0 = arith.constant 0 : index
    %c0_1 = arith.constant 0 : index
    %3 = vector.load %arg7[%c0, %c0_1] : memref<24x256xf32, #tpu.memory_space<vmem>>, vector<24x256xf32>
    %c0_2 = arith.constant 0 : index
    %c0_3 = arith.constant 0 : index
    %4 = vector.load %arg3[%c0_2, %c0_3] : memref<24x384xbf16, #tpu.memory_space<vmem>>, vector<24x384xbf16>
    %c0_4 = arith.constant 0 : index
    %c0_5 = arith.constant 0 : index
    %5 = vector.load %arg4[%c0_4, %c0_5] : memref<384x256xbf16, #tpu.memory_space<vmem>>, vector<384x256xbf16>
    %cst = arith.constant dense<0.000000e+00> : vector<24x256xf32>
    %6 = tpu.matmul %4, %5, %cst {dimension_numbers = #tpu.dot_dimension_numbers<[1], [0], [0], [1], [0, 0, 1, 1], [], []>} : vector<24x384xbf16>, vector<384x256xbf16>, vector<24x256xf32> -> vector<24x256xf32>
    %7 = arith.addf %3, %6 : vector<24x256xf32>
    %c0_6 = arith.constant 0 : index
    %c0_7 = arith.constant 0 : index
    %8 = vector.load %arg7[%c0_6, %c0_7] : memref<24x256xf32, #tpu.memory_space<vmem>>, vector<24x256xf32>
    tpu.vector_store %arg7[%c0_6, %c0_7], %7 {strides = array<i32>} : memref<24x256xf32, #tpu.memory_space<vmem>>, vector<24x256xf32>,
    %c5_i32 = arith.constant 5 : i32
    %9 = arith.cmpi eq, %arg2, %c5_i32 : i32
    %10 = arith.extui %9 : i1 to i32
    %c0_i32_8 = arith.constant 0 : i32
    %11 = arith.cmpi ne, %10, %c0_i32_8 : i32
    scf.if %11 {
      %c0_9 = arith.constant 0 : index
      %c0_10 = arith.constant 0 : index
      %12 = vector.load %arg7[%c0_9, %c0_10] : memref<24x256xf32, #tpu.memory_space<vmem>>, vector<24x256xf32>
      %c0_11 = arith.constant 0 : index
      %c0_12 = arith.constant 0 : index
      %13 = vector.load %arg5[%c0_11, %c0_12] : memref<1x256xf32, #tpu.memory_space<vmem>>, vector<1x256xf32>
      %14 = vector.broadcast %13 : vector<1x256xf32> to vector<24x256xf32>
      %15 = arith.addf %12, %14 : vector<24x256xf32>
      %cst_13 = arith.constant 0.000000e+00 : f32
      %16 = vector.broadcast %cst_13 : f32 to vector<24x256xf32>
      %17 = arith.maximumf %15, %16 : vector<24x256xf32>
      %18 = arith.truncf %17 : vector<24x256xf32> to vector<24x256xbf16>
      %c0_14 = arith.constant 0 : index
      %c0_15 = arith.constant 0 : index
      %19 = vector.load %arg6[%c0_14, %c0_15] : memref<24x256xbf16, #tpu.memory_space<vmem>>, vector<24x256xbf16>
      tpu.vector_store %arg6[%c0_14, %c0_15], %18 {strides = array<i32>} : memref<24x256xbf16, #tpu.memory_space<vmem>>, vector<24x256xbf16>,
    } else {
    }
    return
  }
  func.func @transform_0(%arg0: i32, %arg1: i32, %arg2: i32) -> (i32, i32) {
    %c0_i32 = arith.constant 0 : i32
    return %arg0, %arg2 : i32, i32
  }
  func.func @transform_1(%arg0: i32, %arg1: i32, %arg2: i32) -> (i32, i32) {
    %c0_i32 = arith.constant 0 : i32
    return %arg2, %arg1 : i32, i32
  }
  func.func @transform_2(%arg0: i32, %arg1: i32, %arg2: i32) -> (i32, i32) {
    %c0_i32 = arith.constant 0 : i32
    %c0_i32_0 = arith.constant 0 : i32
    return %c0_i32, %arg1 : i32, i32
  }
  func.func @transform_3(%arg0: i32, %arg1: i32, %arg2: i32) -> (i32, i32) {
    %c0_i32 = arith.constant 0 : i32
    return %arg0, %arg1 : i32, i32
  }
}

module attributes {stable_mosaic.version = 11 : i64} {
  func.func @_maxpool_kernel(%arg0: i32, %arg1: memref<9x8x256xbf16, #tpu.memory_space<vmem>>, %arg2: memref<8x256xbf16, #tpu.memory_space<vmem>>) attributes {dimension_semantics = [#tpu.dimension_semantics<parallel>], iteration_bounds = array<i64: 1>, scalar_prefetch = 0 : i64, scratch_operands = 0 : i64, tpu.core_type = #tpu.core_type<tc>, window_params = [{transform_indices = @transform_0, window_bounds = array<i64: 9, 8, 256>}, {transform_indices = @transform_1, window_bounds = array<i64: 8, 256>}]} {
    %c0 = arith.constant 0 : index
    %c0_0 = arith.constant 0 : index
    %c0_1 = arith.constant 0 : index
    %0 = vector.load %arg1[%c0, %c0_0, %c0_1] : memref<9x8x256xbf16, #tpu.memory_space<vmem>>, vector<1x8x256xbf16>
    %1 = vector.shape_cast %0 : vector<1x8x256xbf16> to vector<8x256xbf16>
    %c1 = arith.constant 1 : index
    %c0_2 = arith.constant 0 : index
    %c0_3 = arith.constant 0 : index
    %2 = vector.load %arg1[%c1, %c0_2, %c0_3] : memref<9x8x256xbf16, #tpu.memory_space<vmem>>, vector<1x8x256xbf16>
    %3 = vector.shape_cast %2 : vector<1x8x256xbf16> to vector<8x256xbf16>
    %4 = arith.maximumf %1, %3 : vector<8x256xbf16>
    %c2 = arith.constant 2 : index
    %c0_4 = arith.constant 0 : index
    %c0_5 = arith.constant 0 : index
    %5 = vector.load %arg1[%c2, %c0_4, %c0_5] : memref<9x8x256xbf16, #tpu.memory_space<vmem>>, vector<1x8x256xbf16>
    %6 = vector.shape_cast %5 : vector<1x8x256xbf16> to vector<8x256xbf16>
    %7 = arith.maximumf %4, %6 : vector<8x256xbf16>
    %c3 = arith.constant 3 : index
    %c0_6 = arith.constant 0 : index
    %c0_7 = arith.constant 0 : index
    %8 = vector.load %arg1[%c3, %c0_6, %c0_7] : memref<9x8x256xbf16, #tpu.memory_space<vmem>>, vector<1x8x256xbf16>
    %9 = vector.shape_cast %8 : vector<1x8x256xbf16> to vector<8x256xbf16>
    %10 = arith.maximumf %7, %9 : vector<8x256xbf16>
    %c4 = arith.constant 4 : index
    %c0_8 = arith.constant 0 : index
    %c0_9 = arith.constant 0 : index
    %11 = vector.load %arg1[%c4, %c0_8, %c0_9] : memref<9x8x256xbf16, #tpu.memory_space<vmem>>, vector<1x8x256xbf16>
    %12 = vector.shape_cast %11 : vector<1x8x256xbf16> to vector<8x256xbf16>
    %13 = arith.maximumf %10, %12 : vector<8x256xbf16>
    %c5 = arith.constant 5 : index
    %c0_10 = arith.constant 0 : index
    %c0_11 = arith.constant 0 : index
    %14 = vector.load %arg1[%c5, %c0_10, %c0_11] : memref<9x8x256xbf16, #tpu.memory_space<vmem>>, vector<1x8x256xbf16>
    %15 = vector.shape_cast %14 : vector<1x8x256xbf16> to vector<8x256xbf16>
    %16 = arith.maximumf %13, %15 : vector<8x256xbf16>
    %c6 = arith.constant 6 : index
    %c0_12 = arith.constant 0 : index
    %c0_13 = arith.constant 0 : index
    %17 = vector.load %arg1[%c6, %c0_12, %c0_13] : memref<9x8x256xbf16, #tpu.memory_space<vmem>>, vector<1x8x256xbf16>
    %18 = vector.shape_cast %17 : vector<1x8x256xbf16> to vector<8x256xbf16>
    %19 = arith.maximumf %16, %18 : vector<8x256xbf16>
    %c7 = arith.constant 7 : index
    %c0_14 = arith.constant 0 : index
    %c0_15 = arith.constant 0 : index
    %20 = vector.load %arg1[%c7, %c0_14, %c0_15] : memref<9x8x256xbf16, #tpu.memory_space<vmem>>, vector<1x8x256xbf16>
    %21 = vector.shape_cast %20 : vector<1x8x256xbf16> to vector<8x256xbf16>
    %22 = arith.maximumf %19, %21 : vector<8x256xbf16>
    %c8 = arith.constant 8 : index
    %c0_16 = arith.constant 0 : index
    %c0_17 = arith.constant 0 : index
    %23 = vector.load %arg1[%c8, %c0_16, %c0_17] : memref<9x8x256xbf16, #tpu.memory_space<vmem>>, vector<1x8x256xbf16>
    %24 = vector.shape_cast %23 : vector<1x8x256xbf16> to vector<8x256xbf16>
    %25 = arith.maximumf %22, %24 : vector<8x256xbf16>
    %c0_18 = arith.constant 0 : index
    %c0_19 = arith.constant 0 : index
    %26 = vector.load %arg2[%c0_18, %c0_19] : memref<8x256xbf16, #tpu.memory_space<vmem>>, vector<8x256xbf16>
    tpu.vector_store %arg2[%c0_18, %c0_19], %25 {strides = array<i32>} : memref<8x256xbf16, #tpu.memory_space<vmem>>, vector<8x256xbf16>,
    return
  }
  func.func @transform_0(%arg0: i32) -> (i32, i32, i32) {
    %c0_i32 = arith.constant 0 : i32
    %c0_i32_0 = arith.constant 0 : i32
    %c0_i32_1 = arith.constant 0 : i32
    return %c0_i32, %arg0, %c0_i32_0 : i32, i32, i32
  }
  func.func @transform_1(%arg0: i32) -> (i32, i32) {
    %c0_i32 = arith.constant 0 : i32
    %c0_i32_0 = arith.constant 0 : i32
    return %arg0, %c0_i32 : i32, i32
  }
}

module attributes {stable_mosaic.version = 11 : i64} {
  func.func @_matmul_bias_kernel(%arg0: i32, %arg1: i32, %arg2: i32, %arg3: memref<8x1024xbf16, #tpu.memory_space<vmem>>, %arg4: memref<1024x256xbf16, #tpu.memory_space<vmem>>, %arg5: memref<1x256xf32, #tpu.memory_space<vmem>>, %arg6: memref<8x256xbf16, #tpu.memory_space<vmem>>, %arg7: memref<8x256xf32, #tpu.memory_space<vmem>>) attributes {dimension_semantics = [#tpu.dimension_semantics<parallel>, #tpu.dimension_semantics<parallel>, #tpu.dimension_semantics<arbitrary>], iteration_bounds = array<i64: 1, 2, 9>, scalar_prefetch = 0 : i64, scratch_operands = 1 : i64, tpu.core_type = #tpu.core_type<tc>, window_params = [{transform_indices = @transform_0, window_bounds = array<i64: 8, 1024>}, {transform_indices = @transform_1, window_bounds = array<i64: 1024, 256>}, {transform_indices = @transform_2, window_bounds = array<i64: 1, 256>}, {transform_indices = @transform_3, window_bounds = array<i64: 8, 256>}]} {
    %c0_i32 = arith.constant 0 : i32
    %0 = arith.cmpi eq, %arg2, %c0_i32 : i32
    %1 = arith.extui %0 : i1 to i32
    %c0_i32_0 = arith.constant 0 : i32
    %2 = arith.cmpi ne, %1, %c0_i32_0 : i32
    scf.if %2 {
      %cst_9 = arith.constant 0.000000e+00 : f32
      %12 = vector.broadcast %cst_9 : f32 to vector<8x256xf32>
      %c0_10 = arith.constant 0 : index
      %c0_11 = arith.constant 0 : index
      %13 = vector.load %arg7[%c0_10, %c0_11] : memref<8x256xf32, #tpu.memory_space<vmem>>, vector<8x256xf32>
      tpu.vector_store %arg7[%c0_10, %c0_11], %12 {strides = array<i32>} : memref<8x256xf32, #tpu.memory_space<vmem>>, vector<8x256xf32>,
    } else {
    }
    %c0 = arith.constant 0 : index
    %c0_1 = arith.constant 0 : index
    %3 = vector.load %arg7[%c0, %c0_1] : memref<8x256xf32, #tpu.memory_space<vmem>>, vector<8x256xf32>
    %c0_2 = arith.constant 0 : index
    %c0_3 = arith.constant 0 : index
    %4 = vector.load %arg3[%c0_2, %c0_3] : memref<8x1024xbf16, #tpu.memory_space<vmem>>, vector<8x1024xbf16>
    %c0_4 = arith.constant 0 : index
    %c0_5 = arith.constant 0 : index
    %5 = vector.load %arg4[%c0_4, %c0_5] : memref<1024x256xbf16, #tpu.memory_space<vmem>>, vector<1024x256xbf16>
    %cst = arith.constant dense<0.000000e+00> : vector<8x256xf32>
    %6 = tpu.matmul %4, %5, %cst {dimension_numbers = #tpu.dot_dimension_numbers<[1], [0], [0], [1], [0, 0, 1, 1], [], []>} : vector<8x1024xbf16>, vector<1024x256xbf16>, vector<8x256xf32> -> vector<8x256xf32>
    %7 = arith.addf %3, %6 : vector<8x256xf32>
    %c0_6 = arith.constant 0 : index
    %c0_7 = arith.constant 0 : index
    %8 = vector.load %arg7[%c0_6, %c0_7] : memref<8x256xf32, #tpu.memory_space<vmem>>, vector<8x256xf32>
    tpu.vector_store %arg7[%c0_6, %c0_7], %7 {strides = array<i32>} : memref<8x256xf32, #tpu.memory_space<vmem>>, vector<8x256xf32>,
    %c8_i32 = arith.constant 8 : i32
    %9 = arith.cmpi eq, %arg2, %c8_i32 : i32
    %10 = arith.extui %9 : i1 to i32
    %c0_i32_8 = arith.constant 0 : i32
    %11 = arith.cmpi ne, %10, %c0_i32_8 : i32
    scf.if %11 {
      %c0_9 = arith.constant 0 : index
      %c0_10 = arith.constant 0 : index
      %12 = vector.load %arg7[%c0_9, %c0_10] : memref<8x256xf32, #tpu.memory_space<vmem>>, vector<8x256xf32>
      %c0_11 = arith.constant 0 : index
      %c0_12 = arith.constant 0 : index
      %13 = vector.load %arg5[%c0_11, %c0_12] : memref<1x256xf32, #tpu.memory_space<vmem>>, vector<1x256xf32>
      %14 = vector.broadcast %13 : vector<1x256xf32> to vector<8x256xf32>
      %15 = arith.addf %12, %14 : vector<8x256xf32>
      %cst_13 = arith.constant 0.000000e+00 : f32
      %16 = vector.broadcast %cst_13 : f32 to vector<8x256xf32>
      %17 = arith.maximumf %15, %16 : vector<8x256xf32>
      %18 = arith.truncf %17 : vector<8x256xf32> to vector<8x256xbf16>
      %c0_14 = arith.constant 0 : index
      %c0_15 = arith.constant 0 : index
      %19 = vector.load %arg6[%c0_14, %c0_15] : memref<8x256xbf16, #tpu.memory_space<vmem>>, vector<8x256xbf16>
      tpu.vector_store %arg6[%c0_14, %c0_15], %18 {strides = array<i32>} : memref<8x256xbf16, #tpu.memory_space<vmem>>, vector<8x256xbf16>,
    } else {
    }
    return
  }
  func.func @transform_0(%arg0: i32, %arg1: i32, %arg2: i32) -> (i32, i32) {
    %c0_i32 = arith.constant 0 : i32
    return %arg0, %arg2 : i32, i32
  }
  func.func @transform_1(%arg0: i32, %arg1: i32, %arg2: i32) -> (i32, i32) {
    %c0_i32 = arith.constant 0 : i32
    return %arg2, %arg1 : i32, i32
  }
  func.func @transform_2(%arg0: i32, %arg1: i32, %arg2: i32) -> (i32, i32) {
    %c0_i32 = arith.constant 0 : i32
    %c0_i32_0 = arith.constant 0 : i32
    return %c0_i32, %arg1 : i32, i32
  }
  func.func @transform_3(%arg0: i32, %arg1: i32, %arg2: i32) -> (i32, i32) {
    %c0_i32 = arith.constant 0 : i32
    return %arg0, %arg1 : i32, i32
  }
}

module attributes {stable_mosaic.version = 11 : i64} {
  func.func @_mlp_head_kernel(%arg0: i32, %arg1: memref<8x512xbf16, #tpu.memory_space<vmem>>, %arg2: memref<512x128xbf16, #tpu.memory_space<vmem>>, %arg3: memref<1x128xf32, #tpu.memory_space<vmem>>, %arg4: memref<128x128xbf16, #tpu.memory_space<vmem>>, %arg5: memref<1x128xf32, #tpu.memory_space<vmem>>, %arg6: memref<8x128xf32, #tpu.memory_space<vmem>>) attributes {dimension_semantics = [#tpu.dimension_semantics<parallel>], iteration_bounds = array<i64: 1>, scalar_prefetch = 0 : i64, scratch_operands = 0 : i64, tpu.core_type = #tpu.core_type<tc>, window_params = [{transform_indices = @transform_0, window_bounds = array<i64: 8, 512>}, {pipeline_mode = #tpu.pipeline_mode<synchronous>, transform_indices = @transform_1, window_bounds = array<i64: 512, 128>}, {pipeline_mode = #tpu.pipeline_mode<synchronous>, transform_indices = @transform_2, window_bounds = array<i64: 1, 128>}, {pipeline_mode = #tpu.pipeline_mode<synchronous>, transform_indices = @transform_3, window_bounds = array<i64: 128, 128>}, {pipeline_mode = #tpu.pipeline_mode<synchronous>, transform_indices = @transform_4, window_bounds = array<i64: 1, 128>}, {transform_indices = @transform_5, window_bounds = array<i64: 8, 128>}]} {
    %c0 = arith.constant 0 : index
    %c0_0 = arith.constant 0 : index
    %0 = vector.load %arg1[%c0, %c0_0] : memref<8x512xbf16, #tpu.memory_space<vmem>>, vector<8x512xbf16>
    %c0_1 = arith.constant 0 : index
    %c0_2 = arith.constant 0 : index
    %1 = vector.load %arg2[%c0_1, %c0_2] : memref<512x128xbf16, #tpu.memory_space<vmem>>, vector<512x128xbf16>
    %cst = arith.constant dense<0.000000e+00> : vector<8x128xf32>
    %2 = tpu.matmul %0, %1, %cst {dimension_numbers = #tpu.dot_dimension_numbers<[1], [0], [0], [1], [0, 0, 1, 1], [], []>} : vector<8x512xbf16>, vector<512x128xbf16>, vector<8x128xf32> -> vector<8x128xf32>
    %c0_3 = arith.constant 0 : index
    %c0_4 = arith.constant 0 : index
    %3 = vector.load %arg3[%c0_3, %c0_4] : memref<1x128xf32, #tpu.memory_space<vmem>>, vector<1x128xf32>
    %4 = vector.broadcast %3 : vector<1x128xf32> to vector<8x128xf32>
    %5 = arith.addf %2, %4 : vector<8x128xf32>
    %cst_5 = arith.constant 0.000000e+00 : f32
    %6 = vector.broadcast %cst_5 : f32 to vector<8x128xf32>
    %7 = arith.maximumf %5, %6 : vector<8x128xf32>
    %8 = arith.truncf %7 : vector<8x128xf32> to vector<8x128xbf16>
    %c0_6 = arith.constant 0 : index
    %c0_7 = arith.constant 0 : index
    %9 = vector.load %arg4[%c0_6, %c0_7] : memref<128x128xbf16, #tpu.memory_space<vmem>>, vector<128x128xbf16>
    %cst_8 = arith.constant dense<0.000000e+00> : vector<8x128xf32>
    %10 = tpu.matmul %8, %9, %cst_8 {dimension_numbers = #tpu.dot_dimension_numbers<[1], [0], [0], [1], [0, 0, 1, 1], [], []>} : vector<8x128xbf16>, vector<128x128xbf16>, vector<8x128xf32> -> vector<8x128xf32>
    %c0_9 = arith.constant 0 : index
    %c0_10 = arith.constant 0 : index
    %11 = vector.load %arg5[%c0_9, %c0_10] : memref<1x128xf32, #tpu.memory_space<vmem>>, vector<1x128xf32>
    %12 = vector.broadcast %11 : vector<1x128xf32> to vector<8x128xf32>
    %13 = arith.addf %10, %12 : vector<8x128xf32>
    %c0_11 = arith.constant 0 : index
    %c0_12 = arith.constant 0 : index
    %14 = vector.load %arg6[%c0_11, %c0_12] : memref<8x128xf32, #tpu.memory_space<vmem>>, vector<8x128xf32>
    tpu.vector_store %arg6[%c0_11, %c0_12], %13 {strides = array<i32>} : memref<8x128xf32, #tpu.memory_space<vmem>>, vector<8x128xf32>,
    return
  }
  func.func @transform_0(%arg0: i32) -> (i32, i32) {
    %c0_i32 = arith.constant 0 : i32
    %c0_i32_0 = arith.constant 0 : i32
    return %arg0, %c0_i32 : i32, i32
  }
  func.func @transform_1(%arg0: i32) -> (i32, i32) {
    %c0_i32 = arith.constant 0 : i32
    %c0_i32_0 = arith.constant 0 : i32
    %c0_i32_1 = arith.constant 0 : i32
    return %c0_i32, %c0_i32_0 : i32, i32
  }
  func.func @transform_2(%arg0: i32) -> (i32, i32) {
    %c0_i32 = arith.constant 0 : i32
    %c0_i32_0 = arith.constant 0 : i32
    %c0_i32_1 = arith.constant 0 : i32
    return %c0_i32, %c0_i32_0 : i32, i32
  }
  func.func @transform_3(%arg0: i32) -> (i32, i32) {
    %c0_i32 = arith.constant 0 : i32
    %c0_i32_0 = arith.constant 0 : i32
    %c0_i32_1 = arith.constant 0 : i32
    return %c0_i32, %c0_i32_0 : i32, i32
  }
  func.func @transform_4(%arg0: i32) -> (i32, i32) {
    %c0_i32 = arith.constant 0 : i32
    %c0_i32_0 = arith.constant 0 : i32
    %c0_i32_1 = arith.constant 0 : i32
    return %c0_i32, %c0_i32_0 : i32, i32
  }
  func.func @transform_5(%arg0: i32) -> (i32, i32) {
    %c0_i32 = arith.constant 0 : i32
    %c0_i32_0 = arith.constant 0 : i32
    return %arg0, %c0_i32 : i32, i32
  }
}

</mosaic_0001>

<bundles_post_ra>
// kernel: _lambda_.10
= control target key start
LH: loop header
LB: loop body
LE: loop exit
PB: predicated region body
PF: predicated region fallthrough
CT: control target
= control target key end

     0   :  { %s2216_s12 = smov 0   ;;  %s2218_s13 = smov 0   ;;  %s2460_s0 = inlined_call_operand.vmem [shape: bf16[512,384], index: 0, kind: input, shape index: {}]   ;;  %s2461_s1 = inlined_call_operand.vmem [shape: bf16[384,128], index: 1, kind: input, shape index: {}]   ;;  %s2462_s2 = inlined_call_operand.vmem [shape: f32[1,128], index: 2, kind: input, shape index: {}]   ;;  %s2463_s3 = inlined_call_operand.vmem [shape: bf16[512,128], index: 3, kind: output, shape index: {}]  }
   0x1   :  { %s2220_s14 = smov 0  }
   0x2 LB: > { %s32_s15 = sadd.s32 1, %s2190_s13  ;;  %p1620_p0 = scmp.ge.s32.totalorder %s2194_s14, 1  ;;  %s2194_s14 = sphi %s2220_s14, %s13_s14   ;;  %s2190_s13 = sphi %s2218_s13, %s2465_s13   ;;  %s2186_s12 = sphi %s2216_s12, %s2464_s12  }
   0x3   : > { %p34_p1 = scmp.ge.s32.totalorder %s32_s15, 2  ;;  %p191_p2 = scmp.lt.s32.totalorder %s2194_s14, 3 }
   0x5   : > { %s2467_s15 = smov (%p34_p1, %s32_s15), 0  ;;  %p192_p3 = pnand %p1620_p0, %p191_p2 }
   0x6   : > { %v2084_v0 = vld [vmem:[%s2461_s1 + $0x40] sm:$0xff] (!%p192_p3)   ;;  %s1621_s18 = sshll.u32 (!%p192_p3), %s2186_s12, 5  ;;  %v2086_v2 = vld [vmem:[%s2461_s1 + $0x48] sm:$0xff] (!%p192_p3)   ;;  %v2088_v4 = vld [vmem:[%s2461_s1 + $0x50] sm:$0xff] (!%p192_p3)  }
   0x7   : > { %195 = sbr.rel (%p192_p3) target bundleno = 353 (0x161), region = 32  ;;  %v2085_v1 = vld [vmem:[%s2461_s1] sm:$0xff] (!%p192_p3)   ;;  %1859 = vmatprep.subr.bf16.mxu0 (!%p192_p3), %v2084_v0  ;;  %2043 = vmatprep.subr.bf16.mxu1 (!%p192_p3), %v2084_v0  ;;  %p236_p4 = scmp.lt.s32.totalorder (!%p192_p3), %s1621_s18, 63  ;;  %v2087_v3 = vld [vmem:[%s2461_s1 + $0x8] sm:$0xff] (!%p192_p3)   ;;  %v2089_v5 = vld [vmem:[%s2461_s1 + $0x10] sm:$0xff] (!%p192_p3)  }
   0x8   : > { %1860 = vmatpush3.bf16.msra.mxu0 (!%p192_p3), %v2085_v1  ;;  %2051 = vmatpush3.bf16.msra.mxu1 (!%p192_p3), %v2085_v1  ;;  %v2090_v6 = vld [vmem:[%s2461_s1 + $0x58] sm:$0xff] (!%p192_p3)   ;;  %v2092_v8 = vld [vmem:[%s2461_s1 + $0x60] sm:$0xff] (!%p192_p3)   ;;  %v2094_v10 = vld [vmem:[%s2461_s1 + $0x68] sm:$0xff] (!%p192_p3)  }
   0x9   : > { %1861 = vmatprep.subr.bf16.mxu0 (!%p192_p3), %v2086_v2  ;;  %2044 = vmatprep.subr.bf16.mxu1 (!%p192_p3), %v2086_v2  ;;  %v2091_v7 = vld [vmem:[%s2461_s1 + $0x18] sm:$0xff] (!%p192_p3)   ;;  %v2093_v9 = vld [vmem:[%s2461_s1 + $0x20] sm:$0xff] (!%p192_p3)   ;;  %v2095_v13 = vld [vmem:[%s2461_s1 + $0x28] sm:$0xff] (!%p192_p3)  }
   0xa   : > { %v2096_v14 = vld [vmem:[%s2461_s1 + $0x70] sm:$0xff] (!%p192_p3)   ;;  %v2098_v16 = vld [vmem:[%s2461_s1 + $0x78] sm:$0xff] (!%p192_p3)   ;;  %v2106_v18 = vld [vmem:[%s2461_s1 + $0x80] sm:$0xff] (!%p192_p3)  }
   0xb   : > { %v2097_v15 = vld [vmem:[%s2461_s1 + $0x30] sm:$0xff] (!%p192_p3)   ;;  %v2099_v17 = vld [vmem:[%s2461_s1 + $0x38] sm:$0xff] (!%p192_p3)   ;;  %v2107_v22 = vld [vmem:[%s2461_s1 + $0x88] sm:$0xff] (!%p192_p3)  }
   0xc   : > { %1862 = vmatpush3.bf16.msra.mxu0 (!%p192_p3), %v2087_v3  ;;  %2052 = vmatpush3.bf16.msra.mxu1 (!%p192_p3), %v2087_v3  ;;  %v2114_v25 = vld [vmem:[%s2461_s1 + $0x90] sm:$0xff] (!%p192_p3)   ;;  %v2115_v27 = vld [vmem:[%s2461_s1 + $0x98] sm:$0xff] (!%p192_p3)   ;;  %v2122_v30 = vld [vmem:[%s2461_s1 + $0xa0] sm:$0xff] (!%p192_p3)  }
   0xd   : > { %1863 = vmatprep.subr.bf16.mxu0 (!%p192_p3), %v2088_v4  ;;  %2045 = vmatprep.subr.bf16.mxu1 (!%p192_p3), %v2088_v4  ;;  %v2123_v33 = vld [vmem:[%s2461_s1 + $0xa8] sm:$0xff] (!%p192_p3)   ;;  %v2130_v36 = vld [vmem:[%s2461_s1 + $0xb0] sm:$0xff] (!%p192_p3)   ;;  %v2131_v40 = vld [vmem:[%s2461_s1 + $0xb8] sm:$0xff] (!%p192_p3)  }
   0xe   : > { %s2469_s18 = smov (!%p236_p4, %s1621_s18), 63 }
   0xf   : > { %s2059_s4 = smul.u32 12, %s2469_s18  ;;  %s1624_s25 = sshll.u32 %s2469_s18, 2 }
  0x10   : > { %1864 = vmatpush3.bf16.msra.mxu0 %v2089_v5  ;;  %2053 = vmatpush3.bf16.msra.mxu1 %v2089_v5  ;;  %s2391_s28 = scalar_lea.vmem %s2463_s3, %s1624_s25 }
  0x11   : > { %1865 = vmatprep.subr.bf16.mxu0 %v2090_v6  ;;  %2046 = vmatprep.subr.bf16.mxu1 %v2090_v6  ;;  %s2267_s11 = scalar_lea.vmem %s2460_s0, %s2059_s4 }
  0x12   : > { %v2102_v11 = vld [vmem:[%s2267_s11 + $0x4] ss:$12 sps:$4 sm:$0xff]   ;;  %v2100_v19 = vld [vmem:[%s2267_s11] ss:$12 sps:$4 sm:$0xff]   ;;  %v2108_v21 = vld [vmem:[%s2267_s11 + $0x1c] ss:$12 sps:$4 sm:$0xff]  }
  0x13   : > { %v2105_v12 = vld [vmem:[%s2267_s11 + $0x124] ss:$12 sps:$4 sm:$0xff]   ;;  %880 = vmatprep.mubr.bf16.mxu0 %v2102_v11  ;;  %v2103_v20 = vld [vmem:[%s2267_s11 + $0x120] ss:$12 sps:$4 sm:$0xff]   ;;  %v2110_v23 = vld [vmem:[%s2267_s11 + $0x13c] ss:$12 sps:$4 sm:$0xff]  }
  0x14   : > { %1866 = vmatpush3.bf16.msra.mxu0 %v2091_v7  ;;  %2054 = vmatpush3.bf16.msra.mxu1 %v2091_v7  ;;  %v2112_v24 = vld [vmem:[%s2267_s11 + $0x18] ss:$12 sps:$4 sm:$0xff]   ;;  %v2116_v28 = vld [vmem:[%s2267_s11 + $0x34] ss:$12 sps:$4 sm:$0xff]   ;;  %v2120_v31 = vld [vmem:[%s2267_s11 + $0x30] ss:$12 sps:$4 sm:$0xff]  }
  0x15   : > { %1867 = vmatprep.subr.bf16.mxu0 %v2092_v8  ;;  %2047 = vmatprep.subr.bf16.mxu1 %v2092_v8  ;;  %v2113_v26 = vld [vmem:[%s2267_s11 + $0x138] ss:$12 sps:$4 sm:$0xff]   ;;  %v2118_v29 = vld [vmem:[%s2267_s11 + $0x154] ss:$12 sps:$4 sm:$0xff]   ;;  %v2121_v32 = vld [vmem:[%s2267_s11 + $0x150] ss:$12 sps:$4 sm:$0xff]  }
  0x16   : > { %976 = vmatprep.mubr.bf16.mxu1 %v2105_v12  ;;  %v2124_v34 = vld [vmem:[%s2267_s11 + $0x4c] ss:$12 sps:$4 sm:$0xff]   ;;  %v2128_v37 = vld [vmem:[%s2267_s11 + $0x48] ss:$12 sps:$4 sm:$0xff]   ;;  %v2132_v39 = vld [vmem:[%s2267_s11 + $0x64] ss:$12 sps:$4 sm:$0xff]  }
  0x17   : > { %v2126_v35 = vld [vmem:[%s2267_s11 + $0x16c] ss:$12 sps:$4 sm:$0xff]   ;;  %v2129_v38 = vld [vmem:[%s2267_s11 + $0x168] ss:$12 sps:$4 sm:$0xff]   ;;  %v2141_v47 = vld [vmem:[%s2267_s11 + $0x50] ss:$12 sps:$4 sm:$0xff]  }
  0x18   : > { %1868 = vmatpush3.bf16.msra.mxu0 %v2093_v9  ;;  %2055 = vmatpush3.bf16.msra.mxu1 %v2093_v9  ;;  %v2134_v41 = vld [vmem:[%s2267_s11 + $0x8] ss:$12 sps:$4 sm:$0xff]   ;;  %v2135_v42 = vld [vmem:[%s2267_s11 + $0x60] ss:$12 sps:$4 sm:$0xff]   ;;  %v2139_v45 = vld [vmem:[%s2267_s11 + $0x38] ss:$12 sps:$4 sm:$0xff]  }
  0x19   : > { %1869 = vmatprep.subr.bf16.mxu0 %v2094_v10  ;;  %2048 = vmatprep.subr.bf16.mxu1 %v2094_v10  ;;  %v2136_v43 = vld [vmem:[%s2267_s11 + $0x20] ss:$12 sps:$4 sm:$0xff]   ;;  %v2137_v44 = vld [vmem:[%s2267_s11 + $0x7c] ss:$12 sps:$4 sm:$0xff]   ;;  %v2140_v46 = vld [vmem:[%s2267_s11 + $0x78] ss:$12 sps:$4 sm:$0xff]  }
  0x1a   : > { %v2142_v48 = vld [vmem:[%s2267_s11 + $0x94] ss:$12 sps:$4 sm:$0xff]   ;;  %v2145_v50 = vld [vmem:[%s2267_s11 + $0x90] ss:$12 sps:$4 sm:$0xff]   ;;  %v2147_v52 = vld [vmem:[%s2267_s11 + $0xac] ss:$12 sps:$4 sm:$0xff]  }
  0x1b   : > { %v2144_v49 = vld [vmem:[%s2267_s11 + $0x68] ss:$12 sps:$4 sm:$0xff]   ;;  %v2146_v51 = vld [vmem:[%s2267_s11 + $0x80] ss:$12 sps:$4 sm:$0xff]   ;;  %v2149_v53 = vld [vmem:[%s2267_s11 + $0x98] ss:$12 sps:$4 sm:$0xff]  }
  0x1c   : > { %1870 = vmatpush3.bf16.msra.mxu0 %v2095_v13  ;;  %2056 = vmatpush3.bf16.msra.mxu1 %v2095_v13  ;;  %v2150_v54 = vld [vmem:[%s2267_s11 + $0xa8] ss:$12 sps:$4 sm:$0xff]   ;;  %v2151_v55 = vld [vmem:[%s2267_s11 + $0xb0] ss:$12 sps:$4 sm:$0xff]   ;;  %v2155_v58 = vld [vmem:[%s2267_s11 + $0xc0] ss:$12 sps:$4 sm:$0xff]  }
  0x1d   : > { %1871 = vmatprep.subr.bf16.mxu0 %v2096_v14  ;;  %2049 = vmatprep.subr.bf16.mxu1 %v2096_v14  ;;  %v2152_v56 = vld [vmem:[%s2267_s11 + $0xc4] ss:$12 sps:$4 sm:$0xff]   ;;  %v2154_v57 = vld [vmem:[%s2267_s11 + $0xc8] ss:$12 sps:$4 sm:$0xff]   ;;  %v2156_v59 = vld [vmem:[%s2267_s11 + $0xe0] ss:$12 sps:$4 sm:$0xff]  }
  0x1e   : > { %v2157_v60 = vld [vmem:[%s2267_s11 + $0xdc] ss:$12 sps:$4 sm:$0xff]   ;;  %v2159_v61 = vld [vmem:[%s2267_s11 + $0xf8] ss:$12 sps:$4 sm:$0xff]   ;;  %v2162_v0 = vld [vmem:[%s2267_s11 + $0xf4] ss:$12 sps:$4 sm:$0xff]  }
  0x1f   : > { %v2160_v62 = vld [vmem:[%s2267_s11 + $0xd8] ss:$12 sps:$4 sm:$0xff]   ;;  %v2161_v63 = vld [vmem:[%s2267_s11 + $0x110] ss:$12 sps:$4 sm:$0xff]   ;;  %v2164_v1 = vld [vmem:[%s2267_s11 + $0x128] ss:$12 sps:$4 sm:$0xff]  }
  0x20   : > { %1872 = vmatpush3.bf16.msra.mxu0 %v2097_v15  ;;  %2057 = vmatpush3.bf16.msra.mxu1 %v2097_v15  ;;  %v2165_v2 = vld [vmem:[%s2267_s11 + $0xf0] ss:$12 sps:$4 sm:$0xff]   ;;  %v2166_v3 = vld [vmem:[%s2267_s11 + $0x140] ss:$12 sps:$4 sm:$0xff]   ;;  %v2169_v5 = vld [vmem:[%s2267_s11 + $0x158] ss:$12 sps:$4 sm:$0xff]  }
  0x21   : > { %1873 = vmatprep.subr.bf16.mxu0 %v2098_v16  ;;  %2050 = vmatprep.subr.bf16.mxu1 %v2098_v16  ;;  %v2167_v4 = vld [vmem:[%s2267_s11 + $0x10c] ss:$12 sps:$4 sm:$0xff]   ;;  %v2170_v6 = vld [vmem:[%s2267_s11 + $0x108] ss:$12 sps:$4 sm:$0xff]   ;;  %v2171_v7 = vld [vmem:[%s2267_s11 + $0x170] ss:$12 sps:$4 sm:$0xff]  }
  0x24   : > { %1874 = vmatpush3.bf16.msra.mxu0 %v2099_v17  ;;  %2058 = vmatpush3.bf16.msra.mxu1 %v2099_v17 }
  0x25   : > { %1995 = vmatprep.subr.bf16.mxu1 %v2106_v18 }
  0x27   : > { %881 = vmatmul.mubr.bf16.vlgmr.msra.gmra.mrb[0].mxu0 %v2100_v19  ;;  %977 = vmatmul.mubr.bf16.vlgmr.msra.gmra.mrb[0].mxu1 %v2103_v20 }
  0x28   : > { %1996 = vmatpush3.bf16.msra.mxu1 %v2106_v18  ;;  %888 = vmatprep.mubr.bf16.mxu0 %v2108_v21 }
  0x29   : > { %1997 = vmatprep.subr.bf16.mxu1 %v2107_v22  ;;  %984 = vmatprep.mubr.bf16.mxu1 %v2110_v23 }
  0x2c   : > { %1998 = vmatpush3.bf16.msra.mxu1 %v2107_v22 }
  0x2d   : > { %1999 = vmatprep.subr.bf16.mxu1 %v2114_v25 }
  0x2f   : > { %889 = vmatmul.mubr.bf16.gmra.mrb[4].mxu0 %v2112_v24  ;;  %985 = vmatmul.mubr.bf16.gmra.mrb[4].mxu1 %v2113_v26 }
  0x30   : > { %2000 = vmatpush3.bf16.msra.mxu1 %v2114_v25  ;;  %896 = vmatprep.mubr.bf16.mxu0 %v2116_v28 }
  0x31   : > { %2001 = vmatprep.subr.bf16.mxu1 %v2115_v27  ;;  %992 = vmatprep.mubr.bf16.mxu1 %v2118_v29 }
  0x34   : > { %2002 = vmatpush3.bf16.msra.mxu1 %v2115_v27 }
  0x35   : > { %2003 = vmatprep.subr.bf16.mxu1 %v2122_v30 }
  0x37   : > { %897 = vmatmul.mubr.bf16.gmra.mrb[8].mxu0 %v2120_v31  ;;  %993 = vmatmul.mubr.bf16.gmra.mrb[8].mxu1 %v2121_v32 }
  0x38   : > { %2004 = vmatpush3.bf16.msra.mxu1 %v2122_v30  ;;  %904 = vmatprep.mubr.bf16.mxu0 %v2124_v34 }
  0x39   : > { %2005 = vmatprep.subr.bf16.mxu1 %v2123_v33  ;;  %1000 = vmatprep.mubr.bf16.mxu1 %v2126_v35 }
  0x3c   : > { %2006 = vmatpush3.bf16.msra.mxu1 %v2123_v33 }
  0x3d   : > { %2007 = vmatprep.subr.bf16.mxu1 %v2130_v36 }
  0x3f   : > { %905 = vmatmul.mubr.bf16.gmra.mrb[12].mxu0 %v2128_v37  ;;  %1001 = vmatmul.mubr.bf16.gmra.mrb[12].mxu1 %v2129_v38 }
  0x40   : > { %2008 = vmatpush3.bf16.msra.mxu1 %v2130_v36  ;;  %912 = vmatprep.mubr.bf16.mxu0 %v2132_v39 }
  0x41   : > { %2009 = vmatprep.subr.bf16.mxu1 %v2131_v40  ;;  %2011 = vmatprep.mubr.bf16.mxu1 %v2134_v41 }
  0x44   : > { %2010 = vmatpush3.bf16.msra.mxu1 %v2131_v40 }
  0x47   : > { %913 = vmatmul.mubr.bf16.gmra.mrb[16].mxu0 %v2135_v42  ;;  %2012 = vmatmul.mubr.bf16.vlgmr.msra.gmra.mrb[16].mxu1 %v2136_v43 }
  0x48   : > { %920 = vmatprep.mubr.bf16.mxu0 %v2137_v44  ;;  %2015 = vmatprep.mubr.bf16.mxu1 %v2139_v45 }
  0x4f   : > { %921 = vmatmul.mubr.bf16.gmra.mrb[20].mxu0 %v2140_v46  ;;  %2016 = vmatmul.mubr.bf16.gmra.mrb[20].mxu1 %v2141_v47 }
  0x50   : > { %928 = vmatprep.mubr.bf16.mxu0 %v2142_v48  ;;  %2019 = vmatprep.mubr.bf16.mxu1 %v2144_v49 }
  0x57   : > { %929 = vmatmul.mubr.bf16.gmra.mrb[24].mxu0 %v2145_v50  ;;  %2020 = vmatmul.mubr.bf16.gmra.mrb[24].mxu1 %v2146_v51 }
  0x58   : > { %936 = vmatprep.mubr.bf16.mxu0 %v2147_v52  ;;  %2023 = vmatprep.mubr.bf16.mxu1 %v2149_v53 }
  0x5f   : > { %937 = vmatmul.mubr.bf16.gmra.mrb[28].mxu0 %v2150_v54  ;;  %2024 = vmatmul.mubr.bf16.gmra.mrb[28].mxu1 %v2151_v55 }
  0x60   : > { %944 = vmatprep.mubr.bf16.mxu0 %v2152_v56  ;;  %2027 = vmatprep.mubr.bf16.mxu1 %v2154_v57 }
  0x67   : > { %945 = vmatmul.mubr.bf16.gmra.mrb[32].mxu0 %v2155_v58  ;;  %2028 = vmatmul.mubr.bf16.gmra.mrb[32].mxu1 %v2156_v59  ;;  %v2381_v58 = vld [vmem:[%s2462_s2] ss:$0 sm:$0xff] }
  0x68   : > { %952 = vmatprep.mubr.bf16.mxu0 %v2157_v60  ;;  %2031 = vmatprep.mubr.bf16.mxu1 %v2159_v61 }
  0x6f   : > { %953 = vmatmul.mubr.bf16.gmra.mrb[36].mxu0 %v2160_v62  ;;  %2032 = vmatmul.mubr.bf16.gmra.mrb[36].mxu1 %v2161_v63 }
  0x70   : > { %960 = vmatprep.mubr.bf16.mxu0 %v2162_v0  ;;  %2035 = vmatprep.mubr.bf16.mxu1 %v2164_v1 }
  0x77   : > { %961 = vmatmul.mubr.bf16.gmra.mrb[40].mxu0 %v2165_v2  ;;  %2036 = vmatmul.mubr.bf16.gmra.mrb[40].mxu1 %v2166_v3 }
  0x78   : > { %968 = vmatprep.mubr.bf16.mxu0 %v2167_v4  ;;  %2039 = vmatprep.mubr.bf16.mxu1 %v2169_v5 }
  0x7f   : > { %969 = vmatmul.mubr.bf16.gmra.mrb[44].mxu0 %v2170_v6  ;;  %2040 = vmatmul.mubr.bf16.gmra.mrb[44].mxu1 %v2171_v7 }
  0xfa   : > { %v1875_v8 = vpop.f32.mrb[0].mxu0  ;;  %v1947_v9 = vpop.f32.mrb[0].mxu1 }
  0xfb   : > { %v1876_v10 = vpop.f32.mrb[1].mxu0  ;;  %v1948_v11 = vpop.f32.mrb[1].mxu1 }
  0xfc   : > { %v1877_v12 = vadd.f32 %v1876_v10, %v1875_v8  ;;  %v2362_v13 = vadd.f32 %v1948_v11, %v1947_v9  ;;  %v1878_v14 = vpop.f32.mrb[2].mxu0  ;;  %v1950_v15 = vpop.f32.mrb[2].mxu1 }
  0xfd   : > { %v1879_v16 = vpop.f32.mrb[3].mxu0  ;;  %v1951_v17 = vpop.f32.mrb[3].mxu1 }
  0xfe   : > { %v1880_v18 = vadd.f32 %v1879_v16, %v1878_v14  ;;  %v2364_v19 = vadd.f32 %v1951_v17, %v1950_v15 }
 0x102   : > { %v1881_v20 = vpop.f32.mrb[4].mxu0  ;;  %v1953_v21 = vpop.f32.mrb[4].mxu1 }
 0x103   : > { %v1882_v22 = vpop.f32.mrb[5].mxu0  ;;  %v1954_v23 = vpop.f32.mrb[5].mxu1 }
 0x104   : > { %v1883_v24 = vadd.f32 %v1882_v22, %v1881_v20  ;;  %v2366_v25 = vadd.f32 %v1954_v23, %v1953_v21  ;;  %v1884_v26 = vpop.f32.mrb[6].mxu0  ;;  %v1956_v27 = vpop.f32.mrb[6].mxu1 }
 0x105   : > { %v1885_v28 = vpop.f32.mrb[7].mxu0  ;;  %v1957_v29 = vpop.f32.mrb[7].mxu1 }
 0x106   : > { %v1886_v30 = vadd.f32 %v1885_v28, %v1884_v26  ;;  %v2368_v31 = vadd.f32 %v1957_v29, %v1956_v27 }
 0x10a   : > { %v1887_v32 = vpop.f32.mrb[8].mxu0  ;;  %v1959_v33 = vpop.f32.mrb[8].mxu1 }
 0x10b   : > { %v1888_v34 = vpop.f32.mrb[9].mxu0  ;;  %v1960_v35 = vpop.f32.mrb[9].mxu1 }
 0x10c   : > { %v1889_v36 = vadd.f32 %v1888_v34, %v1887_v32  ;;  %v2370_v37 = vadd.f32 %v1960_v35, %v1959_v33  ;;  %v1890_v38 = vpop.f32.mrb[10].mxu0  ;;  %v1962_v39 = vpop.f32.mrb[10].mxu1 }
 0x10d   : > { %v1891_v40 = vpop.f32.mrb[11].mxu0  ;;  %v1963_v41 = vpop.f32.mrb[11].mxu1 }
 0x10e   : > { %v1892_v42 = vadd.f32 %v1891_v40, %v1890_v38  ;;  %v2372_v43 = vadd.f32 %v1963_v41, %v1962_v39 }
 0x112   : > { %v1893_v44 = vpop.f32.mrb[12].mxu0  ;;  %v1965_v45 = vpop.f32.mrb[12].mxu1 }
 0x113   : > { %v1894_v46 = vpop.f32.mrb[13].mxu0  ;;  %v1966_v47 = vpop.f32.mrb[13].mxu1 }
 0x114   : > { %v1895_v48 = vadd.f32 %v1894_v46, %v1893_v44  ;;  %v2374_v49 = vadd.f32 %v1966_v47, %v1965_v45  ;;  %v1896_v50 = vpop.f32.mrb[14].mxu0  ;;  %v1968_v51 = vpop.f32.mrb[14].mxu1 }
 0x115   : > { %v1897_v52 = vpop.f32.mrb[15].mxu0  ;;  %v1969_v53 = vpop.f32.mrb[15].mxu1 }
 0x116   : > { %v1898_v54 = vadd.f32 %v1897_v52, %v1896_v50  ;;  %v2376_v55 = vadd.f32 %v1969_v53, %v1968_v51 }
 0x11a   : > { %v1899_v56 = vpop.f32.mrb[16].mxu0  ;;  %v2013_v57 = vpop.f32.mrb[16].mxu1 }
 0x11b   : > { %v1052_v59 = vadd.f32 %v2013_v57, %v1883_v24  ;;  %v1900_v60 = vpop.f32.mrb[17].mxu0  ;;  %v1043_v61 = vpop.f32.mrb[17].mxu1 }
 0x11c   : > { %v1901_v62 = vadd.f32 %v1900_v60, %v1899_v56  ;;  %v1044_v63 = vadd.f32 %v1877_v12, %v1043_v61  ;;  %v1902_v0 = vpop.f32.mrb[18].mxu0  ;;  %v2014_v1 = vpop.f32.mrb[18].mxu1 }
 0x11d   : > { %v1278_v2 = vadd.f32 %v2381_v58, %v1052_v59  ;;  %v1055_v3 = vadd.f32 %v2014_v1, %v1886_v30  ;;  %v1903_v4 = vpop.f32.mrb[19].mxu0  ;;  %v1046_v5 = vpop.f32.mrb[19].mxu1 }
 0x11e   : > { %v1276_v6 = vadd.f32 %v2381_v58, %v1044_v63  ;;  %v1904_v7 = vadd.f32 %v1903_v4, %v1902_v0  ;;  %v1047_v8 = vadd.f32 %v1880_v18, %v1046_v5 }
 0x11f   : > { %v1279_v9 = vadd.f32 %v2381_v58, %v1055_v3  ;;  %v1310_v11 = vmax.f32 %v1278_v2, 0.0 }
 0x120   : > { %v1277_v10 = vadd.f32 %v2381_v58, %v1047_v8  ;;  %v1308_v15 = vmax.f32 %v1276_v6, 0.0 }
 0x121   : > { %v1311_v14 = vmax.f32 %v1279_v9, 0.0 }
 0x122   : > { %v1309_v12 = vmax.f32 %v1277_v10, 0.0  ;;  %v1905_v16 = vpop.f32.mrb[20].mxu0  ;;  %v2017_v17 = vpop.f32.mrb[20].mxu1 }
 0x123   : > { %v1772_v20 = vpack.c.bf16 %v1311_v14, %v1310_v11  ;;  %v1068_v18 = vadd.f32 %v2017_v17, %v1895_v48  ;;  %v1906_v21 = vpop.f32.mrb[21].mxu0  ;;  %v1059_v22 = vpop.f32.mrb[21].mxu1 }
 0x124   : > { %v1767_v23 = vpack.c.bf16 %v1309_v12, %v1308_v15  ;;  %v1907_v24 = vadd.f32 %v1906_v21, %v1905_v16  ;;  %v1060_v26 = vadd.f32 %v1889_v36, %v1059_v22  ;;  %v1908_v27 = vpop.f32.mrb[22].mxu0  ;;  %v2018_v28 = vpop.f32.mrb[22].mxu1 }
 0x125   : > { %1844 = vst [vmem:[%s2391_s28 + $0x8] sm:$0xff] %v1772_v20   ;;  %v1282_v29 = vadd.f32 %v2381_v58, %v1068_v18  ;;  %v1071_v30 = vadd.f32 %v2018_v28, %v1898_v54  ;;  %v1909_v32 = vpop.f32.mrb[23].mxu0  ;;  %v1062_v33 = vpop.f32.mrb[23].mxu1 }
 0x126   : > { %1768 = vst [vmem:[%s2391_s28] sm:$0xff] %v1767_v23   ;;  %v1280_v34 = vadd.f32 %v2381_v58, %v1060_v26  ;;  %v1910_v35 = vadd.f32 %v1909_v32, %v1908_v27  ;;  %v1063_v38 = vadd.f32 %v1892_v42, %v1062_v33 }
 0x127   : > { %v1283_v39 = vadd.f32 %v2381_v58, %v1071_v30  ;;  %v1314_v41 = vmax.f32 %v1282_v29, 0.0 }
 0x128   : > { %v1281_v40 = vadd.f32 %v2381_v58, %v1063_v38  ;;  %v1312_v44 = vmax.f32 %v1280_v34, 0.0 }
 0x129   : > { %v1315_v36 = vmax.f32 %v1283_v39, 0.0 }
 0x12a   : > { %v1313_v45 = vmax.f32 %v1281_v40, 0.0  ;;  %v1911_v46 = vpop.f32.mrb[24].mxu0  ;;  %v2021_v47 = vpop.f32.mrb[24].mxu1 }
 0x12b   : > { %v1782_v48 = vpack.c.bf16 %v1315_v36, %v1314_v41  ;;  %v1084_v50 = vadd.f32 %v2021_v47, %v1907_v24  ;;  %v1912_v51 = vpop.f32.mrb[25].mxu0  ;;  %v1075_v52 = vpop.f32.mrb[25].mxu1 }
 0x12c   : > { %v1777_v53 = vpack.c.bf16 %v1313_v45, %v1312_v44  ;;  %v1913_v54 = vadd.f32 %v1912_v51, %v1911_v46  ;;  %v1076_v56 = vadd.f32 %v1901_v62, %v1075_v52  ;;  %v1914_v42 = vpop.f32.mrb[26].mxu0  ;;  %v2022_v57 = vpop.f32.mrb[26].mxu1 }
 0x12d   : > { %1846 = vst [vmem:[%s2391_s28 + $0x18] sm:$0xff] %v1782_v48   ;;  %v1286_v59 = vadd.f32 %v2381_v58, %v1084_v50  ;;  %v1087_v60 = vadd.f32 %v2022_v57, %v1910_v35  ;;  %v1915_v61 = vpop.f32.mrb[27].mxu0  ;;  %v1078_v63 = vpop.f32.mrb[27].mxu1 }
 0x12e   : > { %1845 = vst [vmem:[%s2391_s28 + $0x10] sm:$0xff] %v1777_v53   ;;  %v1284_v0 = vadd.f32 %v2381_v58, %v1076_v56  ;;  %v1916_v1 = vadd.f32 %v1915_v61, %v1914_v42  ;;  %v1079_v2 = vadd.f32 %v1904_v7, %v1078_v63 }
 0x12f   : > { %v1287_v3 = vadd.f32 %v2381_v58, %v1087_v60  ;;  %v1318_v5 = vmax.f32 %v1286_v59, 0.0 }
 0x130   : > { %v1285_v4 = vadd.f32 %v2381_v58, %v1079_v2  ;;  %v1316_v6 = vmax.f32 %v1284_v0, 0.0 }
 0x131   : > { %v1319_v62 = vmax.f32 %v1287_v3, 0.0 }
 0x132   : > { %v1317_v8 = vmax.f32 %v1285_v4, 0.0  ;;  %v1917_v9 = vpop.f32.mrb[28].mxu0  ;;  %v2025_v10 = vpop.f32.mrb[28].mxu1 }
 0x133   : > { %v1792_v11 = vpack.c.bf16 %v1319_v62, %v1318_v5  ;;  %v1918_v14 = vpop.f32.mrb[29].mxu0  ;;  %v1091_v15 = vpop.f32.mrb[29].mxu1 }
 0x134   : > { %v1787_v12 = vpack.c.bf16 %v1317_v8, %v1316_v6  ;;  %v1919_v16 = vadd.f32 %v1918_v14, %v1917_v9  ;;  %v1092_v17 = vadd.f32 %v1913_v54, %v1091_v15  ;;  %v1920_v20 = vpop.f32.mrb[30].mxu0  ;;  %v2026_v7 = vpop.f32.mrb[30].mxu1 }
 0x135   : > { %1848 = vst [vmem:[%s2391_s28 + $0x28] sm:$0xff] %v1792_v11   ;;  %v1921_v18 = vpop.f32.mrb[31].mxu0  ;;  %v1094_v21 = vpop.f32.mrb[31].mxu1 }
 0x136   : > { %1847 = vst [vmem:[%s2391_s28 + $0x20] sm:$0xff] %v1787_v12   ;;  %v1100_v22 = vadd.f32 %v2025_v10, %v1919_v16  ;;  %v1288_v23 = vadd.f32 %v2381_v58, %v1092_v17  ;;  %v1922_v24 = vadd.f32 %v1921_v18, %v1920_v20  ;;  %v1095_v26 = vadd.f32 %v1916_v1, %v1094_v21 }
 0x138   : > { %v1290_v27 = vadd.f32 %v2381_v58, %v1100_v22  ;;  %v1103_v28 = vadd.f32 %v2026_v7, %v1922_v24  ;;  %v1289_v29 = vadd.f32 %v2381_v58, %v1095_v26  ;;  %v1320_v30 = vmax.f32 %v1288_v23, 0.0 }
 0x13a   : > { %v1291_v32 = vadd.f32 %v2381_v58, %v1103_v28  ;;  %v1321_v33 = vmax.f32 %v1289_v29, 0.0  ;;  %v1923_v34 = vpop.f32.mrb[32].mxu0  ;;  %v2029_v35 = vpop.f32.mrb[32].mxu1  ;;  %v1322_v40 = vmax.f32 %v1290_v27, 0.0 }
 0x13b   : > { %v1924_v38 = vpop.f32.mrb[33].mxu0  ;;  %v1107_v39 = vpop.f32.mrb[33].mxu1 }
 0x13c   : > { %v1323_v41 = vmax.f32 %v1291_v32, 0.0  ;;  %v1797_v36 = vpack.c.bf16 %v1321_v33, %v1320_v30  ;;  %v1925_v44 = vadd.f32 %v1924_v38, %v1923_v34  ;;  %v1926_v45 = vpop.f32.mrb[34].mxu0  ;;  %v2030_v46 = vpop.f32.mrb[34].mxu1 }
 0x13d   : > { %v1927_v47 = vpop.f32.mrb[35].mxu0  ;;  %v1110_v48 = vpop.f32.mrb[35].mxu1 }
 0x13e   : > { %v1802_v50 = vpack.c.bf16 %v1323_v41, %v1322_v40  ;;  %1849 = vst [vmem:[%s2391_s28 + $0x30] sm:$0xff] %v1797_v36   ;;  %v1108_v51 = vadd.f32 %v1925_v44, %v1107_v39  ;;  %v1928_v52 = vadd.f32 %v1927_v47, %v1926_v45 }
 0x140   : > { %1850 = vst [vmem:[%s2391_s28 + $0x38] sm:$0xff] %v1802_v50   ;;  %v1292_v53 = vadd.f32 %v2381_v58, %v1108_v51  ;;  %v1111_v54 = vadd.f32 %v1928_v52, %v1110_v48 }
 0x142   : > { %v1293_v56 = vadd.f32 %v2381_v58, %v1111_v54  ;;  %v1929_v42 = vpop.f32.mrb[36].mxu0  ;;  %v2415_v57 = vpop.f32.mrb[36].mxu1  ;;  %v1324_v61 = vmax.f32 %v1292_v53, 0.0 }
 0x143   : > { %v1930_v59 = vpop.f32.mrb[37].mxu0  ;;  %v1123_v60 = vpop.f32.mrb[37].mxu1 }
 0x144   : > { %v1325_v63 = vmax.f32 %v1293_v56, 0.0  ;;  %v1931_v0 = vadd.f32 %v1930_v59, %v1929_v42  ;;  %v1932_v1 = vpop.f32.mrb[38].mxu0  ;;  %v2417_v2 = vpop.f32.mrb[38].mxu1 }
 0x145   : > { %v1933_v3 = vpop.f32.mrb[39].mxu0  ;;  %v1126_v4 = vpop.f32.mrb[39].mxu1 }
 0x146   : > { %v1807_v5 = vpack.c.bf16 %v1325_v63, %v1324_v61  ;;  %v1116_v62 = vadd.f32 %v2029_v35, %v1931_v0  ;;  %v1934_v6 = vadd.f32 %v1933_v3, %v1932_v1 }
 0x148   : > { %1851 = vst [vmem:[%s2391_s28 + $0x40] sm:$0xff] %v1807_v5   ;;  %v1294_v8 = vadd.f32 %v2381_v58, %v1116_v62  ;;  %v1119_v9 = vadd.f32 %v2030_v46, %v1934_v6 }
 0x14a   : > { %v1295_v10 = vadd.f32 %v2381_v58, %v1119_v9  ;;  %v1935_v11 = vpop.f32.mrb[40].mxu0  ;;  %v2037_v14 = vpop.f32.mrb[40].mxu1  ;;  %v1326_v17 = vmax.f32 %v1294_v8, 0.0 }
 0x14b   : > { %v1148_v15 = vadd.f32 %v2037_v14, %v2366_v25  ;;  %v1936_v12 = vpop.f32.mrb[41].mxu0  ;;  %v1139_v16 = vpop.f32.mrb[41].mxu1 }
 0x14c   : > { %v1327_v20 = vmax.f32 %v1295_v10, 0.0  ;;  %v1937_v7 = vadd.f32 %v1936_v12, %v1935_v11  ;;  %v1140_v18 = vadd.f32 %v2362_v13, %v1139_v16  ;;  %v1938_v21 = vpop.f32.mrb[42].mxu0  ;;  %v2038_v22 = vpop.f32.mrb[42].mxu1 }
 0x14d   : > { %v1302_v23 = vadd.f32 %v2381_v58, %v1148_v15  ;;  %v1151_v24 = vadd.f32 %v2038_v22, %v2368_v31  ;;  %v1939_v26 = vpop.f32.mrb[43].mxu0  ;;  %v1142_v27 = vpop.f32.mrb[43].mxu1 }
 0x14e   : > { %v1812_v28 = vpack.c.bf16 %v1327_v20, %v1326_v17  ;;  %v1124_v29 = vadd.f32 %v1937_v7, %v1123_v60  ;;  %v1940_v30 = vadd.f32 %v1939_v26, %v1938_v21  ;;  %v1300_v25 = vadd.f32 %v2381_v58, %v1140_v18 }
 0x14f   : > { %v1303_v32 = vadd.f32 %v2381_v58, %v1151_v24  ;;  %v1143_v33 = vadd.f32 %v2364_v19, %v1142_v27  ;;  %v1334_v35 = vmax.f32 %v1302_v23, 0.0 }
 0x150   : > { %1852 = vst [vmem:[%s2391_s28 + $0x48] sm:$0xff] %v1812_v28   ;;  %v1296_v13 = vadd.f32 %v2381_v58, %v1124_v29  ;;  %v1127_v34 = vadd.f32 %v1940_v30, %v1126_v4  ;;  %v1332_v36 = vmax.f32 %v1300_v25, 0.0 }
 0x151   : > { %v1335_v38 = vmax.f32 %v1303_v32, 0.0  ;;  %v1301_v39 = vadd.f32 %v2381_v58, %v1143_v33 }
 0x152   : > { %v1297_v31 = vadd.f32 %v2381_v58, %v1127_v34  ;;  %v1941_v40 = vpop.f32.mrb[44].mxu0  ;;  %v2041_v41 = vpop.f32.mrb[44].mxu1  ;;  %v1328_v48 = vmax.f32 %v1296_v13, 0.0 }
 0x153   : > { %v1832_v44 = vpack.c.bf16 %v1335_v38, %v1334_v35  ;;  %v1333_v45 = vmax.f32 %v1301_v39, 0.0  ;;  %v1164_v46 = vadd.f32 %v2041_v41, %v2374_v49  ;;  %v1942_v47 = vpop.f32.mrb[45].mxu0  ;;  %v1155_v19 = vpop.f32.mrb[45].mxu1 }
 0x154   : > { %v1329_v50 = vmax.f32 %v1297_v31, 0.0  ;;  %v1943_v51 = vadd.f32 %v1942_v47, %v1941_v40  ;;  %v1156_v52 = vadd.f32 %v2370_v37, %v1155_v19  ;;  %v1944_v53 = vpop.f32.mrb[46].mxu0  ;;  %v2042_v54 = vpop.f32.mrb[46].mxu1 }
 0x155   : > { %1856 = vst [vmem:[%s2391_s28 + $0x68] sm:$0xff] %v1832_v44   ;;  %v1827_v56 = vpack.c.bf16 %v1333_v45, %v1332_v36  ;;  %v1306_v42 = vadd.f32 %v2381_v58, %v1164_v46  ;;  %v1167_v59 = vadd.f32 %v2042_v54, %v2376_v55  ;;  %v1945_v60 = vpop.f32.mrb[47].mxu0  ;;  %v1158_v61 = vpop.f32.mrb[47].mxu1 }
 0x156   : > { %v1817_v49 = vpack.c.bf16 %v1329_v50, %v1328_v48  ;;  %v1132_v63 = vadd.f32 %v2415_v57, %v1943_v51  ;;  %v1946_v0 = vadd.f32 %v1945_v60, %v1944_v53  ;;  %v1304_v1 = vadd.f32 %v2381_v58, %v1156_v52 }
 0x157   : > { %1855 = vst [vmem:[%s2391_s28 + $0x60] sm:$0xff] %v1827_v56   ;;  %v1307_v37 = vadd.f32 %v2381_v58, %v1167_v59  ;;  %v1159_v3 = vadd.f32 %v2372_v43, %v1158_v61  ;;  %v1338_v5 = vmax.f32 %v1306_v42, 0.0 }
 0x158   : > { %1853 = vst [vmem:[%s2391_s28 + $0x50] sm:$0xff] %v1817_v49   ;;  %v1298_v4 = vadd.f32 %v2381_v58, %v1132_v63  ;;  %v1135_v55 = vadd.f32 %v2417_v2, %v1946_v0  ;;  %v1336_v8 = vmax.f32 %v1304_v1, 0.0 }
 0x159   : > { %v1339_v62 = vmax.f32 %v1307_v37, 0.0  ;;  %v1305_v57 = vadd.f32 %v2381_v58, %v1159_v3 }
 0x15a   : > { %v1299_v6 = vadd.f32 %v2381_v58, %v1135_v55  ;;  %v1330_v11 = vmax.f32 %v1298_v4, 0.0 }
 0x15b   : > { %v1842_v9 = vpack.c.bf16 %v1339_v62, %v1338_v5  ;;  %v1337_v10 = vmax.f32 %v1305_v57, 0.0 }
 0x15c   : > { %v1331_v14 = vmax.f32 %v1299_v6, 0.0 }
 0x15d   : > { %1858 = vst [vmem:[%s2391_s28 + $0x78] sm:$0xff] %v1842_v9   ;;  %v1837_v43 = vpack.c.bf16 %v1337_v10, %v1336_v8 }
 0x15e   : > { %v1822_v15 = vpack.c.bf16 %v1331_v14, %v1330_v11 }
 0x15f   : > { %1857 = vst [vmem:[%s2391_s28 + $0x70] sm:$0xff] %v1837_v43  }
 0x160   : > { %1854 = vst [vmem:[%s2391_s28 + $0x58] sm:$0xff] %v1822_v15  }
 0x161 PF: > { %s13_s14 = sadd.s32 1, %s2194_s14   ;;  %s2464_s12 = smov %s2190_s13 }
 0x162   : > { %p10_p5 = scmp.ge.s32.totalorder %s13_s14, 4   ;;  %s2465_s13 = smov %s2467_s15 }
 0x164   :  { %12 = sbr.rel (!%p10_p5) target bundleno = 2 (0x2), region = 76 }

// kernel: _lambda_.11
= control target key start
LH: loop header
LB: loop body
LE: loop exit
PB: predicated region body
PF: predicated region fallthrough
CT: control target
= control target key end

     0   :  { %vm237_vm0 = vcmask 519168   ;;  %s772_s0 = inlined_call_operand.vmem [shape: bf16[9,104,64], index: 0, kind: input, shape index: {}]   ;;  %s773_s1 = inlined_call_operand.vmem [shape: bf16[104,64], index: 1, kind: output, shape index: {}]  }
   0x1   :  { %v8_v0 = vld [vmem:[%s772_s0] sm:$0xf]  ;;  %v255_v1 = vld [vmem:[%s772_s0 + $0x34] sm:$0xf]  ;;  %v268_v2 = vld [vmem:[%s772_s0 + $0x68] sm:$0xf] }
   0x2   :  { %v35_v3 = vmax.bf16 %v255_v1, %v8_v0  ;;  %v281_v4 = vld [vmem:[%s772_s0 + $0x9c] sm:$0xf]  ;;  %v9_v6 = vld [vmem:[%s772_s0 + $0x4] sm:$0xf]  ;;  %v256_v7 = vld [vmem:[%s772_s0 + $0x38] sm:$0xf] }
   0x3   :  { %v269_v8 = vld [vmem:[%s772_s0 + $0x6c] sm:$0xf]  ;;  %v294_v9 = vld [vmem:[%s772_s0 + $0xd0] sm:$0xf]  ;;  %v36_v10 = vmax.bf16 %v256_v7, %v9_v6  ;;  %v307_v12 = vld [vmem:[%s772_s0 + $0x104] sm:$0xf] }
   0x4   :  { %v62_v5 = vmax.bf16 %v268_v2, %v35_v3  ;;  %v282_v13 = vld [vmem:[%s772_s0 + $0xa0] sm:$0xf]  ;;  %v10_v15 = vld [vmem:[%s772_s0 + $0x8] sm:$0xf]  ;;  %v257_v16 = vld [vmem:[%s772_s0 + $0x3c] sm:$0xf] }
   0x5   :  { %v63_v14 = vmax.bf16 %v269_v8, %v36_v10  ;;  %v270_v17 = vld [vmem:[%s772_s0 + $0x70] sm:$0xf]  ;;  %v295_v19 = vld [vmem:[%s772_s0 + $0xd4] sm:$0xf]  ;;  %v37_v20 = vmax.bf16 %v257_v16, %v10_v15  ;;  %v320_v21 = vld [vmem:[%s772_s0 + $0x138] sm:$0xf] }
   0x6   :  { %v89_v11 = vmax.bf16 %v281_v4, %v62_v5  ;;  %v308_v23 = vld [vmem:[%s772_s0 + $0x108] sm:$0xf]  ;;  %v283_v24 = vld [vmem:[%s772_s0 + $0xa4] sm:$0xf]  ;;  %v11_v27 = vld [vmem:[%s772_s0 + $0xc] sm:$0xf] }
   0x7   :  { %v90_v22 = vmax.bf16 %v282_v13, %v63_v14  ;;  %v64_v26 = vmax.bf16 %v270_v17, %v37_v20  ;;  %v258_v28 = vld [vmem:[%s772_s0 + $0x40] sm:$0xf]  ;;  %v271_v29 = vld [vmem:[%s772_s0 + $0x74] sm:$0xf]  ;;  %v333_v30 = vld [vmem:[%s772_s0 + $0x16c] sm:$0xf] }
   0x8   :  { %v116_v18 = vmax.bf16 %v294_v9, %v89_v11  ;;  %v346_v31 = vld [vmem:[%s772_s0 + $0x1a0] sm:$0xf]  ;;  %v296_v33 = vld [vmem:[%s772_s0 + $0xd8] sm:$0xf]  ;;  %v38_v34 = vmax.bf16 %v258_v28, %v11_v27  ;;  %v321_v36 = vld [vmem:[%s772_s0 + $0x13c] sm:$0xf] }
   0x9   :  { %v117_v32 = vmax.bf16 %v295_v19, %v90_v22  ;;  %v91_v37 = vmax.bf16 %v283_v24, %v64_v26  ;;  %v309_v38 = vld [vmem:[%s772_s0 + $0x10c] sm:$0xf]  ;;  %v284_v39 = vld [vmem:[%s772_s0 + $0xa8] sm:$0xf]  ;;  %v12_v42 = vld [vmem:[%s772_s0 + $0x10] sm:$0xf] }
   0xa   :  { %v143_v25 = vmax.bf16 %v307_v12, %v116_v18  ;;  %v65_v41 = vmax.bf16 %v271_v29, %v38_v34  ;;  %v259_v43 = vld [vmem:[%s772_s0 + $0x44] sm:$0xf]  ;;  %v272_v44 = vld [vmem:[%s772_s0 + $0x78] sm:$0xf]  ;;  %v334_v46 = vld [vmem:[%s772_s0 + $0x170] sm:$0xf] }
   0xb   :  { %v144_v40 = vmax.bf16 %v308_v23, %v117_v32  ;;  %v347_v47 = vld [vmem:[%s772_s0 + $0x1a4] sm:$0xf]  ;;  %v118_v48 = vmax.bf16 %v296_v33, %v91_v37  ;;  %v297_v49 = vld [vmem:[%s772_s0 + $0xdc] sm:$0xf]  ;;  %v39_v50 = vmax.bf16 %v259_v43, %v12_v42  ;;  %v322_v52 = vld [vmem:[%s772_s0 + $0x140] sm:$0xf] }
   0xc   :  { %v170_v35 = vmax.bf16 %v320_v21, %v143_v25  ;;  %v92_v53 = vmax.bf16 %v284_v39, %v65_v41  ;;  %v310_v54 = vld [vmem:[%s772_s0 + $0x110] sm:$0xf]  ;;  %v285_v55 = vld [vmem:[%s772_s0 + $0xac] sm:$0xf]  ;;  %v13_v59 = vld [vmem:[%s772_s0 + $0x14] sm:$0xf] }
   0xd   :  { %v171_v51 = vmax.bf16 %v321_v36, %v144_v40  ;;  %v145_v57 = vmax.bf16 %v309_v38, %v118_v48  ;;  %v66_v58 = vmax.bf16 %v272_v44, %v39_v50  ;;  %v260_v60 = vld [vmem:[%s772_s0 + $0x48] sm:$0xf]  ;;  %v273_v61 = vld [vmem:[%s772_s0 + $0x7c] sm:$0xf]  ;;  %v335_v63 = vld [vmem:[%s772_s0 + $0x174] sm:$0xf] }
   0xe   :  { %v197_v45 = vmax.bf16 %v333_v30, %v170_v35  ;;  %v348_v0 = vld [vmem:[%s772_s0 + $0x1a8] sm:$0xf]  ;;  %v119_v1 = vmax.bf16 %v297_v49, %v92_v53  ;;  %v298_v2 = vld [vmem:[%s772_s0 + $0xe0] sm:$0xf]  ;;  %v40_v3 = vmax.bf16 %v260_v60, %v13_v59  ;;  %v323_v5 = vld [vmem:[%s772_s0 + $0x144] sm:$0xf] }
   0xf   :  { %v198_v62 = vmax.bf16 %v334_v46, %v171_v51  ;;  %v172_v4 = vmax.bf16 %v322_v52, %v145_v57  ;;  %v93_v6 = vmax.bf16 %v285_v55, %v66_v58  ;;  %v311_v7 = vld [vmem:[%s772_s0 + $0x114] sm:$0xf]  ;;  %v286_v8 = vld [vmem:[%s772_s0 + $0xb0] sm:$0xf]  ;;  %v14_v12 = vld [vmem:[%s772_s0 + $0x18] sm:$0xf] }
  0x10   :  { %v224_v56 = vmax.bf16 %v346_v31, %v197_v45  ;;  %v146_v10 = vmax.bf16 %v310_v54, %v119_v1  ;;  %v67_v11 = vmax.bf16 %v273_v61, %v40_v3  ;;  %v261_v13 = vld [vmem:[%s772_s0 + $0x4c] sm:$0xf]  ;;  %v274_v14 = vld [vmem:[%s772_s0 + $0x80] sm:$0xf]  ;;  %v336_v16 = vld [vmem:[%s772_s0 + $0x178] sm:$0xf] }
  0x11   :  { %v225_v9 = vmax.bf16 %v347_v47, %v198_v62  ;;  %v199_v15 = vmax.bf16 %v335_v63, %v172_v4  ;;  %v349_v17 = vld [vmem:[%s772_s0 + $0x1ac] sm:$0xf]  ;;  %v120_v18 = vmax.bf16 %v298_v2, %v93_v6  ;;  %v299_v19 = vld [vmem:[%s772_s0 + $0xe4] sm:$0xf]  ;;  %v41_v20 = vmax.bf16 %v261_v13, %v14_v12  ;;  %v324_v22 = vld [vmem:[%s772_s0 + $0x148] sm:$0xf] }
  0x12   :  { %238 = vst.msk [vmem:[%s773_s1] sm:$0xf] %vm237_vm0, %v224_v56  ;;  %v173_v21 = vmax.bf16 %v323_v5, %v146_v10  ;;  %v94_v23 = vmax.bf16 %v286_v8, %v67_v11  ;;  %v312_v24 = vld [vmem:[%s772_s0 + $0x118] sm:$0xf]  ;;  %v287_v25 = vld [vmem:[%s772_s0 + $0xb4] sm:$0xf] }
  0x13   :  { %239 = vst.msk [vmem:[%s773_s1 + $0x4] sm:$0xf] %vm237_vm0, %v225_v9  ;;  %v226_v26 = vmax.bf16 %v348_v0, %v199_v15  ;;  %v147_v27 = vmax.bf16 %v311_v7, %v120_v18  ;;  %v68_v28 = vmax.bf16 %v274_v14, %v41_v20  ;;  %v15_v29 = vld [vmem:[%s772_s0 + $0x1c] sm:$0xf]  ;;  %v262_v30 = vld [vmem:[%s772_s0 + $0x50] sm:$0xf] }
  0x14   :  { %v275_v31 = vld [vmem:[%s772_s0 + $0x84] sm:$0xf]  ;;  %v200_v32 = vmax.bf16 %v336_v16, %v173_v21  ;;  %v337_v33 = vld [vmem:[%s772_s0 + $0x17c] sm:$0xf]  ;;  %v350_v34 = vld [vmem:[%s772_s0 + $0x1b0] sm:$0xf]  ;;  %v121_v35 = vmax.bf16 %v299_v19, %v94_v23  ;;  %v42_v37 = vmax.bf16 %v262_v30, %v15_v29 }
  0x15   :  { %v300_v36 = vld [vmem:[%s772_s0 + $0xe8] sm:$0xf]  ;;  %240 = vst.msk [vmem:[%s773_s1 + $0x8] sm:$0xf] %vm237_vm0, %v226_v26  ;;  %v174_v38 = vmax.bf16 %v324_v22, %v147_v27  ;;  %v325_v39 = vld [vmem:[%s772_s0 + $0x14c] sm:$0xf]  ;;  %v95_v40 = vmax.bf16 %v287_v25, %v68_v28 }
  0x16   :  { %v313_v41 = vld [vmem:[%s772_s0 + $0x11c] sm:$0xf]  ;;  %v288_v42 = vld [vmem:[%s772_s0 + $0xb8] sm:$0xf]  ;;  %v227_v43 = vmax.bf16 %v349_v17, %v200_v32  ;;  %v148_v44 = vmax.bf16 %v312_v24, %v121_v35  ;;  %v69_v45 = vmax.bf16 %v275_v31, %v42_v37  ;;  %v16_v46 = vld [vmem:[%s772_s0 + $0x20] sm:$0xf] }
  0x17   :  { %v263_v47 = vld [vmem:[%s772_s0 + $0x54] sm:$0xf]  ;;  %v276_v48 = vld [vmem:[%s772_s0 + $0x88] sm:$0xf]  ;;  %v201_v49 = vmax.bf16 %v337_v33, %v174_v38  ;;  %v338_v50 = vld [vmem:[%s772_s0 + $0x180] sm:$0xf]  ;;  %v122_v52 = vmax.bf16 %v300_v36, %v95_v40 }
  0x18   :  { %v351_v51 = vld [vmem:[%s772_s0 + $0x1b4] sm:$0xf]  ;;  %v301_v53 = vld [vmem:[%s772_s0 + $0xec] sm:$0xf]  ;;  %v43_v54 = vmax.bf16 %v263_v47, %v16_v46  ;;  %241 = vst.msk [vmem:[%s773_s1 + $0xc] sm:$0xf] %vm237_vm0, %v227_v43  ;;  %v175_v55 = vmax.bf16 %v325_v39, %v148_v44  ;;  %v96_v57 = vmax.bf16 %v288_v42, %v69_v45 }
  0x19   :  { %v326_v56 = vld [vmem:[%s772_s0 + $0x150] sm:$0xf]  ;;  %v314_v58 = vld [vmem:[%s772_s0 + $0x120] sm:$0xf]  ;;  %v289_v59 = vld [vmem:[%s772_s0 + $0xbc] sm:$0xf]  ;;  %v228_v60 = vmax.bf16 %v350_v34, %v201_v49  ;;  %v149_v61 = vmax.bf16 %v313_v41, %v122_v52 }
  0x1a   :  { %v70_v62 = vmax.bf16 %v276_v48, %v43_v54  ;;  %v17_v63 = vld [vmem:[%s772_s0 + $0x24] sm:$0xf]  ;;  %v264_v0 = vld [vmem:[%s772_s0 + $0x58] sm:$0xf]  ;;  %v277_v1 = vld [vmem:[%s772_s0 + $0x8c] sm:$0xf]  ;;  %v202_v2 = vmax.bf16 %v338_v50, %v175_v55  ;;  %v123_v5 = vmax.bf16 %v301_v53, %v96_v57 }
  0x1b   :  { %v339_v3 = vld [vmem:[%s772_s0 + $0x184] sm:$0xf]  ;;  %v352_v4 = vld [vmem:[%s772_s0 + $0x1b8] sm:$0xf]  ;;  %v302_v6 = vld [vmem:[%s772_s0 + $0xf0] sm:$0xf]  ;;  %v44_v7 = vmax.bf16 %v264_v0, %v17_v63  ;;  %v176_v8 = vmax.bf16 %v326_v56, %v149_v61 }
  0x1c   :  { %242 = vst.msk [vmem:[%s773_s1 + $0x10] sm:$0xf] %vm237_vm0, %v228_v60  ;;  %v327_v9 = vld [vmem:[%s772_s0 + $0x154] sm:$0xf]  ;;  %v97_v10 = vmax.bf16 %v289_v59, %v70_v62  ;;  %v315_v11 = vld [vmem:[%s772_s0 + $0x124] sm:$0xf]  ;;  %v229_v13 = vmax.bf16 %v351_v51, %v202_v2  ;;  %v150_v14 = vmax.bf16 %v314_v58, %v123_v5 }
  0x1d   :  { %v290_v12 = vld [vmem:[%s772_s0 + $0xc0] sm:$0xf]  ;;  %v71_v15 = vmax.bf16 %v277_v1, %v44_v7  ;;  %v18_v16 = vld [vmem:[%s772_s0 + $0x28] sm:$0xf]  ;;  %v265_v17 = vld [vmem:[%s772_s0 + $0x5c] sm:$0xf]  ;;  %v203_v19 = vmax.bf16 %v339_v3, %v176_v8 }
  0x1e   :  { %v278_v18 = vld [vmem:[%s772_s0 + $0x90] sm:$0xf]  ;;  %v340_v20 = vld [vmem:[%s772_s0 + $0x188] sm:$0xf]  ;;  %v353_v21 = vld [vmem:[%s772_s0 + $0x1bc] sm:$0xf]  ;;  %v124_v22 = vmax.bf16 %v302_v6, %v97_v10  ;;  %v45_v24 = vmax.bf16 %v265_v17, %v18_v16  ;;  %v177_v25 = vmax.bf16 %v327_v9, %v150_v14 }
  0x1f   :  { %v303_v23 = vld [vmem:[%s772_s0 + $0xf4] sm:$0xf]  ;;  %243 = vst.msk [vmem:[%s773_s1 + $0x14] sm:$0xf] %vm237_vm0, %v229_v13  ;;  %v328_v26 = vld [vmem:[%s772_s0 + $0x158] sm:$0xf]  ;;  %v98_v27 = vmax.bf16 %v290_v12, %v71_v15  ;;  %v230_v30 = vmax.bf16 %v352_v4, %v203_v19 }
  0x20   :  { %v316_v28 = vld [vmem:[%s772_s0 + $0x128] sm:$0xf]  ;;  %v291_v29 = vld [vmem:[%s772_s0 + $0xc4] sm:$0xf]  ;;  %v151_v31 = vmax.bf16 %v315_v11, %v124_v22  ;;  %v72_v32 = vmax.bf16 %v278_v18, %v45_v24  ;;  %v19_v33 = vld [vmem:[%s772_s0 + $0x2c] sm:$0xf]  ;;  %v204_v36 = vmax.bf16 %v340_v20, %v177_v25 }
  0x21   :  { %v266_v34 = vld [vmem:[%s772_s0 + $0x60] sm:$0xf]  ;;  %v279_v35 = vld [vmem:[%s772_s0 + $0x94] sm:$0xf]  ;;  %v341_v37 = vld [vmem:[%s772_s0 + $0x18c] sm:$0xf]  ;;  %v125_v39 = vmax.bf16 %v303_v23, %v98_v27 }
  0x22   :  { %v354_v38 = vld [vmem:[%s772_s0 + $0x1c0] sm:$0xf]  ;;  %v304_v40 = vld [vmem:[%s772_s0 + $0xf8] sm:$0xf]  ;;  %v46_v41 = vmax.bf16 %v266_v34, %v19_v33  ;;  %244 = vst.msk [vmem:[%s773_s1 + $0x18] sm:$0xf] %vm237_vm0, %v230_v30  ;;  %v178_v42 = vmax.bf16 %v328_v26, %v151_v31  ;;  %v99_v44 = vmax.bf16 %v291_v29, %v72_v32  ;;  %v231_v47 = vmax.bf16 %v353_v21, %v204_v36 }
  0x23   :  { %v329_v43 = vld [vmem:[%s772_s0 + $0x15c] sm:$0xf]  ;;  %v317_v45 = vld [vmem:[%s772_s0 + $0x12c] sm:$0xf]  ;;  %v292_v46 = vld [vmem:[%s772_s0 + $0xc8] sm:$0xf]  ;;  %v152_v48 = vmax.bf16 %v316_v28, %v125_v39 }
  0x24   :  { %v73_v49 = vmax.bf16 %v279_v35, %v46_v41  ;;  %v20_v50 = vld [vmem:[%s772_s0 + $0x30] sm:$0xf]  ;;  %v267_v51 = vld [vmem:[%s772_s0 + $0x64] sm:$0xf]  ;;  %v280_v52 = vld [vmem:[%s772_s0 + $0x98] sm:$0xf]  ;;  %v205_v53 = vmax.bf16 %v341_v37, %v178_v42  ;;  %v126_v55 = vmax.bf16 %v304_v40, %v99_v44 }
  0x25   :  { %v342_v54 = vld [vmem:[%s772_s0 + $0x190] sm:$0xf]  ;;  %v305_v56 = vld [vmem:[%s772_s0 + $0xfc] sm:$0xf]  ;;  %v47_v57 = vmax.bf16 %v267_v51, %v20_v50  ;;  %245 = vst.msk [vmem:[%s773_s1 + $0x1c] sm:$0xf] %vm237_vm0, %v231_v47  ;;  %v179_v58 = vmax.bf16 %v329_v43, %v152_v48 }
  0x26   :  { %v330_v59 = vld [vmem:[%s772_s0 + $0x160] sm:$0xf]  ;;  %v100_v60 = vmax.bf16 %v292_v46, %v73_v49  ;;  %v293_v61 = vld [vmem:[%s772_s0 + $0xcc] sm:$0xf]  ;;  %v232_v62 = vmax.bf16 %v354_v38, %v205_v53  ;;  %v355_v63 = vld [vmem:[%s772_s0 + $0x1c4] sm:$0xf]  ;;  %v153_v0 = vmax.bf16 %v317_v45, %v126_v55 }
  0x27   :  { %v318_v1 = vld [vmem:[%s772_s0 + $0x130] sm:$0xf]  ;;  %v74_v2 = vmax.bf16 %v280_v52, %v47_v57  ;;  %v206_v3 = vmax.bf16 %v342_v54, %v179_v58  ;;  %v343_v4 = vld [vmem:[%s772_s0 + $0x194] sm:$0xf]  ;;  %v306_v6 = vld [vmem:[%s772_s0 + $0x100] sm:$0xf] }
  0x28   :  { %v127_v5 = vmax.bf16 %v305_v56, %v100_v60  ;;  %246 = vst.msk [vmem:[%s773_s1 + $0x20] sm:$0xf] %vm237_vm0, %v232_v62  ;;  %v180_v7 = vmax.bf16 %v330_v59, %v153_v0  ;;  %v331_v8 = vld [vmem:[%s772_s0 + $0x164] sm:$0xf]  ;;  %v356_v11 = vld [vmem:[%s772_s0 + $0x1c8] sm:$0xf] }
  0x29   :  { %v101_v9 = vmax.bf16 %v293_v61, %v74_v2  ;;  %v233_v10 = vmax.bf16 %v355_v63, %v206_v3  ;;  %v319_v13 = vld [vmem:[%s772_s0 + $0x134] sm:$0xf]  ;;  %v344_v15 = vld [vmem:[%s772_s0 + $0x198] sm:$0xf]  ;;  %v332_v18 = vld [vmem:[%s772_s0 + $0x168] sm:$0xf] }
  0x2a   :  { %v154_v12 = vmax.bf16 %v318_v1, %v127_v5  ;;  %v207_v14 = vmax.bf16 %v343_v4, %v180_v7  ;;  %v357_v20 = vld [vmem:[%s772_s0 + $0x1cc] sm:$0xf]  ;;  %v345_v23 = vld [vmem:[%s772_s0 + $0x19c] sm:$0xf]  ;;  %v358_v26 = vld [vmem:[%s772_s0 + $0x1d0] sm:$0xf] }
  0x2b   :  { %v128_v16 = vmax.bf16 %v306_v6, %v101_v9  ;;  %247 = vst.msk [vmem:[%s773_s1 + $0x24] sm:$0xf] %vm237_vm0, %v233_v10 }
  0x2c   :  { %v181_v17 = vmax.bf16 %v331_v8, %v154_v12  ;;  %v234_v19 = vmax.bf16 %v356_v11, %v207_v14 }
  0x2d   :  { %v155_v21 = vmax.bf16 %v319_v13, %v128_v16 }
  0x2e   :  { %v208_v22 = vmax.bf16 %v344_v15, %v181_v17  ;;  %248 = vst.msk [vmem:[%s773_s1 + $0x28] sm:$0xf] %vm237_vm0, %v234_v19 }
  0x2f   :  { %v182_v24 = vmax.bf16 %v332_v18, %v155_v21 }
  0x30   :  { %v235_v25 = vmax.bf16 %v357_v20, %v208_v22 }
  0x31   :  { %v209_v27 = vmax.bf16 %v345_v23, %v182_v24 }
  0x32   :  { %249 = vst.msk [vmem:[%s773_s1 + $0x2c] sm:$0xf] %vm237_vm0, %v235_v25 }
  0x33   :  { %v236_v28 = vmax.bf16 %v358_v26, %v209_v27 }
  0x35   :  { %250 = vst.msk [vmem:[%s773_s1 + $0x30] sm:$0xf] %vm237_vm0, %v236_v28 }

// kernel: _lambda_.13
= control target key start
LH: loop header
LB: loop body
LE: loop exit
PB: predicated region body
PF: predicated region fallthrough
CT: control target
= control target key end

     0   :  { %vm67_vm0 = vcmask 1043456   ;;  %vm68_vm1 = vcmask 523268   ;;  %s201_s0 = inlined_call_operand.vmem [shape: bf16[9,24,192], index: 0, kind: input, shape index: {}]   ;;  %s202_s1 = inlined_call_operand.vmem [shape: bf16[24,192], index: 1, kind: output, shape index: {}]  }
   0x1   :  { %v8_v0 = vld [vmem:[%s201_s0] sm:$0xff]  ;;  %v77_v1 = vld [vmem:[%s201_s0 + $0x18] sm:$0xff]  ;;  %v80_v2 = vld [vmem:[%s201_s0 + $0x30] sm:$0xff] }
   0x2   :  { %v15_v3 = vmax.bf16 %v77_v1, %v8_v0  ;;  %v83_v4 = vld [vmem:[%s201_s0 + $0x48] sm:$0xff]  ;;  %v78_v7 = vld [vmem:[%s201_s0 + $0x20] sm:$0xff]  ;;  %v81_v10 = vld [vmem:[%s201_s0 + $0x38] sm:$0xff] }
   0x3   :  { %v9_v6 = vld [vmem:[%s201_s0 + $0x8] sm:$0xff]  ;;  %v86_v8 = vld [vmem:[%s201_s0 + $0x60] sm:$0xff]  ;;  %v84_v12 = vld [vmem:[%s201_s0 + $0x50] sm:$0xff] }
   0x4   :  { %v22_v5 = vmax.bf16 %v80_v2, %v15_v3  ;;  %v16_v9 = vmax.bf16 %v78_v7, %v9_v6  ;;  %v89_v13 = vld [vmem:[%s201_s0 + $0x78] sm:$0xff]  ;;  %v10_v15 = vld [vmem:[%s201_s0 + $0x10] sm:$0xff]  ;;  %v79_v16 = vld [vmem:[%s201_s0 + $0x28] sm:$0xff] }
   0x5   :  { %v87_v18 = vld [vmem:[%s201_s0 + $0x68] sm:$0xff]  ;;  %v17_v19 = vmax.bf16 %v79_v16, %v10_v15  ;;  %v82_v20 = vld [vmem:[%s201_s0 + $0x40] sm:$0xff]  ;;  %v92_v21 = vld [vmem:[%s201_s0 + $0x90] sm:$0xff] }
   0x6   :  { %v29_v11 = vmax.bf16 %v83_v4, %v22_v5  ;;  %v23_v14 = vmax.bf16 %v81_v10, %v16_v9  ;;  %v85_v23 = vld [vmem:[%s201_s0 + $0x58] sm:$0xff]  ;;  %v90_v25 = vld [vmem:[%s201_s0 + $0x80] sm:$0xff]  ;;  %v95_v27 = vld [vmem:[%s201_s0 + $0xa8] sm:$0xff] }
   0x7   :  { %v24_v26 = vmax.bf16 %v82_v20, %v17_v19  ;;  %v88_v29 = vld [vmem:[%s201_s0 + $0x70] sm:$0xff]  ;;  %v93_v31 = vld [vmem:[%s201_s0 + $0x98] sm:$0xff]  ;;  %v98_v33 = vld [vmem:[%s201_s0 + $0xc0] sm:$0xff] }
   0x8   :  { %v36_v17 = vmax.bf16 %v86_v8, %v29_v11  ;;  %v30_v22 = vmax.bf16 %v84_v12, %v23_v14  ;;  %v91_v35 = vld [vmem:[%s201_s0 + $0x88] sm:$0xff]  ;;  %v96_v37 = vld [vmem:[%s201_s0 + $0xb0] sm:$0xff]  ;;  %vm69_vm2 = vmor %vm68_vm1, %vm67_vm0 }
   0x9   :  { %v31_v32 = vmax.bf16 %v85_v23, %v24_v26  ;;  %v94_v40 = vld [vmem:[%s201_s0 + $0xa0] sm:$0xff]  ;;  %v99_v42 = vld [vmem:[%s201_s0 + $0xc8] sm:$0xff]  ;;  %v97_v45 = vld [vmem:[%s201_s0 + $0xb8] sm:$0xff] }
   0xa   :  { %v43_v24 = vmax.bf16 %v89_v13, %v36_v17  ;;  %v37_v28 = vmax.bf16 %v87_v18, %v30_v22  ;;  %v100_v48 = vld [vmem:[%s201_s0 + $0xd0] sm:$0xff] }
   0xb   :  { %v38_v38 = vmax.bf16 %v88_v29, %v31_v32 }
   0xc   :  { %v50_v30 = vmax.bf16 %v92_v21, %v43_v24  ;;  %v44_v34 = vmax.bf16 %v90_v25, %v37_v28 }
   0xd   :  { %v45_v43 = vmax.bf16 %v91_v35, %v38_v38 }
   0xe   :  { %v57_v36 = vmax.bf16 %v95_v27, %v50_v30  ;;  %v51_v39 = vmax.bf16 %v93_v31, %v44_v34 }
   0xf   :  { %v52_v46 = vmax.bf16 %v94_v40, %v45_v43 }
  0x10   :  { %v64_v41 = vmax.bf16 %v98_v33, %v57_v36  ;;  %v58_v44 = vmax.bf16 %v96_v37, %v51_v39 }
  0x11   :  { %v59_v49 = vmax.bf16 %v97_v45, %v52_v46 }
  0x12   :  { %70 = vst.msk [vmem:[%s202_s1] sm:$0xff] %vm69_vm2, %v64_v41  ;;  %v65_v47 = vmax.bf16 %v99_v42, %v58_v44 }
  0x13   :  { %v66_v50 = vmax.bf16 %v100_v48, %v59_v49 }
  0x14   :  { %71 = vst.msk [vmem:[%s202_s1 + $0x8] sm:$0xff] %vm69_vm2, %v65_v47 }
  0x15   :  { %72 = vst.msk [vmem:[%s202_s1 + $0x10] sm:$0xff] %vm69_vm2, %v66_v50 }

// kernel: _lambda_.12
= control target key start
LH: loop header
LB: loop body
LE: loop exit
PB: predicated region body
PF: predicated region fallthrough
CT: control target
= control target key end

     0   :  { %s4929_s1 = inlined_call_operand.vmem [shape: bf16[1664,256], index: 1, kind: input, shape index: {}]   ;;  %s4930_s0 = inlined_call_operand.vmem [shape: bf16[104,1664], index: 0, kind: input, shape index: {}]   ;;  %s4931_s2 = inlined_call_operand.vmem [shape: f32[1,256], index: 2, kind: input, shape index: {}]   ;;  %s4932_s3 = inlined_call_operand.vmem [shape: bf16[104,256], index: 3, kind: output, shape index: {}]  }
   0x1   :  { %v3303_v0 = vld [vmem:[%s4929_s1 + $0x4] ss:$8 sps:$4 sm:$0xff]   ;;  %v3307_v2 = vld [vmem:[%s4929_s1] ss:$8 sps:$4 sm:$0xff]   ;;  %v3309_v4 = vld [vmem:[%s4929_s1 + $0x14] ss:$8 sps:$4 sm:$0xff]  }
   0x2   :  { %v3305_v1 = vld [vmem:[%s4929_s1 + $0x304] ss:$8 sps:$4 sm:$0xff]   ;;  %1852 = vmatprep.subr.bf16.mxu1 %v3303_v0  ;;  %v3308_v3 = vld [vmem:[%s4929_s1 + $0x300] ss:$8 sps:$4 sm:$0xff]   ;;  %v3311_v5 = vld [vmem:[%s4929_s1 + $0x314] ss:$8 sps:$4 sm:$0xff]  }
   0x3   :  { %2155 = vmatprep.subr.bf16.mxu0 %v3305_v1  ;;  %1853 = vmatpush1.bf16.msra.mxu1 %v3307_v2  ;;  %v3313_v6 = vld [vmem:[%s4929_s1 + $0x10] ss:$8 sps:$4 sm:$0xff]   ;;  %v3315_v8 = vld [vmem:[%s4929_s1 + $0x24] ss:$8 sps:$4 sm:$0xff]   ;;  %v3319_v10 = vld [vmem:[%s4929_s1 + $0x20] ss:$8 sps:$4 sm:$0xff]  }
   0x4   :  { %2156 = vmatpush1.bf16.msra.mxu0 %v3308_v3  ;;  %1854 = vmatprep.subr.bf16.mxu1 %v3309_v4  ;;  %v3314_v7 = vld [vmem:[%s4929_s1 + $0x310] ss:$8 sps:$4 sm:$0xff]   ;;  %v3317_v9 = vld [vmem:[%s4929_s1 + $0x324] ss:$8 sps:$4 sm:$0xff]   ;;  %v3320_v11 = vld [vmem:[%s4929_s1 + $0x320] ss:$8 sps:$4 sm:$0xff]  }
   0x5   :  { %2157 = vmatprep.subr.bf16.mxu0 %v3311_v5  ;;  %v3321_v12 = vld [vmem:[%s4929_s1 + $0x34] ss:$8 sps:$4 sm:$0xff]   ;;  %v3325_v14 = vld [vmem:[%s4929_s1 + $0x30] ss:$8 sps:$4 sm:$0xff]   ;;  %v3327_v16 = vld [vmem:[%s4929_s1 + $0x44] ss:$8 sps:$4 sm:$0xff]  }
   0x6   :  { %v3323_v13 = vld [vmem:[%s4929_s1 + $0x334] ss:$8 sps:$4 sm:$0xff]   ;;  %v3326_v15 = vld [vmem:[%s4929_s1 + $0x330] ss:$8 sps:$4 sm:$0xff]   ;;  %v3329_v17 = vld [vmem:[%s4929_s1 + $0x344] ss:$8 sps:$4 sm:$0xff]  }
   0x7   :  { %1855 = vmatpush1.bf16.msra.mxu1 %v3313_v6  ;;  %v3331_v18 = vld [vmem:[%s4929_s1 + $0x40] ss:$8 sps:$4 sm:$0xff]   ;;  %v3333_v20 = vld [vmem:[%s4929_s1 + $0x54] ss:$8 sps:$4 sm:$0xff]   ;;  %v3337_v22 = vld [vmem:[%s4929_s1 + $0x50] ss:$8 sps:$4 sm:$0xff]  }
   0x8   :  { %2158 = vmatpush1.bf16.msra.mxu0 %v3314_v7  ;;  %1856 = vmatprep.subr.bf16.mxu1 %v3315_v8  ;;  %v3332_v19 = vld [vmem:[%s4929_s1 + $0x340] ss:$8 sps:$4 sm:$0xff]   ;;  %v3335_v21 = vld [vmem:[%s4929_s1 + $0x354] ss:$8 sps:$4 sm:$0xff]   ;;  %v3338_v23 = vld [vmem:[%s4929_s1 + $0x350] ss:$8 sps:$4 sm:$0xff]  }
   0x9   :  { %2159 = vmatprep.subr.bf16.mxu0 %v3317_v9  ;;  %v3339_v24 = vld [vmem:[%s4929_s1 + $0x64] ss:$8 sps:$4 sm:$0xff]   ;;  %v3343_v26 = vld [vmem:[%s4929_s1 + $0x60] ss:$8 sps:$4 sm:$0xff]   ;;  %v3345_v28 = vld [vmem:[%s4929_s1 + $0x74] ss:$8 sps:$4 sm:$0xff]  }
   0xa   :  { %v3341_v25 = vld [vmem:[%s4929_s1 + $0x364] ss:$8 sps:$4 sm:$0xff]   ;;  %v3344_v27 = vld [vmem:[%s4929_s1 + $0x360] ss:$8 sps:$4 sm:$0xff]   ;;  %v3347_v29 = vld [vmem:[%s4929_s1 + $0x374] ss:$8 sps:$4 sm:$0xff]  }
   0xb   :  { %1857 = vmatpush1.bf16.msra.mxu1 %v3319_v10  ;;  %v3349_v30 = vld [vmem:[%s4929_s1 + $0x70] ss:$8 sps:$4 sm:$0xff]   ;;  %v3351_v32 = vld [vmem:[%s4929_s1 + $0x84] ss:$8 sps:$4 sm:$0xff]   ;;  %v3355_v34 = vld [vmem:[%s4929_s1 + $0x80] ss:$8 sps:$4 sm:$0xff]  }
   0xc   :  { %2160 = vmatpush1.bf16.msra.mxu0 %v3320_v11  ;;  %1858 = vmatprep.subr.bf16.mxu1 %v3321_v12  ;;  %v3350_v31 = vld [vmem:[%s4929_s1 + $0x370] ss:$8 sps:$4 sm:$0xff]   ;;  %v3353_v33 = vld [vmem:[%s4929_s1 + $0x384] ss:$8 sps:$4 sm:$0xff]   ;;  %v3356_v35 = vld [vmem:[%s4929_s1 + $0x380] ss:$8 sps:$4 sm:$0xff]  }
   0xd   :  { %2161 = vmatprep.subr.bf16.mxu0 %v3323_v13  ;;  %v3357_v36 = vld [vmem:[%s4929_s1 + $0x94] ss:$8 sps:$4 sm:$0xff]   ;;  %v3361_v38 = vld [vmem:[%s4929_s1 + $0x90] ss:$8 sps:$4 sm:$0xff]   ;;  %v3363_v40 = vld [vmem:[%s4929_s1 + $0xa4] ss:$8 sps:$4 sm:$0xff]  }
   0xe   :  { %v3359_v37 = vld [vmem:[%s4929_s1 + $0x394] ss:$8 sps:$4 sm:$0xff]   ;;  %v3362_v39 = vld [vmem:[%s4929_s1 + $0x390] ss:$8 sps:$4 sm:$0xff]   ;;  %v3365_v41 = vld [vmem:[%s4929_s1 + $0x3a4] ss:$8 sps:$4 sm:$0xff]  }
   0xf   :  { %1859 = vmatpush1.bf16.msra.mxu1 %v3325_v14  ;;  %v3367_v42 = vld [vmem:[%s4929_s1 + $0xa0] ss:$8 sps:$4 sm:$0xff]   ;;  %v3369_v44 = vld [vmem:[%s4929_s1 + $0xb4] ss:$8 sps:$4 sm:$0xff]   ;;  %v3373_v46 = vld [vmem:[%s4929_s1 + $0xb0] ss:$8 sps:$4 sm:$0xff]  }
  0x10   :  { %2162 = vmatpush1.bf16.msra.mxu0 %v3326_v15  ;;  %1860 = vmatprep.subr.bf16.mxu1 %v3327_v16  ;;  %v3368_v43 = vld [vmem:[%s4929_s1 + $0x3a0] ss:$8 sps:$4 sm:$0xff]   ;;  %v3371_v45 = vld [vmem:[%s4929_s1 + $0x3b4] ss:$8 sps:$4 sm:$0xff]   ;;  %v3374_v47 = vld [vmem:[%s4929_s1 + $0x3b0] ss:$8 sps:$4 sm:$0xff]  }
  0x11   :  { %2163 = vmatprep.subr.bf16.mxu0 %v3329_v17  ;;  %v3401_v48 = vld [vmem:[%s4930_s0 + $0x4] ss:$52 sps:$4 sm:$0xff]   ;;  %v3407_v51 = vld [vmem:[%s4930_s0 + $0x1c] ss:$52 sps:$4 sm:$0xff]   ;;  %v3379_v52 = vld [vmem:[%s4929_s1 + $0xc0] ss:$8 sps:$4 sm:$0xff]  }
  0x12   :  { %v3375_v49 = vld [vmem:[%s4929_s1 + $0xc4] ss:$8 sps:$4 sm:$0xff]   ;;  %1884 = vmatprep.mubr.bf16.mxu1 %v3401_v48  ;;  %v3380_v53 = vld [vmem:[%s4929_s1 + $0x3c0] ss:$8 sps:$4 sm:$0xff]   ;;  %v3381_v54 = vld [vmem:[%s4929_s1 + $0xd4] ss:$8 sps:$4 sm:$0xff]   ;;  %2187 = vmatprep.mubr.bf16.mxu0 %v3407_v51 }
  0x13   :  { %1861 = vmatpush1.bf16.msra.mxu1 %v3331_v18  ;;  %v3377_v50 = vld [vmem:[%s4929_s1 + $0x3c4] ss:$8 sps:$4 sm:$0xff]   ;;  %v3383_v55 = vld [vmem:[%s4929_s1 + $0x3d4] ss:$8 sps:$4 sm:$0xff]   ;;  %v3385_v56 = vld [vmem:[%s4929_s1 + $0xd0] ss:$8 sps:$4 sm:$0xff]  }
  0x14   :  { %2164 = vmatpush1.bf16.msra.mxu0 %v3332_v19  ;;  %1862 = vmatprep.subr.bf16.mxu1 %v3333_v20  ;;  %v3386_v57 = vld [vmem:[%s4929_s1 + $0x3d0] ss:$8 sps:$4 sm:$0xff]   ;;  %v3387_v58 = vld [vmem:[%s4929_s1 + $0xe4] ss:$8 sps:$4 sm:$0xff]   ;;  %v3391_v60 = vld [vmem:[%s4929_s1 + $0xe0] ss:$8 sps:$4 sm:$0xff]  }
  0x15   :  { %2165 = vmatprep.subr.bf16.mxu0 %v3335_v21  ;;  %v3389_v59 = vld [vmem:[%s4929_s1 + $0x3e4] ss:$8 sps:$4 sm:$0xff]   ;;  %v3392_v61 = vld [vmem:[%s4929_s1 + $0x3e0] ss:$8 sps:$4 sm:$0xff]   ;;  %v3393_v62 = vld [vmem:[%s4929_s1 + $0xf4] ss:$8 sps:$4 sm:$0xff]  }
  0x16   :  { %v3395_v63 = vld [vmem:[%s4929_s1 + $0x3f4] ss:$8 sps:$4 sm:$0xff]   ;;  %v3397_v0 = vld [vmem:[%s4929_s1 + $0xf0] ss:$8 sps:$4 sm:$0xff]   ;;  %v3404_v2 = vld [vmem:[%s4929_s1 + $0x104] ss:$8 sps:$4 sm:$0xff]  }
  0x17   :  { %1863 = vmatpush1.bf16.msra.mxu1 %v3337_v22  ;;  %v3398_v1 = vld [vmem:[%s4929_s1 + $0x3f0] ss:$8 sps:$4 sm:$0xff]   ;;  %v3410_v3 = vld [vmem:[%s4929_s1 + $0x404] ss:$8 sps:$4 sm:$0xff]   ;;  %v3399_v4 = vld [vmem:[%s4930_s0] ss:$52 sps:$4 sm:$0xff]  }
  0x18   :  { %2166 = vmatpush1.bf16.msra.mxu0 %v3338_v23  ;;  %1864 = vmatprep.subr.bf16.mxu1 %v3339_v24  ;;  %v3402_v5 = vld [vmem:[%s4929_s1 + $0x100] ss:$8 sps:$4 sm:$0xff]   ;;  %v3405_v6 = vld [vmem:[%s4930_s0 + $0x18] ss:$52 sps:$4 sm:$0xff]   ;;  %v3413_v8 = vld [vmem:[%s4929_s1 + $0x114] ss:$8 sps:$4 sm:$0xff]  }
  0x19   :  { %2167 = vmatprep.subr.bf16.mxu0 %v3341_v25  ;;  %v3408_v7 = vld [vmem:[%s4929_s1 + $0x400] ss:$8 sps:$4 sm:$0xff]   ;;  %v3416_v9 = vld [vmem:[%s4929_s1 + $0x414] ss:$8 sps:$4 sm:$0xff]   ;;  %v3432_v11 = vld [vmem:[%s4930_s0 + $0x84] ss:$52 sps:$4 sm:$0xff]  }
  0x1a   :  { %v3429_v10 = vld [vmem:[%s4930_s0 + $0x6c] ss:$52 sps:$4 sm:$0xff]   ;;  %v3411_v12 = vld [vmem:[%s4929_s1 + $0x110] ss:$8 sps:$4 sm:$0xff]   ;;  %v3431_v18 = vld [vmem:[%s4930_s0 + $0x68] ss:$52 sps:$4 sm:$0xff]  }
  0x1b   :  { %1865 = vmatpush1.bf16.msra.mxu1 %v3343_v26  ;;  %v3414_v13 = vld [vmem:[%s4929_s1 + $0x410] ss:$8 sps:$4 sm:$0xff]   ;;  %v3419_v14 = vld [vmem:[%s4929_s1 + $0x124] ss:$8 sps:$4 sm:$0xff]   ;;  %v3417_v16 = vld [vmem:[%s4929_s1 + $0x120] ss:$8 sps:$4 sm:$0xff]  }
  0x1c   :  { %2168 = vmatpush1.bf16.msra.mxu0 %v3344_v27  ;;  %1866 = vmatprep.subr.bf16.mxu1 %v3345_v28  ;;  %v3422_v15 = vld [vmem:[%s4929_s1 + $0x424] ss:$8 sps:$4 sm:$0xff]   ;;  %v3420_v17 = vld [vmem:[%s4929_s1 + $0x420] ss:$8 sps:$4 sm:$0xff]   ;;  %v3425_v20 = vld [vmem:[%s4929_s1 + $0x134] ss:$8 sps:$4 sm:$0xff]  }
  0x1d   :  { %2169 = vmatprep.subr.bf16.mxu0 %v3347_v29  ;;  %v3434_v19 = vld [vmem:[%s4930_s0 + $0x80] ss:$52 sps:$4 sm:$0xff]   ;;  %v3423_v24 = vld [vmem:[%s4929_s1 + $0x130] ss:$8 sps:$4 sm:$0xff]   ;;  %v3437_v26 = vld [vmem:[%s4929_s1 + $0x144] ss:$8 sps:$4 sm:$0xff]  }
  0x1e   :  { %v3428_v21 = vld [vmem:[%s4929_s1 + $0x434] ss:$8 sps:$4 sm:$0xff]   ;;  %v3450_v23 = vld [vmem:[%s4930_s0 + $0xec] ss:$52 sps:$4 sm:$0xff]   ;;  %v3426_v25 = vld [vmem:[%s4929_s1 + $0x430] ss:$8 sps:$4 sm:$0xff]  }
  0x1f   :  { %1867 = vmatpush1.bf16.msra.mxu1 %v3349_v30  ;;  %v3447_v22 = vld [vmem:[%s4930_s0 + $0xd4] ss:$52 sps:$4 sm:$0xff]   ;;  %v3440_v27 = vld [vmem:[%s4929_s1 + $0x444] ss:$8 sps:$4 sm:$0xff]   ;;  %v3459_v48 = vld [vmem:[%s4929_s1 + $0x170] ss:$8 sps:$4 sm:$0xff]  }
  0x20   :  { %2170 = vmatpush1.bf16.msra.mxu0 %v3350_v31  ;;  %1868 = vmatprep.subr.bf16.mxu1 %v3351_v32  ;;  %v3435_v28 = vld [vmem:[%s4929_s1 + $0x140] ss:$8 sps:$4 sm:$0xff]   ;;  %v3449_v30 = vld [vmem:[%s4930_s0 + $0xd0] ss:$52 sps:$4 sm:$0xff]   ;;  %v3443_v32 = vld [vmem:[%s4929_s1 + $0x154] ss:$8 sps:$4 sm:$0xff]  }
  0x21   :  { %2171 = vmatprep.subr.bf16.mxu0 %v3353_v33  ;;  %v3438_v29 = vld [vmem:[%s4929_s1 + $0x440] ss:$8 sps:$4 sm:$0xff]   ;;  %v3446_v33 = vld [vmem:[%s4929_s1 + $0x454] ss:$8 sps:$4 sm:$0xff]   ;;  %v3476_v51 = vld [vmem:[%s4929_s1 + $0x484] ss:$8 sps:$4 sm:$0xff]  }
  0x22   :  { %v3452_v31 = vld [vmem:[%s4930_s0 + $0xe8] ss:$52 sps:$4 sm:$0xff]  }
  0x23   :  { %1869 = vmatpush1.bf16.msra.mxu1 %v3355_v34  ;;  %v3465_v34 = vld [vmem:[%s4930_s0 + $0x13c] ss:$52 sps:$4 sm:$0xff]  }
  0x24   :  { %2172 = vmatpush1.bf16.msra.mxu0 %v3356_v35  ;;  %1870 = vmatprep.subr.bf16.mxu1 %v3357_v36  ;;  %v3468_v35 = vld [vmem:[%s4930_s0 + $0x154] ss:$52 sps:$4 sm:$0xff]   ;;  %v3441_v36 = vld [vmem:[%s4929_s1 + $0x150] ss:$8 sps:$4 sm:$0xff]  }
  0x25   :  { %2173 = vmatprep.subr.bf16.mxu0 %v3359_v37  ;;  %v3444_v37 = vld [vmem:[%s4929_s1 + $0x450] ss:$8 sps:$4 sm:$0xff]  }
  0x27   :  { %1871 = vmatpush1.bf16.msra.mxu1 %v3361_v38  ;;  %v3455_v38 = vld [vmem:[%s4929_s1 + $0x164] ss:$8 sps:$4 sm:$0xff]  }
  0x28   :  { %2174 = vmatpush1.bf16.msra.mxu0 %v3362_v39  ;;  %1872 = vmatprep.subr.bf16.mxu1 %v3363_v40  ;;  %v3458_v39 = vld [vmem:[%s4929_s1 + $0x464] ss:$8 sps:$4 sm:$0xff]   ;;  %v3453_v40 = vld [vmem:[%s4929_s1 + $0x160] ss:$8 sps:$4 sm:$0xff]  }
  0x29   :  { %2175 = vmatprep.subr.bf16.mxu0 %v3365_v41  ;;  %v3456_v41 = vld [vmem:[%s4929_s1 + $0x460] ss:$8 sps:$4 sm:$0xff]  }
  0x2b   :  { %1873 = vmatpush1.bf16.msra.mxu1 %v3367_v42  ;;  %v3467_v42 = vld [vmem:[%s4930_s0 + $0x138] ss:$52 sps:$4 sm:$0xff]  }
  0x2c   :  { %2176 = vmatpush1.bf16.msra.mxu0 %v3368_v43  ;;  %1874 = vmatprep.subr.bf16.mxu1 %v3369_v44  ;;  %v3470_v43 = vld [vmem:[%s4930_s0 + $0x150] ss:$52 sps:$4 sm:$0xff]   ;;  %v3461_v44 = vld [vmem:[%s4929_s1 + $0x174] ss:$8 sps:$4 sm:$0xff]  }
  0x2d   :  { %2177 = vmatprep.subr.bf16.mxu0 %v3371_v45  ;;  %v3464_v45 = vld [vmem:[%s4929_s1 + $0x474] ss:$8 sps:$4 sm:$0xff]  }
  0x2f   :  { %1875 = vmatpush1.bf16.msra.mxu1 %v3373_v46  ;;  %v3483_v46 = vld [vmem:[%s4930_s0 + $0x1a4] ss:$52 sps:$4 sm:$0xff]  }
  0x30   :  { %2178 = vmatpush1.bf16.msra.mxu0 %v3374_v47  ;;  %1876 = vmatprep.subr.bf16.mxu1 %v3375_v49  ;;  %v3486_v47 = vld [vmem:[%s4930_s0 + $0x1bc] ss:$52 sps:$4 sm:$0xff]  }
  0x31   :  { %2179 = vmatprep.subr.bf16.mxu0 %v3377_v50  ;;  %v3462_v49 = vld [vmem:[%s4929_s1 + $0x470] ss:$8 sps:$4 sm:$0xff]   ;;  %v3473_v50 = vld [vmem:[%s4929_s1 + $0x184] ss:$8 sps:$4 sm:$0xff]  }
  0x33   :  { %1877 = vmatpush1.bf16.msra.mxu1 %v3379_v52  ;;  %v3471_v52 = vld [vmem:[%s4929_s1 + $0x180] ss:$8 sps:$4 sm:$0xff]  }
  0x34   :  { %2180 = vmatpush1.bf16.msra.mxu0 %v3380_v53  ;;  %1878 = vmatprep.subr.bf16.mxu1 %v3381_v54  ;;  %v3485_v53 = vld [vmem:[%s4930_s0 + $0x1a0] ss:$52 sps:$4 sm:$0xff]   ;;  %v3488_v54 = vld [vmem:[%s4930_s0 + $0x1b8] ss:$52 sps:$4 sm:$0xff]  }
  0x35   :  { %2181 = vmatprep.subr.bf16.mxu0 %v3383_v55  ;;  %v3474_v55 = vld [vmem:[%s4929_s1 + $0x480] ss:$8 sps:$4 sm:$0xff]  }
  0x37   :  { %1879 = vmatpush1.bf16.msra.mxu1 %v3385_v56  ;;  %v3479_v56 = vld [vmem:[%s4929_s1 + $0x194] ss:$8 sps:$4 sm:$0xff]  }
  0x38   :  { %2182 = vmatpush1.bf16.msra.mxu0 %v3386_v57  ;;  %1880 = vmatprep.subr.bf16.mxu1 %v3387_v58  ;;  %v3482_v57 = vld [vmem:[%s4929_s1 + $0x494] ss:$8 sps:$4 sm:$0xff]   ;;  %v3501_v58 = vld [vmem:[%s4930_s0 + $0x20c] ss:$52 sps:$4 sm:$0xff]  }
  0x39   :  { %2183 = vmatprep.subr.bf16.mxu0 %v3389_v59  ;;  %v3477_v59 = vld [vmem:[%s4929_s1 + $0x190] ss:$8 sps:$4 sm:$0xff]  }
  0x3b   :  { %1881 = vmatpush1.bf16.msra.mxu1 %v3391_v60  ;;  %v3504_v60 = vld [vmem:[%s4930_s0 + $0x224] ss:$52 sps:$4 sm:$0xff]  }
  0x3c   :  { %2184 = vmatpush1.bf16.msra.mxu0 %v3392_v61  ;;  %1882 = vmatprep.subr.bf16.mxu1 %v3393_v62  ;;  %v3480_v61 = vld [vmem:[%s4929_s1 + $0x490] ss:$8 sps:$4 sm:$0xff]   ;;  %v3491_v62 = vld [vmem:[%s4929_s1 + $0x1a4] ss:$8 sps:$4 sm:$0xff]  }
  0x3d   :  { %2185 = vmatprep.subr.bf16.mxu0 %v3395_v63  ;;  %v3494_v63 = vld [vmem:[%s4929_s1 + $0x4a4] ss:$8 sps:$4 sm:$0xff]  }
  0x3f   :  { %1883 = vmatpush1.bf16.msra.mxu1 %v3397_v0  ;;  %v3503_v0 = vld [vmem:[%s4930_s0 + $0x208] ss:$52 sps:$4 sm:$0xff]  }
  0x40   :  { %2186 = vmatpush1.bf16.msra.mxu0 %v3398_v1  ;;  %1953 = vmatprep.subr.bf16.mxu1 %v3404_v2  ;;  %v3506_v1 = vld [vmem:[%s4930_s0 + $0x220] ss:$52 sps:$4 sm:$0xff]  }
  0x41   :  { %2256 = vmatprep.subr.bf16.mxu0 %v3410_v3  ;;  %v155_v2 = vld [vmem:[%s4930_s0 + $0x270] sm:$0xff]  ;;  %v158_v3 = vld [vmem:[%s4930_s0 + $0x288] sm:$0xff] }
  0x42   :  { %1885 = vmatmul.mubr.bf16.vlgmr.msra.gmra.mrb[0].mxu1 %v3399_v4  ;;  %v3489_v4 = vld [vmem:[%s4929_s1 + $0x1a0] ss:$8 sps:$4 sm:$0xff]  }
  0x43   :  { %2188 = vmatmul.mubr.bf16.vlgmr.msra.gmra.mrb[0].mxu0 %v3405_v6  ;;  %1954 = vmatpush1.bf16.msra.mxu1 %v3402_v5  ;;  %v3492_v5 = vld [vmem:[%s4929_s1 + $0x4a0] ss:$8 sps:$4 sm:$0xff]   ;;  %v3497_v6 = vld [vmem:[%s4929_s1 + $0x1b4] ss:$8 sps:$4 sm:$0xff]  }
  0x44   :  { %2257 = vmatpush1.bf16.msra.mxu0 %v3408_v7  ;;  %1955 = vmatprep.subr.bf16.mxu1 %v3413_v8  ;;  %v3500_v7 = vld [vmem:[%s4929_s1 + $0x4b4] ss:$8 sps:$4 sm:$0xff]   ;;  %v2880_v8 = vcombine.high %v155_v2, %v155_v2 }
  0x45   :  { %2258 = vmatprep.subr.bf16.mxu0 %v3416_v9  ;;  %1894 = vmatprep.mubr.bf16.mxu1 %v3429_v10  ;;  %v2886_v9 = vcombine.high %v158_v3, %v158_v3  ;;  %v3495_v10 = vld [vmem:[%s4929_s1 + $0x1b0] ss:$8 sps:$4 sm:$0xff]  }
  0x46   :  { %2197 = vmatprep.mubr.bf16.mxu0 %v3432_v11  ;;  %v3498_v11 = vld [vmem:[%s4929_s1 + $0x4b0] ss:$8 sps:$4 sm:$0xff]  }
  0x47   :  { %1956 = vmatpush1.bf16.msra.mxu1 %v3411_v12  ;;  %v3509_v12 = vld [vmem:[%s4929_s1 + $0x1c4] ss:$8 sps:$4 sm:$0xff]  }
  0x48   :  { %2259 = vmatpush1.bf16.msra.mxu0 %v3414_v13  ;;  %1957 = vmatprep.subr.bf16.mxu1 %v3419_v14  ;;  %v3512_v13 = vld [vmem:[%s4929_s1 + $0x4c4] ss:$8 sps:$4 sm:$0xff]   ;;  %v3507_v14 = vld [vmem:[%s4929_s1 + $0x1c0] ss:$8 sps:$4 sm:$0xff]  }
  0x49   :  { %2260 = vmatprep.subr.bf16.mxu0 %v3422_v15  ;;  %v2879_v15 = vcombine.low %v155_v2, %v155_v2  ;;  %v3583_v2 = vld [vmem:[%s4929_s1 + $0x250] ss:$8 sps:$4 sm:$0xff]  }
  0x4a   :  { %1895 = vmatmul.mubr.bf16.gmra.mrb[4].mxu1 %v3431_v18  ;;  %v3515_v18 = vld [vmem:[%s4929_s1 + $0x1d4] ss:$8 sps:$4 sm:$0xff]  }
  0x4b   :  { %2198 = vmatmul.mubr.bf16.gmra.mrb[4].mxu0 %v3434_v19  ;;  %1958 = vmatpush1.bf16.msra.mxu1 %v3417_v16  ;;  %v2885_v16 = vcombine.low %v158_v3, %v158_v3  ;;  %v3518_v19 = vld [vmem:[%s4929_s1 + $0x4d4] ss:$8 sps:$4 sm:$0xff]   ;;  %v4371_v3 = vld [vmem:[%s4929_s1 + $0x550] ss:$8 sps:$4 sm:$0xff]  }
  0x4c   :  { %2261 = vmatpush1.bf16.msra.mxu0 %v3420_v17  ;;  %1959 = vmatprep.subr.bf16.mxu1 %v3425_v20  ;;  %v3510_v17 = vld [vmem:[%s4929_s1 + $0x4c0] ss:$8 sps:$4 sm:$0xff]  }
  0x4d   :  { %2262 = vmatprep.subr.bf16.mxu0 %v3428_v21  ;;  %1904 = vmatprep.mubr.bf16.mxu1 %v3447_v22  ;;  %v3537_v20 = vld [vmem:[%s4930_s0 + $0xc] ss:$52 sps:$4 sm:$0xff]   ;;  %v3540_v21 = vld [vmem:[%s4930_s0 + $0x24] ss:$52 sps:$4 sm:$0xff]  }
  0x4e   :  { %2207 = vmatprep.mubr.bf16.mxu0 %v3450_v23  ;;  %v3513_v22 = vld [vmem:[%s4929_s1 + $0x1d0] ss:$8 sps:$4 sm:$0xff]  }
  0x4f   :  { %1960 = vmatpush1.bf16.msra.mxu1 %v3423_v24  ;;  %v3516_v23 = vld [vmem:[%s4929_s1 + $0x4d0] ss:$8 sps:$4 sm:$0xff]   ;;  %v3525_v24 = vld [vmem:[%s4929_s1 + $0x1e4] ss:$8 sps:$4 sm:$0xff]  }
  0x50   :  { %2263 = vmatpush1.bf16.msra.mxu0 %v3426_v25  ;;  %1961 = vmatprep.subr.bf16.mxu1 %v3437_v26  ;;  %v3528_v25 = vld [vmem:[%s4929_s1 + $0x4e4] ss:$8 sps:$4 sm:$0xff]   ;;  %v3523_v26 = vld [vmem:[%s4929_s1 + $0x1e0] ss:$8 sps:$4 sm:$0xff]  }
  0x51   :  { %2264 = vmatprep.subr.bf16.mxu0 %v3440_v27  ;;  %v3526_v27 = vld [vmem:[%s4929_s1 + $0x4e0] ss:$8 sps:$4 sm:$0xff]  }
  0x52   :  { %1905 = vmatmul.mubr.bf16.gmra.mrb[8].mxu1 %v3449_v30  ;;  %v3529_v30 = vld [vmem:[%s4929_s1 + $0x1f0] ss:$8 sps:$4 sm:$0xff]  }
  0x53   :  { %2208 = vmatmul.mubr.bf16.gmra.mrb[8].mxu0 %v3452_v31  ;;  %1962 = vmatpush1.bf16.msra.mxu1 %v3435_v28  ;;  %v3531_v28 = vld [vmem:[%s4929_s1 + $0x1f4] ss:$8 sps:$4 sm:$0xff]   ;;  %v3532_v31 = vld [vmem:[%s4929_s1 + $0x4f0] ss:$8 sps:$4 sm:$0xff]  }
  0x54   :  { %2265 = vmatpush1.bf16.msra.mxu0 %v3438_v29  ;;  %1963 = vmatprep.subr.bf16.mxu1 %v3443_v32  ;;  %v3534_v29 = vld [vmem:[%s4929_s1 + $0x4f4] ss:$8 sps:$4 sm:$0xff]  }
  0x55   :  { %2266 = vmatprep.subr.bf16.mxu0 %v3446_v33  ;;  %1914 = vmatprep.mubr.bf16.mxu1 %v3465_v34  ;;  %v3535_v32 = vld [vmem:[%s4930_s0 + $0x8] ss:$52 sps:$4 sm:$0xff]   ;;  %v3543_v33 = vld [vmem:[%s4929_s1 + $0x204] ss:$8 sps:$4 sm:$0xff]  }
  0x56   :  { %2217 = vmatprep.mubr.bf16.mxu0 %v3468_v35  ;;  %v4240_v34 = vld [vmem:[%s4929_s1 + $0x504] ss:$8 sps:$4 sm:$0xff]   ;;  %v3538_v35 = vld [vmem:[%s4930_s0 + $0x20] ss:$52 sps:$4 sm:$0xff]  }
  0x57   :  { %1964 = vmatpush1.bf16.msra.mxu1 %v3441_v36  ;;  %v3541_v36 = vld [vmem:[%s4929_s1 + $0x200] ss:$8 sps:$4 sm:$0xff]  }
  0x58   :  { %2267 = vmatpush1.bf16.msra.mxu0 %v3444_v37  ;;  %1965 = vmatprep.subr.bf16.mxu1 %v3455_v38  ;;  %v4251_v37 = vld [vmem:[%s4929_s1 + $0x500] ss:$8 sps:$4 sm:$0xff]   ;;  %v3549_v38 = vld [vmem:[%s4929_s1 + $0x214] ss:$8 sps:$4 sm:$0xff]  }
  0x59   :  { %2268 = vmatprep.subr.bf16.mxu0 %v3458_v39  ;;  %v4260_v39 = vld [vmem:[%s4929_s1 + $0x514] ss:$8 sps:$4 sm:$0xff]  }
  0x5a   :  { %1915 = vmatmul.mubr.bf16.gmra.mrb[12].mxu1 %v3467_v42  ;;  %v3547_v42 = vld [vmem:[%s4929_s1 + $0x210] ss:$8 sps:$4 sm:$0xff]  }
  0x5b   :  { %2218 = vmatmul.mubr.bf16.gmra.mrb[12].mxu0 %v3470_v43  ;;  %1966 = vmatpush1.bf16.msra.mxu1 %v3453_v40  ;;  %v3553_v40 = vld [vmem:[%s4930_s0 + $0x74] ss:$52 sps:$4 sm:$0xff]   ;;  %v4275_v43 = vld [vmem:[%s4929_s1 + $0x510] ss:$8 sps:$4 sm:$0xff]  }
  0x5c   :  { %2269 = vmatpush1.bf16.msra.mxu0 %v3456_v41  ;;  %1967 = vmatprep.subr.bf16.mxu1 %v3461_v44  ;;  %v3555_v41 = vld [vmem:[%s4930_s0 + $0x8c] ss:$52 sps:$4 sm:$0xff]   ;;  %v3557_v44 = vld [vmem:[%s4930_s0 + $0x70] ss:$52 sps:$4 sm:$0xff]  }
  0x5d   :  { %2270 = vmatprep.subr.bf16.mxu0 %v3464_v45  ;;  %1924 = vmatprep.mubr.bf16.mxu1 %v3483_v46  ;;  %v3560_v45 = vld [vmem:[%s4929_s1 + $0x224] ss:$8 sps:$4 sm:$0xff]  }
  0x5e   :  { %2227 = vmatprep.mubr.bf16.mxu0 %v3486_v47  ;;  %v4287_v46 = vld [vmem:[%s4929_s1 + $0x524] ss:$8 sps:$4 sm:$0xff]   ;;  %v3558_v47 = vld [vmem:[%s4929_s1 + $0x220] ss:$8 sps:$4 sm:$0xff]  }
  0x5f   :  { %1968 = vmatpush1.bf16.msra.mxu1 %v3459_v48  ;;  %v3561_v48 = vld [vmem:[%s4930_s0 + $0x88] ss:$52 sps:$4 sm:$0xff]  }
  0x60   :  { %2271 = vmatpush1.bf16.msra.mxu0 %v3462_v49  ;;  %1969 = vmatprep.subr.bf16.mxu1 %v3473_v50  ;;  %v4299_v49 = vld [vmem:[%s4929_s1 + $0x520] ss:$8 sps:$4 sm:$0xff]   ;;  %v3567_v50 = vld [vmem:[%s4929_s1 + $0x234] ss:$8 sps:$4 sm:$0xff]  }
  0x61   :  { %2272 = vmatprep.subr.bf16.mxu0 %v3476_v51  ;;  %v4308_v51 = vld [vmem:[%s4929_s1 + $0x534] ss:$8 sps:$4 sm:$0xff]  }
  0x62   :  { %1925 = vmatmul.mubr.bf16.gmra.mrb[16].mxu1 %v3485_v53  ;;  %v3573_v53 = vld [vmem:[%s4930_s0 + $0xf4] ss:$52 sps:$4 sm:$0xff]  }
  0x63   :  { %2228 = vmatmul.mubr.bf16.gmra.mrb[16].mxu0 %v3488_v54  ;;  %1970 = vmatpush1.bf16.msra.mxu1 %v3471_v52  ;;  %v3571_v52 = vld [vmem:[%s4930_s0 + $0xdc] ss:$52 sps:$4 sm:$0xff]  }
  0x64   :  { %2273 = vmatpush1.bf16.msra.mxu0 %v3474_v55  ;;  %1971 = vmatprep.subr.bf16.mxu1 %v3479_v56  ;;  %v3565_v54 = vld [vmem:[%s4929_s1 + $0x230] ss:$8 sps:$4 sm:$0xff]  }
  0x65   :  { %2274 = vmatprep.subr.bf16.mxu0 %v3482_v57  ;;  %1934 = vmatprep.mubr.bf16.mxu1 %v3501_v58  ;;  %v4323_v55 = vld [vmem:[%s4929_s1 + $0x530] ss:$8 sps:$4 sm:$0xff]   ;;  %v3578_v57 = vld [vmem:[%s4929_s1 + $0x244] ss:$8 sps:$4 sm:$0xff]  }
  0x66   :  { %2237 = vmatprep.mubr.bf16.mxu0 %v3504_v60  ;;  %v3575_v56 = vld [vmem:[%s4930_s0 + $0xd8] ss:$52 sps:$4 sm:$0xff]   ;;  %v3579_v60 = vld [vmem:[%s4930_s0 + $0xf0] ss:$52 sps:$4 sm:$0xff]  }
  0x67   :  { %1972 = vmatpush1.bf16.msra.mxu1 %v3477_v59  ;;  %v4335_v58 = vld [vmem:[%s4929_s1 + $0x544] ss:$8 sps:$4 sm:$0xff]   ;;  %v3576_v59 = vld [vmem:[%s4929_s1 + $0x240] ss:$8 sps:$4 sm:$0xff]  }
  0x68   :  { %2275 = vmatpush1.bf16.msra.mxu0 %v3480_v61  ;;  %1973 = vmatprep.subr.bf16.mxu1 %v3491_v62  ;;  %v4347_v61 = vld [vmem:[%s4929_s1 + $0x540] ss:$8 sps:$4 sm:$0xff]   ;;  %v3585_v62 = vld [vmem:[%s4929_s1 + $0x254] ss:$8 sps:$4 sm:$0xff]  }
  0x69   :  { %2276 = vmatprep.subr.bf16.mxu0 %v3494_v63  ;;  %v4356_v63 = vld [vmem:[%s4929_s1 + $0x554] ss:$8 sps:$4 sm:$0xff]  }
  0x6a   :  { %1935 = vmatmul.mubr.bf16.gmra.mrb[20].mxu1 %v3503_v0  ;;  %v3589_v0 = vld [vmem:[%s4930_s0 + $0x144] ss:$52 sps:$4 sm:$0xff]  }
  0x6b   :  { %2238 = vmatmul.mubr.bf16.gmra.mrb[20].mxu0 %v3506_v1  ;;  %1974 = vmatpush1.bf16.msra.mxu1 %v3489_v4  ;;  %v3591_v1 = vld [vmem:[%s4930_s0 + $0x15c] ss:$52 sps:$4 sm:$0xff]   ;;  %v3593_v4 = vld [vmem:[%s4930_s0 + $0x140] ss:$52 sps:$4 sm:$0xff]  }
  0x6c   :  { %2277 = vmatpush1.bf16.msra.mxu0 %v3492_v5  ;;  %1975 = vmatprep.subr.bf16.mxu1 %v3497_v6  ;;  %v3596_v5 = vld [vmem:[%s4929_s1 + $0x264] ss:$8 sps:$4 sm:$0xff]  }
  0x6d   :  { %2278 = vmatprep.subr.bf16.mxu0 %v3500_v7  ;;  %1944 = vmatprep.mubr.bf16.mxu1 %v2880_v8  ;;  %v4383_v6 = vld [vmem:[%s4929_s1 + $0x564] ss:$8 sps:$4 sm:$0xff]   ;;  %v3594_v7 = vld [vmem:[%s4929_s1 + $0x260] ss:$8 sps:$4 sm:$0xff]  }
  0x6e   :  { %2247 = vmatprep.mubr.bf16.mxu0 %v2886_v9  ;;  %v3597_v8 = vld [vmem:[%s4930_s0 + $0x158] ss:$52 sps:$4 sm:$0xff]   ;;  %v4394_v9 = vld [vmem:[%s4929_s1 + $0x560] ss:$8 sps:$4 sm:$0xff]  }
  0x6f   :  { %1976 = vmatpush1.bf16.msra.mxu1 %v3495_v10  ;;  %v3603_v10 = vld [vmem:[%s4929_s1 + $0x274] ss:$8 sps:$4 sm:$0xff]  }
  0x70   :  { %2279 = vmatpush1.bf16.msra.mxu0 %v3498_v11  ;;  %1977 = vmatprep.subr.bf16.mxu1 %v3509_v12  ;;  %v4403_v11 = vld [vmem:[%s4929_s1 + $0x574] ss:$8 sps:$4 sm:$0xff]   ;;  %v3607_v12 = vld [vmem:[%s4930_s0 + $0x1ac] ss:$52 sps:$4 sm:$0xff]  }
  0x71   :  { %2280 = vmatprep.subr.bf16.mxu0 %v3512_v13  ;;  %v3609_v13 = vld [vmem:[%s4930_s0 + $0x1c4] ss:$52 sps:$4 sm:$0xff]  }
  0x72   :  { %1945 = vmatmul.mubr.bf16.gmra.mrb[24].mxu1 %v2879_v15  ;;  %v4418_v15 = vld [vmem:[%s4929_s1 + $0x570] ss:$8 sps:$4 sm:$0xff]  }
  0x73   :  { %2248 = vmatmul.mubr.bf16.gmra.mrb[24].mxu0 %v2885_v16  ;;  %1978 = vmatpush1.bf16.msra.mxu1 %v3507_v14  ;;  %v3601_v14 = vld [vmem:[%s4929_s1 + $0x270] ss:$8 sps:$4 sm:$0xff]   ;;  %v3614_v16 = vld [vmem:[%s4929_s1 + $0x284] ss:$8 sps:$4 sm:$0xff]  }
  0x74   :  { %2281 = vmatpush1.bf16.msra.mxu0 %v3510_v17  ;;  %1979 = vmatprep.subr.bf16.mxu1 %v3515_v18  ;;  %v4428_v17 = vld [vmem:[%s4929_s1 + $0x584] ss:$8 sps:$4 sm:$0xff]   ;;  %v3611_v18 = vld [vmem:[%s4930_s0 + $0x1a8] ss:$52 sps:$4 sm:$0xff]  }
  0x75   :  { %2282 = vmatprep.subr.bf16.mxu0 %v3518_v19  ;;  %1985 = vmatprep.mubr.bf16.mxu1 %v3537_v20  ;;  %v3612_v19 = vld [vmem:[%s4929_s1 + $0x280] ss:$8 sps:$4 sm:$0xff]  }
  0x76   :  { %2288 = vmatprep.mubr.bf16.mxu0 %v3540_v21  ;;  %v3615_v20 = vld [vmem:[%s4930_s0 + $0x1c0] ss:$52 sps:$4 sm:$0xff]  }
  0x77   :  { %1980 = vmatpush1.bf16.msra.mxu1 %v3513_v22  ;;  %v4442_v21 = vld [vmem:[%s4929_s1 + $0x580] ss:$8 sps:$4 sm:$0xff]   ;;  %v3621_v22 = vld [vmem:[%s4929_s1 + $0x294] ss:$8 sps:$4 sm:$0xff]  }
  0x78   :  { %2283 = vmatpush1.bf16.msra.mxu0 %v3516_v23  ;;  %1981 = vmatprep.subr.bf16.mxu1 %v3525_v24  ;;  %v4452_v23 = vld [vmem:[%s4929_s1 + $0x594] ss:$8 sps:$4 sm:$0xff]  }
  0x79   :  { %2284 = vmatprep.subr.bf16.mxu0 %v3528_v25  ;;  %v3625_v24 = vld [vmem:[%s4930_s0 + $0x214] ss:$52 sps:$4 sm:$0xff]   ;;  %v3627_v25 = vld [vmem:[%s4930_s0 + $0x22c] ss:$52 sps:$4 sm:$0xff]  }
  0x7b   :  { %1982 = vmatpush1.bf16.msra.mxu1 %v3523_v26  ;;  %v3619_v26 = vld [vmem:[%s4929_s1 + $0x290] ss:$8 sps:$4 sm:$0xff]  }
  0x7c   :  { %2285 = vmatpush1.bf16.msra.mxu0 %v3526_v27  ;;  %1983 = vmatprep.subr.bf16.mxu1 %v3531_v28  ;;  %v4466_v27 = vld [vmem:[%s4929_s1 + $0x590] ss:$8 sps:$4 sm:$0xff]   ;;  %v3632_v28 = vld [vmem:[%s4929_s1 + $0x2a4] ss:$8 sps:$4 sm:$0xff]  }
  0x7d   :  { %2286 = vmatprep.subr.bf16.mxu0 %v3534_v29  ;;  %v3629_v29 = vld [vmem:[%s4930_s0 + $0x210] ss:$52 sps:$4 sm:$0xff]  }
  0x7f   :  { %1984 = vmatpush1.bf16.msra.mxu1 %v3529_v30  ;;  %v4479_v30 = vld [vmem:[%s4929_s1 + $0x5a4] ss:$8 sps:$4 sm:$0xff]  }
  0x80   :  { %2287 = vmatpush1.bf16.msra.mxu0 %v3532_v31  ;;  %2054 = vmatprep.subr.bf16.mxu1 %v3543_v33  ;;  %v3630_v31 = vld [vmem:[%s4929_s1 + $0x2a0] ss:$8 sps:$4 sm:$0xff]   ;;  %v156_v33 = vld [vmem:[%s4930_s0 + $0x278] sm:$0xff] }
  0x81   :  { %2357 = vmatprep.subr.bf16.mxu0 %v4240_v34 }
  0x82   :  { %1986 = vmatmul.mubr.bf16.vlgmr.msra.gmra.mrb[0].mxu1 %v3535_v32  ;;  %v3633_v32 = vld [vmem:[%s4930_s0 + $0x228] ss:$52 sps:$4 sm:$0xff]  }
  0x83   :  { %2289 = vmatmul.mubr.bf16.vlgmr.msra.gmra.mrb[0].mxu0 %v3538_v35  ;;  %2055 = vmatpush1.bf16.msra.mxu1 %v3541_v36  ;;  %v159_v35 = vld [vmem:[%s4930_s0 + $0x290] sm:$0xff]  ;;  %v4497_v36 = vld [vmem:[%s4929_s1 + $0x5a0] ss:$8 sps:$4 sm:$0xff]  }
  0x84   :  { %2358 = vmatpush1.bf16.msra.mxu0 %v4251_v37  ;;  %2056 = vmatprep.subr.bf16.mxu1 %v3549_v38  ;;  %v3639_v38 = vld [vmem:[%s4929_s1 + $0x2b4] ss:$8 sps:$4 sm:$0xff]  }
  0x85   :  { %2359 = vmatprep.subr.bf16.mxu0 %v4260_v39  ;;  %1995 = vmatprep.mubr.bf16.mxu1 %v3553_v40  ;;  %v4506_v40 = vld [vmem:[%s4929_s1 + $0x5b4] ss:$8 sps:$4 sm:$0xff]  }
  0x86   :  { %2298 = vmatprep.mubr.bf16.mxu0 %v3555_v41  ;;  %v2882_v41 = vcombine.high %v156_v33, %v156_v33 }
  0x87   :  { %2057 = vmatpush1.bf16.msra.mxu1 %v3547_v42  ;;  %v2888_v42 = vcombine.high %v159_v35, %v159_v35 }
  0x88   :  { %2360 = vmatpush1.bf16.msra.mxu0 %v4275_v43  ;;  %2058 = vmatprep.subr.bf16.mxu1 %v3560_v45  ;;  %v4514_v45 = vld [vmem:[%s4929_s1 + $0x5b0] ss:$8 sps:$4 sm:$0xff]  }
  0x89   :  { %2361 = vmatprep.subr.bf16.mxu0 %v4287_v46 }
  0x8a   :  { %1996 = vmatmul.mubr.bf16.gmra.mrb[4].mxu1 %v3557_v44  ;;  %v3637_v44 = vld [vmem:[%s4929_s1 + $0x2b0] ss:$8 sps:$4 sm:$0xff]  }
  0x8b   :  { %2299 = vmatmul.mubr.bf16.gmra.mrb[4].mxu0 %v3561_v48  ;;  %2059 = vmatpush1.bf16.msra.mxu1 %v3558_v47  ;;  %v3647_v47 = vld [vmem:[%s4929_s1 + $0x2c4] ss:$8 sps:$4 sm:$0xff]  }
  0x8c   :  { %2362 = vmatpush1.bf16.msra.mxu0 %v4299_v49  ;;  %2060 = vmatprep.subr.bf16.mxu1 %v3567_v50  ;;  %v4524_v48 = vld [vmem:[%s4929_s1 + $0x5c4] ss:$8 sps:$4 sm:$0xff]   ;;  %v3645_v50 = vld [vmem:[%s4929_s1 + $0x2c0] ss:$8 sps:$4 sm:$0xff]  }
  0x8d   :  { %2363 = vmatprep.subr.bf16.mxu0 %v4308_v51  ;;  %2005 = vmatprep.mubr.bf16.mxu1 %v3571_v52  ;;  %v2881_v52 = vcombine.low %v156_v33, %v156_v33  ;;  %v3707_v33 = vld [vmem:[%s4930_s0 + $0x14c] ss:$52 sps:$4 sm:$0xff]  }
  0x8e   :  { %2308 = vmatprep.mubr.bf16.mxu0 %v3573_v53  ;;  %v4532_v53 = vld [vmem:[%s4929_s1 + $0x5c0] ss:$8 sps:$4 sm:$0xff]  }
  0x8f   :  { %2061 = vmatpush1.bf16.msra.mxu1 %v3565_v54  ;;  %v3653_v54 = vld [vmem:[%s4929_s1 + $0x2d4] ss:$8 sps:$4 sm:$0xff]  }
  0x90   :  { %2364 = vmatpush1.bf16.msra.mxu0 %v4323_v55  ;;  %2062 = vmatprep.subr.bf16.mxu1 %v3578_v57  ;;  %v4541_v57 = vld [vmem:[%s4929_s1 + $0x5d4] ss:$8 sps:$4 sm:$0xff]  }
  0x91   :  { %2365 = vmatprep.subr.bf16.mxu0 %v4335_v58 }
  0x92   :  { %2006 = vmatmul.mubr.bf16.gmra.mrb[8].mxu1 %v3575_v56  ;;  %v2887_v56 = vcombine.low %v159_v35, %v159_v35  ;;  %v3715_v35 = vld [vmem:[%s4929_s1 + $0x664] ss:$8 sps:$4 sm:$0xff]  }
  0x93   :  { %2309 = vmatmul.mubr.bf16.gmra.mrb[8].mxu0 %v3579_v60  ;;  %2063 = vmatpush1.bf16.msra.mxu1 %v3576_v59  ;;  %v3673_v59 = vld [vmem:[%s4930_s0 + $0x14] ss:$52 sps:$4 sm:$0xff]   ;;  %v3676_v60 = vld [vmem:[%s4930_s0 + $0x2c] ss:$52 sps:$4 sm:$0xff]  }
  0x94   :  { %2366 = vmatpush1.bf16.msra.mxu0 %v4347_v61  ;;  %2064 = vmatprep.subr.bf16.mxu1 %v3585_v62  ;;  %v3651_v62 = vld [vmem:[%s4929_s1 + $0x2d0] ss:$8 sps:$4 sm:$0xff]  }
  0x95   :  { %2367 = vmatprep.subr.bf16.mxu0 %v4356_v63  ;;  %2015 = vmatprep.mubr.bf16.mxu1 %v3589_v0  ;;  %v4556_v0 = vld [vmem:[%s4929_s1 + $0x5d0] ss:$8 sps:$4 sm:$0xff]  }
  0x96   :  { %2318 = vmatprep.mubr.bf16.mxu0 %v3591_v1  ;;  %v3661_v1 = vld [vmem:[%s4929_s1 + $0x2e4] ss:$8 sps:$4 sm:$0xff]  }
  0x97   :  { %2065 = vmatpush1.bf16.msra.mxu1 %v3583_v2  ;;  %v4566_v2 = vld [vmem:[%s4929_s1 + $0x5e4] ss:$8 sps:$4 sm:$0xff]  }
  0x98   :  { %2368 = vmatpush1.bf16.msra.mxu0 %v4371_v3  ;;  %2066 = vmatprep.subr.bf16.mxu1 %v3596_v5  ;;  %v4574_v5 = vld [vmem:[%s4929_s1 + $0x5e0] ss:$8 sps:$4 sm:$0xff]  }
  0x99   :  { %2369 = vmatprep.subr.bf16.mxu0 %v4383_v6 }
  0x9a   :  { %2016 = vmatmul.mubr.bf16.gmra.mrb[12].mxu1 %v3593_v4  ;;  %v3659_v4 = vld [vmem:[%s4929_s1 + $0x2e0] ss:$8 sps:$4 sm:$0xff]  }
  0x9b   :  { %2319 = vmatmul.mubr.bf16.gmra.mrb[12].mxu0 %v3597_v8  ;;  %2067 = vmatpush1.bf16.msra.mxu1 %v3594_v7  ;;  %v3667_v7 = vld [vmem:[%s4929_s1 + $0x2f4] ss:$8 sps:$4 sm:$0xff]  }
  0x9c   :  { %2370 = vmatpush1.bf16.msra.mxu0 %v4394_v9  ;;  %2068 = vmatprep.subr.bf16.mxu1 %v3603_v10  ;;  %v4584_v8 = vld [vmem:[%s4929_s1 + $0x5f4] ss:$8 sps:$4 sm:$0xff]   ;;  %v3665_v10 = vld [vmem:[%s4929_s1 + $0x2f0] ss:$8 sps:$4 sm:$0xff]  }
  0x9d   :  { %2371 = vmatprep.subr.bf16.mxu0 %v4403_v11  ;;  %2025 = vmatprep.mubr.bf16.mxu1 %v3607_v12  ;;  %v4593_v12 = vld [vmem:[%s4929_s1 + $0x5f0] ss:$8 sps:$4 sm:$0xff]  }
  0x9e   :  { %2328 = vmatprep.mubr.bf16.mxu0 %v3609_v13  ;;  %v3679_v13 = vld [vmem:[%s4929_s1 + $0x604] ss:$8 sps:$4 sm:$0xff]  }
  0x9f   :  { %2069 = vmatpush1.bf16.msra.mxu1 %v3601_v14  ;;  %v3671_v14 = vld [vmem:[%s4930_s0 + $0x10] ss:$52 sps:$4 sm:$0xff]  }
  0xa0   :  { %2372 = vmatpush1.bf16.msra.mxu0 %v4418_v15  ;;  %2070 = vmatprep.subr.bf16.mxu1 %v3614_v16  ;;  %v3674_v16 = vld [vmem:[%s4930_s0 + $0x28] ss:$52 sps:$4 sm:$0xff]  }
  0xa1   :  { %2373 = vmatprep.subr.bf16.mxu0 %v4428_v17 }
  0xa2   :  { %2026 = vmatmul.mubr.bf16.gmra.mrb[16].mxu1 %v3611_v18  ;;  %v3677_v18 = vld [vmem:[%s4929_s1 + $0x600] ss:$8 sps:$4 sm:$0xff]  }
  0xa3   :  { %2329 = vmatmul.mubr.bf16.gmra.mrb[16].mxu0 %v3615_v20  ;;  %2071 = vmatpush1.bf16.msra.mxu1 %v3612_v19  ;;  %v3682_v19 = vld [vmem:[%s4929_s1 + $0x614] ss:$8 sps:$4 sm:$0xff]  }
  0xa4   :  { %2374 = vmatpush1.bf16.msra.mxu0 %v4442_v21  ;;  %2072 = vmatprep.subr.bf16.mxu1 %v3621_v22  ;;  %v3683_v20 = vld [vmem:[%s4930_s0 + $0x7c] ss:$52 sps:$4 sm:$0xff]   ;;  %v3685_v22 = vld [vmem:[%s4930_s0 + $0x94] ss:$52 sps:$4 sm:$0xff]  }
  0xa5   :  { %2375 = vmatprep.subr.bf16.mxu0 %v4452_v23  ;;  %2035 = vmatprep.mubr.bf16.mxu1 %v3625_v24  ;;  %v3691_v24 = vld [vmem:[%s4929_s1 + $0x624] ss:$8 sps:$4 sm:$0xff]  }
  0xa6   :  { %2338 = vmatprep.mubr.bf16.mxu0 %v3627_v25  ;;  %v3687_v25 = vld [vmem:[%s4930_s0 + $0x78] ss:$52 sps:$4 sm:$0xff]  }
  0xa7   :  { %2073 = vmatpush1.bf16.msra.mxu1 %v3619_v26  ;;  %v3694_v26 = vld [vmem:[%s4929_s1 + $0x634] ss:$8 sps:$4 sm:$0xff]  }
  0xa8   :  { %2376 = vmatpush1.bf16.msra.mxu0 %v4466_v27  ;;  %2074 = vmatprep.subr.bf16.mxu1 %v3632_v28  ;;  %v3695_v28 = vld [vmem:[%s4930_s0 + $0xe4] ss:$52 sps:$4 sm:$0xff]  }
  0xa9   :  { %2377 = vmatprep.subr.bf16.mxu0 %v4479_v30 }
  0xaa   :  { %2036 = vmatmul.mubr.bf16.gmra.mrb[20].mxu1 %v3629_v29  ;;  %v3703_v29 = vld [vmem:[%s4929_s1 + $0x644] ss:$8 sps:$4 sm:$0xff]  }
  0xab   :  { %2339 = vmatmul.mubr.bf16.gmra.mrb[20].mxu0 %v3633_v32  ;;  %2075 = vmatpush1.bf16.msra.mxu1 %v3630_v31  ;;  %v3699_v31 = vld [vmem:[%s4930_s0 + $0xe0] ss:$52 sps:$4 sm:$0xff]  }
  0xac   :  { %2378 = vmatpush1.bf16.msra.mxu0 %v4497_v36  ;;  %2076 = vmatprep.subr.bf16.mxu1 %v3639_v38  ;;  %v3706_v32 = vld [vmem:[%s4929_s1 + $0x654] ss:$8 sps:$4 sm:$0xff]  }
  0xad   :  { %2379 = vmatprep.subr.bf16.mxu0 %v4506_v40  ;;  %2045 = vmatprep.mubr.bf16.mxu1 %v2882_v41  ;;  %v3711_v38 = vld [vmem:[%s4930_s0 + $0x148] ss:$52 sps:$4 sm:$0xff]  }
  0xae   :  { %2348 = vmatprep.mubr.bf16.mxu0 %v2888_v42  ;;  %v3718_v41 = vld [vmem:[%s4929_s1 + $0x674] ss:$8 sps:$4 sm:$0xff]  }
  0xaf   :  { %2077 = vmatpush1.bf16.msra.mxu1 %v3637_v44  ;;  %v3719_v42 = vld [vmem:[%s4930_s0 + $0x1b4] ss:$52 sps:$4 sm:$0xff]   ;;  %v3721_v44 = vld [vmem:[%s4930_s0 + $0x1b0] ss:$52 sps:$4 sm:$0xff]  }
  0xb0   :  { %2380 = vmatpush1.bf16.msra.mxu0 %v4514_v45  ;;  %2078 = vmatprep.subr.bf16.mxu1 %v3647_v47  ;;  %v3722_v47 = vld [vmem:[%s4930_s0 + $0x30] ss:$52 sps:$4 sm:$0xff]  }
  0xb1   :  { %2381 = vmatprep.subr.bf16.mxu0 %v4524_v48 }
  0xb2   :  { %2046 = vmatmul.mubr.bf16.gmra.mrb[28].mxu1 %v2881_v52  ;;  %v3737_v52 = vld [vmem:[%s4930_s0 + $0x230] ss:$52 sps:$4 sm:$0xff]  }
  0xb3   :  { %2349 = vmatmul.mubr.bf16.gmra.mrb[28].mxu0 %v2887_v56  ;;  %2079 = vmatpush1.bf16.msra.mxu1 %v3645_v50 }
  0xb4   :  { %2382 = vmatpush1.bf16.msra.mxu0 %v4532_v53  ;;  %2080 = vmatprep.subr.bf16.mxu1 %v3653_v54 }
  0xb5   :  { %2383 = vmatprep.subr.bf16.mxu0 %v4541_v57  ;;  %2086 = vmatprep.mubr.bf16.mxu1 %v3673_v59 }
  0xb6   :  { %2389 = vmatprep.mubr.bf16.mxu0 %v3676_v60 }
  0xb7   :  { %2081 = vmatpush1.bf16.msra.mxu1 %v3651_v62 }
  0xb8   :  { %2384 = vmatpush1.bf16.msra.mxu0 %v4556_v0  ;;  %2082 = vmatprep.subr.bf16.mxu1 %v3661_v1 }
  0xb9   :  { %2385 = vmatprep.subr.bf16.mxu0 %v4566_v2 }
  0xbb   :  { %2083 = vmatpush1.bf16.msra.mxu1 %v3659_v4 }
  0xbc   :  { %2386 = vmatpush1.bf16.msra.mxu0 %v4574_v5  ;;  %2084 = vmatprep.subr.bf16.mxu1 %v3667_v7 }
  0xbd   :  { %2387 = vmatprep.subr.bf16.mxu0 %v4584_v8 }
  0xbf   :  { %2085 = vmatpush1.bf16.msra.mxu1 %v3665_v10 }
  0xc0   :  { %2388 = vmatpush1.bf16.msra.mxu0 %v4593_v12  ;;  %3126 = vmatprep.subr.bf16.mxu1 %v4240_v34  ;;  %v3680_v34 = vld [vmem:[%s4929_s1 + $0x610] ss:$8 sps:$4 sm:$0xff]  }
  0xc1   :  { %2458 = vmatprep.subr.bf16.mxu0 %v3679_v13 }
  0xc2   :  { %2087 = vmatmul.mubr.bf16.vlgmr.msra.gmra.mrb[0].mxu1 %v3671_v14 }
  0xc3   :  { %2390 = vmatmul.mubr.bf16.vlgmr.msra.gmra.mrb[0].mxu0 %v3674_v16  ;;  %3142 = vmatpush1.bf16.msra.mxu1 %v4251_v37  ;;  %v3688_v37 = vld [vmem:[%s4930_s0 + $0x90] ss:$52 sps:$4 sm:$0xff]  }
  0xc4   :  { %2459 = vmatpush1.bf16.msra.mxu0 %v3677_v18  ;;  %3127 = vmatprep.subr.bf16.mxu1 %v4260_v39  ;;  %v3689_v39 = vld [vmem:[%s4929_s1 + $0x620] ss:$8 sps:$4 sm:$0xff]  }
  0xc5   :  { %2460 = vmatprep.subr.bf16.mxu0 %v3682_v19  ;;  %2096 = vmatprep.mubr.bf16.mxu1 %v3683_v20 }
  0xc6   :  { %2399 = vmatprep.mubr.bf16.mxu0 %v3685_v22 }
  0xc7   :  { %3143 = vmatpush1.bf16.msra.mxu1 %v4275_v43  ;;  %v3697_v43 = vld [vmem:[%s4930_s0 + $0xfc] ss:$52 sps:$4 sm:$0xff]  }
  0xc8   :  { %2461 = vmatpush1.bf16.msra.mxu0 %v3680_v34  ;;  %3128 = vmatprep.subr.bf16.mxu1 %v4287_v46  ;;  %v3692_v46 = vld [vmem:[%s4929_s1 + $0x630] ss:$8 sps:$4 sm:$0xff]  }
  0xc9   :  { %2462 = vmatprep.subr.bf16.mxu0 %v3691_v24 }
  0xca   :  { %2097 = vmatmul.mubr.bf16.gmra.mrb[4].mxu1 %v3687_v25 }
  0xcb   :  { %2400 = vmatmul.mubr.bf16.gmra.mrb[4].mxu0 %v3688_v37  ;;  %3144 = vmatpush1.bf16.msra.mxu1 %v4299_v49  ;;  %v3700_v49 = vld [vmem:[%s4930_s0 + $0xf8] ss:$52 sps:$4 sm:$0xff]  }
  0xcc   :  { %2463 = vmatpush1.bf16.msra.mxu0 %v3689_v39  ;;  %3129 = vmatprep.subr.bf16.mxu1 %v4308_v51  ;;  %v3701_v51 = vld [vmem:[%s4929_s1 + $0x640] ss:$8 sps:$4 sm:$0xff]  }
  0xcd   :  { %2464 = vmatprep.subr.bf16.mxu0 %v3694_v26  ;;  %2106 = vmatprep.mubr.bf16.mxu1 %v3695_v28 }
  0xce   :  { %2409 = vmatprep.mubr.bf16.mxu0 %v3697_v43 }
  0xcf   :  { %3145 = vmatpush1.bf16.msra.mxu1 %v4323_v55  ;;  %v3709_v55 = vld [vmem:[%s4930_s0 + $0x164] ss:$52 sps:$4 sm:$0xff]  }
  0xd0   :  { %2465 = vmatpush1.bf16.msra.mxu0 %v3692_v46  ;;  %3130 = vmatprep.subr.bf16.mxu1 %v4335_v58  ;;  %v3704_v58 = vld [vmem:[%s4929_s1 + $0x650] ss:$8 sps:$4 sm:$0xff]  }
  0xd1   :  { %2466 = vmatprep.subr.bf16.mxu0 %v3703_v29 }
  0xd2   :  { %2107 = vmatmul.mubr.bf16.gmra.mrb[8].mxu1 %v3699_v31 }
  0xd3   :  { %2410 = vmatmul.mubr.bf16.gmra.mrb[8].mxu0 %v3700_v49  ;;  %3146 = vmatpush1.bf16.msra.mxu1 %v4347_v61  ;;  %v3712_v61 = vld [vmem:[%s4930_s0 + $0x160] ss:$52 sps:$4 sm:$0xff]  }
  0xd4   :  { %2467 = vmatpush1.bf16.msra.mxu0 %v3701_v51  ;;  %3131 = vmatprep.subr.bf16.mxu1 %v4356_v63  ;;  %v3713_v63 = vld [vmem:[%s4929_s1 + $0x660] ss:$8 sps:$4 sm:$0xff]  }
  0xd5   :  { %2468 = vmatprep.subr.bf16.mxu0 %v3706_v32  ;;  %2116 = vmatprep.mubr.bf16.mxu1 %v3707_v33 }
  0xd6   :  { %2419 = vmatprep.mubr.bf16.mxu0 %v3709_v55 }
  0xd7   :  { %3147 = vmatpush1.bf16.msra.mxu1 %v4371_v3  ;;  %v3716_v3 = vld [vmem:[%s4929_s1 + $0x670] ss:$8 sps:$4 sm:$0xff]  }
  0xd8   :  { %2469 = vmatpush1.bf16.msra.mxu0 %v3704_v58  ;;  %3132 = vmatprep.subr.bf16.mxu1 %v4383_v6  ;;  %v3742_v6 = vmov 0  }
  0xd9   :  { %2470 = vmatprep.subr.bf16.mxu0 %v3715_v35 }
  0xda   :  { %2117 = vmatmul.mubr.bf16.gmra.mrb[12].mxu1 %v3711_v38 }
  0xdb   :  { %2420 = vmatmul.mubr.bf16.gmra.mrb[12].mxu0 %v3712_v61  ;;  %3148 = vmatpush1.bf16.msra.mxu1 %v4394_v9  ;;  %v3723_v9 = vld [vmem:[%s4930_s0 + $0x21c] ss:$52 sps:$4 sm:$0xff]   ;;  %v2642_v61 = vlaneseq }
  0xdc   :  { %2471 = vmatpush1.bf16.msra.mxu0 %v3713_v63  ;;  %3133 = vmatprep.subr.bf16.mxu1 %v4403_v11  ;;  %v157_v11 = vld [vmem:[%s4930_s0 + $0x280] sm:$0xff] }
  0xdd   :  { %2472 = vmatprep.subr.bf16.mxu0 %v3718_v41  ;;  %2126 = vmatprep.mubr.bf16.mxu1 %v3719_v42  ;;  %v2884_v50 = vcombine.high %v157_v11, %v157_v11  ;;  %v2643_v63 = vshrl.u32 %v2642_v61, 7 }
  0xde   :  { %2490 = vmatprep.mubr.bf16.mxu0 %v3742_v6 }
  0xdf   :  { %3149 = vmatpush1.bf16.msra.mxu1 %v4418_v15  ;;  %v3725_v15 = vld [vmem:[%s4930_s0 + $0x218] ss:$52 sps:$4 sm:$0xff]  }
  0xe0   :  { %2473 = vmatpush1.bf16.msra.mxu0 %v3716_v3  ;;  %3134 = vmatprep.subr.bf16.mxu1 %v4428_v17  ;;  %v3726_v17 = vld [vmem:[%s4930_s0 + $0x98] ss:$52 sps:$4 sm:$0xff]  }
  0xe2   :  { %2127 = vmatmul.mubr.bf16.gmra.mrb[16].mxu1 %v3721_v44  ;;  %v2644_v44 = vsub.s32 0, %v2643_v63 }
  0xe3   :  { %2491 = vmatmul.mubr.bf16.vlgmr.msra.gmra.mrb[0].mxu0 %v3722_v47  ;;  %3150 = vmatpush1.bf16.msra.mxu1 %v4442_v21  ;;  %v2883_v21 = vcombine.low %v157_v11, %v157_v11  ;;  %v2640_v47 = vld [vmem:[%s4931_s2] sm:$0x3] }
  0xe4   :  { %2136 = vmatprep.mubr.bf16.mxu1 %v3723_v9  ;;  %3135 = vmatprep.subr.bf16.mxu1 %v4452_v23  ;;  %v3729_v23 = vld [vmem:[%s4930_s0 + $0x100] ss:$52 sps:$4 sm:$0xff]   ;;  %v2648_v9 = vsub.s32 1, %v2643_v63  ;;  %v4811_v11 = vrot.slane %v2640_v47, %v2644_v44 }
  0xe5   :  { %2500 = vmatprep.mubr.bf16.mxu0 %v3742_v6 }
  0xe7   :  { %3151 = vmatpush1.bf16.msra.mxu1 %v4466_v27  ;;  %v3733_v27 = vld [vmem:[%s4930_s0 + $0x1cc] ss:$52 sps:$4 sm:$0xff]  }
  0xe8   :  { %3136 = vmatprep.subr.bf16.mxu1 %v4479_v30  ;;  %v3730_v30 = vld [vmem:[%s4930_s0 + $0x168] ss:$52 sps:$4 sm:$0xff]  }
  0xea   :  { %2137 = vmatmul.mubr.bf16.gmra.mrb[20].mxu1 %v3725_v15 }
  0xeb   :  { %2501 = vmatmul.mubr.bf16.gmra.mrb[4].mxu0 %v3726_v17  ;;  %3152 = vmatpush1.bf16.msra.mxu1 %v4497_v36  ;;  %v3731_v36 = vld [vmem:[%s4930_s0 + $0x1c8] ss:$52 sps:$4 sm:$0xff]  }
  0xec   :  { %2146 = vmatprep.mubr.bf16.mxu1 %v2884_v50  ;;  %3137 = vmatprep.subr.bf16.mxu1 %v4506_v40  ;;  %v3734_v40 = vld [vmem:[%s4930_s0 + $0x1d0] ss:$52 sps:$4 sm:$0xff]   ;;  %v4813_v50 = vrot.slane %v2640_v47, %v2648_v9 }
  0xed   :  { %2510 = vmatprep.mubr.bf16.mxu0 %v3742_v6 }
  0xef   :  { %3153 = vmatpush1.bf16.msra.mxu1 %v4514_v45  ;;  %v3735_v45 = vld [vmem:[%s4930_s0 + $0x234] ss:$52 sps:$4 sm:$0xff]  }
  0xf0   :  { %3138 = vmatprep.subr.bf16.mxu1 %v4524_v48  ;;  %v160_v48 = vld [vmem:[%s4930_s0 + $0x298] sm:$0xff] }
  0xf1   :  { %v2890_v54 = vcombine.high %v160_v48, %v160_v48  ;;  %v2889_v56 = vcombine.low %v160_v48, %v160_v48 }
  0xf2   :  { %2147 = vmatmul.mubr.bf16.gmra.mrb[32].mxu1 %v2883_v21 }
  0xf3   :  { %2511 = vmatmul.mubr.bf16.gmra.mrb[8].mxu0 %v3729_v23  ;;  %3154 = vmatpush1.bf16.msra.mxu1 %v4532_v53  ;;  %v3738_v53 = vld [vmem:[%s4930_s0 + $0x238] ss:$52 sps:$4 sm:$0xff]  }
  0xf4   :  { %2520 = vmatprep.mubr.bf16.mxu0 %v3742_v6  ;;  %3139 = vmatprep.subr.bf16.mxu1 %v4541_v57  ;;  %v3741_v57 = vld [vmem:[%s4930_s0 + $0x2a0] ss:$0 sps:$4 sm:$0xff]  }
  0xf5   :  { %2429 = vmatprep.mubr.bf16.mxu1 %v3733_v27 }
  0xf7   :  { %3155 = vmatpush1.bf16.msra.mxu1 %v4556_v0 }
  0xf8   :  { %3140 = vmatprep.subr.bf16.mxu1 %v4566_v2 }
  0xfb   :  { %2521 = vmatmul.mubr.bf16.gmra.mrb[12].mxu0 %v3730_v30  ;;  %3156 = vmatpush1.bf16.msra.mxu1 %v4574_v5 }
  0xfc   :  { %2530 = vmatprep.mubr.bf16.mxu0 %v3742_v6  ;;  %3141 = vmatprep.subr.bf16.mxu1 %v4584_v8 }
  0xff   :  { %3157 = vmatpush1.bf16.msra.mxu1 %v4593_v12 }
 0x102   :  { %2430 = vmatmul.mubr.bf16.vlgmr.msra.gmra.mrb[36].mxu1 %v3731_v36 }
 0x103   :  { %2531 = vmatmul.mubr.bf16.gmra.mrb[32].mxu0 %v3734_v40  ;;  %2439 = vmatprep.mubr.bf16.mxu1 %v3735_v45 }
 0x104   :  { %2540 = vmatprep.mubr.bf16.mxu0 %v3742_v6 }
 0x10a   :  { %2440 = vmatmul.mubr.bf16.gmra.mrb[40].mxu1 %v3737_v52 }
 0x10b   :  { %2541 = vmatmul.mubr.bf16.gmra.mrb[36].mxu0 %v3738_v53  ;;  %2449 = vmatprep.mubr.bf16.mxu1 %v2890_v54 }
 0x10c   :  { %2550 = vmatprep.mubr.bf16.mxu0 %v3742_v6 }
 0x112   :  { %2450 = vmatmul.mubr.bf16.gmra.mrb[44].mxu1 %v2889_v56 }
 0x113   :  { %2551 = vmatmul.mubr.bf16.gmra.mrb[40].mxu0 %v3741_v57 }
 0x145   :  { %v1946_v59 = vpop.f32.mrb[24].mxu1 }
 0x146   :  { %v4770_v60 = vpop.f32.mrb[24].mxu0  ;;  %v1948_v62 = vpop.f32.mrb[25].mxu1 }
 0x147   :  { %v4772_v0 = vpop.f32.mrb[25].mxu0  ;;  %v1950_v1 = vpop.f32.mrb[26].mxu1 }
 0x148   :  { %v2253_v2 = vpop.f32.mrb[26].mxu0  ;;  %v1951_v4 = vpop.f32.mrb[27].mxu1 }
 0x149   :  { %v2254_v5 = vpop.f32.mrb[27].mxu0 }
 0x176   :  { %v2330_v7 = vpop.f32.mrb[16].mxu0 }
 0x177   :  { %v2332_v8 = vpop.f32.mrb[17].mxu0 }
 0x178   :  { %v2334_v10 = vpop.f32.mrb[18].mxu0 }
 0x179   :  { %v2336_v12 = vpop.f32.mrb[19].mxu0 }
 0x17e   :  { %v4774_v13 = vpop.f32.mrb[20].mxu0 }
 0x17f   :  { %v4776_v14 = vpop.f32.mrb[21].mxu0 }
 0x180   :  { %v4778_v16 = vpop.f32.mrb[22].mxu0 }
 0x181   :  { %v4780_v18 = vpop.f32.mrb[23].mxu0 }
 0x185   :  { %v2047_v19 = vpop.f32.mrb[28].mxu1 }
 0x186   :  { %v4782_v20 = vpop.f32.mrb[28].mxu0  ;;  %v4784_v22 = vadd.f32 %v2047_v19, %v1946_v59  ;;  %v2049_v34 = vpop.f32.mrb[29].mxu1 }
 0x187   :  { %v4786_v24 = vpop.f32.mrb[29].mxu0  ;;  %v4788_v25 = vadd.f32 %v2049_v34, %v1948_v62  ;;  %v2051_v37 = vpop.f32.mrb[30].mxu1 }
 0x188   :  { %v2354_v39 = vpop.f32.mrb[30].mxu0  ;;  %v2052_v26 = vpop.f32.mrb[31].mxu1 }
 0x189   :  { %v2355_v28 = vpop.f32.mrb[31].mxu0 }
 0x195   :  { %v2088_v43 = vpop.f32.mrb[0].mxu1 }
 0x196   :  { %v2090_v46 = vpop.f32.mrb[1].mxu1 }
 0x197   :  { %v2092_v29 = vpop.f32.mrb[2].mxu1 }
 0x198   :  { %v2094_v31 = vpop.f32.mrb[3].mxu1 }
 0x19d   :  { %v2098_v49 = vpop.f32.mrb[4].mxu1 }
 0x19e   :  { %v2100_v51 = vpop.f32.mrb[5].mxu1 }
 0x19f   :  { %v2102_v32 = vpop.f32.mrb[6].mxu1 }
 0x1a0   :  { %v4790_v33 = vpop.f32.mrb[7].mxu1 }
 0x1a5   :  { %v4792_v55 = vpop.f32.mrb[8].mxu1 }
 0x1a6   :  { %v4794_v58 = vpop.f32.mrb[9].mxu1 }
 0x1a7   :  { %v4796_v35 = vpop.f32.mrb[10].mxu1 }
 0x1a8   :  { %v4798_v38 = vpop.f32.mrb[11].mxu1 }
 0x1ad   :  { %v4800_v41 = vpop.f32.mrb[12].mxu1 }
 0x1ae   :  { %v4802_v42 = vpop.f32.mrb[13].mxu1 }
 0x1af   :  { %v4804_v3 = vpop.f32.mrb[14].mxu1 }
 0x1b0   :  { %v4806_v6 = vpop.f32.mrb[15].mxu1 }
 0x1b5   :  { %v2128_v15 = vpop.f32.mrb[16].mxu1 }
 0x1b6   :  { %v2492_v17 = vpop.f32.mrb[0].mxu0  ;;  %v4815_v21 = vadd.f32 %v2330_v7, %v2128_v15  ;;  %v2130_v27 = vpop.f32.mrb[17].mxu1 }
 0x1b7   :  { %v3158_v23 = vadd.f32 %v2492_v17, %v2088_v43  ;;  %v2494_v30 = vpop.f32.mrb[1].mxu0  ;;  %v4817_v36 = vadd.f32 %v2332_v8, %v2130_v27  ;;  %v2132_v45 = vpop.f32.mrb[18].mxu1 }
 0x1b8   :  { %v3159_v40 = vadd.f32 %v2494_v30, %v2090_v46  ;;  %v2496_v48 = vpop.f32.mrb[2].mxu0  ;;  %v4820_v53 = vadd.f32 %v2334_v10, %v2132_v45  ;;  %v2134_v56 = vpop.f32.mrb[19].mxu1 }
 0x1b9   :  { %v2652_v52 = vadd.f32 %v3158_v23, %v4811_v11  ;;  %v3160_v54 = vadd.f32 %v2496_v48, %v2092_v29  ;;  %v2498_v57 = vpop.f32.mrb[3].mxu0  ;;  %v4823_v62 = vadd.f32 %v2336_v12, %v2134_v56 }
 0x1ba   :  { %v2653_v59 = vadd.f32 %v3159_v40, %v4813_v50  ;;  %v3161_v1 = vadd.f32 %v2498_v57, %v2094_v31 }
 0x1bb   :  { %v2678_v2 = vmax.f32 %v2652_v52, 0.0  ;;  %v2654_v4 = vadd.f32 %v3160_v54, %v4811_v11 }
 0x1bc   :  { %v2679_v5 = vmax.f32 %v2653_v59, 0.0  ;;  %v2655_v7 = vadd.f32 %v3161_v1, %v4813_v50 }
 0x1bd   :  { %v2680_v8 = vmax.f32 %v2654_v4, 0.0  ;;  %v2138_v37 = vpop.f32.mrb[20].mxu1 }
 0x1be   :  { %v3113_v19 = vpack.c.bf16 %v2679_v5, %v2678_v2  ;;  %v2681_v34 = vmax.f32 %v2655_v7, 0.0  ;;  %v2502_v10 = vpop.f32.mrb[4].mxu0  ;;  %v4828_v39 = vadd.f32 %v4774_v13, %v2138_v37  ;;  %v2140_v28 = vpop.f32.mrb[21].mxu1 }
 0x1bf   :  { %v3162_v26 = vadd.f32 %v2502_v10, %v2098_v49  ;;  %v2504_v43 = vpop.f32.mrb[5].mxu0  ;;  %v4834_v46 = vadd.f32 %v4776_v14, %v2140_v28  ;;  %v2142_v31 = vpop.f32.mrb[22].mxu1 }
 0x1c0   :  { %2784 = vst [vmem:[%s4932_s3] sm:$0xff] %v3113_v19  ;;  %v3114_v12 = vpack.c.bf16 %v2681_v34, %v2680_v8  ;;  %v3163_v29 = vadd.f32 %v2504_v43, %v2100_v51  ;;  %v2506_v61 = vpop.f32.mrb[6].mxu0  ;;  %v4838_v44 = vadd.f32 %v4778_v16, %v2142_v31  ;;  %v2144_v49 = vpop.f32.mrb[23].mxu1 }
 0x1c1   :  { %v2656_v63 = vadd.f32 %v3162_v26, %v4811_v11  ;;  %v3164_v13 = vadd.f32 %v2506_v61, %v2102_v32  ;;  %v2508_v47 = vpop.f32.mrb[7].mxu0  ;;  %v4845_v14 = vadd.f32 %v4780_v18, %v2144_v49 }
 0x1c2   :  { %2785 = vst [vmem:[%s4932_s3 + $0x8] sm:$0xff] %v3114_v12  ;;  %v2657_v9 = vadd.f32 %v3163_v29, %v4813_v50  ;;  %v3165_v51 = vadd.f32 %v2508_v47, %v4790_v33 }
 0x1c3   :  { %v2682_v15 = vmax.f32 %v2656_v63, 0.0  ;;  %v2658_v17 = vadd.f32 %v3164_v13, %v4811_v11 }
 0x1c4   :  { %v2683_v23 = vmax.f32 %v2657_v9, 0.0  ;;  %v2659_v16 = vadd.f32 %v3165_v51, %v4813_v50 }
 0x1c5   :  { %v2684_v32 = vmax.f32 %v2658_v17, 0.0  ;;  %v2148_v40 = vpop.f32.mrb[32].mxu1 }
 0x1c6   :  { %v3115_v27 = vpack.c.bf16 %v2683_v23, %v2682_v15  ;;  %v2685_v30 = vmax.f32 %v2659_v16, 0.0  ;;  %v2512_v45 = vpop.f32.mrb[8].mxu0  ;;  %v2149_v48 = vadd.f32 %v2148_v40, %v4784_v22  ;;  %v2150_v54 = vpop.f32.mrb[33].mxu1 }
 0x1c7   :  { %v3166_v52 = vadd.f32 %v2512_v45, %v4792_v55  ;;  %v2514_v18 = vpop.f32.mrb[9].mxu0  ;;  %v2151_v56 = vadd.f32 %v2150_v54, %v4788_v25  ;;  %v2152_v1 = vpop.f32.mrb[34].mxu1 }
 0x1c8   :  { %2786 = vst [vmem:[%s4932_s3 + $0x10] sm:$0xff] %v3115_v27  ;;  %v3116_v33 = vpack.c.bf16 %v2685_v30, %v2684_v32  ;;  %v3167_v57 = vadd.f32 %v2514_v18, %v4794_v58  ;;  %v2516_v59 = vpop.f32.mrb[10].mxu0  ;;  %v2250_v2 = vadd.f32 %v4770_v60, %v2149_v48  ;;  %v2153_v5 = vpop.f32.mrb[35].mxu1 }
 0x1c9   :  { %v2660_v4 = vadd.f32 %v3166_v52, %v4811_v11  ;;  %v3168_v22 = vadd.f32 %v2516_v59, %v4796_v35  ;;  %v2518_v55 = vpop.f32.mrb[11].mxu0  ;;  %v2252_v7 = vadd.f32 %v4772_v0, %v2151_v56 }
 0x1ca   :  { %2787 = vst [vmem:[%s4932_s3 + $0x18] sm:$0xff] %v3116_v33  ;;  %v2661_v25 = vadd.f32 %v3167_v57, %v4813_v50  ;;  %v3169_v58 = vadd.f32 %v2518_v55, %v4798_v38  ;;  %v4868_v60 = vadd.f32 %v4782_v20, %v2250_v2 }
 0x1cb   :  { %v2686_v8 = vmax.f32 %v2660_v4, 0.0  ;;  %v2662_v19 = vadd.f32 %v3168_v22, %v4811_v11  ;;  %v4872_v37 = vadd.f32 %v4786_v24, %v2252_v7 }
 0x1cc   :  { %v2687_v34 = vmax.f32 %v2661_v25, 0.0  ;;  %v2663_v35 = vadd.f32 %v3169_v58, %v4813_v50 }
 0x1cd   :  { %v2688_v10 = vmax.f32 %v2662_v19, 0.0 }
 0x1ce   :  { %v3117_v26 = vpack.c.bf16 %v2687_v34, %v2686_v8  ;;  %v2689_v28 = vmax.f32 %v2663_v35, 0.0  ;;  %v2522_v0 = vpop.f32.mrb[12].mxu0 }
 0x1cf   :  { %v3170_v43 = vadd.f32 %v2522_v0, %v4800_v41  ;;  %v2524_v12 = vpop.f32.mrb[13].mxu0 }
 0x1d0   :  { %2788 = vst [vmem:[%s4932_s3 + $0x20] sm:$0xff] %v3117_v26  ;;  %v3118_v38 = vpack.c.bf16 %v2689_v28, %v2688_v10  ;;  %v3171_v20 = vadd.f32 %v2524_v12, %v4802_v42  ;;  %v2526_v29 = vpop.f32.mrb[14].mxu0 }
 0x1d1   :  { %v2664_v31 = vadd.f32 %v3170_v43, %v4811_v11  ;;  %v3172_v24 = vadd.f32 %v2526_v29, %v4804_v3  ;;  %v2528_v61 = vpop.f32.mrb[15].mxu0 }
 0x1d2   :  { %2789 = vst [vmem:[%s4932_s3 + $0x28] sm:$0xff] %v3118_v38  ;;  %v2665_v41 = vadd.f32 %v3171_v20, %v4813_v50  ;;  %v3173_v63 = vadd.f32 %v2528_v61, %v4806_v6 }
 0x1d3   :  { %v2690_v13 = vmax.f32 %v2664_v31, 0.0  ;;  %v2666_v49 = vadd.f32 %v3172_v24, %v4811_v11 }
 0x1d4   :  { %v2691_v47 = vmax.f32 %v2665_v41, 0.0  ;;  %v2667_v42 = vadd.f32 %v3173_v63, %v4813_v50 }
 0x1d5   :  { %v2692_v9 = vmax.f32 %v2666_v49, 0.0  ;;  %v2431_v17 = vpop.f32.mrb[36].mxu1 }
 0x1d6   :  { %v3119_v51 = vpack.c.bf16 %v2691_v47, %v2690_v13  ;;  %v2693_v15 = vmax.f32 %v2667_v42, 0.0  ;;  %v2532_v3 = vpop.f32.mrb[32].mxu0  ;;  %v3175_v23 = vadd.f32 %v4815_v21, %v2431_v17  ;;  %v2433_v16 = vpop.f32.mrb[37].mxu1 }
 0x1d7   :  { %v2534_v32 = vpop.f32.mrb[33].mxu0  ;;  %v3178_v27 = vadd.f32 %v4817_v36, %v2433_v16  ;;  %v2435_v30 = vpop.f32.mrb[38].mxu1 }
 0x1d8   :  { %2790 = vst [vmem:[%s4932_s3 + $0x30] sm:$0xff] %v3119_v51  ;;  %v3120_v6 = vpack.c.bf16 %v2693_v15, %v2692_v9  ;;  %v2536_v40 = vpop.f32.mrb[34].mxu0  ;;  %v3176_v45 = vadd.f32 %v3175_v23, %v2532_v3  ;;  %v3181_v48 = vadd.f32 %v4820_v53, %v2435_v30  ;;  %v2437_v52 = vpop.f32.mrb[39].mxu1 }
 0x1d9   :  { %v2538_v54 = vpop.f32.mrb[35].mxu0  ;;  %v3179_v21 = vadd.f32 %v3178_v27, %v2534_v32  ;;  %v3184_v18 = vadd.f32 %v4823_v62, %v2437_v52 }
 0x1da   :  { %2791 = vst [vmem:[%s4932_s3 + $0x38] sm:$0xff] %v3120_v6  ;;  %v2668_v33 = vadd.f32 %v3176_v45, %v4811_v11  ;;  %v3182_v56 = vadd.f32 %v3181_v48, %v2536_v40 }
 0x1db   :  { %v2669_v57 = vadd.f32 %v3179_v21, %v4813_v50  ;;  %v3185_v36 = vadd.f32 %v3184_v18, %v2538_v54 }
 0x1dc   :  { %v2694_v59 = vmax.f32 %v2668_v33, 0.0  ;;  %v2670_v1 = vadd.f32 %v3182_v56, %v4811_v11 }
 0x1dd   :  { %v2695_v2 = vmax.f32 %v2669_v57, 0.0  ;;  %v2671_v53 = vadd.f32 %v3185_v36, %v4813_v50  ;;  %v2441_v4 = vpop.f32.mrb[40].mxu1 }
 0x1de   :  { %v2542_v22 = vpop.f32.mrb[36].mxu0  ;;  %v2696_v55 = vmax.f32 %v2670_v1, 0.0  ;;  %v3187_v5 = vadd.f32 %v4828_v39, %v2441_v4  ;;  %v2443_v7 = vpop.f32.mrb[41].mxu1 }
 0x1df   :  { %v2544_v25 = vpop.f32.mrb[37].mxu0  ;;  %v3121_v62 = vpack.c.bf16 %v2695_v2, %v2694_v59  ;;  %v2697_v58 = vmax.f32 %v2671_v53, 0.0  ;;  %v3190_v8 = vadd.f32 %v4834_v46, %v2443_v7  ;;  %v2445_v19 = vpop.f32.mrb[42].mxu1 }
 0x1e0   :  { %v2546_v34 = vpop.f32.mrb[38].mxu0  ;;  %v3188_v35 = vadd.f32 %v3187_v5, %v2542_v22  ;;  %v3193_v10 = vadd.f32 %v4838_v44, %v2445_v19  ;;  %v2447_v26 = vpop.f32.mrb[43].mxu1 }
 0x1e1   :  { %v2548_v28 = vpop.f32.mrb[39].mxu0  ;;  %2792 = vst [vmem:[%s4932_s3 + $0x40] sm:$0xff] %v3121_v62  ;;  %v3122_v0 = vpack.c.bf16 %v2697_v58, %v2696_v55  ;;  %v3191_v43 = vadd.f32 %v3190_v8, %v2544_v25  ;;  %v3196_v39 = vadd.f32 %v4845_v14, %v2447_v26 }
 0x1e2   :  { %v2672_v12 = vadd.f32 %v3188_v35, %v4811_v11  ;;  %v3194_v38 = vadd.f32 %v3193_v10, %v2546_v34 }
 0x1e3   :  { %2793 = vst [vmem:[%s4932_s3 + $0x48] sm:$0xff] %v3122_v0  ;;  %v2673_v46 = vadd.f32 %v3191_v43, %v4813_v50  ;;  %v3197_v44 = vadd.f32 %v3196_v39, %v2548_v28 }
 0x1e4   :  { %v2698_v20 = vmax.f32 %v2672_v12, 0.0  ;;  %v2674_v29 = vadd.f32 %v3194_v38, %v4811_v11 }
 0x1e5   :  { %v2699_v31 = vmax.f32 %v2673_v46, 0.0  ;;  %v2675_v24 = vadd.f32 %v3197_v44, %v4813_v50  ;;  %v2451_v61 = vpop.f32.mrb[44].mxu1 }
 0x1e6   :  { %v2552_v41 = vpop.f32.mrb[40].mxu0  ;;  %v2700_v63 = vmax.f32 %v2674_v29, 0.0  ;;  %v2452_v14 = vadd.f32 %v2451_v61, %v4868_v60  ;;  %v2453_v13 = vpop.f32.mrb[45].mxu1 }
 0x1e7   :  { %v2554_v49 = vpop.f32.mrb[41].mxu0  ;;  %v3123_v47 = vpack.c.bf16 %v2699_v31, %v2698_v20  ;;  %v2701_v42 = vmax.f32 %v2675_v24, 0.0  ;;  %v2454_v9 = vadd.f32 %v2453_v13, %v4872_v37  ;;  %v2455_v51 = vpop.f32.mrb[46].mxu1 }
 0x1e8   :  { %v2556_v15 = vpop.f32.mrb[42].mxu0  ;;  %v2553_v17 = vadd.f32 %v2552_v41, %v2452_v14  ;;  %v2456_v3 = vpop.f32.mrb[47].mxu1 }
 0x1e9   :  { %v2557_v23 = vpop.f32.mrb[43].mxu0  ;;  %2794 = vst [vmem:[%s4932_s3 + $0x50] sm:$0xff] %v3123_v47  ;;  %v3124_v16 = vpack.c.bf16 %v2701_v42, %v2700_v63  ;;  %v2555_v32 = vadd.f32 %v2554_v49, %v2454_v9 }
 0x1ea   :  { %v2676_v6 = vadd.f32 %v4811_v11, %v2553_v17 }
 0x1eb   :  { %2795 = vst [vmem:[%s4932_s3 + $0x58] sm:$0xff] %v3124_v16  ;;  %v2677_v60 = vadd.f32 %v4813_v50, %v2555_v32 }
 0x1ec   :  { %v2702_v37 = vmax.f32 %v2676_v6, 0.0 }
 0x1ed   :  { %v2703_v27 = vmax.f32 %v2677_v60, 0.0 }
 0x1ef   :  { %v3125_v30 = vpack.c.bf16 %v2703_v27, %v2702_v37 }
 0x1f1   :  { %2796 = vst [vmem:[%s4932_s3 + $0x60] sm:$0xff] %v3125_v30 }

// kernel: _lambda_.14
= control target key start
LH: loop header
LB: loop body
LE: loop exit
PB: predicated region body
PF: predicated region fallthrough
CT: control target
= control target key end

     0   :  { %s4067_s12 = smov 0   ;;  %s4069_s13 = smov 0   ;;  %s4894_s0 = inlined_call_operand.vmem [shape: bf16[24,1792], index: 0, kind: input, shape index: {}]   ;;  %s4895_s1 = inlined_call_operand.vmem [shape: bf16[1792,512], index: 1, kind: input, shape index: {}]   ;;  %s4896_s2 = inlined_call_operand.vmem [shape: f32[1,512], index: 2, kind: input, shape index: {}]   ;;  %s4897_s3 = inlined_call_operand.vmem [shape: bf16[24,512], index: 3, kind: output, shape index: {}]  }
   0x1   :  { %s4071_s14 = smov 0   ;;  %s4073_s15 = smov 0  }
   0x2   :  { %s4075_s16 = smov 0  }
   0x3 LB: > { %s28_s17 = sadd.s32 1, %s4041_s15  ;;  %s3264_s18 = sadd.s32 4294967295, %s4045_s16   ;;  %s4045_s16 = sphi %s4075_s16, %s13_s16   ;;  %s4041_s15 = sphi %s4073_s15, %s4902_s15   ;;  %s4037_s14 = sphi %s4071_s14, %s4901_s14   ;;  %s4033_s13 = sphi %s4069_s13, %s4900_s13   ;;  %s4029_s12 = sphi %s4067_s12, %s4899_s12  }
   0x4   : > { %p30_p0 = scmp.ge.s32.totalorder %s28_s17, 2  ;;  %p76_p1 = scmp.ne.s32.totalorder %s4033_s13, %s4029_s12 }
   0x5   : > { %p77_p2 = scmp.eq.s32.totalorder %s4045_s16, 0  ;;  %p134_p4 = scmp.eq.s32.totalorder %s3264_s18, 1 }
   0x6   : > { %s4904_s17 = smov (%p30_p0, %s28_s17), 0  ;;  %s69_s20 = sadd.s32 1, %s4033_s13 }
   0x7   : > { %p78_p3 = por %p77_p2, %p76_p1  ;;  %s65_s19 = ssub.s32 %s4041_s15, %s4904_s17 }
   0x8   : > { %p67_p5 = scmp.eq.s32.totalorder %s65_s19, 0  ;;  %p4102_p6 = por %p134_p4, %p76_p1 }
   0x9   : > { %p3268_p7 = scmp.ge.s32.totalorder %s4045_s16, 2 }
   0xa   : > { %s4107_s22 = scalar_select %p67_p5, %s4033_s13, %s69_s20  }
   0xb   : > { %171 = sbr.rel (%p3268_p7) target bundleno = 134 (0x86), region = 20 }
  0x12   : > { %174 = sbr.rel (!%p78_p3) target bundleno = 134 (0x86), region = 24  ;;  %s176_s23 = sand.u32 (%p78_p3), 1, %s4033_s13  }
  0x13   : > { %s3532_s24 = sshll.u32 (%p78_p3), %s4041_s15, 3  ;;  %s3593_s25 = smul.u32 (%p78_p3), 1792, %s176_s23 }
  0x14   : > { %s4115_s28 = scalar_lea.vmem (%p78_p3), %s4895_s1, %s3532_s24 }
  0x15   : > { %v658_v0 = vld [vmem:[%s4115_s28] sm:$0xff] (%p78_p3)  ;;  %v660_v1 = vld [vmem:[%s4115_s28 + $0x10] sm:$0xff] (%p78_p3)  ;;  %s4123_s29 = scalar_lea.vmem (%p78_p3), [#allocation3], %s3593_s25 }
  0x16   : > { %v662_v2 = vld [vmem:[%s4115_s28 + $0x20] sm:$0xff] (%p78_p3)  ;;  %v664_v3 = vld [vmem:[%s4115_s28 + $0x30] sm:$0xff] (%p78_p3)  ;;  %659 = vst [vmem:[%s4123_s29] sm:$0xff] (%p78_p3), %v658_v0  ;;  %661 = vst [vmem:[%s4123_s29 + $0x8] sm:$0xff] (%p78_p3), %v660_v1 }
  0x17   : > { %v666_v4 = vld [vmem:[%s4115_s28 + $0x40] sm:$0xff] (%p78_p3)  ;;  %v668_v5 = vld [vmem:[%s4115_s28 + $0x50] sm:$0xff] (%p78_p3)  ;;  %663 = vst [vmem:[%s4123_s29 + $0x10] sm:$0xff] (%p78_p3), %v662_v2  ;;  %665 = vst [vmem:[%s4123_s29 + $0x18] sm:$0xff] (%p78_p3), %v664_v3 }
  0x18   : > { %667 = vst [vmem:[%s4123_s29 + $0x20] sm:$0xff] (%p78_p3), %v666_v4  ;;  %669 = vst [vmem:[%s4123_s29 + $0x28] sm:$0xff] (%p78_p3), %v668_v5  ;;  %v670_v6 = vld [vmem:[%s4115_s28 + $0x60] sm:$0xff] (%p78_p3)  ;;  %v672_v7 = vld [vmem:[%s4115_s28 + $0x70] sm:$0xff] (%p78_p3) }
  0x19   : > { %v674_v8 = vld [vmem:[%s4115_s28 + $0x80] sm:$0xff]  ;;  %671 = vst [vmem:[%s4123_s29 + $0x30] sm:$0xff] %v670_v6  ;;  %673 = vst [vmem:[%s4123_s29 + $0x38] sm:$0xff] %v672_v7  ;;  %v676_v9 = vld [vmem:[%s4115_s28 + $0x90] sm:$0xff] }
  0x1a   : > { %675 = vst [vmem:[%s4123_s29 + $0x40] sm:$0xff] %v674_v8  ;;  %v678_v10 = vld [vmem:[%s4115_s28 + $0xa0] sm:$0xff]  ;;  %v680_v11 = vld [vmem:[%s4115_s28 + $0xb0] sm:$0xff]  ;;  %677 = vst [vmem:[%s4123_s29 + $0x48] sm:$0xff] %v676_v9 }
  0x1b   : > { %679 = vst [vmem:[%s4123_s29 + $0x50] sm:$0xff] %v678_v10  ;;  %681 = vst [vmem:[%s4123_s29 + $0x58] sm:$0xff] %v680_v11  ;;  %v682_v12 = vld [vmem:[%s4115_s28 + $0xc0] sm:$0xff]  ;;  %v684_v13 = vld [vmem:[%s4115_s28 + $0xd0] sm:$0xff] }
  0x1c   : > { %v686_v14 = vld [vmem:[%s4115_s28 + $0xe0] sm:$0xff]  ;;  %683 = vst [vmem:[%s4123_s29 + $0x60] sm:$0xff] %v682_v12  ;;  %685 = vst [vmem:[%s4123_s29 + $0x68] sm:$0xff] %v684_v13  ;;  %v688_v15 = vld [vmem:[%s4115_s28 + $0xf0] sm:$0xff] }
  0x1d   : > { %687 = vst [vmem:[%s4123_s29 + $0x70] sm:$0xff] %v686_v14  ;;  %v690_v16 = vld [vmem:[%s4115_s28 + $0x100] sm:$0xff]  ;;  %v692_v17 = vld [vmem:[%s4115_s28 + $0x110] sm:$0xff]  ;;  %689 = vst [vmem:[%s4123_s29 + $0x78] sm:$0xff] %v688_v15 }
  0x1e   : > { %691 = vst [vmem:[%s4123_s29 + $0x80] sm:$0xff] %v690_v16  ;;  %693 = vst [vmem:[%s4123_s29 + $0x88] sm:$0xff] %v692_v17  ;;  %v694_v18 = vld [vmem:[%s4115_s28 + $0x120] sm:$0xff]  ;;  %v696_v19 = vld [vmem:[%s4115_s28 + $0x130] sm:$0xff] }
  0x1f   : > { %v698_v20 = vld [vmem:[%s4115_s28 + $0x140] sm:$0xff]  ;;  %695 = vst [vmem:[%s4123_s29 + $0x90] sm:$0xff] %v694_v18  ;;  %697 = vst [vmem:[%s4123_s29 + $0x98] sm:$0xff] %v696_v19  ;;  %v700_v21 = vld [vmem:[%s4115_s28 + $0x150] sm:$0xff] }
  0x20   : > { %699 = vst [vmem:[%s4123_s29 + $0xa0] sm:$0xff] %v698_v20  ;;  %v702_v22 = vld [vmem:[%s4115_s28 + $0x160] sm:$0xff]  ;;  %v704_v23 = vld [vmem:[%s4115_s28 + $0x170] sm:$0xff]  ;;  %701 = vst [vmem:[%s4123_s29 + $0xa8] sm:$0xff] %v700_v21 }
  0x21   : > { %703 = vst [vmem:[%s4123_s29 + $0xb0] sm:$0xff] %v702_v22  ;;  %705 = vst [vmem:[%s4123_s29 + $0xb8] sm:$0xff] %v704_v23  ;;  %v706_v24 = vld [vmem:[%s4115_s28 + $0x180] sm:$0xff]  ;;  %v708_v25 = vld [vmem:[%s4115_s28 + $0x190] sm:$0xff] }
  0x22   : > { %v710_v26 = vld [vmem:[%s4115_s28 + $0x1a0] sm:$0xff]  ;;  %707 = vst [vmem:[%s4123_s29 + $0xc0] sm:$0xff] %v706_v24  ;;  %709 = vst [vmem:[%s4123_s29 + $0xc8] sm:$0xff] %v708_v25  ;;  %v712_v27 = vld [vmem:[%s4115_s28 + $0x1b0] sm:$0xff] }
  0x23   : > { %711 = vst [vmem:[%s4123_s29 + $0xd0] sm:$0xff] %v710_v26  ;;  %v714_v28 = vld [vmem:[%s4115_s28 + $0x1c0] sm:$0xff]  ;;  %v716_v29 = vld [vmem:[%s4115_s28 + $0x1d0] sm:$0xff]  ;;  %713 = vst [vmem:[%s4123_s29 + $0xd8] sm:$0xff] %v712_v27 }
  0x24   : > { %715 = vst [vmem:[%s4123_s29 + $0xe0] sm:$0xff] %v714_v28  ;;  %717 = vst [vmem:[%s4123_s29 + $0xe8] sm:$0xff] %v716_v29  ;;  %v718_v30 = vld [vmem:[%s4115_s28 + $0x1e0] sm:$0xff]  ;;  %v720_v31 = vld [vmem:[%s4115_s28 + $0x1f0] sm:$0xff] }
  0x25   : > { %v722_v32 = vld [vmem:[%s4115_s28 + $0x200] sm:$0xff]  ;;  %719 = vst [vmem:[%s4123_s29 + $0xf0] sm:$0xff] %v718_v30  ;;  %721 = vst [vmem:[%s4123_s29 + $0xf8] sm:$0xff] %v720_v31  ;;  %v724_v33 = vld [vmem:[%s4115_s28 + $0x210] sm:$0xff] }
  0x26   : > { %723 = vst [vmem:[%s4123_s29 + $0x100] sm:$0xff] %v722_v32  ;;  %v726_v34 = vld [vmem:[%s4115_s28 + $0x220] sm:$0xff]  ;;  %v728_v35 = vld [vmem:[%s4115_s28 + $0x230] sm:$0xff]  ;;  %725 = vst [vmem:[%s4123_s29 + $0x108] sm:$0xff] %v724_v33 }
  0x27   : > { %727 = vst [vmem:[%s4123_s29 + $0x110] sm:$0xff] %v726_v34  ;;  %729 = vst [vmem:[%s4123_s29 + $0x118] sm:$0xff] %v728_v35  ;;  %v730_v36 = vld [vmem:[%s4115_s28 + $0x240] sm:$0xff]  ;;  %v732_v37 = vld [vmem:[%s4115_s28 + $0x250] sm:$0xff] }
  0x28   : > { %v734_v38 = vld [vmem:[%s4115_s28 + $0x260] sm:$0xff]  ;;  %731 = vst [vmem:[%s4123_s29 + $0x120] sm:$0xff] %v730_v36  ;;  %733 = vst [vmem:[%s4123_s29 + $0x128] sm:$0xff] %v732_v37  ;;  %v736_v39 = vld [vmem:[%s4115_s28 + $0x270] sm:$0xff] }
  0x29   : > { %735 = vst [vmem:[%s4123_s29 + $0x130] sm:$0xff] %v734_v38  ;;  %v738_v40 = vld [vmem:[%s4115_s28 + $0x280] sm:$0xff]  ;;  %v740_v41 = vld [vmem:[%s4115_s28 + $0x290] sm:$0xff]  ;;  %737 = vst [vmem:[%s4123_s29 + $0x138] sm:$0xff] %v736_v39 }
  0x2a   : > { %739 = vst [vmem:[%s4123_s29 + $0x140] sm:$0xff] %v738_v40  ;;  %741 = vst [vmem:[%s4123_s29 + $0x148] sm:$0xff] %v740_v41  ;;  %v742_v42 = vld [vmem:[%s4115_s28 + $0x2a0] sm:$0xff]  ;;  %v744_v43 = vld [vmem:[%s4115_s28 + $0x2b0] sm:$0xff] }
  0x2b   : > { %v746_v44 = vld [vmem:[%s4115_s28 + $0x2c0] sm:$0xff]  ;;  %743 = vst [vmem:[%s4123_s29 + $0x150] sm:$0xff] %v742_v42  ;;  %745 = vst [vmem:[%s4123_s29 + $0x158] sm:$0xff] %v744_v43  ;;  %v748_v45 = vld [vmem:[%s4115_s28 + $0x2d0] sm:$0xff] }
  0x2c   : > { %747 = vst [vmem:[%s4123_s29 + $0x160] sm:$0xff] %v746_v44  ;;  %v750_v46 = vld [vmem:[%s4115_s28 + $0x2e0] sm:$0xff]  ;;  %v752_v47 = vld [vmem:[%s4115_s28 + $0x2f0] sm:$0xff]  ;;  %749 = vst [vmem:[%s4123_s29 + $0x168] sm:$0xff] %v748_v45 }
  0x2d   : > { %751 = vst [vmem:[%s4123_s29 + $0x170] sm:$0xff] %v750_v46  ;;  %753 = vst [vmem:[%s4123_s29 + $0x178] sm:$0xff] %v752_v47  ;;  %v754_v48 = vld [vmem:[%s4115_s28 + $0x300] sm:$0xff]  ;;  %v756_v49 = vld [vmem:[%s4115_s28 + $0x310] sm:$0xff] }
  0x2e   : > { %v758_v50 = vld [vmem:[%s4115_s28 + $0x320] sm:$0xff]  ;;  %755 = vst [vmem:[%s4123_s29 + $0x180] sm:$0xff] %v754_v48  ;;  %757 = vst [vmem:[%s4123_s29 + $0x188] sm:$0xff] %v756_v49  ;;  %v760_v51 = vld [vmem:[%s4115_s28 + $0x330] sm:$0xff] }
  0x2f   : > { %759 = vst [vmem:[%s4123_s29 + $0x190] sm:$0xff] %v758_v50  ;;  %v762_v52 = vld [vmem:[%s4115_s28 + $0x340] sm:$0xff]  ;;  %v764_v53 = vld [vmem:[%s4115_s28 + $0x350] sm:$0xff]  ;;  %761 = vst [vmem:[%s4123_s29 + $0x198] sm:$0xff] %v760_v51 }
  0x30   : > { %763 = vst [vmem:[%s4123_s29 + $0x1a0] sm:$0xff] %v762_v52  ;;  %765 = vst [vmem:[%s4123_s29 + $0x1a8] sm:$0xff] %v764_v53  ;;  %v766_v54 = vld [vmem:[%s4115_s28 + $0x360] sm:$0xff]  ;;  %v768_v55 = vld [vmem:[%s4115_s28 + $0x370] sm:$0xff] }
  0x31   : > { %v770_v56 = vld [vmem:[%s4115_s28 + $0x380] sm:$0xff]  ;;  %767 = vst [vmem:[%s4123_s29 + $0x1b0] sm:$0xff] %v766_v54  ;;  %769 = vst [vmem:[%s4123_s29 + $0x1b8] sm:$0xff] %v768_v55  ;;  %v772_v57 = vld [vmem:[%s4115_s28 + $0x390] sm:$0xff] }
  0x32   : > { %771 = vst [vmem:[%s4123_s29 + $0x1c0] sm:$0xff] %v770_v56  ;;  %v774_v58 = vld [vmem:[%s4115_s28 + $0x3a0] sm:$0xff]  ;;  %v776_v59 = vld [vmem:[%s4115_s28 + $0x3b0] sm:$0xff]  ;;  %773 = vst [vmem:[%s4123_s29 + $0x1c8] sm:$0xff] %v772_v57 }
  0x33   : > { %775 = vst [vmem:[%s4123_s29 + $0x1d0] sm:$0xff] %v774_v58  ;;  %777 = vst [vmem:[%s4123_s29 + $0x1d8] sm:$0xff] %v776_v59  ;;  %v778_v60 = vld [vmem:[%s4115_s28 + $0x3c0] sm:$0xff]  ;;  %v780_v61 = vld [vmem:[%s4115_s28 + $0x3d0] sm:$0xff] }
  0x34   : > { %v782_v62 = vld [vmem:[%s4115_s28 + $0x3e0] sm:$0xff]  ;;  %779 = vst [vmem:[%s4123_s29 + $0x1e0] sm:$0xff] %v778_v60  ;;  %781 = vst [vmem:[%s4123_s29 + $0x1e8] sm:$0xff] %v780_v61  ;;  %v784_v63 = vld [vmem:[%s4115_s28 + $0x3f0] sm:$0xff] }
  0x35   : > { %783 = vst [vmem:[%s4123_s29 + $0x1f0] sm:$0xff] %v782_v62  ;;  %v786_v0 = vld [vmem:[%s4115_s28 + $0x400] sm:$0xff]  ;;  %v788_v1 = vld [vmem:[%s4115_s28 + $0x410] sm:$0xff]  ;;  %785 = vst [vmem:[%s4123_s29 + $0x1f8] sm:$0xff] %v784_v63 }
  0x36   : > { %787 = vst [vmem:[%s4123_s29 + $0x200] sm:$0xff] %v786_v0  ;;  %789 = vst [vmem:[%s4123_s29 + $0x208] sm:$0xff] %v788_v1  ;;  %v790_v2 = vld [vmem:[%s4115_s28 + $0x420] sm:$0xff]  ;;  %v792_v3 = vld [vmem:[%s4115_s28 + $0x430] sm:$0xff] }
  0x37   : > { %v794_v4 = vld [vmem:[%s4115_s28 + $0x440] sm:$0xff]  ;;  %791 = vst [vmem:[%s4123_s29 + $0x210] sm:$0xff] %v790_v2  ;;  %793 = vst [vmem:[%s4123_s29 + $0x218] sm:$0xff] %v792_v3  ;;  %v796_v5 = vld [vmem:[%s4115_s28 + $0x450] sm:$0xff] }
  0x38   : > { %795 = vst [vmem:[%s4123_s29 + $0x220] sm:$0xff] %v794_v4  ;;  %v798_v6 = vld [vmem:[%s4115_s28 + $0x460] sm:$0xff]  ;;  %v800_v7 = vld [vmem:[%s4115_s28 + $0x470] sm:$0xff]  ;;  %797 = vst [vmem:[%s4123_s29 + $0x228] sm:$0xff] %v796_v5 }
  0x39   : > { %799 = vst [vmem:[%s4123_s29 + $0x230] sm:$0xff] %v798_v6  ;;  %801 = vst [vmem:[%s4123_s29 + $0x238] sm:$0xff] %v800_v7  ;;  %v802_v8 = vld [vmem:[%s4115_s28 + $0x480] sm:$0xff]  ;;  %v804_v9 = vld [vmem:[%s4115_s28 + $0x490] sm:$0xff] }
  0x3a   : > { %v806_v10 = vld [vmem:[%s4115_s28 + $0x4a0] sm:$0xff]  ;;  %803 = vst [vmem:[%s4123_s29 + $0x240] sm:$0xff] %v802_v8  ;;  %805 = vst [vmem:[%s4123_s29 + $0x248] sm:$0xff] %v804_v9  ;;  %v808_v11 = vld [vmem:[%s4115_s28 + $0x4b0] sm:$0xff] }
  0x3b   : > { %807 = vst [vmem:[%s4123_s29 + $0x250] sm:$0xff] %v806_v10  ;;  %v810_v12 = vld [vmem:[%s4115_s28 + $0x4c0] sm:$0xff]  ;;  %v812_v13 = vld [vmem:[%s4115_s28 + $0x4d0] sm:$0xff]  ;;  %809 = vst [vmem:[%s4123_s29 + $0x258] sm:$0xff] %v808_v11 }
  0x3c   : > { %811 = vst [vmem:[%s4123_s29 + $0x260] sm:$0xff] %v810_v12  ;;  %813 = vst [vmem:[%s4123_s29 + $0x268] sm:$0xff] %v812_v13  ;;  %v814_v14 = vld [vmem:[%s4115_s28 + $0x4e0] sm:$0xff]  ;;  %v816_v15 = vld [vmem:[%s4115_s28 + $0x4f0] sm:$0xff] }
  0x3d   : > { %v818_v16 = vld [vmem:[%s4115_s28 + $0x500] sm:$0xff]  ;;  %815 = vst [vmem:[%s4123_s29 + $0x270] sm:$0xff] %v814_v14  ;;  %817 = vst [vmem:[%s4123_s29 + $0x278] sm:$0xff] %v816_v15  ;;  %v820_v17 = vld [vmem:[%s4115_s28 + $0x510] sm:$0xff] }
  0x3e   : > { %819 = vst [vmem:[%s4123_s29 + $0x280] sm:$0xff] %v818_v16  ;;  %v822_v18 = vld [vmem:[%s4115_s28 + $0x520] sm:$0xff]  ;;  %v824_v19 = vld [vmem:[%s4115_s28 + $0x530] sm:$0xff]  ;;  %821 = vst [vmem:[%s4123_s29 + $0x288] sm:$0xff] %v820_v17 }
  0x3f   : > { %823 = vst [vmem:[%s4123_s29 + $0x290] sm:$0xff] %v822_v18  ;;  %825 = vst [vmem:[%s4123_s29 + $0x298] sm:$0xff] %v824_v19  ;;  %v826_v20 = vld [vmem:[%s4115_s28 + $0x540] sm:$0xff]  ;;  %v828_v21 = vld [vmem:[%s4115_s28 + $0x550] sm:$0xff] }
  0x40   : > { %v830_v22 = vld [vmem:[%s4115_s28 + $0x560] sm:$0xff]  ;;  %827 = vst [vmem:[%s4123_s29 + $0x2a0] sm:$0xff] %v826_v20  ;;  %829 = vst [vmem:[%s4123_s29 + $0x2a8] sm:$0xff] %v828_v21  ;;  %v832_v23 = vld [vmem:[%s4115_s28 + $0x570] sm:$0xff] }
  0x41   : > { %831 = vst [vmem:[%s4123_s29 + $0x2b0] sm:$0xff] %v830_v22  ;;  %v834_v24 = vld [vmem:[%s4115_s28 + $0x580] sm:$0xff]  ;;  %v836_v25 = vld [vmem:[%s4115_s28 + $0x590] sm:$0xff]  ;;  %833 = vst [vmem:[%s4123_s29 + $0x2b8] sm:$0xff] %v832_v23 }
  0x42   : > { %835 = vst [vmem:[%s4123_s29 + $0x2c0] sm:$0xff] %v834_v24  ;;  %837 = vst [vmem:[%s4123_s29 + $0x2c8] sm:$0xff] %v836_v25  ;;  %v838_v26 = vld [vmem:[%s4115_s28 + $0x5a0] sm:$0xff]  ;;  %v840_v27 = vld [vmem:[%s4115_s28 + $0x5b0] sm:$0xff] }
  0x43   : > { %v842_v28 = vld [vmem:[%s4115_s28 + $0x5c0] sm:$0xff]  ;;  %839 = vst [vmem:[%s4123_s29 + $0x2d0] sm:$0xff] %v838_v26  ;;  %841 = vst [vmem:[%s4123_s29 + $0x2d8] sm:$0xff] %v840_v27  ;;  %v844_v29 = vld [vmem:[%s4115_s28 + $0x5d0] sm:$0xff] }
  0x44   : > { %843 = vst [vmem:[%s4123_s29 + $0x2e0] sm:$0xff] %v842_v28  ;;  %v846_v30 = vld [vmem:[%s4115_s28 + $0x5e0] sm:$0xff]  ;;  %v848_v31 = vld [vmem:[%s4115_s28 + $0x5f0] sm:$0xff]  ;;  %845 = vst [vmem:[%s4123_s29 + $0x2e8] sm:$0xff] %v844_v29 }
  0x45   : > { %847 = vst [vmem:[%s4123_s29 + $0x2f0] sm:$0xff] %v846_v30  ;;  %849 = vst [vmem:[%s4123_s29 + $0x2f8] sm:$0xff] %v848_v31  ;;  %v850_v32 = vld [vmem:[%s4115_s28 + $0x600] sm:$0xff]  ;;  %v852_v33 = vld [vmem:[%s4115_s28 + $0x610] sm:$0xff] }
  0x46   : > { %v854_v34 = vld [vmem:[%s4115_s28 + $0x620] sm:$0xff]  ;;  %851 = vst [vmem:[%s4123_s29 + $0x300] sm:$0xff] %v850_v32  ;;  %853 = vst [vmem:[%s4123_s29 + $0x308] sm:$0xff] %v852_v33  ;;  %v856_v35 = vld [vmem:[%s4115_s28 + $0x630] sm:$0xff] }
  0x47   : > { %855 = vst [vmem:[%s4123_s29 + $0x310] sm:$0xff] %v854_v34  ;;  %v858_v36 = vld [vmem:[%s4115_s28 + $0x640] sm:$0xff]  ;;  %v860_v37 = vld [vmem:[%s4115_s28 + $0x650] sm:$0xff]  ;;  %857 = vst [vmem:[%s4123_s29 + $0x318] sm:$0xff] %v856_v35 }
  0x48   : > { %859 = vst [vmem:[%s4123_s29 + $0x320] sm:$0xff] %v858_v36  ;;  %861 = vst [vmem:[%s4123_s29 + $0x328] sm:$0xff] %v860_v37  ;;  %v862_v38 = vld [vmem:[%s4115_s28 + $0x660] sm:$0xff]  ;;  %v864_v39 = vld [vmem:[%s4115_s28 + $0x670] sm:$0xff] }
  0x49   : > { %v866_v40 = vld [vmem:[%s4115_s28 + $0x680] sm:$0xff]  ;;  %863 = vst [vmem:[%s4123_s29 + $0x330] sm:$0xff] %v862_v38  ;;  %865 = vst [vmem:[%s4123_s29 + $0x338] sm:$0xff] %v864_v39  ;;  %v868_v41 = vld [vmem:[%s4115_s28 + $0x690] sm:$0xff] }
  0x4a   : > { %867 = vst [vmem:[%s4123_s29 + $0x340] sm:$0xff] %v866_v40  ;;  %v870_v42 = vld [vmem:[%s4115_s28 + $0x6a0] sm:$0xff]  ;;  %v872_v43 = vld [vmem:[%s4115_s28 + $0x6b0] sm:$0xff]  ;;  %869 = vst [vmem:[%s4123_s29 + $0x348] sm:$0xff] %v868_v41 }
  0x4b   : > { %871 = vst [vmem:[%s4123_s29 + $0x350] sm:$0xff] %v870_v42  ;;  %873 = vst [vmem:[%s4123_s29 + $0x358] sm:$0xff] %v872_v43  ;;  %v874_v44 = vld [vmem:[%s4115_s28 + $0x6c0] sm:$0xff]  ;;  %v876_v45 = vld [vmem:[%s4115_s28 + $0x6d0] sm:$0xff] }
  0x4c   : > { %v878_v46 = vld [vmem:[%s4115_s28 + $0x6e0] sm:$0xff]  ;;  %875 = vst [vmem:[%s4123_s29 + $0x360] sm:$0xff] %v874_v44  ;;  %877 = vst [vmem:[%s4123_s29 + $0x368] sm:$0xff] %v876_v45  ;;  %v880_v47 = vld [vmem:[%s4115_s28 + $0x6f0] sm:$0xff] }
  0x4d   : > { %879 = vst [vmem:[%s4123_s29 + $0x370] sm:$0xff] %v878_v46  ;;  %v882_v48 = vld [vmem:[%s4115_s28 + $0x700] sm:$0xff]  ;;  %v884_v49 = vld [vmem:[%s4115_s28 + $0x710] sm:$0xff]  ;;  %881 = vst [vmem:[%s4123_s29 + $0x378] sm:$0xff] %v880_v47 }
  0x4e   : > { %883 = vst [vmem:[%s4123_s29 + $0x380] sm:$0xff] %v882_v48  ;;  %885 = vst [vmem:[%s4123_s29 + $0x388] sm:$0xff] %v884_v49  ;;  %v886_v50 = vld [vmem:[%s4115_s28 + $0x720] sm:$0xff]  ;;  %v888_v51 = vld [vmem:[%s4115_s28 + $0x730] sm:$0xff] }
  0x4f   : > { %v890_v52 = vld [vmem:[%s4115_s28 + $0x740] sm:$0xff]  ;;  %887 = vst [vmem:[%s4123_s29 + $0x390] sm:$0xff] %v886_v50  ;;  %889 = vst [vmem:[%s4123_s29 + $0x398] sm:$0xff] %v888_v51  ;;  %v892_v53 = vld [vmem:[%s4115_s28 + $0x750] sm:$0xff] }
  0x50   : > { %891 = vst [vmem:[%s4123_s29 + $0x3a0] sm:$0xff] %v890_v52  ;;  %v894_v54 = vld [vmem:[%s4115_s28 + $0x760] sm:$0xff]  ;;  %v896_v55 = vld [vmem:[%s4115_s28 + $0x770] sm:$0xff]  ;;  %893 = vst [vmem:[%s4123_s29 + $0x3a8] sm:$0xff] %v892_v53 }
  0x51   : > { %895 = vst [vmem:[%s4123_s29 + $0x3b0] sm:$0xff] %v894_v54  ;;  %897 = vst [vmem:[%s4123_s29 + $0x3b8] sm:$0xff] %v896_v55  ;;  %v898_v56 = vld [vmem:[%s4115_s28 + $0x780] sm:$0xff]  ;;  %v900_v57 = vld [vmem:[%s4115_s28 + $0x790] sm:$0xff] }
  0x52   : > { %v902_v58 = vld [vmem:[%s4115_s28 + $0x7a0] sm:$0xff]  ;;  %899 = vst [vmem:[%s4123_s29 + $0x3c0] sm:$0xff] %v898_v56  ;;  %901 = vst [vmem:[%s4123_s29 + $0x3c8] sm:$0xff] %v900_v57  ;;  %v904_v59 = vld [vmem:[%s4115_s28 + $0x7b0] sm:$0xff] }
  0x53   : > { %903 = vst [vmem:[%s4123_s29 + $0x3d0] sm:$0xff] %v902_v58  ;;  %v906_v60 = vld [vmem:[%s4115_s28 + $0x7c0] sm:$0xff]  ;;  %v908_v61 = vld [vmem:[%s4115_s28 + $0x7d0] sm:$0xff]  ;;  %905 = vst [vmem:[%s4123_s29 + $0x3d8] sm:$0xff] %v904_v59 }
  0x54   : > { %907 = vst [vmem:[%s4123_s29 + $0x3e0] sm:$0xff] %v906_v60  ;;  %909 = vst [vmem:[%s4123_s29 + $0x3e8] sm:$0xff] %v908_v61  ;;  %v910_v62 = vld [vmem:[%s4115_s28 + $0x7e0] sm:$0xff]  ;;  %v912_v63 = vld [vmem:[%s4115_s28 + $0x7f0] sm:$0xff] }
  0x55   : > { %v914_v0 = vld [vmem:[%s4115_s28 + $0x800] sm:$0xff]  ;;  %911 = vst [vmem:[%s4123_s29 + $0x3f0] sm:$0xff] %v910_v62  ;;  %913 = vst [vmem:[%s4123_s29 + $0x3f8] sm:$0xff] %v912_v63  ;;  %v916_v1 = vld [vmem:[%s4115_s28 + $0x810] sm:$0xff] }
  0x56   : > { %915 = vst [vmem:[%s4123_s29 + $0x400] sm:$0xff] %v914_v0  ;;  %v918_v2 = vld [vmem:[%s4115_s28 + $0x820] sm:$0xff]  ;;  %v920_v3 = vld [vmem:[%s4115_s28 + $0x830] sm:$0xff]  ;;  %917 = vst [vmem:[%s4123_s29 + $0x408] sm:$0xff] %v916_v1 }
  0x57   : > { %919 = vst [vmem:[%s4123_s29 + $0x410] sm:$0xff] %v918_v2  ;;  %921 = vst [vmem:[%s4123_s29 + $0x418] sm:$0xff] %v920_v3  ;;  %v922_v4 = vld [vmem:[%s4115_s28 + $0x840] sm:$0xff]  ;;  %v924_v5 = vld [vmem:[%s4115_s28 + $0x850] sm:$0xff] }
  0x58   : > { %v926_v6 = vld [vmem:[%s4115_s28 + $0x860] sm:$0xff]  ;;  %923 = vst [vmem:[%s4123_s29 + $0x420] sm:$0xff] %v922_v4  ;;  %925 = vst [vmem:[%s4123_s29 + $0x428] sm:$0xff] %v924_v5  ;;  %v928_v7 = vld [vmem:[%s4115_s28 + $0x870] sm:$0xff] }
  0x59   : > { %927 = vst [vmem:[%s4123_s29 + $0x430] sm:$0xff] %v926_v6  ;;  %v930_v8 = vld [vmem:[%s4115_s28 + $0x880] sm:$0xff]  ;;  %v932_v9 = vld [vmem:[%s4115_s28 + $0x890] sm:$0xff]  ;;  %929 = vst [vmem:[%s4123_s29 + $0x438] sm:$0xff] %v928_v7 }
  0x5a   : > { %931 = vst [vmem:[%s4123_s29 + $0x440] sm:$0xff] %v930_v8  ;;  %933 = vst [vmem:[%s4123_s29 + $0x448] sm:$0xff] %v932_v9  ;;  %v934_v10 = vld [vmem:[%s4115_s28 + $0x8a0] sm:$0xff]  ;;  %v936_v11 = vld [vmem:[%s4115_s28 + $0x8b0] sm:$0xff] }
  0x5b   : > { %v938_v12 = vld [vmem:[%s4115_s28 + $0x8c0] sm:$0xff]  ;;  %935 = vst [vmem:[%s4123_s29 + $0x450] sm:$0xff] %v934_v10  ;;  %937 = vst [vmem:[%s4123_s29 + $0x458] sm:$0xff] %v936_v11  ;;  %v940_v13 = vld [vmem:[%s4115_s28 + $0x8d0] sm:$0xff] }
  0x5c   : > { %939 = vst [vmem:[%s4123_s29 + $0x460] sm:$0xff] %v938_v12  ;;  %v942_v14 = vld [vmem:[%s4115_s28 + $0x8e0] sm:$0xff]  ;;  %v944_v15 = vld [vmem:[%s4115_s28 + $0x8f0] sm:$0xff]  ;;  %941 = vst [vmem:[%s4123_s29 + $0x468] sm:$0xff] %v940_v13 }
  0x5d   : > { %943 = vst [vmem:[%s4123_s29 + $0x470] sm:$0xff] %v942_v14  ;;  %945 = vst [vmem:[%s4123_s29 + $0x478] sm:$0xff] %v944_v15  ;;  %v946_v16 = vld [vmem:[%s4115_s28 + $0x900] sm:$0xff]  ;;  %v948_v17 = vld [vmem:[%s4115_s28 + $0x910] sm:$0xff] }
  0x5e   : > { %v950_v18 = vld [vmem:[%s4115_s28 + $0x920] sm:$0xff]  ;;  %947 = vst [vmem:[%s4123_s29 + $0x480] sm:$0xff] %v946_v16  ;;  %949 = vst [vmem:[%s4123_s29 + $0x488] sm:$0xff] %v948_v17  ;;  %v952_v19 = vld [vmem:[%s4115_s28 + $0x930] sm:$0xff] }
  0x5f   : > { %951 = vst [vmem:[%s4123_s29 + $0x490] sm:$0xff] %v950_v18  ;;  %v954_v20 = vld [vmem:[%s4115_s28 + $0x940] sm:$0xff]  ;;  %v956_v21 = vld [vmem:[%s4115_s28 + $0x950] sm:$0xff]  ;;  %953 = vst [vmem:[%s4123_s29 + $0x498] sm:$0xff] %v952_v19 }
  0x60   : > { %955 = vst [vmem:[%s4123_s29 + $0x4a0] sm:$0xff] %v954_v20  ;;  %957 = vst [vmem:[%s4123_s29 + $0x4a8] sm:$0xff] %v956_v21  ;;  %v958_v22 = vld [vmem:[%s4115_s28 + $0x960] sm:$0xff]  ;;  %v960_v23 = vld [vmem:[%s4115_s28 + $0x970] sm:$0xff] }
  0x61   : > { %v962_v24 = vld [vmem:[%s4115_s28 + $0x980] sm:$0xff]  ;;  %959 = vst [vmem:[%s4123_s29 + $0x4b0] sm:$0xff] %v958_v22  ;;  %961 = vst [vmem:[%s4123_s29 + $0x4b8] sm:$0xff] %v960_v23  ;;  %v964_v25 = vld [vmem:[%s4115_s28 + $0x990] sm:$0xff] }
  0x62   : > { %963 = vst [vmem:[%s4123_s29 + $0x4c0] sm:$0xff] %v962_v24  ;;  %v966_v26 = vld [vmem:[%s4115_s28 + $0x9a0] sm:$0xff]  ;;  %v968_v27 = vld [vmem:[%s4115_s28 + $0x9b0] sm:$0xff]  ;;  %965 = vst [vmem:[%s4123_s29 + $0x4c8] sm:$0xff] %v964_v25 }
  0x63   : > { %967 = vst [vmem:[%s4123_s29 + $0x4d0] sm:$0xff] %v966_v26  ;;  %969 = vst [vmem:[%s4123_s29 + $0x4d8] sm:$0xff] %v968_v27  ;;  %v970_v28 = vld [vmem:[%s4115_s28 + $0x9c0] sm:$0xff]  ;;  %v972_v29 = vld [vmem:[%s4115_s28 + $0x9d0] sm:$0xff] }
  0x64   : > { %v974_v30 = vld [vmem:[%s4115_s28 + $0x9e0] sm:$0xff]  ;;  %971 = vst [vmem:[%s4123_s29 + $0x4e0] sm:$0xff] %v970_v28  ;;  %973 = vst [vmem:[%s4123_s29 + $0x4e8] sm:$0xff] %v972_v29  ;;  %v976_v31 = vld [vmem:[%s4115_s28 + $0x9f0] sm:$0xff] }
  0x65   : > { %975 = vst [vmem:[%s4123_s29 + $0x4f0] sm:$0xff] %v974_v30  ;;  %v978_v32 = vld [vmem:[%s4115_s28 + $0xa00] sm:$0xff]  ;;  %v980_v33 = vld [vmem:[%s4115_s28 + $0xa10] sm:$0xff]  ;;  %977 = vst [vmem:[%s4123_s29 + $0x4f8] sm:$0xff] %v976_v31 }
  0x66   : > { %979 = vst [vmem:[%s4123_s29 + $0x500] sm:$0xff] %v978_v32  ;;  %981 = vst [vmem:[%s4123_s29 + $0x508] sm:$0xff] %v980_v33  ;;  %v982_v34 = vld [vmem:[%s4115_s28 + $0xa20] sm:$0xff]  ;;  %v984_v35 = vld [vmem:[%s4115_s28 + $0xa30] sm:$0xff] }
  0x67   : > { %v986_v36 = vld [vmem:[%s4115_s28 + $0xa40] sm:$0xff]  ;;  %983 = vst [vmem:[%s4123_s29 + $0x510] sm:$0xff] %v982_v34  ;;  %985 = vst [vmem:[%s4123_s29 + $0x518] sm:$0xff] %v984_v35  ;;  %v988_v37 = vld [vmem:[%s4115_s28 + $0xa50] sm:$0xff] }
  0x68   : > { %987 = vst [vmem:[%s4123_s29 + $0x520] sm:$0xff] %v986_v36  ;;  %v990_v38 = vld [vmem:[%s4115_s28 + $0xa60] sm:$0xff]  ;;  %v992_v39 = vld [vmem:[%s4115_s28 + $0xa70] sm:$0xff]  ;;  %989 = vst [vmem:[%s4123_s29 + $0x528] sm:$0xff] %v988_v37 }
  0x69   : > { %991 = vst [vmem:[%s4123_s29 + $0x530] sm:$0xff] %v990_v38  ;;  %993 = vst [vmem:[%s4123_s29 + $0x538] sm:$0xff] %v992_v39  ;;  %v994_v40 = vld [vmem:[%s4115_s28 + $0xa80] sm:$0xff]  ;;  %v996_v41 = vld [vmem:[%s4115_s28 + $0xa90] sm:$0xff] }
  0x6a   : > { %v998_v42 = vld [vmem:[%s4115_s28 + $0xaa0] sm:$0xff]  ;;  %995 = vst [vmem:[%s4123_s29 + $0x540] sm:$0xff] %v994_v40  ;;  %997 = vst [vmem:[%s4123_s29 + $0x548] sm:$0xff] %v996_v41  ;;  %v1000_v43 = vld [vmem:[%s4115_s28 + $0xab0] sm:$0xff] }
  0x6b   : > { %999 = vst [vmem:[%s4123_s29 + $0x550] sm:$0xff] %v998_v42  ;;  %v1002_v44 = vld [vmem:[%s4115_s28 + $0xac0] sm:$0xff]  ;;  %v1004_v45 = vld [vmem:[%s4115_s28 + $0xad0] sm:$0xff]  ;;  %1001 = vst [vmem:[%s4123_s29 + $0x558] sm:$0xff] %v1000_v43 }
  0x6c   : > { %1003 = vst [vmem:[%s4123_s29 + $0x560] sm:$0xff] %v1002_v44  ;;  %1005 = vst [vmem:[%s4123_s29 + $0x568] sm:$0xff] %v1004_v45  ;;  %v1006_v46 = vld [vmem:[%s4115_s28 + $0xae0] sm:$0xff]  ;;  %v1008_v47 = vld [vmem:[%s4115_s28 + $0xaf0] sm:$0xff] }
  0x6d   : > { %v1010_v48 = vld [vmem:[%s4115_s28 + $0xb00] sm:$0xff]  ;;  %1007 = vst [vmem:[%s4123_s29 + $0x570] sm:$0xff] %v1006_v46  ;;  %1009 = vst [vmem:[%s4123_s29 + $0x578] sm:$0xff] %v1008_v47  ;;  %v1012_v49 = vld [vmem:[%s4115_s28 + $0xb10] sm:$0xff] }
  0x6e   : > { %1011 = vst [vmem:[%s4123_s29 + $0x580] sm:$0xff] %v1010_v48  ;;  %v1014_v50 = vld [vmem:[%s4115_s28 + $0xb20] sm:$0xff]  ;;  %v1016_v51 = vld [vmem:[%s4115_s28 + $0xb30] sm:$0xff]  ;;  %1013 = vst [vmem:[%s4123_s29 + $0x588] sm:$0xff] %v1012_v49 }
  0x6f   : > { %1015 = vst [vmem:[%s4123_s29 + $0x590] sm:$0xff] %v1014_v50  ;;  %1017 = vst [vmem:[%s4123_s29 + $0x598] sm:$0xff] %v1016_v51  ;;  %v1018_v52 = vld [vmem:[%s4115_s28 + $0xb40] sm:$0xff]  ;;  %v1020_v53 = vld [vmem:[%s4115_s28 + $0xb50] sm:$0xff] }
  0x70   : > { %v1022_v54 = vld [vmem:[%s4115_s28 + $0xb60] sm:$0xff]  ;;  %1019 = vst [vmem:[%s4123_s29 + $0x5a0] sm:$0xff] %v1018_v52  ;;  %1021 = vst [vmem:[%s4123_s29 + $0x5a8] sm:$0xff] %v1020_v53  ;;  %v1024_v55 = vld [vmem:[%s4115_s28 + $0xb70] sm:$0xff] }
  0x71   : > { %1023 = vst [vmem:[%s4123_s29 + $0x5b0] sm:$0xff] %v1022_v54  ;;  %v1026_v56 = vld [vmem:[%s4115_s28 + $0xb80] sm:$0xff]  ;;  %v1028_v57 = vld [vmem:[%s4115_s28 + $0xb90] sm:$0xff]  ;;  %1025 = vst [vmem:[%s4123_s29 + $0x5b8] sm:$0xff] %v1024_v55 }
  0x72   : > { %1027 = vst [vmem:[%s4123_s29 + $0x5c0] sm:$0xff] %v1026_v56  ;;  %1029 = vst [vmem:[%s4123_s29 + $0x5c8] sm:$0xff] %v1028_v57  ;;  %v1030_v58 = vld [vmem:[%s4115_s28 + $0xba0] sm:$0xff]  ;;  %v1032_v59 = vld [vmem:[%s4115_s28 + $0xbb0] sm:$0xff] }
  0x73   : > { %v1034_v60 = vld [vmem:[%s4115_s28 + $0xbc0] sm:$0xff]  ;;  %1031 = vst [vmem:[%s4123_s29 + $0x5d0] sm:$0xff] %v1030_v58  ;;  %1033 = vst [vmem:[%s4123_s29 + $0x5d8] sm:$0xff] %v1032_v59  ;;  %v1036_v61 = vld [vmem:[%s4115_s28 + $0xbd0] sm:$0xff] }
  0x74   : > { %1035 = vst [vmem:[%s4123_s29 + $0x5e0] sm:$0xff] %v1034_v60  ;;  %v1038_v62 = vld [vmem:[%s4115_s28 + $0xbe0] sm:$0xff]  ;;  %v1040_v63 = vld [vmem:[%s4115_s28 + $0xbf0] sm:$0xff]  ;;  %1037 = vst [vmem:[%s4123_s29 + $0x5e8] sm:$0xff] %v1036_v61 }
  0x75   : > { %1039 = vst [vmem:[%s4123_s29 + $0x5f0] sm:$0xff] %v1038_v62  ;;  %1041 = vst [vmem:[%s4123_s29 + $0x5f8] sm:$0xff] %v1040_v63  ;;  %v1042_v0 = vld [vmem:[%s4115_s28 + $0xc00] sm:$0xff]  ;;  %v1044_v1 = vld [vmem:[%s4115_s28 + $0xc10] sm:$0xff] }
  0x76   : > { %v1046_v2 = vld [vmem:[%s4115_s28 + $0xc20] sm:$0xff]  ;;  %1043 = vst [vmem:[%s4123_s29 + $0x600] sm:$0xff] %v1042_v0  ;;  %1045 = vst [vmem:[%s4123_s29 + $0x608] sm:$0xff] %v1044_v1  ;;  %v1048_v3 = vld [vmem:[%s4115_s28 + $0xc30] sm:$0xff] }
  0x77   : > { %1047 = vst [vmem:[%s4123_s29 + $0x610] sm:$0xff] %v1046_v2  ;;  %v1050_v4 = vld [vmem:[%s4115_s28 + $0xc40] sm:$0xff]  ;;  %v1052_v5 = vld [vmem:[%s4115_s28 + $0xc50] sm:$0xff]  ;;  %1049 = vst [vmem:[%s4123_s29 + $0x618] sm:$0xff] %v1048_v3 }
  0x78   : > { %1051 = vst [vmem:[%s4123_s29 + $0x620] sm:$0xff] %v1050_v4  ;;  %1053 = vst [vmem:[%s4123_s29 + $0x628] sm:$0xff] %v1052_v5  ;;  %v1054_v6 = vld [vmem:[%s4115_s28 + $0xc60] sm:$0xff]  ;;  %v1056_v7 = vld [vmem:[%s4115_s28 + $0xc70] sm:$0xff] }
  0x79   : > { %v1058_v8 = vld [vmem:[%s4115_s28 + $0xc80] sm:$0xff]  ;;  %1055 = vst [vmem:[%s4123_s29 + $0x630] sm:$0xff] %v1054_v6  ;;  %1057 = vst [vmem:[%s4123_s29 + $0x638] sm:$0xff] %v1056_v7  ;;  %v1060_v9 = vld [vmem:[%s4115_s28 + $0xc90] sm:$0xff] }
  0x7a   : > { %1059 = vst [vmem:[%s4123_s29 + $0x640] sm:$0xff] %v1058_v8  ;;  %v1062_v10 = vld [vmem:[%s4115_s28 + $0xca0] sm:$0xff]  ;;  %v1064_v11 = vld [vmem:[%s4115_s28 + $0xcb0] sm:$0xff]  ;;  %1061 = vst [vmem:[%s4123_s29 + $0x648] sm:$0xff] %v1060_v9 }
  0x7b   : > { %1063 = vst [vmem:[%s4123_s29 + $0x650] sm:$0xff] %v1062_v10  ;;  %1065 = vst [vmem:[%s4123_s29 + $0x658] sm:$0xff] %v1064_v11  ;;  %v1066_v12 = vld [vmem:[%s4115_s28 + $0xcc0] sm:$0xff]  ;;  %v1068_v13 = vld [vmem:[%s4115_s28 + $0xcd0] sm:$0xff] }
  0x7c   : > { %v1070_v14 = vld [vmem:[%s4115_s28 + $0xce0] sm:$0xff]  ;;  %1067 = vst [vmem:[%s4123_s29 + $0x660] sm:$0xff] %v1066_v12  ;;  %1069 = vst [vmem:[%s4123_s29 + $0x668] sm:$0xff] %v1068_v13  ;;  %v1072_v15 = vld [vmem:[%s4115_s28 + $0xcf0] sm:$0xff] }
  0x7d   : > { %1071 = vst [vmem:[%s4123_s29 + $0x670] sm:$0xff] %v1070_v14  ;;  %v1074_v16 = vld [vmem:[%s4115_s28 + $0xd00] sm:$0xff]  ;;  %v1076_v17 = vld [vmem:[%s4115_s28 + $0xd10] sm:$0xff]  ;;  %1073 = vst [vmem:[%s4123_s29 + $0x678] sm:$0xff] %v1072_v15 }
  0x7e   : > { %1075 = vst [vmem:[%s4123_s29 + $0x680] sm:$0xff] %v1074_v16  ;;  %1077 = vst [vmem:[%s4123_s29 + $0x688] sm:$0xff] %v1076_v17  ;;  %v1078_v18 = vld [vmem:[%s4115_s28 + $0xd20] sm:$0xff]  ;;  %v1080_v19 = vld [vmem:[%s4115_s28 + $0xd30] sm:$0xff] }
  0x7f   : > { %v1082_v20 = vld [vmem:[%s4115_s28 + $0xd40] sm:$0xff]  ;;  %1079 = vst [vmem:[%s4123_s29 + $0x690] sm:$0xff] %v1078_v18  ;;  %1081 = vst [vmem:[%s4123_s29 + $0x698] sm:$0xff] %v1080_v19  ;;  %v1084_v21 = vld [vmem:[%s4115_s28 + $0xd50] sm:$0xff] }
  0x80   : > { %1083 = vst [vmem:[%s4123_s29 + $0x6a0] sm:$0xff] %v1082_v20  ;;  %v1086_v22 = vld [vmem:[%s4115_s28 + $0xd60] sm:$0xff]  ;;  %v1088_v23 = vld [vmem:[%s4115_s28 + $0xd70] sm:$0xff]  ;;  %1085 = vst [vmem:[%s4123_s29 + $0x6a8] sm:$0xff] %v1084_v21 }
  0x81   : > { %1087 = vst [vmem:[%s4123_s29 + $0x6b0] sm:$0xff] %v1086_v22  ;;  %1089 = vst [vmem:[%s4123_s29 + $0x6b8] sm:$0xff] %v1088_v23  ;;  %v1090_v24 = vld [vmem:[%s4115_s28 + $0xd80] sm:$0xff]  ;;  %v1092_v25 = vld [vmem:[%s4115_s28 + $0xd90] sm:$0xff] }
  0x82   : > { %v1094_v26 = vld [vmem:[%s4115_s28 + $0xda0] sm:$0xff]  ;;  %1091 = vst [vmem:[%s4123_s29 + $0x6c0] sm:$0xff] %v1090_v24  ;;  %1093 = vst [vmem:[%s4123_s29 + $0x6c8] sm:$0xff] %v1092_v25  ;;  %v1096_v27 = vld [vmem:[%s4115_s28 + $0xdb0] sm:$0xff] }
  0x83   : > { %1095 = vst [vmem:[%s4123_s29 + $0x6d0] sm:$0xff] %v1094_v26  ;;  %v1098_v28 = vld [vmem:[%s4115_s28 + $0xdc0] sm:$0xff]  ;;  %v1100_v29 = vld [vmem:[%s4115_s28 + $0xdd0] sm:$0xff]  ;;  %1097 = vst [vmem:[%s4123_s29 + $0x6d8] sm:$0xff] %v1096_v27 }
  0x84   : > { %1099 = vst [vmem:[%s4123_s29 + $0x6e0] sm:$0xff] %v1098_v28  ;;  %1101 = vst [vmem:[%s4123_s29 + $0x6e8] sm:$0xff] %v1100_v29  ;;  %v1102_v30 = vld [vmem:[%s4115_s28 + $0xde0] sm:$0xff]  ;;  %v1104_v31 = vld [vmem:[%s4115_s28 + $0xdf0] sm:$0xff] }
  0x85   : > { %1103 = vst [vmem:[%s4123_s29 + $0x6f0] sm:$0xff] %v1102_v30  ;;  %1105 = vst [vmem:[%s4123_s29 + $0x6f8] sm:$0xff] %v1104_v31 }
  0x86 PF: > { %p3271_p8 = scmp.ge.s32.totalorder %s4045_s16, 1  ;;  %p1118_p9 = scmp.lt.s32.totalorder %s4045_s16, 3 }
  0x88   : > { %p1119_p10 = pnand %p3271_p8, %p1118_p9 }
  0x89   : > { %s1125_s30 = sand.u32 (!%p1119_p10), 1, %s4029_s12   ;;  %v3734_v32 = vld [vmem:[%s4894_s0 + $0x4] ss:$56 sps:$4 sm:$0xff] (!%p1119_p10)  }
  0x8a   : > { %1122 = sbr.rel (%p1119_p10) target bundleno = 632 (0x278), region = 66  ;;  %v3740_v33 = vld [vmem:[%s4894_s0 + $0x1c] ss:$56 sps:$4 sm:$0xff] (!%p1119_p10)   ;;  %2714 = vmatprep.mubr.bf16.mxu1 (!%p1119_p10), %v3734_v32 }
  0x8b   : > { %s3594_s4 = smul.u32 (!%p1119_p10), 1792, %s1125_s30  ;;  %2867 = vmatprep.mubr.bf16.mxu0 (!%p1119_p10), %v3740_v33 }
  0x8c   : > { %s3595_s25 = smul.u32 (!%p1119_p10), 24, %s1125_s30 }
  0x8d   : > { %s4578_s9 = scalar_lea.vmem (!%p1119_p10), [#allocation3], %s3594_s4 }
  0x8e   : > { %v3636_v34 = vld [vmem:[%s4578_s9 + $0x4] ss:$8 sps:$4 sm:$0xff] (!%p1119_p10)   ;;  %v3640_v36 = vld [vmem:[%s4578_s9] ss:$8 sps:$4 sm:$0xff] (!%p1119_p10)   ;;  %v3642_v38 = vld [vmem:[%s4578_s9 + $0x14] ss:$8 sps:$4 sm:$0xff] (!%p1119_p10)  }
  0x8f   : > { %v3638_v35 = vld [vmem:[%s4578_s9 + $0x304] ss:$8 sps:$4 sm:$0xff] (!%p1119_p10)   ;;  %2682 = vmatprep.subr.bf16.mxu1 (!%p1119_p10), %v3636_v34  ;;  %v3641_v37 = vld [vmem:[%s4578_s9 + $0x300] ss:$8 sps:$4 sm:$0xff] (!%p1119_p10)   ;;  %v3644_v39 = vld [vmem:[%s4578_s9 + $0x314] ss:$8 sps:$4 sm:$0xff] (!%p1119_p10)  }
  0x90   : > { %2835 = vmatprep.subr.bf16.mxu0 (!%p1119_p10), %v3638_v35  ;;  %2683 = vmatpush1.bf16.msra.mxu1 (!%p1119_p10), %v3640_v36  ;;  %v3646_v40 = vld [vmem:[%s4578_s9 + $0x10] ss:$8 sps:$4 sm:$0xff] (!%p1119_p10)   ;;  %v3648_v42 = vld [vmem:[%s4578_s9 + $0x24] ss:$8 sps:$4 sm:$0xff] (!%p1119_p10)   ;;  %v3652_v44 = vld [vmem:[%s4578_s9 + $0x20] ss:$8 sps:$4 sm:$0xff] (!%p1119_p10)  }
  0x91   : > { %2836 = vmatpush1.bf16.msra.mxu0 %v3641_v37  ;;  %2684 = vmatprep.subr.bf16.mxu1 %v3642_v38  ;;  %v3647_v41 = vld [vmem:[%s4578_s9 + $0x310] ss:$8 sps:$4 sm:$0xff]   ;;  %v3650_v43 = vld [vmem:[%s4578_s9 + $0x324] ss:$8 sps:$4 sm:$0xff]   ;;  %v3653_v45 = vld [vmem:[%s4578_s9 + $0x320] ss:$8 sps:$4 sm:$0xff]  }
  0x92   : > { %2837 = vmatprep.subr.bf16.mxu0 %v3644_v39  ;;  %v3654_v46 = vld [vmem:[%s4578_s9 + $0x34] ss:$8 sps:$4 sm:$0xff]   ;;  %v3658_v48 = vld [vmem:[%s4578_s9 + $0x30] ss:$8 sps:$4 sm:$0xff]   ;;  %v3660_v50 = vld [vmem:[%s4578_s9 + $0x44] ss:$8 sps:$4 sm:$0xff]  }
  0x93   : > { %v3656_v47 = vld [vmem:[%s4578_s9 + $0x334] ss:$8 sps:$4 sm:$0xff]   ;;  %v3659_v49 = vld [vmem:[%s4578_s9 + $0x330] ss:$8 sps:$4 sm:$0xff]   ;;  %v3662_v51 = vld [vmem:[%s4578_s9 + $0x344] ss:$8 sps:$4 sm:$0xff]  }
  0x94   : > { %2685 = vmatpush1.bf16.msra.mxu1 %v3646_v40  ;;  %v3664_v52 = vld [vmem:[%s4578_s9 + $0x40] ss:$8 sps:$4 sm:$0xff]   ;;  %v3666_v54 = vld [vmem:[%s4578_s9 + $0x54] ss:$8 sps:$4 sm:$0xff]   ;;  %v3670_v56 = vld [vmem:[%s4578_s9 + $0x50] ss:$8 sps:$4 sm:$0xff]  }
  0x95   : > { %2838 = vmatpush1.bf16.msra.mxu0 %v3647_v41  ;;  %2686 = vmatprep.subr.bf16.mxu1 %v3648_v42  ;;  %v3665_v53 = vld [vmem:[%s4578_s9 + $0x340] ss:$8 sps:$4 sm:$0xff]   ;;  %v3668_v55 = vld [vmem:[%s4578_s9 + $0x354] ss:$8 sps:$4 sm:$0xff]   ;;  %v3671_v57 = vld [vmem:[%s4578_s9 + $0x350] ss:$8 sps:$4 sm:$0xff]  }
  0x96   : > { %2839 = vmatprep.subr.bf16.mxu0 %v3650_v43  ;;  %v3672_v58 = vld [vmem:[%s4578_s9 + $0x64] ss:$8 sps:$4 sm:$0xff]   ;;  %v3676_v60 = vld [vmem:[%s4578_s9 + $0x60] ss:$8 sps:$4 sm:$0xff]   ;;  %v3678_v62 = vld [vmem:[%s4578_s9 + $0x74] ss:$8 sps:$4 sm:$0xff]  }
  0x97   : > { %v3674_v59 = vld [vmem:[%s4578_s9 + $0x364] ss:$8 sps:$4 sm:$0xff]   ;;  %v3677_v61 = vld [vmem:[%s4578_s9 + $0x360] ss:$8 sps:$4 sm:$0xff]   ;;  %v3680_v63 = vld [vmem:[%s4578_s9 + $0x374] ss:$8 sps:$4 sm:$0xff]  }
  0x98   : > { %2687 = vmatpush1.bf16.msra.mxu1 %v3652_v44  ;;  %v3682_v0 = vld [vmem:[%s4578_s9 + $0x70] ss:$8 sps:$4 sm:$0xff]   ;;  %v3684_v2 = vld [vmem:[%s4578_s9 + $0x84] ss:$8 sps:$4 sm:$0xff]   ;;  %v3688_v4 = vld [vmem:[%s4578_s9 + $0x80] ss:$8 sps:$4 sm:$0xff]  }
  0x99   : > { %2840 = vmatpush1.bf16.msra.mxu0 %v3653_v45  ;;  %2688 = vmatprep.subr.bf16.mxu1 %v3654_v46  ;;  %v3683_v1 = vld [vmem:[%s4578_s9 + $0x370] ss:$8 sps:$4 sm:$0xff]   ;;  %v3686_v3 = vld [vmem:[%s4578_s9 + $0x384] ss:$8 sps:$4 sm:$0xff]   ;;  %v3689_v5 = vld [vmem:[%s4578_s9 + $0x380] ss:$8 sps:$4 sm:$0xff]  }
  0x9a   : > { %2841 = vmatprep.subr.bf16.mxu0 %v3656_v47  ;;  %v3690_v6 = vld [vmem:[%s4578_s9 + $0x94] ss:$8 sps:$4 sm:$0xff]   ;;  %v3694_v8 = vld [vmem:[%s4578_s9 + $0x90] ss:$8 sps:$4 sm:$0xff]   ;;  %v3696_v10 = vld [vmem:[%s4578_s9 + $0xa4] ss:$8 sps:$4 sm:$0xff]  }
  0x9b   : > { %v3692_v7 = vld [vmem:[%s4578_s9 + $0x394] ss:$8 sps:$4 sm:$0xff]   ;;  %v3695_v9 = vld [vmem:[%s4578_s9 + $0x390] ss:$8 sps:$4 sm:$0xff]   ;;  %v3698_v11 = vld [vmem:[%s4578_s9 + $0x3a4] ss:$8 sps:$4 sm:$0xff]  }
  0x9c   : > { %2689 = vmatpush1.bf16.msra.mxu1 %v3658_v48  ;;  %v3700_v12 = vld [vmem:[%s4578_s9 + $0xa0] ss:$8 sps:$4 sm:$0xff]   ;;  %v3702_v14 = vld [vmem:[%s4578_s9 + $0xb4] ss:$8 sps:$4 sm:$0xff]   ;;  %v3706_v16 = vld [vmem:[%s4578_s9 + $0xb0] ss:$8 sps:$4 sm:$0xff]  }
  0x9d   : > { %2842 = vmatpush1.bf16.msra.mxu0 %v3659_v49  ;;  %2690 = vmatprep.subr.bf16.mxu1 %v3660_v50  ;;  %v3701_v13 = vld [vmem:[%s4578_s9 + $0x3a0] ss:$8 sps:$4 sm:$0xff]   ;;  %v3704_v15 = vld [vmem:[%s4578_s9 + $0x3b4] ss:$8 sps:$4 sm:$0xff]   ;;  %v3707_v17 = vld [vmem:[%s4578_s9 + $0x3b0] ss:$8 sps:$4 sm:$0xff]  }
  0x9e   : > { %2843 = vmatprep.subr.bf16.mxu0 %v3662_v51  ;;  %v3708_v18 = vld [vmem:[%s4578_s9 + $0xc4] ss:$8 sps:$4 sm:$0xff]   ;;  %v3712_v20 = vld [vmem:[%s4578_s9 + $0xc0] ss:$8 sps:$4 sm:$0xff]   ;;  %v3714_v22 = vld [vmem:[%s4578_s9 + $0xd4] ss:$8 sps:$4 sm:$0xff]  }
  0x9f   : > { %v3710_v19 = vld [vmem:[%s4578_s9 + $0x3c4] ss:$8 sps:$4 sm:$0xff]   ;;  %v3713_v21 = vld [vmem:[%s4578_s9 + $0x3c0] ss:$8 sps:$4 sm:$0xff]   ;;  %v3716_v23 = vld [vmem:[%s4578_s9 + $0x3d4] ss:$8 sps:$4 sm:$0xff]  }
  0xa0   : > { %2691 = vmatpush1.bf16.msra.mxu1 %v3664_v52  ;;  %v3718_v24 = vld [vmem:[%s4578_s9 + $0xd0] ss:$8 sps:$4 sm:$0xff]   ;;  %v3720_v26 = vld [vmem:[%s4578_s9 + $0xe4] ss:$8 sps:$4 sm:$0xff]   ;;  %v3724_v28 = vld [vmem:[%s4578_s9 + $0xe0] ss:$8 sps:$4 sm:$0xff]  }
  0xa1   : > { %2844 = vmatpush1.bf16.msra.mxu0 %v3665_v53  ;;  %2692 = vmatprep.subr.bf16.mxu1 %v3666_v54  ;;  %v3719_v25 = vld [vmem:[%s4578_s9 + $0x3d0] ss:$8 sps:$4 sm:$0xff]   ;;  %v3722_v27 = vld [vmem:[%s4578_s9 + $0x3e4] ss:$8 sps:$4 sm:$0xff]   ;;  %v3725_v29 = vld [vmem:[%s4578_s9 + $0x3e0] ss:$8 sps:$4 sm:$0xff]  }
  0xa2   : > { %2845 = vmatprep.subr.bf16.mxu0 %v3668_v55  ;;  %v3726_v30 = vld [vmem:[%s4578_s9 + $0xf4] ss:$8 sps:$4 sm:$0xff]   ;;  %v3730_v32 = vld [vmem:[%s4578_s9 + $0xf0] ss:$8 sps:$4 sm:$0xff]   ;;  %v3737_v34 = vld [vmem:[%s4578_s9 + $0x104] ss:$8 sps:$4 sm:$0xff]  }
  0xa3   : > { %v3728_v31 = vld [vmem:[%s4578_s9 + $0x3f4] ss:$8 sps:$4 sm:$0xff]   ;;  %v3731_v33 = vld [vmem:[%s4578_s9 + $0x3f0] ss:$8 sps:$4 sm:$0xff]   ;;  %v3743_v37 = vld [vmem:[%s4578_s9 + $0x404] ss:$8 sps:$4 sm:$0xff]  }
  0xa4   : > { %2693 = vmatpush1.bf16.msra.mxu1 %v3670_v56  ;;  %v3732_v35 = vld [vmem:[%s4894_s0] ss:$56 sps:$4 sm:$0xff]   ;;  %v1215_v38 = vld [vmem:[%s4894_s0 + $0x88] sm:$0xff]  ;;  %v1212_v39 = vld [vmem:[%s4894_s0 + $0x70] sm:$0xff]  ;;  %s1160_s26 = scalar_lea.vmem [#allocation4], %s3595_s25  ;;  %s3536_s12 = sshll.u32 (%p4102_p6), %s4037_s14, 3 }
  0xa5   : > { %2846 = vmatpush1.bf16.msra.mxu0 %v3671_v57  ;;  %2694 = vmatprep.subr.bf16.mxu1 %v3672_v58  ;;  %v3738_v36 = vld [vmem:[%s4894_s0 + $0x18] ss:$56 sps:$4 sm:$0xff]   ;;  %v3735_v40 = vld [vmem:[%s4578_s9 + $0x100] ss:$8 sps:$4 sm:$0xff]   ;;  %v3746_v42 = vld [vmem:[%s4578_s9 + $0x114] ss:$8 sps:$4 sm:$0xff]   ;;  %v3294_v44 = vcombine.high %v1215_v38, %v1215_v38  ;;  %v3288_v45 = vcombine.high %v1212_v39, %v1212_v39  ;;  %v3293_v52 = vcombine.low %v1215_v38, %v1215_v38  ;;  %s3119_s28 = scalar_lea.vmem (%p4102_p6), %s4897_s3, %s3536_s12 }
  0xa6   : > { %2847 = vmatprep.subr.bf16.mxu0 %v3674_v59  ;;  %v3741_v41 = vld [vmem:[%s4578_s9 + $0x400] ss:$8 sps:$4 sm:$0xff]   ;;  %v3749_v43 = vld [vmem:[%s4578_s9 + $0x414] ss:$8 sps:$4 sm:$0xff]   ;;  %v3744_v46 = vld [vmem:[%s4578_s9 + $0x110] ss:$8 sps:$4 sm:$0xff]   ;;  %v3287_v53 = vcombine.low %v1212_v39, %v1212_v39 }
  0xa7   : > { %v3747_v47 = vld [vmem:[%s4578_s9 + $0x410] ss:$8 sps:$4 sm:$0xff]   ;;  %v3752_v48 = vld [vmem:[%s4578_s9 + $0x124] ss:$8 sps:$4 sm:$0xff]   ;;  %v3750_v50 = vld [vmem:[%s4578_s9 + $0x120] ss:$8 sps:$4 sm:$0xff]  }
  0xa8   : > { %2695 = vmatpush1.bf16.msra.mxu1 %v3676_v60  ;;  %v3755_v49 = vld [vmem:[%s4578_s9 + $0x424] ss:$8 sps:$4 sm:$0xff]   ;;  %v3753_v51 = vld [vmem:[%s4578_s9 + $0x420] ss:$8 sps:$4 sm:$0xff]   ;;  %v3758_v54 = vld [vmem:[%s4578_s9 + $0x134] ss:$8 sps:$4 sm:$0xff]  }
  0xa9   : > { %2848 = vmatpush1.bf16.msra.mxu0 %v3677_v61  ;;  %2696 = vmatprep.subr.bf16.mxu1 %v3678_v62  ;;  %v3761_v55 = vld [vmem:[%s4578_s9 + $0x434] ss:$8 sps:$4 sm:$0xff]   ;;  %v3756_v56 = vld [vmem:[%s4578_s9 + $0x130] ss:$8 sps:$4 sm:$0xff]   ;;  %v3764_v58 = vld [vmem:[%s4578_s9 + $0x144] ss:$8 sps:$4 sm:$0xff]  }
  0xaa   : > { %2849 = vmatprep.subr.bf16.mxu0 %v3680_v63  ;;  %v3759_v57 = vld [vmem:[%s4578_s9 + $0x430] ss:$8 sps:$4 sm:$0xff]   ;;  %v3767_v59 = vld [vmem:[%s4578_s9 + $0x444] ss:$8 sps:$4 sm:$0xff]   ;;  %v3762_v60 = vld [vmem:[%s4578_s9 + $0x140] ss:$8 sps:$4 sm:$0xff]  }
  0xab   : > { %v3765_v61 = vld [vmem:[%s4578_s9 + $0x440] ss:$8 sps:$4 sm:$0xff]   ;;  %v3770_v62 = vld [vmem:[%s4578_s9 + $0x154] ss:$8 sps:$4 sm:$0xff]  }
  0xac   : > { %2697 = vmatpush1.bf16.msra.mxu1 %v3682_v0  ;;  %v3773_v63 = vld [vmem:[%s4578_s9 + $0x454] ss:$8 sps:$4 sm:$0xff]   ;;  %v3768_v0 = vld [vmem:[%s4578_s9 + $0x150] ss:$8 sps:$4 sm:$0xff]   ;;  %v3826_v38 = vld [vmem:[%s4578_s9 + $0x1e0] ss:$8 sps:$4 sm:$0xff]  }
  0xad   : > { %2850 = vmatpush1.bf16.msra.mxu0 %v3683_v1  ;;  %2698 = vmatprep.subr.bf16.mxu1 %v3684_v2  ;;  %v3771_v1 = vld [vmem:[%s4578_s9 + $0x450] ss:$8 sps:$4 sm:$0xff]   ;;  %v3776_v2 = vld [vmem:[%s4578_s9 + $0x164] ss:$8 sps:$4 sm:$0xff]   ;;  %v3829_v39 = vld [vmem:[%s4578_s9 + $0x4e0] ss:$8 sps:$4 sm:$0xff]  }
  0xae   : > { %2851 = vmatprep.subr.bf16.mxu0 %v3686_v3  ;;  %v3779_v3 = vld [vmem:[%s4578_s9 + $0x464] ss:$8 sps:$4 sm:$0xff]  }
  0xb0   : > { %2699 = vmatpush1.bf16.msra.mxu1 %v3688_v4  ;;  %v3840_v4 = vld [vmem:[%s4894_s0 + $0xc] ss:$56 sps:$4 sm:$0xff]  }
  0xb1   : > { %2852 = vmatpush1.bf16.msra.mxu0 %v3689_v5  ;;  %2700 = vmatprep.subr.bf16.mxu1 %v3690_v6  ;;  %v3774_v5 = vld [vmem:[%s4578_s9 + $0x160] ss:$8 sps:$4 sm:$0xff]  }
  0xb2   : > { %2853 = vmatprep.subr.bf16.mxu0 %v3692_v7  ;;  %v3777_v6 = vld [vmem:[%s4578_s9 + $0x460] ss:$8 sps:$4 sm:$0xff]   ;;  %v3846_v7 = vld [vmem:[%s4894_s0 + $0x24] ss:$56 sps:$4 sm:$0xff]  }
  0xb4   : > { %2701 = vmatpush1.bf16.msra.mxu1 %v3694_v8  ;;  %v3782_v8 = vld [vmem:[%s4578_s9 + $0x174] ss:$8 sps:$4 sm:$0xff]  }
  0xb5   : > { %2854 = vmatpush1.bf16.msra.mxu0 %v3695_v9  ;;  %2702 = vmatprep.subr.bf16.mxu1 %v3696_v10  ;;  %v3785_v9 = vld [vmem:[%s4578_s9 + $0x474] ss:$8 sps:$4 sm:$0xff]   ;;  %v3780_v10 = vld [vmem:[%s4578_s9 + $0x170] ss:$8 sps:$4 sm:$0xff]  }
  0xb6   : > { %2855 = vmatprep.subr.bf16.mxu0 %v3698_v11  ;;  %v3783_v11 = vld [vmem:[%s4578_s9 + $0x470] ss:$8 sps:$4 sm:$0xff]  }
  0xb8   : > { %2703 = vmatpush1.bf16.msra.mxu1 %v3700_v12  ;;  %v3788_v12 = vld [vmem:[%s4578_s9 + $0x184] ss:$8 sps:$4 sm:$0xff]  }
  0xb9   : > { %2856 = vmatpush1.bf16.msra.mxu0 %v3701_v13  ;;  %2704 = vmatprep.subr.bf16.mxu1 %v3702_v14  ;;  %v3791_v13 = vld [vmem:[%s4578_s9 + $0x484] ss:$8 sps:$4 sm:$0xff]   ;;  %v3786_v14 = vld [vmem:[%s4578_s9 + $0x180] ss:$8 sps:$4 sm:$0xff]  }
  0xba   : > { %2857 = vmatprep.subr.bf16.mxu0 %v3704_v15  ;;  %v3789_v15 = vld [vmem:[%s4578_s9 + $0x480] ss:$8 sps:$4 sm:$0xff]  }
  0xbc   : > { %2705 = vmatpush1.bf16.msra.mxu1 %v3706_v16  ;;  %v3794_v16 = vld [vmem:[%s4578_s9 + $0x194] ss:$8 sps:$4 sm:$0xff]  }
  0xbd   : > { %2858 = vmatpush1.bf16.msra.mxu0 %v3707_v17  ;;  %2706 = vmatprep.subr.bf16.mxu1 %v3708_v18  ;;  %v3797_v17 = vld [vmem:[%s4578_s9 + $0x494] ss:$8 sps:$4 sm:$0xff]   ;;  %v3792_v18 = vld [vmem:[%s4578_s9 + $0x190] ss:$8 sps:$4 sm:$0xff]  }
  0xbe   : > { %2859 = vmatprep.subr.bf16.mxu0 %v3710_v19  ;;  %v3795_v19 = vld [vmem:[%s4578_s9 + $0x490] ss:$8 sps:$4 sm:$0xff]  }
  0xc0   : > { %2707 = vmatpush1.bf16.msra.mxu1 %v3712_v20  ;;  %v3800_v20 = vld [vmem:[%s4578_s9 + $0x1a4] ss:$8 sps:$4 sm:$0xff]  }
  0xc1   : > { %2860 = vmatpush1.bf16.msra.mxu0 %v3713_v21  ;;  %2708 = vmatprep.subr.bf16.mxu1 %v3714_v22  ;;  %v3803_v21 = vld [vmem:[%s4578_s9 + $0x4a4] ss:$8 sps:$4 sm:$0xff]   ;;  %v3798_v22 = vld [vmem:[%s4578_s9 + $0x1a0] ss:$8 sps:$4 sm:$0xff]  }
  0xc2   : > { %2861 = vmatprep.subr.bf16.mxu0 %v3716_v23  ;;  %v3801_v23 = vld [vmem:[%s4578_s9 + $0x4a0] ss:$8 sps:$4 sm:$0xff]  }
  0xc4   : > { %2709 = vmatpush1.bf16.msra.mxu1 %v3718_v24  ;;  %v3806_v24 = vld [vmem:[%s4578_s9 + $0x1b4] ss:$8 sps:$4 sm:$0xff]  }
  0xc5   : > { %2862 = vmatpush1.bf16.msra.mxu0 %v3719_v25  ;;  %2710 = vmatprep.subr.bf16.mxu1 %v3720_v26  ;;  %v3809_v25 = vld [vmem:[%s4578_s9 + $0x4b4] ss:$8 sps:$4 sm:$0xff]   ;;  %v3804_v26 = vld [vmem:[%s4578_s9 + $0x1b0] ss:$8 sps:$4 sm:$0xff]  }
  0xc6   : > { %2863 = vmatprep.subr.bf16.mxu0 %v3722_v27  ;;  %v3807_v27 = vld [vmem:[%s4578_s9 + $0x4b0] ss:$8 sps:$4 sm:$0xff]  }
  0xc8   : > { %2711 = vmatpush1.bf16.msra.mxu1 %v3724_v28  ;;  %v3812_v28 = vld [vmem:[%s4578_s9 + $0x1c4] ss:$8 sps:$4 sm:$0xff]  }
  0xc9   : > { %2864 = vmatpush1.bf16.msra.mxu0 %v3725_v29  ;;  %2712 = vmatprep.subr.bf16.mxu1 %v3726_v30  ;;  %v3815_v29 = vld [vmem:[%s4578_s9 + $0x4c4] ss:$8 sps:$4 sm:$0xff]   ;;  %v3810_v30 = vld [vmem:[%s4578_s9 + $0x1c0] ss:$8 sps:$4 sm:$0xff]  }
  0xca   : > { %2865 = vmatprep.subr.bf16.mxu0 %v3728_v31  ;;  %v3813_v31 = vld [vmem:[%s4578_s9 + $0x4c0] ss:$8 sps:$4 sm:$0xff]  }
  0xcc   : > { %2713 = vmatpush1.bf16.msra.mxu1 %v3730_v32  ;;  %v3818_v32 = vld [vmem:[%s4578_s9 + $0x1d4] ss:$8 sps:$4 sm:$0xff]  }
  0xcd   : > { %2866 = vmatpush1.bf16.msra.mxu0 %v3731_v33  ;;  %2733 = vmatprep.subr.bf16.mxu1 %v3737_v34  ;;  %v3821_v33 = vld [vmem:[%s4578_s9 + $0x4d4] ss:$8 sps:$4 sm:$0xff]   ;;  %v3816_v34 = vld [vmem:[%s4578_s9 + $0x1d0] ss:$8 sps:$4 sm:$0xff]  }
  0xce   : > { %2886 = vmatprep.subr.bf16.mxu0 %v3743_v37  ;;  %v3831_v37 = vld [vmem:[%s4578_s9 + $0x4e4] ss:$8 sps:$4 sm:$0xff]  }
  0xcf   : > { %2715 = vmatmul.mubr.bf16.vlgmr.msra.gmra.mrb[0].mxu1 %v3732_v35  ;;  %v3819_v35 = vld [vmem:[%s4578_s9 + $0x4d0] ss:$8 sps:$4 sm:$0xff]  }
  0xd0   : > { %2868 = vmatmul.mubr.bf16.vlgmr.msra.gmra.mrb[0].mxu0 %v3738_v36  ;;  %2734 = vmatpush1.bf16.msra.mxu1 %v3735_v40  ;;  %v3828_v36 = vld [vmem:[%s4578_s9 + $0x1e4] ss:$8 sps:$4 sm:$0xff]   ;;  %v3834_v40 = vld [vmem:[%s4578_s9 + $0x1f4] ss:$8 sps:$4 sm:$0xff]  }
  0xd1   : > { %2887 = vmatpush1.bf16.msra.mxu0 %v3741_v41  ;;  %2735 = vmatprep.subr.bf16.mxu1 %v3746_v42  ;;  %v3837_v41 = vld [vmem:[%s4578_s9 + $0x4f4] ss:$8 sps:$4 sm:$0xff]   ;;  %v3832_v42 = vld [vmem:[%s4578_s9 + $0x1f0] ss:$8 sps:$4 sm:$0xff]  }
  0xd2   : > { %2888 = vmatprep.subr.bf16.mxu0 %v3749_v43  ;;  %2877 = vmatprep.mubr.bf16.mxu0 %v3294_v44  ;;  %v3835_v43 = vld [vmem:[%s4578_s9 + $0x4f0] ss:$8 sps:$4 sm:$0xff]   ;;  %v3843_v44 = vld [vmem:[%s4578_s9 + $0x204] ss:$8 sps:$4 sm:$0xff]  }
  0xd3   : > { %2724 = vmatprep.mubr.bf16.mxu1 %v3288_v45  ;;  %v3838_v45 = vld [vmem:[%s4894_s0 + $0x8] ss:$56 sps:$4 sm:$0xff]  }
  0xd4   : > { %2736 = vmatpush1.bf16.msra.mxu1 %v3744_v46  ;;  %v3849_v46 = vld [vmem:[%s4578_s9 + $0x504] ss:$8 sps:$4 sm:$0xff]  }
  0xd5   : > { %2889 = vmatpush1.bf16.msra.mxu0 %v3747_v47  ;;  %2737 = vmatprep.subr.bf16.mxu1 %v3752_v48  ;;  %v3841_v47 = vld [vmem:[%s4578_s9 + $0x200] ss:$8 sps:$4 sm:$0xff]  }
  0xd6   : > { %2890 = vmatprep.subr.bf16.mxu0 %v3755_v49  ;;  %v3844_v48 = vld [vmem:[%s4894_s0 + $0x20] ss:$56 sps:$4 sm:$0xff]  }
  0xd7   : > { %2725 = vmatmul.mubr.bf16.gmra.mrb[4].mxu1 %v3287_v53  ;;  %v3847_v49 = vld [vmem:[%s4578_s9 + $0x500] ss:$8 sps:$4 sm:$0xff]   ;;  %v3855_v53 = vld [vmem:[%s4578_s9 + $0x514] ss:$8 sps:$4 sm:$0xff]  }
  0xd8   : > { %2878 = vmatmul.mubr.bf16.gmra.mrb[4].mxu0 %v3293_v52  ;;  %2738 = vmatpush1.bf16.msra.mxu1 %v3750_v50  ;;  %v1213_v50 = vld [vmem:[%s4894_s0 + $0x78] sm:$0xff] }
  0xd9   : > { %2891 = vmatpush1.bf16.msra.mxu0 %v3753_v51  ;;  %2739 = vmatprep.subr.bf16.mxu1 %v3758_v54  ;;  %v1216_v51 = vld [vmem:[%s4894_s0 + $0x90] sm:$0xff]  ;;  %v3290_v54 = vcombine.high %v1213_v50, %v1213_v50 }
  0xda   : > { %2892 = vmatprep.subr.bf16.mxu0 %v3761_v55  ;;  %2765 = vmatprep.mubr.bf16.mxu1 %v3840_v4  ;;  %v3852_v52 = vld [vmem:[%s4578_s9 + $0x214] ss:$8 sps:$4 sm:$0xff]   ;;  %v3296_v55 = vcombine.high %v1216_v51, %v1216_v51  ;;  %v3864_v4 = vld [vmem:[%s4578_s9 + $0x230] ss:$8 sps:$4 sm:$0xff]  }
  0xdb   : > { %2918 = vmatprep.mubr.bf16.mxu0 %v3846_v7  ;;  %v3875_v7 = vld [vmem:[%s4578_s9 + $0x544] ss:$8 sps:$4 sm:$0xff]  }
  0xdc   : > { %2740 = vmatpush1.bf16.msra.mxu1 %v3756_v56  ;;  %v3850_v56 = vld [vmem:[%s4578_s9 + $0x210] ss:$8 sps:$4 sm:$0xff]  }
  0xdd   : > { %2893 = vmatpush1.bf16.msra.mxu0 %v3759_v57  ;;  %2741 = vmatprep.subr.bf16.mxu1 %v3764_v58  ;;  %v3853_v57 = vld [vmem:[%s4578_s9 + $0x510] ss:$8 sps:$4 sm:$0xff]   ;;  %v3860_v58 = vld [vmem:[%s4578_s9 + $0x224] ss:$8 sps:$4 sm:$0xff]  }
  0xde   : > { %2894 = vmatprep.subr.bf16.mxu0 %v3767_v59  ;;  %v3863_v59 = vld [vmem:[%s4578_s9 + $0x524] ss:$8 sps:$4 sm:$0xff]  }
  0xe0   : > { %2742 = vmatpush1.bf16.msra.mxu1 %v3762_v60  ;;  %v3289_v60 = vcombine.low %v1213_v50, %v1213_v50  ;;  %v3940_v50 = vld [vmem:[%s4578_s9 + $0x2f4] ss:$8 sps:$4 sm:$0xff]  }
  0xe1   : > { %2895 = vmatpush1.bf16.msra.mxu0 %v3765_v61  ;;  %2743 = vmatprep.subr.bf16.mxu1 %v3770_v62  ;;  %v3858_v61 = vld [vmem:[%s4578_s9 + $0x220] ss:$8 sps:$4 sm:$0xff]   ;;  %v3295_v62 = vcombine.low %v1216_v51, %v1216_v51  ;;  %v3943_v51 = vld [vmem:[%s4578_s9 + $0x5f4] ss:$8 sps:$4 sm:$0xff]  }
  0xe2   : > { %2896 = vmatprep.subr.bf16.mxu0 %v3773_v63  ;;  %v3861_v63 = vld [vmem:[%s4578_s9 + $0x520] ss:$8 sps:$4 sm:$0xff]  }
  0xe4   : > { %2744 = vmatpush1.bf16.msra.mxu1 %v3768_v0  ;;  %v3866_v0 = vld [vmem:[%s4578_s9 + $0x234] ss:$8 sps:$4 sm:$0xff]  }
  0xe5   : > { %2897 = vmatpush1.bf16.msra.mxu0 %v3771_v1  ;;  %2745 = vmatprep.subr.bf16.mxu1 %v3776_v2  ;;  %v3869_v1 = vld [vmem:[%s4578_s9 + $0x534] ss:$8 sps:$4 sm:$0xff]  }
  0xe6   : > { %2898 = vmatprep.subr.bf16.mxu0 %v3779_v3  ;;  %v3946_v2 = vld [vmem:[%s4894_s0 + $0x14] ss:$56 sps:$4 sm:$0xff]  }
  0xe7   : > { %v3949_v3 = vld [vmem:[%s4894_s0 + $0x2c] ss:$56 sps:$4 sm:$0xff]  }
  0xe8   : > { %2746 = vmatpush1.bf16.msra.mxu1 %v3774_v5  ;;  %v3867_v5 = vld [vmem:[%s4578_s9 + $0x530] ss:$8 sps:$4 sm:$0xff]  }
  0xe9   : > { %2899 = vmatpush1.bf16.msra.mxu0 %v3777_v6  ;;  %2747 = vmatprep.subr.bf16.mxu1 %v3782_v8  ;;  %v3872_v6 = vld [vmem:[%s4578_s9 + $0x244] ss:$8 sps:$4 sm:$0xff]   ;;  %v3870_v8 = vld [vmem:[%s4578_s9 + $0x240] ss:$8 sps:$4 sm:$0xff]  }
  0xea   : > { %2900 = vmatprep.subr.bf16.mxu0 %v3785_v9  ;;  %v3873_v9 = vld [vmem:[%s4578_s9 + $0x540] ss:$8 sps:$4 sm:$0xff]  }
  0xec   : > { %2748 = vmatpush1.bf16.msra.mxu1 %v3780_v10  ;;  %v3878_v10 = vld [vmem:[%s4578_s9 + $0x254] ss:$8 sps:$4 sm:$0xff]  }
  0xed   : > { %2901 = vmatpush1.bf16.msra.mxu0 %v3783_v11  ;;  %2749 = vmatprep.subr.bf16.mxu1 %v3788_v12  ;;  %v3881_v11 = vld [vmem:[%s4578_s9 + $0x554] ss:$8 sps:$4 sm:$0xff]   ;;  %v3876_v12 = vld [vmem:[%s4578_s9 + $0x250] ss:$8 sps:$4 sm:$0xff]  }
  0xee   : > { %2902 = vmatprep.subr.bf16.mxu0 %v3791_v13  ;;  %v3879_v13 = vld [vmem:[%s4578_s9 + $0x550] ss:$8 sps:$4 sm:$0xff]  }
  0xf0   : > { %2750 = vmatpush1.bf16.msra.mxu1 %v3786_v14  ;;  %v3884_v14 = vld [vmem:[%s4578_s9 + $0x264] ss:$8 sps:$4 sm:$0xff]  }
  0xf1   : > { %2903 = vmatpush1.bf16.msra.mxu0 %v3789_v15  ;;  %2751 = vmatprep.subr.bf16.mxu1 %v3794_v16  ;;  %v3887_v15 = vld [vmem:[%s4578_s9 + $0x564] ss:$8 sps:$4 sm:$0xff]   ;;  %v3882_v16 = vld [vmem:[%s4578_s9 + $0x260] ss:$8 sps:$4 sm:$0xff]  }
  0xf2   : > { %2904 = vmatprep.subr.bf16.mxu0 %v3797_v17  ;;  %v3885_v17 = vld [vmem:[%s4578_s9 + $0x560] ss:$8 sps:$4 sm:$0xff]  }
  0xf4   : > { %2752 = vmatpush1.bf16.msra.mxu1 %v3792_v18  ;;  %v3890_v18 = vld [vmem:[%s4578_s9 + $0x274] ss:$8 sps:$4 sm:$0xff]  }
  0xf5   : > { %2905 = vmatpush1.bf16.msra.mxu0 %v3795_v19  ;;  %2753 = vmatprep.subr.bf16.mxu1 %v3800_v20  ;;  %v3893_v19 = vld [vmem:[%s4578_s9 + $0x574] ss:$8 sps:$4 sm:$0xff]   ;;  %v3888_v20 = vld [vmem:[%s4578_s9 + $0x270] ss:$8 sps:$4 sm:$0xff]  }
  0xf6   : > { %2906 = vmatprep.subr.bf16.mxu0 %v3803_v21  ;;  %v3891_v21 = vld [vmem:[%s4578_s9 + $0x570] ss:$8 sps:$4 sm:$0xff]  }
  0xf8   : > { %2754 = vmatpush1.bf16.msra.mxu1 %v3798_v22  ;;  %v3896_v22 = vld [vmem:[%s4578_s9 + $0x284] ss:$8 sps:$4 sm:$0xff]  }
  0xf9   : > { %2907 = vmatpush1.bf16.msra.mxu0 %v3801_v23  ;;  %2755 = vmatprep.subr.bf16.mxu1 %v3806_v24  ;;  %v3899_v23 = vld [vmem:[%s4578_s9 + $0x584] ss:$8 sps:$4 sm:$0xff]   ;;  %v3894_v24 = vld [vmem:[%s4578_s9 + $0x280] ss:$8 sps:$4 sm:$0xff]  }
  0xfa   : > { %2908 = vmatprep.subr.bf16.mxu0 %v3809_v25  ;;  %v3897_v25 = vld [vmem:[%s4578_s9 + $0x580] ss:$8 sps:$4 sm:$0xff]  }
  0xfc   : > { %2756 = vmatpush1.bf16.msra.mxu1 %v3804_v26  ;;  %v3902_v26 = vld [vmem:[%s4578_s9 + $0x294] ss:$8 sps:$4 sm:$0xff]  }
  0xfd   : > { %2909 = vmatpush1.bf16.msra.mxu0 %v3807_v27  ;;  %2757 = vmatprep.subr.bf16.mxu1 %v3812_v28  ;;  %v3905_v27 = vld [vmem:[%s4578_s9 + $0x594] ss:$8 sps:$4 sm:$0xff]   ;;  %v3900_v28 = vld [vmem:[%s4578_s9 + $0x290] ss:$8 sps:$4 sm:$0xff]  }
  0xfe   : > { %2910 = vmatprep.subr.bf16.mxu0 %v3815_v29  ;;  %v3903_v29 = vld [vmem:[%s4578_s9 + $0x590] ss:$8 sps:$4 sm:$0xff]  }
 0x100   : > { %2758 = vmatpush1.bf16.msra.mxu1 %v3810_v30  ;;  %v3908_v30 = vld [vmem:[%s4578_s9 + $0x2a4] ss:$8 sps:$4 sm:$0xff]  }
 0x101   : > { %2911 = vmatpush1.bf16.msra.mxu0 %v3813_v31  ;;  %2759 = vmatprep.subr.bf16.mxu1 %v3818_v32  ;;  %v3911_v31 = vld [vmem:[%s4578_s9 + $0x5a4] ss:$8 sps:$4 sm:$0xff]   ;;  %v3906_v32 = vld [vmem:[%s4578_s9 + $0x2a0] ss:$8 sps:$4 sm:$0xff]  }
 0x102   : > { %2912 = vmatprep.subr.bf16.mxu0 %v3821_v33  ;;  %v3909_v33 = vld [vmem:[%s4578_s9 + $0x5a0] ss:$8 sps:$4 sm:$0xff]  }
 0x104   : > { %2760 = vmatpush1.bf16.msra.mxu1 %v3816_v34  ;;  %v3914_v34 = vld [vmem:[%s4578_s9 + $0x2b4] ss:$8 sps:$4 sm:$0xff]  }
 0x105   : > { %2913 = vmatpush1.bf16.msra.mxu0 %v3819_v35  ;;  %2761 = vmatprep.subr.bf16.mxu1 %v3828_v36  ;;  %v3917_v35 = vld [vmem:[%s4578_s9 + $0x5b4] ss:$8 sps:$4 sm:$0xff]   ;;  %v3912_v36 = vld [vmem:[%s4578_s9 + $0x2b0] ss:$8 sps:$4 sm:$0xff]  }
 0x106   : > { %2914 = vmatprep.subr.bf16.mxu0 %v3831_v37  ;;  %v3915_v37 = vld [vmem:[%s4578_s9 + $0x5b0] ss:$8 sps:$4 sm:$0xff]  }
 0x108   : > { %2762 = vmatpush1.bf16.msra.mxu1 %v3826_v38  ;;  %v3920_v38 = vld [vmem:[%s4578_s9 + $0x2c4] ss:$8 sps:$4 sm:$0xff]  }
 0x109   : > { %2915 = vmatpush1.bf16.msra.mxu0 %v3829_v39  ;;  %2763 = vmatprep.subr.bf16.mxu1 %v3834_v40  ;;  %v3923_v39 = vld [vmem:[%s4578_s9 + $0x5c4] ss:$8 sps:$4 sm:$0xff]   ;;  %v3918_v40 = vld [vmem:[%s4578_s9 + $0x2c0] ss:$8 sps:$4 sm:$0xff]  }
 0x10a   : > { %2916 = vmatprep.subr.bf16.mxu0 %v3837_v41  ;;  %v3921_v41 = vld [vmem:[%s4578_s9 + $0x5c0] ss:$8 sps:$4 sm:$0xff]  }
 0x10c   : > { %2764 = vmatpush1.bf16.msra.mxu1 %v3832_v42  ;;  %v3926_v42 = vld [vmem:[%s4578_s9 + $0x2d4] ss:$8 sps:$4 sm:$0xff]  }
 0x10d   : > { %2917 = vmatpush1.bf16.msra.mxu0 %v3835_v43  ;;  %2784 = vmatprep.subr.bf16.mxu1 %v3843_v44  ;;  %v3929_v43 = vld [vmem:[%s4578_s9 + $0x5d4] ss:$8 sps:$4 sm:$0xff]   ;;  %v3924_v44 = vld [vmem:[%s4578_s9 + $0x2d0] ss:$8 sps:$4 sm:$0xff]  }
 0x10e   : > { %2937 = vmatprep.subr.bf16.mxu0 %v3849_v46  ;;  %v3934_v46 = vld [vmem:[%s4578_s9 + $0x2e4] ss:$8 sps:$4 sm:$0xff]  }
 0x10f   : > { %2766 = vmatmul.mubr.bf16.vlgmr.msra.gmra.mrb[0].mxu1 %v3838_v45  ;;  %v3927_v45 = vld [vmem:[%s4578_s9 + $0x5d0] ss:$8 sps:$4 sm:$0xff]  }
 0x110   : > { %2919 = vmatmul.mubr.bf16.vlgmr.msra.gmra.mrb[0].mxu0 %v3844_v48  ;;  %2785 = vmatpush1.bf16.msra.mxu1 %v3841_v47  ;;  %v3937_v47 = vld [vmem:[%s4578_s9 + $0x5e4] ss:$8 sps:$4 sm:$0xff]   ;;  %v3932_v48 = vld [vmem:[%s4578_s9 + $0x2e0] ss:$8 sps:$4 sm:$0xff]  }
 0x111   : > { %2938 = vmatpush1.bf16.msra.mxu0 %v3847_v49  ;;  %2786 = vmatprep.subr.bf16.mxu1 %v3852_v52  ;;  %v3935_v49 = vld [vmem:[%s4578_s9 + $0x5e0] ss:$8 sps:$4 sm:$0xff]   ;;  %v3938_v52 = vld [vmem:[%s4578_s9 + $0x2f0] ss:$8 sps:$4 sm:$0xff]  }
 0x112   : > { %2939 = vmatprep.subr.bf16.mxu0 %v3855_v53  ;;  %2775 = vmatprep.mubr.bf16.mxu1 %v3290_v54  ;;  %v3941_v53 = vld [vmem:[%s4578_s9 + $0x5f0] ss:$8 sps:$4 sm:$0xff]   ;;  %v3952_v54 = vld [vmem:[%s4578_s9 + $0x604] ss:$8 sps:$4 sm:$0xff]  }
 0x113   : > { %2928 = vmatprep.mubr.bf16.mxu0 %v3296_v55  ;;  %v3944_v55 = vld [vmem:[%s4894_s0 + $0x10] ss:$56 sps:$4 sm:$0xff]  }
 0x114   : > { %2787 = vmatpush1.bf16.msra.mxu1 %v3850_v56  ;;  %v3947_v56 = vld [vmem:[%s4894_s0 + $0x28] ss:$56 sps:$4 sm:$0xff]  }
 0x115   : > { %2940 = vmatpush1.bf16.msra.mxu0 %v3853_v57  ;;  %2788 = vmatprep.subr.bf16.mxu1 %v3860_v58  ;;  %v1214_v57 = vld [vmem:[%s4894_s0 + $0x80] sm:$0xff]  ;;  %v1217_v58 = vld [vmem:[%s4894_s0 + $0x98] sm:$0xff] }
 0x116   : > { %2941 = vmatprep.subr.bf16.mxu0 %v3863_v59  ;;  %v3950_v59 = vld [vmem:[%s4578_s9 + $0x600] ss:$8 sps:$4 sm:$0xff]  }
 0x117   : > { %2776 = vmatmul.mubr.bf16.gmra.mrb[8].mxu1 %v3289_v60  ;;  %v3955_v60 = vld [vmem:[%s4578_s9 + $0x614] ss:$8 sps:$4 sm:$0xff]  }
 0x118   : > { %2929 = vmatmul.mubr.bf16.gmra.mrb[8].mxu0 %v3295_v62  ;;  %2789 = vmatpush1.bf16.msra.mxu1 %v3858_v61  ;;  %v3292_v61 = vcombine.high %v1214_v57, %v1214_v57  ;;  %v3298_v62 = vcombine.high %v1217_v58, %v1217_v58 }
 0x119   : > { %2942 = vmatpush1.bf16.msra.mxu0 %v3861_v63  ;;  %2790 = vmatprep.subr.bf16.mxu1 %v3866_v0  ;;  %v3953_v63 = vld [vmem:[%s4578_s9 + $0x610] ss:$8 sps:$4 sm:$0xff]   ;;  %v3960_v0 = vld [vmem:[%s4578_s9 + $0x624] ss:$8 sps:$4 sm:$0xff]  }
 0x11a   : > { %2943 = vmatprep.subr.bf16.mxu0 %v3869_v1  ;;  %2816 = vmatprep.mubr.bf16.mxu1 %v3946_v2  ;;  %v3291_v1 = vcombine.low %v1214_v57, %v1214_v57  ;;  %v3297_v2 = vcombine.low %v1217_v58, %v1217_v58 }
 0x11b   : > { %2969 = vmatprep.mubr.bf16.mxu0 %v3949_v3  ;;  %v4828_v3 = vld [vmem:[%s4894_s0 + $0xa0] sm:$0xff] }
 0x11c   : > { %2791 = vmatpush1.bf16.msra.mxu1 %v3864_v4  ;;  %v3958_v4 = vld [vmem:[%s4578_s9 + $0x620] ss:$8 sps:$4 sm:$0xff]  }
 0x11d   : > { %2944 = vmatpush1.bf16.msra.mxu0 %v3867_v5  ;;  %2792 = vmatprep.subr.bf16.mxu1 %v3872_v6  ;;  %v3963_v5 = vld [vmem:[%s4578_s9 + $0x634] ss:$8 sps:$4 sm:$0xff]  }
 0x11e   : > { %2945 = vmatprep.subr.bf16.mxu0 %v3875_v7  ;;  %v4004_v6 = vld [vmem:[%s4894_s0 + $0x34] ss:$56 sps:$4 sm:$0xff]   ;;  %v3300_v7 = vcombine.high %v4828_v3, %v4828_v3 }
 0x120   : > { %2793 = vmatpush1.bf16.msra.mxu1 %v3870_v8  ;;  %v3961_v8 = vld [vmem:[%s4578_s9 + $0x630] ss:$8 sps:$4 sm:$0xff]  }
 0x121   : > { %2946 = vmatpush1.bf16.msra.mxu0 %v3873_v9  ;;  %2794 = vmatprep.subr.bf16.mxu1 %v3878_v10  ;;  %v3968_v9 = vld [vmem:[%s4578_s9 + $0x644] ss:$8 sps:$4 sm:$0xff]   ;;  %v3966_v10 = vld [vmem:[%s4578_s9 + $0x640] ss:$8 sps:$4 sm:$0xff]  }
 0x122   : > { %2947 = vmatprep.subr.bf16.mxu0 %v3881_v11  ;;  %v3971_v11 = vld [vmem:[%s4578_s9 + $0x654] ss:$8 sps:$4 sm:$0xff]  }
 0x124   : > { %2795 = vmatpush1.bf16.msra.mxu1 %v3876_v12  ;;  %v3969_v12 = vld [vmem:[%s4578_s9 + $0x650] ss:$8 sps:$4 sm:$0xff]  }
 0x125   : > { %2948 = vmatpush1.bf16.msra.mxu0 %v3879_v13  ;;  %2796 = vmatprep.subr.bf16.mxu1 %v3884_v14  ;;  %v3974_v13 = vld [vmem:[%s4578_s9 + $0x664] ss:$8 sps:$4 sm:$0xff]   ;;  %v3972_v14 = vld [vmem:[%s4578_s9 + $0x660] ss:$8 sps:$4 sm:$0xff]  }
 0x126   : > { %2949 = vmatprep.subr.bf16.mxu0 %v3887_v15  ;;  %v3977_v15 = vld [vmem:[%s4578_s9 + $0x674] ss:$8 sps:$4 sm:$0xff]  }
 0x128   : > { %2797 = vmatpush1.bf16.msra.mxu1 %v3882_v16  ;;  %v3975_v16 = vld [vmem:[%s4578_s9 + $0x670] ss:$8 sps:$4 sm:$0xff]  }
 0x129   : > { %2950 = vmatpush1.bf16.msra.mxu0 %v3885_v17  ;;  %2798 = vmatprep.subr.bf16.mxu1 %v3890_v18  ;;  %v3980_v17 = vld [vmem:[%s4578_s9 + $0x684] ss:$8 sps:$4 sm:$0xff]   ;;  %v3978_v18 = vld [vmem:[%s4578_s9 + $0x680] ss:$8 sps:$4 sm:$0xff]  }
 0x12a   : > { %2951 = vmatprep.subr.bf16.mxu0 %v3893_v19  ;;  %v3983_v19 = vld [vmem:[%s4578_s9 + $0x694] ss:$8 sps:$4 sm:$0xff]  }
 0x12c   : > { %2799 = vmatpush1.bf16.msra.mxu1 %v3888_v20  ;;  %v3981_v20 = vld [vmem:[%s4578_s9 + $0x690] ss:$8 sps:$4 sm:$0xff]  }
 0x12d   : > { %2952 = vmatpush1.bf16.msra.mxu0 %v3891_v21  ;;  %2800 = vmatprep.subr.bf16.mxu1 %v3896_v22  ;;  %v3986_v21 = vld [vmem:[%s4578_s9 + $0x6a4] ss:$8 sps:$4 sm:$0xff]   ;;  %v3984_v22 = vld [vmem:[%s4578_s9 + $0x6a0] ss:$8 sps:$4 sm:$0xff]  }
 0x12e   : > { %2953 = vmatprep.subr.bf16.mxu0 %v3899_v23  ;;  %v3989_v23 = vld [vmem:[%s4578_s9 + $0x6b4] ss:$8 sps:$4 sm:$0xff]  }
 0x130   : > { %2801 = vmatpush1.bf16.msra.mxu1 %v3894_v24  ;;  %v3987_v24 = vld [vmem:[%s4578_s9 + $0x6b0] ss:$8 sps:$4 sm:$0xff]  }
 0x131   : > { %2954 = vmatpush1.bf16.msra.mxu0 %v3897_v25  ;;  %2802 = vmatprep.subr.bf16.mxu1 %v3902_v26  ;;  %v3992_v25 = vld [vmem:[%s4578_s9 + $0x6c4] ss:$8 sps:$4 sm:$0xff]   ;;  %v3990_v26 = vld [vmem:[%s4578_s9 + $0x6c0] ss:$8 sps:$4 sm:$0xff]  }
 0x132   : > { %2955 = vmatprep.subr.bf16.mxu0 %v3905_v27  ;;  %v3995_v27 = vld [vmem:[%s4578_s9 + $0x6d4] ss:$8 sps:$4 sm:$0xff]  }
 0x134   : > { %2803 = vmatpush1.bf16.msra.mxu1 %v3900_v28  ;;  %v3993_v28 = vld [vmem:[%s4578_s9 + $0x6d0] ss:$8 sps:$4 sm:$0xff]  }
 0x135   : > { %2956 = vmatpush1.bf16.msra.mxu0 %v3903_v29  ;;  %2804 = vmatprep.subr.bf16.mxu1 %v3908_v30  ;;  %v3998_v29 = vld [vmem:[%s4578_s9 + $0x6e4] ss:$8 sps:$4 sm:$0xff]   ;;  %v3996_v30 = vld [vmem:[%s4578_s9 + $0x6e0] ss:$8 sps:$4 sm:$0xff]  }
 0x136   : > { %2957 = vmatprep.subr.bf16.mxu0 %v3911_v31  ;;  %v4001_v31 = vld [vmem:[%s4578_s9 + $0x6f4] ss:$8 sps:$4 sm:$0xff]  }
 0x138   : > { %2805 = vmatpush1.bf16.msra.mxu1 %v3906_v32  ;;  %v3999_v32 = vld [vmem:[%s4578_s9 + $0x6f0] ss:$8 sps:$4 sm:$0xff]   ;;  %s3272_s9 = sshll.u32 %s4037_s14, 1 }
 0x139   : > { %2958 = vmatpush1.bf16.msra.mxu0 %v3909_v33  ;;  %2806 = vmatprep.subr.bf16.mxu1 %v3914_v34  ;;  %v4002_v33 = vld [vmem:[%s4894_s0 + $0x30] ss:$56 sps:$4 sm:$0xff]   ;;  %v3299_v34 = vcombine.low %v4828_v3, %v4828_v3  ;;  %p1176_p11 = scmp.lt.s32.totalorder %s3272_s9, 3 }
 0x13a   : > { %2959 = vmatprep.subr.bf16.mxu0 %v3917_v35 }
 0x13b   : > { %s4906_s9 = smov (!%p1176_p11, %s3272_s9), 3 }
 0x13c   : > { %2807 = vmatpush1.bf16.msra.mxu1 %v3912_v36  ;;  %s1178_s24 = scalar_lea.vmem %s4896_s2, %s4906_s9 }
 0x13d   : > { %2960 = vmatpush1.bf16.msra.mxu0 %v3915_v37  ;;  %2808 = vmatprep.subr.bf16.mxu1 %v3920_v38 }
 0x13e   : > { %2961 = vmatprep.subr.bf16.mxu0 %v3923_v39 }
 0x140   : > { %2809 = vmatpush1.bf16.msra.mxu1 %v3918_v40 }
 0x141   : > { %2962 = vmatpush1.bf16.msra.mxu0 %v3921_v41  ;;  %2810 = vmatprep.subr.bf16.mxu1 %v3926_v42 }
 0x142   : > { %2963 = vmatprep.subr.bf16.mxu0 %v3929_v43 }
 0x144   : > { %2811 = vmatpush1.bf16.msra.mxu1 %v3924_v44 }
 0x145   : > { %2964 = vmatpush1.bf16.msra.mxu0 %v3927_v45  ;;  %2812 = vmatprep.subr.bf16.mxu1 %v3934_v46 }
 0x146   : > { %2965 = vmatprep.subr.bf16.mxu0 %v3937_v47 }
 0x148   : > { %2813 = vmatpush1.bf16.msra.mxu1 %v3932_v48 }
 0x149   : > { %2966 = vmatpush1.bf16.msra.mxu0 %v3935_v49  ;;  %2814 = vmatprep.subr.bf16.mxu1 %v3940_v50 }
 0x14a   : > { %2967 = vmatprep.subr.bf16.mxu0 %v3943_v51 }
 0x14c   : > { %2815 = vmatpush1.bf16.msra.mxu1 %v3938_v52 }
 0x14d   : > { %2968 = vmatpush1.bf16.msra.mxu0 %v3941_v53  ;;  %3537 = vmatprep.subr.bf16.mxu1 %v3952_v54 }
 0x14e   : > { %2988 = vmatprep.subr.bf16.mxu0 %v3952_v54 }
 0x14f   : > { %2817 = vmatmul.mubr.bf16.vlgmr.msra.gmra.mrb[0].mxu1 %v3944_v55 }
 0x150   : > { %2970 = vmatmul.mubr.bf16.vlgmr.msra.gmra.mrb[0].mxu0 %v3947_v56  ;;  %3553 = vmatpush1.bf16.msra.mxu1 %v3950_v59 }
 0x151   : > { %2989 = vmatpush1.bf16.msra.mxu0 %v3950_v59  ;;  %3538 = vmatprep.subr.bf16.mxu1 %v3955_v60 }
 0x152   : > { %2990 = vmatprep.subr.bf16.mxu0 %v3955_v60  ;;  %2826 = vmatprep.mubr.bf16.mxu1 %v3292_v61 }
 0x153   : > { %2979 = vmatprep.mubr.bf16.mxu0 %v3298_v62 }
 0x154   : > { %3554 = vmatpush1.bf16.msra.mxu1 %v3953_v63 }
 0x155   : > { %2991 = vmatpush1.bf16.msra.mxu0 %v3953_v63  ;;  %3539 = vmatprep.subr.bf16.mxu1 %v3960_v0 }
 0x156   : > { %2992 = vmatprep.subr.bf16.mxu0 %v3960_v0 }
 0x157   : > { %2827 = vmatmul.mubr.bf16.gmra.mrb[12].mxu1 %v3291_v1 }
 0x158   : > { %2980 = vmatmul.mubr.bf16.gmra.mrb[12].mxu0 %v3297_v2  ;;  %3555 = vmatpush1.bf16.msra.mxu1 %v3958_v4 }
 0x159   : > { %2993 = vmatpush1.bf16.msra.mxu0 %v3958_v4  ;;  %3540 = vmatprep.subr.bf16.mxu1 %v3963_v5 }
 0x15a   : > { %2994 = vmatprep.subr.bf16.mxu0 %v3963_v5  ;;  %3020 = vmatprep.mubr.bf16.mxu0 %v4004_v6 }
 0x15b   : > { %3030 = vmatprep.mubr.bf16.mxu1 %v3300_v7 }
 0x15c   : > { %3556 = vmatpush1.bf16.msra.mxu1 %v3961_v8 }
 0x15d   : > { %2995 = vmatpush1.bf16.msra.mxu0 %v3961_v8  ;;  %3541 = vmatprep.subr.bf16.mxu1 %v3968_v9 }
 0x15e   : > { %2996 = vmatprep.subr.bf16.mxu0 %v3968_v9  ;;  %v3062_v9 = vlaneseq }
 0x160   : > { %3557 = vmatpush1.bf16.msra.mxu1 %v3966_v10 }
 0x161   : > { %2997 = vmatpush1.bf16.msra.mxu0 %v3966_v10  ;;  %3542 = vmatprep.subr.bf16.mxu1 %v3971_v11  ;;  %v3063_v10 = vshrl.u32 %v3062_v9, 7 }
 0x162   : > { %2998 = vmatprep.subr.bf16.mxu0 %v3971_v11 }
 0x163   : > { %v3064_v11 = vsub.s32 0, %v3063_v10 }
 0x164   : > { %3558 = vmatpush1.bf16.msra.mxu1 %v3969_v12 }
 0x165   : > { %2999 = vmatpush1.bf16.msra.mxu0 %v3969_v12  ;;  %3543 = vmatprep.subr.bf16.mxu1 %v3974_v13  ;;  %v3060_v12 = vld [vmem:[%s1178_s24] sm:$0x3] }
 0x166   : > { %3000 = vmatprep.subr.bf16.mxu0 %v3974_v13  ;;  %v3068_v13 = vsub.s32 1, %v3063_v10 }
 0x168   : > { %3559 = vmatpush1.bf16.msra.mxu1 %v3972_v14 }
 0x169   : > { %3001 = vmatpush1.bf16.msra.mxu0 %v3972_v14  ;;  %3544 = vmatprep.subr.bf16.mxu1 %v3977_v15  ;;  %v3065_v14 = vrot.slane %v3060_v12, %v3064_v11 }
 0x16a   : > { %3002 = vmatprep.subr.bf16.mxu0 %v3977_v15 }
 0x16c   : > { %3560 = vmatpush1.bf16.msra.mxu1 %v3975_v16 }
 0x16d   : > { %3003 = vmatpush1.bf16.msra.mxu0 %v3975_v16  ;;  %3545 = vmatprep.subr.bf16.mxu1 %v3980_v17 }
 0x16e   : > { %3004 = vmatprep.subr.bf16.mxu0 %v3980_v17  ;;  %v3069_v17 = vrot.slane %v3060_v12, %v3068_v13 }
 0x170   : > { %3561 = vmatpush1.bf16.msra.mxu1 %v3978_v18 }
 0x171   : > { %3005 = vmatpush1.bf16.msra.mxu0 %v3978_v18  ;;  %3546 = vmatprep.subr.bf16.mxu1 %v3983_v19 }
 0x172   : > { %3006 = vmatprep.subr.bf16.mxu0 %v3983_v19 }
 0x174   : > { %3562 = vmatpush1.bf16.msra.mxu1 %v3981_v20 }
 0x175   : > { %3007 = vmatpush1.bf16.msra.mxu0 %v3981_v20  ;;  %3547 = vmatprep.subr.bf16.mxu1 %v3986_v21 }
 0x176   : > { %3008 = vmatprep.subr.bf16.mxu0 %v3986_v21 }
 0x178   : > { %3563 = vmatpush1.bf16.msra.mxu1 %v3984_v22 }
 0x179   : > { %3009 = vmatpush1.bf16.msra.mxu0 %v3984_v22  ;;  %3548 = vmatprep.subr.bf16.mxu1 %v3989_v23 }
 0x17a   : > { %3010 = vmatprep.subr.bf16.mxu0 %v3989_v23 }
 0x17c   : > { %3564 = vmatpush1.bf16.msra.mxu1 %v3987_v24 }
 0x17d   : > { %3011 = vmatpush1.bf16.msra.mxu0 %v3987_v24  ;;  %3549 = vmatprep.subr.bf16.mxu1 %v3992_v25 }
 0x17e   : > { %3012 = vmatprep.subr.bf16.mxu0 %v3992_v25 }
 0x180   : > { %3565 = vmatpush1.bf16.msra.mxu1 %v3990_v26 }
 0x181   : > { %3013 = vmatpush1.bf16.msra.mxu0 %v3990_v26  ;;  %3550 = vmatprep.subr.bf16.mxu1 %v3995_v27 }
 0x182   : > { %3014 = vmatprep.subr.bf16.mxu0 %v3995_v27 }
 0x184   : > { %3566 = vmatpush1.bf16.msra.mxu1 %v3993_v28 }
 0x185   : > { %3015 = vmatpush1.bf16.msra.mxu0 %v3993_v28  ;;  %3551 = vmatprep.subr.bf16.mxu1 %v3998_v29 }
 0x186   : > { %3016 = vmatprep.subr.bf16.mxu0 %v3998_v29 }
 0x188   : > { %3567 = vmatpush1.bf16.msra.mxu1 %v3996_v30 }
 0x189   : > { %3017 = vmatpush1.bf16.msra.mxu0 %v3996_v30  ;;  %3552 = vmatprep.subr.bf16.mxu1 %v4001_v31 }
 0x18a   : > { %3018 = vmatprep.subr.bf16.mxu0 %v4001_v31 }
 0x18c   : > { %3568 = vmatpush1.bf16.msra.mxu1 %v3999_v32 }
 0x18d   : > { %3019 = vmatpush1.bf16.msra.mxu0 %v3999_v32 }
 0x18f   : > { %3031 = vmatmul.mubr.bf16.vlgmr.msra.gmra.mrb[16].mxu1 %v3299_v34 }
 0x190   : > { %3021 = vmatmul.mubr.bf16.vlgmr.msra.gmra.mrb[0].mxu0 %v4002_v33 }
 0x1aa   : > { %v2726_v36 = vpop.f32.mrb[4].mxu1 }
 0x1ab   : > { %v2879_v35 = vpop.f32.mrb[4].mxu0  ;;  %v2728_v38 = vpop.f32.mrb[5].mxu1 }
 0x1ac   : > { %v2881_v37 = vpop.f32.mrb[5].mxu0  ;;  %v2730_v40 = vpop.f32.mrb[6].mxu1 }
 0x1ad   : > { %v2883_v39 = vpop.f32.mrb[6].mxu0  ;;  %v2731_v42 = vpop.f32.mrb[7].mxu1 }
 0x1ae   : > { %v2884_v41 = vpop.f32.mrb[7].mxu0 }
 0x1ea   : > { %v2777_v43 = vpop.f32.mrb[8].mxu1 }
 0x1eb   : > { %v2930_v44 = vpop.f32.mrb[8].mxu0  ;;  %v2778_v45 = vadd.f32 %v2777_v43, %v2726_v36  ;;  %v2779_v46 = vpop.f32.mrb[9].mxu1 }
 0x1ec   : > { %v2932_v47 = vpop.f32.mrb[9].mxu0  ;;  %v2780_v48 = vadd.f32 %v2779_v46, %v2728_v38  ;;  %v2781_v50 = vpop.f32.mrb[10].mxu1 }
 0x1ed   : > { %v2934_v49 = vpop.f32.mrb[10].mxu0  ;;  %v2782_v52 = vpop.f32.mrb[11].mxu1 }
 0x1ee   : > { %v2935_v51 = vpop.f32.mrb[11].mxu0 }
 0x222   : > { %v2818_v53 = vpop.f32.mrb[0].mxu1 }
 0x223   : > { %v2820_v54 = vpop.f32.mrb[1].mxu1 }
 0x224   : > { %v2822_v55 = vpop.f32.mrb[2].mxu1 }
 0x225   : > { %v2824_v56 = vpop.f32.mrb[3].mxu1 }
 0x22a   : > { %v2828_v57 = vpop.f32.mrb[12].mxu1 }
 0x22b   : > { %v2981_v58 = vpop.f32.mrb[12].mxu0  ;;  %v2829_v59 = vadd.f32 %v2828_v57, %v2778_v45  ;;  %v2830_v60 = vpop.f32.mrb[13].mxu1 }
 0x22c   : > { %v2983_v61 = vpop.f32.mrb[13].mxu0  ;;  %v2831_v62 = vadd.f32 %v2830_v60, %v2780_v48  ;;  %v2832_v0 = vpop.f32.mrb[14].mxu1 }
 0x22d   : > { %v2985_v63 = vpop.f32.mrb[14].mxu0  ;;  %v2880_v1 = vadd.f32 %v2879_v35, %v2829_v59  ;;  %v2833_v3 = vpop.f32.mrb[15].mxu1 }
 0x22e   : > { %v2986_v2 = vpop.f32.mrb[15].mxu0  ;;  %v2882_v4 = vadd.f32 %v2881_v37, %v2831_v62 }
 0x22f   : > { %v2931_v5 = vadd.f32 %v2930_v44, %v2880_v1 }
 0x230   : > { %v2933_v6 = vadd.f32 %v2932_v47, %v2882_v4 }
 0x231   : > { %v2982_v7 = vadd.f32 %v2981_v58, %v2931_v5 }
 0x232   : > { %v2984_v8 = vadd.f32 %v2983_v61, %v2933_v6 }
 0x262   : > { %v3032_v16 = vpop.f32.mrb[16].mxu1 }
 0x263   : > { %v3022_v15 = vpop.f32.mrb[0].mxu0  ;;  %v3033_v19 = vadd.f32 %v3032_v16, %v2982_v7  ;;  %v3034_v21 = vpop.f32.mrb[17].mxu1 }
 0x264   : > { %v3569_v18 = vadd.f32 %v3022_v15, %v2818_v53  ;;  %v3024_v20 = vpop.f32.mrb[1].mxu0  ;;  %v3035_v23 = vadd.f32 %v3034_v21, %v2984_v8  ;;  %v3036_v25 = vpop.f32.mrb[18].mxu1 }
 0x265   : > { %v3570_v22 = vadd.f32 %v3024_v20, %v2820_v54  ;;  %v3026_v24 = vpop.f32.mrb[2].mxu0  ;;  %v3076_v27 = vadd.f32 %v3065_v14, %v3033_v19  ;;  %v3037_v30 = vpop.f32.mrb[19].mxu1 }
 0x266   : > { %v3072_v26 = vadd.f32 %v3569_v18, %v3065_v14  ;;  %v3571_v28 = vadd.f32 %v3026_v24, %v2822_v55  ;;  %v3028_v29 = vpop.f32.mrb[3].mxu0  ;;  %v3077_v32 = vadd.f32 %v3069_v17, %v3035_v23 }
 0x267   : > { %v3073_v31 = vadd.f32 %v3570_v22, %v3069_v17  ;;  %v3572_v33 = vadd.f32 %v3028_v29, %v2824_v56  ;;  %v3082_v35 = vmax.f32 %v3076_v27, 0.0 }
 0x268   : > { %v3078_v34 = vmax.f32 %v3072_v26, 0.0  ;;  %v3074_v36 = vadd.f32 %v3571_v28, %v3065_v14  ;;  %v3083_v38 = vmax.f32 %v3077_v32, 0.0 }
 0x269   : > { %v3079_v37 = vmax.f32 %v3073_v31, 0.0  ;;  %v3075_v39 = vadd.f32 %v3572_v33, %v3069_v17  ;;  %3113 = sbr.rel (!%p4102_p6) target bundleno = 632 (0x278), region = 82 }
 0x26a   : > { %v3080_v40 = vmax.f32 %v3074_v36, 0.0  ;;  %v3535_v42 = vpack.c.bf16 %v3083_v38, %v3082_v35 }
 0x26b   : > { %v3533_v41 = vpack.c.bf16 %v3079_v37, %v3078_v34  ;;  %v3081_v43 = vmax.f32 %v3075_v39, 0.0 }
 0x26c   : > { %3106 = vst [vmem:[%s1160_s26 + $0x10] sm:$0xff] %v3535_v42 }
 0x26d   : > { %3104 = vst [vmem:[%s1160_s26] sm:$0xff] %v3533_v41  ;;  %v3534_v44 = vpack.c.bf16 %v3081_v43, %v3080_v40 }
 0x26f   : > { %3105 = vst [vmem:[%s1160_s26 + $0x8] sm:$0xff] %v3534_v44 }
 0x273   : > { %v3155_v47 = vld [vmem:[%s1160_s26 + $0x10] sm:$0xff] }
 0x274   : > { %v3151_v45 = vld [vmem:[%s1160_s26] sm:$0xff]  ;;  %3156 = vst [vmem:[%s3119_s28 + $0x20] sm:$0xff] %v3155_v47 }
 0x275   : > { %3152 = vst [vmem:[%s3119_s28] sm:$0xff] %v3151_v45 }
 0x276   : > { %v3153_v46 = vld [vmem:[%s1160_s26 + $0x8] sm:$0xff] }
 0x277   : > { %3154 = vst [vmem:[%s3119_s28 + $0x10] sm:$0xff] %v3153_v46 }
 0x278 PF: > { %s13_s16 = sadd.s32 1, %s4045_s16   ;;  %s4899_s12 = smov %s4033_s13 }
 0x279   : > { %p10_p12 = scmp.ge.s32.totalorder %s13_s16, 4   ;;  %s4900_s13 = smov %s4107_s22 }
 0x27a   : > { %s4901_s14 = smov %s4041_s15  ;;  %s4902_s15 = smov %s4904_s17 }
 0x27b   :  { %12 = sbr.rel (!%p10_p12) target bundleno = 3 (0x3), region = 157 }

// kernel: _lambda_.15
= control target key start
LH: loop header
LB: loop body
LE: loop exit
PB: predicated region body
PF: predicated region fallthrough
CT: control target
= control target key end

     0   :  { %s1217_s12 = smov 0   ;;  %s1219_s13 = smov 0   ;;  %s1355_s0 = inlined_call_operand.vmem [shape: bf16[24,3456], index: 0, kind: input, shape index: {}]   ;;  %s1356_s1 = inlined_call_operand.vmem [shape: bf16[3456,256], index: 1, kind: input, shape index: {}]   ;;  %s1357_s2 = inlined_call_operand.vmem [shape: f32[1,256], index: 2, kind: input, shape index: {}]   ;;  %s1358_s3 = inlined_call_operand.vmem [shape: bf16[24,256], index: 3, kind: output, shape index: {}]  }
   0x1   :  { %s1221_s14 = smov 0   ;;  %s1223_s15 = smov 0  }
   0x2   :  { %s1225_s16 = smov 0  }
   0x3 LB: > { %s25_s17 = sadd.s32 1, %s1189_s15  ;;  %p48_p1 = scmp.ne.s32.totalorder %s1181_s13, %s1177_s12  ;;  %s1193_s16 = sphi %s1225_s16, %s13_s16   ;;  %s1189_s15 = sphi %s1223_s15, %s1362_s15   ;;  %s1185_s14 = sphi %s1221_s14, %s1361_s14   ;;  %s1181_s13 = sphi %s1219_s13, %s1360_s13   ;;  %s1177_s12 = sphi %s1217_s12, %s1359_s12  }
   0x4   : > { %p26_p0 = scmp.ge.s32.totalorder %s25_s17, 9  ;;  %p49_p2 = scmp.eq.s32.totalorder %s1193_s16, 0 }
   0x5   : > { %s41_s19 = sadd.s32 1, %s1181_s13  ;;  %p949_p5 = scmp.ge.s32.totalorder %s1193_s16, 9 }
   0x6   : > { %s1364_s17 = smov (%p26_p0, %s25_s17), 0  ;;  %p50_p3 = por %p49_p2, %p48_p1 }
   0x7   : > { %s37_s18 = ssub.s32 %s1189_s15, %s1364_s17  ;;  %164 = sbr.rel (%p949_p5) target bundleno = 22 (0x16), region = 20 }
   0x8   : > { %p39_p4 = scmp.eq.s32.totalorder %s37_s18, 0 }
   0xa   : > { %s1252_s20 = scalar_select %p39_p4, %s1181_s13, %s41_s19  }
   0xe   : > { %167 = sbr.rel (!%p50_p3) target bundleno = 22 (0x16), region = 24  ;;  %s169_s21 = sand.u32 (%p50_p3), 1, %s1181_s13  }
   0xf   : > { %s1023_s22 = smul.u32 (%p50_p3), 12, %s1189_s15 }
  0x10   : > { %s1032_s23 = smul.u32 (%p50_p3), 36, %s169_s21 }
  0x11   : > { %s177_s26 = scalar_lea.vmem (%p50_p3), %s1355_s0, %s1023_s22 }
  0x12   : > { %v192_v0 = vld [vmem:[%s177_s26] sm:$0xff] (%p50_p3)  ;;  %v194_v1 = vld [vmem:[%s177_s26 + $0x6c] sm:$0xff] (%p50_p3)  ;;  %v196_v2 = vld [vmem:[%s177_s26 + $0xd8] sm:$0xff] (%p50_p3)  ;;  %s171_s27 = scalar_lea.vmem (%p50_p3), [#allocation3], %s1032_s23 }
  0x13   : > { %193 = vst [vmem:[%s171_s27] sm:$0xff] (%p50_p3), %v192_v0  ;;  %195 = vst [vmem:[%s171_s27 + $0xc] sm:$0xff] (%p50_p3), %v194_v1  ;;  %v951_v3 = vld [vmem:[%s177_s26 + $0x8] sm:$0xf] (%p50_p3)  ;;  %v953_v4 = vld [vmem:[%s177_s26 + $0x74] sm:$0xf] (%p50_p3) }
  0x14   : > { %197 = vst [vmem:[%s171_s27 + $0x18] sm:$0xff] (%p50_p3), %v196_v2  ;;  %v955_v5 = vld [vmem:[%s177_s26 + $0xe0] sm:$0xf] (%p50_p3)  ;;  %952 = vst [vmem:[%s171_s27 + $0x8] sm:$0xf] (%p50_p3), %v951_v3 }
  0x15   : > { %954 = vst [vmem:[%s171_s27 + $0x14] sm:$0xf] %v953_v4  ;;  %956 = vst [vmem:[%s171_s27 + $0x20] sm:$0xf] %v955_v5 }
  0x16 PF: > { %p957_p6 = scmp.ge.s32.totalorder %s1193_s16, 1  ;;  %p230_p7 = scmp.lt.s32.totalorder %s1193_s16, 10 }
  0x18   : > { %p231_p8 = pnand %p957_p6, %p230_p7 }
  0x19   : > { %s237_s28 = sand.u32 (!%p231_p8), 1, %s1177_s12   ;;  %s281_s29 = smul.u32 (!%p231_p8), 48, %s1185_s14 }
  0x1a   : > { %234 = sbr.rel (%p231_p8) target bundleno = 345 (0x159), region = 54  ;;  %p960_p10 = scmp.ne.s32.totalorder (!%p231_p8), %s1185_s14, 0 }
  0x1b   : > { %s1033_s30 = smul.u32 (!%p231_p8), 36, %s237_s28  ;;  %p283_p9 = scmp.lt.s32.totalorder (!%p231_p8), %s281_s29, 431 }
  0x1d   : > { %s1269_s8 = scalar_lea.vmem (!%p231_p8), [#allocation3], %s1033_s30 }
  0x21   : > { %s1366_s29 = smov (!%p283_p9, %s281_s29), 431  ;;  %314 = sbr.rel (%p960_p10) target bundleno = 40 (0x28), region = 62 }
  0x22   : > { %s1024_s4 = sshll.u32 %s1366_s29, 3  ;;  %v1195_v6 = vmov (!%p960_p10), 0.0  }
  0x23   : > { %s1267_s7 = scalar_lea.vmem %s1356_s1, %s1024_s4  ;;  %315 = vst [vmem:[#allocation2] sm:$0xff] (!%p960_p10), %v1195_v6  ;;  %316 = vst [vmem:[#allocation2 + $0x8] sm:$0xff] (!%p960_p10), %v1195_v6 }
  0x24   : > { %317 = vst [vmem:[#allocation2 + $0x10] sm:$0xff] (!%p960_p10), %v1195_v6  ;;  %318 = vst [vmem:[#allocation2 + $0x18] sm:$0xff] (!%p960_p10), %v1195_v6 }
  0x25   : > { %319 = vst [vmem:[#allocation2 + $0x20] sm:$0xff] (!%p960_p10), %v1195_v6  ;;  %320 = vst [vmem:[#allocation2 + $0x28] sm:$0xff] (!%p960_p10), %v1195_v6 }
  0x28 PF: > { %v1076_v7 = vld [vmem:[%s1267_s7 + $0x4] ss:$8 sps:$4 sm:$0xff]   ;;  %v1078_v8 = vld [vmem:[%s1267_s7] ss:$8 sps:$4 sm:$0xff]   ;;  %v1196_v9 = vmov 0   ;;  %p1015_p11 = scmp.ne.s32.totalorder %s1185_s14, 8 }
  0x29   : > { %731 = vmatprep.mubr.bf16.mxu0 %v1196_v9  ;;  %648 = vmatprep.subr.bf16.mxu1 %v1076_v7  ;;  %v1079_v10 = vld [vmem:[%s1267_s7 + $0x14] ss:$8 sps:$4 sm:$0xff]   ;;  %v1081_v11 = vld [vmem:[%s1267_s7 + $0x10] ss:$8 sps:$4 sm:$0xff]   ;;  %v1082_v12 = vld [vmem:[%s1267_s7 + $0x24] ss:$8 sps:$4 sm:$0xff]  }
  0x2a   : > { %649 = vmatpush1.bf16.msra.mxu1 %v1078_v8  ;;  %v1084_v13 = vld [vmem:[%s1267_s7 + $0x20] ss:$8 sps:$4 sm:$0xff]   ;;  %v1085_v14 = vld [vmem:[%s1267_s7 + $0x34] ss:$8 sps:$4 sm:$0xff]   ;;  %v1087_v15 = vld [vmem:[%s1267_s7 + $0x30] ss:$8 sps:$4 sm:$0xff]  }
  0x2b   : > { %650 = vmatprep.subr.bf16.mxu1 %v1079_v10  ;;  %v1100_v16 = vld [vmem:[%s1267_s7 + $0x104] ss:$8 sps:$4 sm:$0xff]   ;;  %v1102_v17 = vld [vmem:[%s1267_s7 + $0x100] ss:$8 sps:$4 sm:$0xff]   ;;  %v1106_v19 = vld [vmem:[%s1267_s7 + $0x114] ss:$8 sps:$4 sm:$0xff]  }
  0x2c   : > { %v1088_v18 = vld [vmem:[%s1267_s7 + $0x44] ss:$8 sps:$4 sm:$0xff]   ;;  %699 = vmatprep.subr.bf16.mxu0 %v1100_v16  ;;  %v1108_v20 = vld [vmem:[%s1267_s7 + $0x110] ss:$8 sps:$4 sm:$0xff]   ;;  %v1090_v21 = vld [vmem:[%s1267_s7 + $0x40] ss:$8 sps:$4 sm:$0xff]  }
  0x2d   : > { %700 = vmatpush1.bf16.msra.mxu0 %v1102_v17  ;;  %v1091_v22 = vld [vmem:[%s1267_s7 + $0x54] ss:$8 sps:$4 sm:$0xff]   ;;  %v1112_v23 = vld [vmem:[%s1267_s7 + $0x124] ss:$8 sps:$4 sm:$0xff]   ;;  %v1114_v24 = vld [vmem:[%s1267_s7 + $0x120] ss:$8 sps:$4 sm:$0xff]  }
  0x2e   : > { %651 = vmatpush1.bf16.msra.mxu1 %v1081_v11  ;;  %701 = vmatprep.subr.bf16.mxu0 %v1106_v19  ;;  %v1093_v25 = vld [vmem:[%s1267_s7 + $0x50] ss:$8 sps:$4 sm:$0xff]   ;;  %v1118_v26 = vld [vmem:[%s1267_s7 + $0x134] ss:$8 sps:$4 sm:$0xff]   ;;  %v1094_v27 = vld [vmem:[%s1267_s7 + $0x64] ss:$8 sps:$4 sm:$0xff]  }
  0x2f   : > { %652 = vmatprep.subr.bf16.mxu1 %v1082_v12  ;;  %v1120_v28 = vld [vmem:[%s1267_s7 + $0x130] ss:$8 sps:$4 sm:$0xff]   ;;  %v1096_v29 = vld [vmem:[%s1267_s7 + $0x60] ss:$8 sps:$4 sm:$0xff]   ;;  %v1124_v30 = vld [vmem:[%s1267_s7 + $0x144] ss:$8 sps:$4 sm:$0xff]  }
  0x30   : > { %v1097_v31 = vld [vmem:[%s1267_s7 + $0x74] ss:$8 sps:$4 sm:$0xff]   ;;  %v1126_v32 = vld [vmem:[%s1267_s7 + $0x140] ss:$8 sps:$4 sm:$0xff]   ;;  %v1099_v33 = vld [vmem:[%s1267_s7 + $0x70] ss:$8 sps:$4 sm:$0xff]  }
  0x31   : > { %702 = vmatpush1.bf16.msra.mxu0 %v1108_v20  ;;  %v1130_v34 = vld [vmem:[%s1267_s7 + $0x154] ss:$8 sps:$4 sm:$0xff]   ;;  %v1103_v35 = vld [vmem:[%s1267_s7 + $0x84] ss:$8 sps:$4 sm:$0xff]   ;;  %v1132_v36 = vld [vmem:[%s1267_s7 + $0x150] ss:$8 sps:$4 sm:$0xff]  }
  0x32   : > { %653 = vmatpush1.bf16.msra.mxu1 %v1084_v13  ;;  %703 = vmatprep.subr.bf16.mxu0 %v1112_v23  ;;  %v1105_v37 = vld [vmem:[%s1267_s7 + $0x80] ss:$8 sps:$4 sm:$0xff]   ;;  %v1136_v38 = vld [vmem:[%s1267_s7 + $0x164] ss:$8 sps:$4 sm:$0xff]   ;;  %v1109_v39 = vld [vmem:[%s1267_s7 + $0x94] ss:$8 sps:$4 sm:$0xff]  }
  0x33   : > { %654 = vmatprep.subr.bf16.mxu1 %v1085_v14  ;;  %v1138_v40 = vld [vmem:[%s1267_s7 + $0x160] ss:$8 sps:$4 sm:$0xff]   ;;  %v1111_v42 = vld [vmem:[%s1267_s7 + $0x90] ss:$8 sps:$4 sm:$0xff]   ;;  %v1142_v43 = vld [vmem:[%s1267_s7 + $0x174] ss:$8 sps:$4 sm:$0xff]  }
  0x34   : > { %v1151_v41 = vld [vmem:[%s1269_s8 + $0x4] ss:$12 sps:$4 sm:$0xff]   ;;  %v1148_v48 = vld [vmem:[%s1269_s8 + $0x8] ss:$12 sps:$4 sm:$0xff]   ;;  %v1152_v53 = vld [vmem:[%s1269_s8 + $0x20] ss:$0 sps:$4 sm:$0xff]  }
  0x35   : > { %704 = vmatpush1.bf16.msra.mxu0 %v1114_v24  ;;  %v1115_v44 = vld [vmem:[%s1267_s7 + $0xa4] ss:$8 sps:$4 sm:$0xff]   ;;  %680 = vmatprep.mubr.bf16.mxu1 %v1151_v41  ;;  %v1144_v45 = vld [vmem:[%s1267_s7 + $0x170] ss:$8 sps:$4 sm:$0xff]   ;;  %v1117_v46 = vld [vmem:[%s1267_s7 + $0xa0] ss:$8 sps:$4 sm:$0xff]  }
  0x36   : > { %655 = vmatpush1.bf16.msra.mxu1 %v1087_v15  ;;  %705 = vmatprep.subr.bf16.mxu0 %v1118_v26  ;;  %v1121_v47 = vld [vmem:[%s1267_s7 + $0xb4] ss:$8 sps:$4 sm:$0xff]   ;;  %v1123_v49 = vld [vmem:[%s1267_s7 + $0xb0] ss:$8 sps:$4 sm:$0xff]   ;;  %v1127_v50 = vld [vmem:[%s1267_s7 + $0xc4] ss:$8 sps:$4 sm:$0xff]  }
  0x37   : > { %656 = vmatprep.subr.bf16.mxu1 %v1088_v18  ;;  %v1129_v51 = vld [vmem:[%s1267_s7 + $0xc0] ss:$8 sps:$4 sm:$0xff]   ;;  %v1133_v52 = vld [vmem:[%s1267_s7 + $0xd4] ss:$8 sps:$4 sm:$0xff]   ;;  %v1135_v54 = vld [vmem:[%s1267_s7 + $0xd0] ss:$8 sps:$4 sm:$0xff]  }
  0x38   : > { %v1139_v55 = vld [vmem:[%s1267_s7 + $0xe4] ss:$8 sps:$4 sm:$0xff]   ;;  %v1141_v56 = vld [vmem:[%s1267_s7 + $0xe0] ss:$8 sps:$4 sm:$0xff]   ;;  %v1145_v57 = vld [vmem:[%s1267_s7 + $0xf4] ss:$8 sps:$4 sm:$0xff]  }
  0x39   : > { %706 = vmatpush1.bf16.msra.mxu0 %v1120_v28  ;;  %v1147_v58 = vld [vmem:[%s1267_s7 + $0xf0] ss:$8 sps:$4 sm:$0xff]   ;;  %v321_v7 = vld [vmem:[#allocation2] sm:$0xff]  ;;  %v322_v10 = vld [vmem:[#allocation2 + $0x8] sm:$0xff] }
  0x3a   : > { %657 = vmatpush1.bf16.msra.mxu1 %v1090_v21  ;;  %707 = vmatprep.subr.bf16.mxu0 %v1124_v30  ;;  %v331_v59 = vld [vmem:[%s1269_s8 + $0x18] sm:$0xff]  ;;  %v1149_v60 = vld [vmem:[%s1269_s8] ss:$12 sps:$4 sm:$0xff]  }
  0x3b   : > { %658 = vmatprep.subr.bf16.mxu1 %v1091_v22  ;;  %v965_v61 = vcombine.high %v331_v59, %v331_v59  ;;  %v964_v62 = vcombine.low %v331_v59, %v331_v59  ;;  %v323_v13 = vld [vmem:[#allocation2 + $0x10] sm:$0xff]  ;;  %v324_v17 = vld [vmem:[#allocation2 + $0x18] sm:$0xff]  ;;  %v325_v23 = vld [vmem:[#allocation2 + $0x20] sm:$0xff] }
  0x3c   : > { %v326_v26 = vld [vmem:[#allocation2 + $0x28] sm:$0xff] }
  0x3d   : > { %708 = vmatpush1.bf16.msra.mxu0 %v1126_v32 }
  0x3e   : > { %659 = vmatpush1.bf16.msra.mxu1 %v1093_v25  ;;  %709 = vmatprep.subr.bf16.mxu0 %v1130_v34 }
  0x3f   : > { %660 = vmatprep.subr.bf16.mxu1 %v1094_v27 }
  0x41   : > { %710 = vmatpush1.bf16.msra.mxu0 %v1132_v36 }
  0x42   : > { %661 = vmatpush1.bf16.msra.mxu1 %v1096_v29  ;;  %711 = vmatprep.subr.bf16.mxu0 %v1136_v38 }
  0x43   : > { %662 = vmatprep.subr.bf16.mxu1 %v1097_v31 }
  0x45   : > { %712 = vmatpush1.bf16.msra.mxu0 %v1138_v40 }
  0x46   : > { %663 = vmatpush1.bf16.msra.mxu1 %v1099_v33  ;;  %713 = vmatprep.subr.bf16.mxu0 %v1142_v43  ;;  %v774_v33 = vlaneseq (!%p1015_p11) }
  0x47   : > { %664 = vmatprep.subr.bf16.mxu1 %v1103_v35  ;;  %v772_v35 = vld [vmem:[%s1357_s2] sm:$0x3] (!%p1015_p11) }
  0x48   : > { %v775_v34 = vshrl.u32 (!%p1015_p11), %v774_v33, 7 }
  0x49   : > { %714 = vmatpush1.bf16.msra.mxu0 %v1144_v45 }
  0x4a   : > { %665 = vmatpush1.bf16.msra.mxu1 %v1105_v37  ;;  %v776_v37 = vsub.s32 (!%p1015_p11), 0, %v775_v34  ;;  %v780_v38 = vsub.s32 (!%p1015_p11), 1, %v775_v34 }
  0x4b   : > { %666 = vmatprep.subr.bf16.mxu1 %v1109_v39 }
  0x4c   : > { %732 = vmatmul.mubr.bf16.vlgmr.msra.gmra.mrb[0].mxu0 %v1148_v48  ;;  %v781_v43 = vrot.slane (!%p1015_p11), %v772_v35, %v780_v38 }
  0x4d   : > { %741 = vmatprep.mubr.bf16.mxu0 %v1196_v9 }
  0x4e   : > { %667 = vmatpush1.bf16.msra.mxu1 %v1111_v42  ;;  %v777_v42 = vrot.slane (!%p1015_p11), %v772_v35, %v776_v37 }
  0x4f   : > { %668 = vmatprep.subr.bf16.mxu1 %v1115_v44 }
  0x52   : > { %669 = vmatpush1.bf16.msra.mxu1 %v1117_v46 }
  0x53   : > { %670 = vmatprep.subr.bf16.mxu1 %v1121_v47 }
  0x54   : > { %742 = vmatmul.mubr.bf16.gmra.mrb[4].mxu0 %v1152_v53 }
  0x56   : > { %671 = vmatpush1.bf16.msra.mxu1 %v1123_v49 }
  0x57   : > { %672 = vmatprep.subr.bf16.mxu1 %v1127_v50 }
  0x5a   : > { %673 = vmatpush1.bf16.msra.mxu1 %v1129_v51 }
  0x5b   : > { %674 = vmatprep.subr.bf16.mxu1 %v1133_v52 }
  0x5e   : > { %675 = vmatpush1.bf16.msra.mxu1 %v1135_v54 }
  0x5f   : > { %676 = vmatprep.subr.bf16.mxu1 %v1139_v55 }
  0x62   : > { %677 = vmatpush1.bf16.msra.mxu1 %v1141_v56 }
  0x63   : > { %678 = vmatprep.subr.bf16.mxu1 %v1145_v57 }
  0x66   : > { %679 = vmatpush1.bf16.msra.mxu1 %v1147_v58 }
  0x69   : > { %681 = vmatmul.mubr.bf16.vlgmr.msra.gmra.mrb[0].mxu1 %v1149_v60 }
  0x6a   : > { %690 = vmatprep.mubr.bf16.mxu1 %v965_v61 }
  0x71   : > { %691 = vmatmul.mubr.bf16.gmra.mrb[4].mxu1 %v964_v62 }
 0x11f   : > { %v733_v63 = vpop.f32.mrb[0].mxu0 }
 0x120   : > { %v735_v0 = vpop.f32.mrb[1].mxu0 }
 0x121   : > { %v737_v1 = vpop.f32.mrb[2].mxu0 }
 0x122   : > { %v739_v2 = vpop.f32.mrb[3].mxu0 }
 0x127   : > { %v743_v3 = vpop.f32.mrb[4].mxu0 }
 0x128   : > { %v745_v4 = vpop.f32.mrb[5].mxu0 }
 0x129   : > { %v747_v5 = vpop.f32.mrb[6].mxu0 }
 0x12a   : > { %v748_v6 = vpop.f32.mrb[7].mxu0 }
 0x13c   : > { %v682_v8 = vpop.f32.mrb[0].mxu1 }
 0x13d   : > { %v734_v9 = vadd.f32 %v733_v63, %v682_v8  ;;  %v684_v11 = vpop.f32.mrb[1].mxu1 }
 0x13e   : > { %v736_v12 = vadd.f32 %v735_v0, %v684_v11  ;;  %v686_v14 = vpop.f32.mrb[2].mxu1 }
 0x13f   : > { %v750_v15 = vadd.f32 %v734_v9, %v321_v7  ;;  %v738_v16 = vadd.f32 %v737_v1, %v686_v14  ;;  %v688_v18 = vpop.f32.mrb[3].mxu1 }
 0x140   : > { %v751_v19 = vadd.f32 %v736_v12, %v322_v10  ;;  %v740_v20 = vadd.f32 %v739_v2, %v688_v18 }
 0x141   : > { %756 = vst [vmem:[#allocation2] sm:$0xff] %v750_v15  ;;  %v752_v21 = vadd.f32 %v738_v16, %v323_v13 }
 0x142   : > { %757 = vst [vmem:[#allocation2 + $0x8] sm:$0xff] %v751_v19  ;;  %v753_v22 = vadd.f32 %v740_v20, %v324_v17 }
 0x143   : > { %758 = vst [vmem:[#allocation2 + $0x10] sm:$0xff] %v752_v21 }
 0x144   : > { %759 = vst [vmem:[#allocation2 + $0x18] sm:$0xff] %v753_v22  ;;  %v692_v24 = vpop.f32.mrb[4].mxu1  ;;  %765 = sbr.rel (%p1015_p11) target bundleno = 345 (0x159), region = 66 }
 0x145   : > { %v744_v25 = vadd.f32 %v743_v3, %v692_v24  ;;  %v694_v27 = vpop.f32.mrb[5].mxu1 }
 0x146   : > { %v746_v28 = vadd.f32 %v745_v4, %v694_v27  ;;  %v696_v29 = vpop.f32.mrb[6].mxu1 }
 0x147   : > { %v754_v30 = vadd.f32 %v744_v25, %v325_v23  ;;  %v697_v31 = vpop.f32.mrb[7].mxu1 }
 0x148   : > { %v755_v32 = vadd.f32 %v746_v28, %v326_v26  ;;  %v766_v36 = vld [vmem:[#allocation2] sm:$0xff] (!%p1015_p11) }
 0x149   : > { %760 = vst [vmem:[#allocation2 + $0x20] sm:$0xff] %v754_v30  ;;  %v767_v39 = vld [vmem:[#allocation2 + $0x8] sm:$0xff] (!%p1015_p11)  ;;  %v784_v46 = vadd.f32 (!%p1015_p11), %v777_v42, %v766_v36 }
 0x14a   : > { %761 = vst [vmem:[#allocation2 + $0x28] sm:$0xff] %v755_v32  ;;  %v768_v40 = vld [vmem:[#allocation2 + $0x10] sm:$0xff] (!%p1015_p11)  ;;  %v785_v47 = vadd.f32 (!%p1015_p11), %v781_v43, %v767_v39 }
 0x14b   : > { %v769_v41 = vld [vmem:[#allocation2 + $0x18] sm:$0xff]  ;;  %v786_v48 = vadd.f32 %v777_v42, %v768_v40  ;;  %v790_v52 = vmax.f32 %v784_v46, 0.0 }
 0x14c   : > { %v787_v49 = vadd.f32 %v781_v43, %v769_v41  ;;  %v791_v53 = vmax.f32 %v785_v47, 0.0 }
 0x14d   : > { %v792_v54 = vmax.f32 %v786_v48, 0.0 }
 0x14e   : > { %v793_v55 = vmax.f32 %v787_v49, 0.0  ;;  %v1025_v58 = vpack.c.bf16 %v791_v53, %v790_v52 }
 0x150   : > { %v770_v44 = vld [vmem:[#allocation2 + $0x20] sm:$0xff]  ;;  %v1026_v59 = vpack.c.bf16 %v793_v55, %v792_v54  ;;  %816 = vst [vmem:[%s1358_s3] sm:$0xff] %v1025_v58 }
 0x151   : > { %v771_v45 = vld [vmem:[#allocation2 + $0x28] sm:$0xff]  ;;  %v788_v50 = vadd.f32 %v777_v42, %v770_v44 }
 0x152   : > { %v789_v51 = vadd.f32 %v781_v43, %v771_v45  ;;  %817 = vst [vmem:[%s1358_s3 + $0x8] sm:$0xff] %v1026_v59 }
 0x153   : > { %v794_v56 = vmax.f32 %v788_v50, 0.0 }
 0x154   : > { %v795_v57 = vmax.f32 %v789_v51, 0.0 }
 0x156   : > { %v1027_v60 = vpack.c.bf16 %v795_v57, %v794_v56 }
 0x158   : > { %818 = vst [vmem:[%s1358_s3 + $0x10] sm:$0xff] %v1027_v60 }
 0x159 PF: > { %s13_s16 = sadd.s32 1, %s1193_s16   ;;  %s1359_s12 = smov %s1181_s13 }
 0x15a   : > { %p10_p12 = scmp.ge.s32.totalorder %s13_s16, 11   ;;  %s1360_s13 = smov %s1252_s20 }
 0x15b   : > { %s1361_s14 = smov %s1189_s15  ;;  %s1362_s15 = smov %s1364_s17 }
 0x15c   :  { %12 = sbr.rel (!%p10_p12) target bundleno = 3 (0x3), region = 113 }

// kernel: _lambda_.17
= control target key start
LH: loop header
LB: loop body
LE: loop exit
PB: predicated region body
PF: predicated region fallthrough
CT: control target
= control target key end

     0   :  { %s86_s0 = inlined_call_operand.vmem [shape: bf16[9,8,256], index: 0, kind: input, shape index: {}]   ;;  %s87_s1 = inlined_call_operand.vmem [shape: bf16[8,256], index: 1, kind: output, shape index: {}]  }
   0x1   :  { %v8_v0 = vld [vmem:[%s86_s0] sm:$0xff]  ;;  %v38_v1 = vld [vmem:[%s86_s0 + $0x8] sm:$0xff]  ;;  %v39_v2 = vld [vmem:[%s86_s0 + $0x10] sm:$0xff] }
   0x2   :  { %v11_v3 = vmax.bf16 %v38_v1, %v8_v0  ;;  %v40_v4 = vld [vmem:[%s86_s0 + $0x18] sm:$0xff]  ;;  %v41_v6 = vld [vmem:[%s86_s0 + $0x20] sm:$0xff]  ;;  %v42_v8 = vld [vmem:[%s86_s0 + $0x28] sm:$0xff] }
   0x3   :  { %v43_v10 = vld [vmem:[%s86_s0 + $0x30] sm:$0xff]  ;;  %v44_v12 = vld [vmem:[%s86_s0 + $0x38] sm:$0xff]  ;;  %v45_v14 = vld [vmem:[%s86_s0 + $0x40] sm:$0xff] }
   0x4   :  { %v14_v5 = vmax.bf16 %v39_v2, %v11_v3 }
   0x6   :  { %v17_v7 = vmax.bf16 %v40_v4, %v14_v5 }
   0x8   :  { %v20_v9 = vmax.bf16 %v41_v6, %v17_v7 }
   0xa   :  { %v23_v11 = vmax.bf16 %v42_v8, %v20_v9 }
   0xc   :  { %v26_v13 = vmax.bf16 %v43_v10, %v23_v11 }
   0xe   :  { %v29_v15 = vmax.bf16 %v44_v12, %v26_v13 }
  0x10   :  { %v32_v16 = vmax.bf16 %v45_v14, %v29_v15 }
  0x12   :  { %33 = vst [vmem:[%s87_s1] sm:$0xff] %v32_v16 }

// kernel: _lambda_.16
= control target key start
LH: loop header
LB: loop body
LE: loop exit
PB: predicated region body
PF: predicated region fallthrough
CT: control target
= control target key end

     0   :  { %s1217_s12 = smov 0   ;;  %s1219_s13 = smov 0   ;;  %s1355_s0 = inlined_call_operand.vmem [shape: bf16[24,2304], index: 0, kind: input, shape index: {}]   ;;  %s1356_s1 = inlined_call_operand.vmem [shape: bf16[2304,256], index: 1, kind: input, shape index: {}]   ;;  %s1357_s2 = inlined_call_operand.vmem [shape: f32[1,256], index: 2, kind: input, shape index: {}]   ;;  %s1358_s3 = inlined_call_operand.vmem [shape: bf16[24,256], index: 3, kind: output, shape index: {}]  }
   0x1   :  { %s1221_s14 = smov 0   ;;  %s1223_s15 = smov 0  }
   0x2   :  { %s1225_s16 = smov 0  }
   0x3 LB: > { %s25_s17 = sadd.s32 1, %s1189_s15  ;;  %p48_p1 = scmp.ne.s32.totalorder %s1181_s13, %s1177_s12  ;;  %s1193_s16 = sphi %s1225_s16, %s13_s16   ;;  %s1189_s15 = sphi %s1223_s15, %s1362_s15   ;;  %s1185_s14 = sphi %s1221_s14, %s1361_s14   ;;  %s1181_s13 = sphi %s1219_s13, %s1360_s13   ;;  %s1177_s12 = sphi %s1217_s12, %s1359_s12  }
   0x4   : > { %p26_p0 = scmp.ge.s32.totalorder %s25_s17, 6  ;;  %p49_p2 = scmp.eq.s32.totalorder %s1193_s16, 0 }
   0x5   : > { %s41_s19 = sadd.s32 1, %s1181_s13  ;;  %p949_p5 = scmp.ge.s32.totalorder %s1193_s16, 6 }
   0x6   : > { %s1364_s17 = smov (%p26_p0, %s25_s17), 0  ;;  %p50_p3 = por %p49_p2, %p48_p1 }
   0x7   : > { %s37_s18 = ssub.s32 %s1189_s15, %s1364_s17  ;;  %164 = sbr.rel (%p949_p5) target bundleno = 22 (0x16), region = 20 }
   0x8   : > { %p39_p4 = scmp.eq.s32.totalorder %s37_s18, 0 }
   0xa   : > { %s1252_s20 = scalar_select %p39_p4, %s1181_s13, %s41_s19  }
   0xe   : > { %167 = sbr.rel (!%p50_p3) target bundleno = 22 (0x16), region = 24  ;;  %s169_s21 = sand.u32 (%p50_p3), 1, %s1181_s13  }
   0xf   : > { %s1023_s22 = smul.u32 (%p50_p3), 12, %s1189_s15 }
  0x10   : > { %s1032_s23 = smul.u32 (%p50_p3), 36, %s169_s21 }
  0x11   : > { %s177_s26 = scalar_lea.vmem (%p50_p3), %s1355_s0, %s1023_s22 }
  0x12   : > { %v192_v0 = vld [vmem:[%s177_s26] sm:$0xff] (%p50_p3)  ;;  %v194_v1 = vld [vmem:[%s177_s26 + $0x48] sm:$0xff] (%p50_p3)  ;;  %v196_v2 = vld [vmem:[%s177_s26 + $0x90] sm:$0xff] (%p50_p3)  ;;  %s171_s27 = scalar_lea.vmem (%p50_p3), [#allocation3], %s1032_s23 }
  0x13   : > { %193 = vst [vmem:[%s171_s27] sm:$0xff] (%p50_p3), %v192_v0  ;;  %195 = vst [vmem:[%s171_s27 + $0xc] sm:$0xff] (%p50_p3), %v194_v1  ;;  %v951_v3 = vld [vmem:[%s177_s26 + $0x8] sm:$0xf] (%p50_p3)  ;;  %v953_v4 = vld [vmem:[%s177_s26 + $0x50] sm:$0xf] (%p50_p3) }
  0x14   : > { %197 = vst [vmem:[%s171_s27 + $0x18] sm:$0xff] (%p50_p3), %v196_v2  ;;  %v955_v5 = vld [vmem:[%s177_s26 + $0x98] sm:$0xf] (%p50_p3)  ;;  %952 = vst [vmem:[%s171_s27 + $0x8] sm:$0xf] (%p50_p3), %v951_v3 }
  0x15   : > { %954 = vst [vmem:[%s171_s27 + $0x14] sm:$0xf] %v953_v4  ;;  %956 = vst [vmem:[%s171_s27 + $0x20] sm:$0xf] %v955_v5 }
  0x16 PF: > { %p957_p6 = scmp.ge.s32.totalorder %s1193_s16, 1  ;;  %p230_p7 = scmp.lt.s32.totalorder %s1193_s16, 7 }
  0x18   : > { %p231_p8 = pnand %p957_p6, %p230_p7 }
  0x19   : > { %s237_s28 = sand.u32 (!%p231_p8), 1, %s1177_s12   ;;  %s281_s29 = smul.u32 (!%p231_p8), 48, %s1185_s14 }
  0x1a   : > { %234 = sbr.rel (%p231_p8) target bundleno = 345 (0x159), region = 54  ;;  %p960_p10 = scmp.ne.s32.totalorder (!%p231_p8), %s1185_s14, 0 }
  0x1b   : > { %s1033_s30 = smul.u32 (!%p231_p8), 36, %s237_s28  ;;  %p283_p9 = scmp.lt.s32.totalorder (!%p231_p8), %s281_s29, 287 }
  0x1d   : > { %s1269_s8 = scalar_lea.vmem (!%p231_p8), [#allocation3], %s1033_s30 }
  0x21   : > { %s1366_s29 = smov (!%p283_p9, %s281_s29), 287  ;;  %314 = sbr.rel (%p960_p10) target bundleno = 40 (0x28), region = 62 }
  0x22   : > { %s1024_s4 = sshll.u32 %s1366_s29, 3  ;;  %v1195_v6 = vmov (!%p960_p10), 0.0  }
  0x23   : > { %s1267_s7 = scalar_lea.vmem %s1356_s1, %s1024_s4  ;;  %315 = vst [vmem:[#allocation2] sm:$0xff] (!%p960_p10), %v1195_v6  ;;  %316 = vst [vmem:[#allocation2 + $0x8] sm:$0xff] (!%p960_p10), %v1195_v6 }
  0x24   : > { %317 = vst [vmem:[#allocation2 + $0x10] sm:$0xff] (!%p960_p10), %v1195_v6  ;;  %318 = vst [vmem:[#allocation2 + $0x18] sm:$0xff] (!%p960_p10), %v1195_v6 }
  0x25   : > { %319 = vst [vmem:[#allocation2 + $0x20] sm:$0xff] (!%p960_p10), %v1195_v6  ;;  %320 = vst [vmem:[#allocation2 + $0x28] sm:$0xff] (!%p960_p10), %v1195_v6 }
  0x28 PF: > { %v1076_v7 = vld [vmem:[%s1267_s7 + $0x4] ss:$8 sps:$4 sm:$0xff]   ;;  %v1078_v8 = vld [vmem:[%s1267_s7] ss:$8 sps:$4 sm:$0xff]   ;;  %v1196_v9 = vmov 0   ;;  %p1015_p11 = scmp.ne.s32.totalorder %s1185_s14, 5 }
  0x29   : > { %731 = vmatprep.mubr.bf16.mxu0 %v1196_v9  ;;  %648 = vmatprep.subr.bf16.mxu1 %v1076_v7  ;;  %v1079_v10 = vld [vmem:[%s1267_s7 + $0x14] ss:$8 sps:$4 sm:$0xff]   ;;  %v1081_v11 = vld [vmem:[%s1267_s7 + $0x10] ss:$8 sps:$4 sm:$0xff]   ;;  %v1082_v12 = vld [vmem:[%s1267_s7 + $0x24] ss:$8 sps:$4 sm:$0xff]  }
  0x2a   : > { %649 = vmatpush1.bf16.msra.mxu1 %v1078_v8  ;;  %v1084_v13 = vld [vmem:[%s1267_s7 + $0x20] ss:$8 sps:$4 sm:$0xff]   ;;  %v1085_v14 = vld [vmem:[%s1267_s7 + $0x34] ss:$8 sps:$4 sm:$0xff]   ;;  %v1087_v15 = vld [vmem:[%s1267_s7 + $0x30] ss:$8 sps:$4 sm:$0xff]  }
  0x2b   : > { %650 = vmatprep.subr.bf16.mxu1 %v1079_v10  ;;  %v1100_v16 = vld [vmem:[%s1267_s7 + $0x104] ss:$8 sps:$4 sm:$0xff]   ;;  %v1102_v17 = vld [vmem:[%s1267_s7 + $0x100] ss:$8 sps:$4 sm:$0xff]   ;;  %v1106_v19 = vld [vmem:[%s1267_s7 + $0x114] ss:$8 sps:$4 sm:$0xff]  }
  0x2c   : > { %v1088_v18 = vld [vmem:[%s1267_s7 + $0x44] ss:$8 sps:$4 sm:$0xff]   ;;  %699 = vmatprep.subr.bf16.mxu0 %v1100_v16  ;;  %v1108_v20 = vld [vmem:[%s1267_s7 + $0x110] ss:$8 sps:$4 sm:$0xff]   ;;  %v1090_v21 = vld [vmem:[%s1267_s7 + $0x40] ss:$8 sps:$4 sm:$0xff]  }
  0x2d   : > { %700 = vmatpush1.bf16.msra.mxu0 %v1102_v17  ;;  %v1091_v22 = vld [vmem:[%s1267_s7 + $0x54] ss:$8 sps:$4 sm:$0xff]   ;;  %v1112_v23 = vld [vmem:[%s1267_s7 + $0x124] ss:$8 sps:$4 sm:$0xff]   ;;  %v1114_v24 = vld [vmem:[%s1267_s7 + $0x120] ss:$8 sps:$4 sm:$0xff]  }
  0x2e   : > { %651 = vmatpush1.bf16.msra.mxu1 %v1081_v11  ;;  %701 = vmatprep.subr.bf16.mxu0 %v1106_v19  ;;  %v1093_v25 = vld [vmem:[%s1267_s7 + $0x50] ss:$8 sps:$4 sm:$0xff]   ;;  %v1118_v26 = vld [vmem:[%s1267_s7 + $0x134] ss:$8 sps:$4 sm:$0xff]   ;;  %v1094_v27 = vld [vmem:[%s1267_s7 + $0x64] ss:$8 sps:$4 sm:$0xff]  }
  0x2f   : > { %652 = vmatprep.subr.bf16.mxu1 %v1082_v12  ;;  %v1120_v28 = vld [vmem:[%s1267_s7 + $0x130] ss:$8 sps:$4 sm:$0xff]   ;;  %v1096_v29 = vld [vmem:[%s1267_s7 + $0x60] ss:$8 sps:$4 sm:$0xff]   ;;  %v1124_v30 = vld [vmem:[%s1267_s7 + $0x144] ss:$8 sps:$4 sm:$0xff]  }
  0x30   : > { %v1097_v31 = vld [vmem:[%s1267_s7 + $0x74] ss:$8 sps:$4 sm:$0xff]   ;;  %v1126_v32 = vld [vmem:[%s1267_s7 + $0x140] ss:$8 sps:$4 sm:$0xff]   ;;  %v1099_v33 = vld [vmem:[%s1267_s7 + $0x70] ss:$8 sps:$4 sm:$0xff]  }
  0x31   : > { %702 = vmatpush1.bf16.msra.mxu0 %v1108_v20  ;;  %v1130_v34 = vld [vmem:[%s1267_s7 + $0x154] ss:$8 sps:$4 sm:$0xff]   ;;  %v1103_v35 = vld [vmem:[%s1267_s7 + $0x84] ss:$8 sps:$4 sm:$0xff]   ;;  %v1132_v36 = vld [vmem:[%s1267_s7 + $0x150] ss:$8 sps:$4 sm:$0xff]  }
  0x32   : > { %653 = vmatpush1.bf16.msra.mxu1 %v1084_v13  ;;  %703 = vmatprep.subr.bf16.mxu0 %v1112_v23  ;;  %v1105_v37 = vld [vmem:[%s1267_s7 + $0x80] ss:$8 sps:$4 sm:$0xff]   ;;  %v1136_v38 = vld [vmem:[%s1267_s7 + $0x164] ss:$8 sps:$4 sm:$0xff]   ;;  %v1109_v39 = vld [vmem:[%s1267_s7 + $0x94] ss:$8 sps:$4 sm:$0xff]  }
  0x33   : > { %654 = vmatprep.subr.bf16.mxu1 %v1085_v14  ;;  %v1138_v40 = vld [vmem:[%s1267_s7 + $0x160] ss:$8 sps:$4 sm:$0xff]   ;;  %v1111_v42 = vld [vmem:[%s1267_s7 + $0x90] ss:$8 sps:$4 sm:$0xff]   ;;  %v1142_v43 = vld [vmem:[%s1267_s7 + $0x174] ss:$8 sps:$4 sm:$0xff]  }
  0x34   : > { %v1151_v41 = vld [vmem:[%s1269_s8 + $0x4] ss:$12 sps:$4 sm:$0xff]   ;;  %v1148_v48 = vld [vmem:[%s1269_s8 + $0x8] ss:$12 sps:$4 sm:$0xff]   ;;  %v1152_v53 = vld [vmem:[%s1269_s8 + $0x20] ss:$0 sps:$4 sm:$0xff]  }
  0x35   : > { %704 = vmatpush1.bf16.msra.mxu0 %v1114_v24  ;;  %v1115_v44 = vld [vmem:[%s1267_s7 + $0xa4] ss:$8 sps:$4 sm:$0xff]   ;;  %680 = vmatprep.mubr.bf16.mxu1 %v1151_v41  ;;  %v1144_v45 = vld [vmem:[%s1267_s7 + $0x170] ss:$8 sps:$4 sm:$0xff]   ;;  %v1117_v46 = vld [vmem:[%s1267_s7 + $0xa0] ss:$8 sps:$4 sm:$0xff]  }
  0x36   : > { %655 = vmatpush1.bf16.msra.mxu1 %v1087_v15  ;;  %705 = vmatprep.subr.bf16.mxu0 %v1118_v26  ;;  %v1121_v47 = vld [vmem:[%s1267_s7 + $0xb4] ss:$8 sps:$4 sm:$0xff]   ;;  %v1123_v49 = vld [vmem:[%s1267_s7 + $0xb0] ss:$8 sps:$4 sm:$0xff]   ;;  %v1127_v50 = vld [vmem:[%s1267_s7 + $0xc4] ss:$8 sps:$4 sm:$0xff]  }
  0x37   : > { %656 = vmatprep.subr.bf16.mxu1 %v1088_v18  ;;  %v1129_v51 = vld [vmem:[%s1267_s7 + $0xc0] ss:$8 sps:$4 sm:$0xff]   ;;  %v1133_v52 = vld [vmem:[%s1267_s7 + $0xd4] ss:$8 sps:$4 sm:$0xff]   ;;  %v1135_v54 = vld [vmem:[%s1267_s7 + $0xd0] ss:$8 sps:$4 sm:$0xff]  }
  0x38   : > { %v1139_v55 = vld [vmem:[%s1267_s7 + $0xe4] ss:$8 sps:$4 sm:$0xff]   ;;  %v1141_v56 = vld [vmem:[%s1267_s7 + $0xe0] ss:$8 sps:$4 sm:$0xff]   ;;  %v1145_v57 = vld [vmem:[%s1267_s7 + $0xf4] ss:$8 sps:$4 sm:$0xff]  }
  0x39   : > { %706 = vmatpush1.bf16.msra.mxu0 %v1120_v28  ;;  %v1147_v58 = vld [vmem:[%s1267_s7 + $0xf0] ss:$8 sps:$4 sm:$0xff]   ;;  %v321_v7 = vld [vmem:[#allocation2] sm:$0xff]  ;;  %v322_v10 = vld [vmem:[#allocation2 + $0x8] sm:$0xff] }
  0x3a   : > { %657 = vmatpush1.bf16.msra.mxu1 %v1090_v21  ;;  %707 = vmatprep.subr.bf16.mxu0 %v1124_v30  ;;  %v331_v59 = vld [vmem:[%s1269_s8 + $0x18] sm:$0xff]  ;;  %v1149_v60 = vld [vmem:[%s1269_s8] ss:$12 sps:$4 sm:$0xff]  }
  0x3b   : > { %658 = vmatprep.subr.bf16.mxu1 %v1091_v22  ;;  %v965_v61 = vcombine.high %v331_v59, %v331_v59  ;;  %v964_v62 = vcombine.low %v331_v59, %v331_v59  ;;  %v323_v13 = vld [vmem:[#allocation2 + $0x10] sm:$0xff]  ;;  %v324_v17 = vld [vmem:[#allocation2 + $0x18] sm:$0xff]  ;;  %v325_v23 = vld [vmem:[#allocation2 + $0x20] sm:$0xff] }
  0x3c   : > { %v326_v26 = vld [vmem:[#allocation2 + $0x28] sm:$0xff] }
  0x3d   : > { %708 = vmatpush1.bf16.msra.mxu0 %v1126_v32 }
  0x3e   : > { %659 = vmatpush1.bf16.msra.mxu1 %v1093_v25  ;;  %709 = vmatprep.subr.bf16.mxu0 %v1130_v34 }
  0x3f   : > { %660 = vmatprep.subr.bf16.mxu1 %v1094_v27 }
  0x41   : > { %710 = vmatpush1.bf16.msra.mxu0 %v1132_v36 }
  0x42   : > { %661 = vmatpush1.bf16.msra.mxu1 %v1096_v29  ;;  %711 = vmatprep.subr.bf16.mxu0 %v1136_v38 }
  0x43   : > { %662 = vmatprep.subr.bf16.mxu1 %v1097_v31 }
  0x45   : > { %712 = vmatpush1.bf16.msra.mxu0 %v1138_v40 }
  0x46   : > { %663 = vmatpush1.bf16.msra.mxu1 %v1099_v33  ;;  %713 = vmatprep.subr.bf16.mxu0 %v1142_v43  ;;  %v774_v33 = vlaneseq (!%p1015_p11) }
  0x47   : > { %664 = vmatprep.subr.bf16.mxu1 %v1103_v35  ;;  %v772_v35 = vld [vmem:[%s1357_s2] sm:$0x3] (!%p1015_p11) }
  0x48   : > { %v775_v34 = vshrl.u32 (!%p1015_p11), %v774_v33, 7 }
  0x49   : > { %714 = vmatpush1.bf16.msra.mxu0 %v1144_v45 }
  0x4a   : > { %665 = vmatpush1.bf16.msra.mxu1 %v1105_v37  ;;  %v776_v37 = vsub.s32 (!%p1015_p11), 0, %v775_v34  ;;  %v780_v38 = vsub.s32 (!%p1015_p11), 1, %v775_v34 }
  0x4b   : > { %666 = vmatprep.subr.bf16.mxu1 %v1109_v39 }
  0x4c   : > { %732 = vmatmul.mubr.bf16.vlgmr.msra.gmra.mrb[0].mxu0 %v1148_v48  ;;  %v781_v43 = vrot.slane (!%p1015_p11), %v772_v35, %v780_v38 }
  0x4d   : > { %741 = vmatprep.mubr.bf16.mxu0 %v1196_v9 }
  0x4e   : > { %667 = vmatpush1.bf16.msra.mxu1 %v1111_v42  ;;  %v777_v42 = vrot.slane (!%p1015_p11), %v772_v35, %v776_v37 }
  0x4f   : > { %668 = vmatprep.subr.bf16.mxu1 %v1115_v44 }
  0x52   : > { %669 = vmatpush1.bf16.msra.mxu1 %v1117_v46 }
  0x53   : > { %670 = vmatprep.subr.bf16.mxu1 %v1121_v47 }
  0x54   : > { %742 = vmatmul.mubr.bf16.gmra.mrb[4].mxu0 %v1152_v53 }
  0x56   : > { %671 = vmatpush1.bf16.msra.mxu1 %v1123_v49 }
  0x57   : > { %672 = vmatprep.subr.bf16.mxu1 %v1127_v50 }
  0x5a   : > { %673 = vmatpush1.bf16.msra.mxu1 %v1129_v51 }
  0x5b   : > { %674 = vmatprep.subr.bf16.mxu1 %v1133_v52 }
  0x5e   : > { %675 = vmatpush1.bf16.msra.mxu1 %v1135_v54 }
  0x5f   : > { %676 = vmatprep.subr.bf16.mxu1 %v1139_v55 }
  0x62   : > { %677 = vmatpush1.bf16.msra.mxu1 %v1141_v56 }
  0x63   : > { %678 = vmatprep.subr.bf16.mxu1 %v1145_v57 }
  0x66   : > { %679 = vmatpush1.bf16.msra.mxu1 %v1147_v58 }
  0x69   : > { %681 = vmatmul.mubr.bf16.vlgmr.msra.gmra.mrb[0].mxu1 %v1149_v60 }
  0x6a   : > { %690 = vmatprep.mubr.bf16.mxu1 %v965_v61 }
  0x71   : > { %691 = vmatmul.mubr.bf16.gmra.mrb[4].mxu1 %v964_v62 }
 0x11f   : > { %v733_v63 = vpop.f32.mrb[0].mxu0 }
 0x120   : > { %v735_v0 = vpop.f32.mrb[1].mxu0 }
 0x121   : > { %v737_v1 = vpop.f32.mrb[2].mxu0 }
 0x122   : > { %v739_v2 = vpop.f32.mrb[3].mxu0 }
 0x127   : > { %v743_v3 = vpop.f32.mrb[4].mxu0 }
 0x128   : > { %v745_v4 = vpop.f32.mrb[5].mxu0 }
 0x129   : > { %v747_v5 = vpop.f32.mrb[6].mxu0 }
 0x12a   : > { %v748_v6 = vpop.f32.mrb[7].mxu0 }
 0x13c   : > { %v682_v8 = vpop.f32.mrb[0].mxu1 }
 0x13d   : > { %v734_v9 = vadd.f32 %v733_v63, %v682_v8  ;;  %v684_v11 = vpop.f32.mrb[1].mxu1 }
 0x13e   : > { %v736_v12 = vadd.f32 %v735_v0, %v684_v11  ;;  %v686_v14 = vpop.f32.mrb[2].mxu1 }
 0x13f   : > { %v750_v15 = vadd.f32 %v734_v9, %v321_v7  ;;  %v738_v16 = vadd.f32 %v737_v1, %v686_v14  ;;  %v688_v18 = vpop.f32.mrb[3].mxu1 }
 0x140   : > { %v751_v19 = vadd.f32 %v736_v12, %v322_v10  ;;  %v740_v20 = vadd.f32 %v739_v2, %v688_v18 }
 0x141   : > { %756 = vst [vmem:[#allocation2] sm:$0xff] %v750_v15  ;;  %v752_v21 = vadd.f32 %v738_v16, %v323_v13 }
 0x142   : > { %757 = vst [vmem:[#allocation2 + $0x8] sm:$0xff] %v751_v19  ;;  %v753_v22 = vadd.f32 %v740_v20, %v324_v17 }
 0x143   : > { %758 = vst [vmem:[#allocation2 + $0x10] sm:$0xff] %v752_v21 }
 0x144   : > { %759 = vst [vmem:[#allocation2 + $0x18] sm:$0xff] %v753_v22  ;;  %v692_v24 = vpop.f32.mrb[4].mxu1  ;;  %765 = sbr.rel (%p1015_p11) target bundleno = 345 (0x159), region = 66 }
 0x145   : > { %v744_v25 = vadd.f32 %v743_v3, %v692_v24  ;;  %v694_v27 = vpop.f32.mrb[5].mxu1 }
 0x146   : > { %v746_v28 = vadd.f32 %v745_v4, %v694_v27  ;;  %v696_v29 = vpop.f32.mrb[6].mxu1 }
 0x147   : > { %v754_v30 = vadd.f32 %v744_v25, %v325_v23  ;;  %v697_v31 = vpop.f32.mrb[7].mxu1 }
 0x148   : > { %v755_v32 = vadd.f32 %v746_v28, %v326_v26  ;;  %v766_v36 = vld [vmem:[#allocation2] sm:$0xff] (!%p1015_p11) }
 0x149   : > { %760 = vst [vmem:[#allocation2 + $0x20] sm:$0xff] %v754_v30  ;;  %v767_v39 = vld [vmem:[#allocation2 + $0x8] sm:$0xff] (!%p1015_p11)  ;;  %v784_v46 = vadd.f32 (!%p1015_p11), %v777_v42, %v766_v36 }
 0x14a   : > { %761 = vst [vmem:[#allocation2 + $0x28] sm:$0xff] %v755_v32  ;;  %v768_v40 = vld [vmem:[#allocation2 + $0x10] sm:$0xff] (!%p1015_p11)  ;;  %v785_v47 = vadd.f32 (!%p1015_p11), %v781_v43, %v767_v39 }
 0x14b   : > { %v769_v41 = vld [vmem:[#allocation2 + $0x18] sm:$0xff]  ;;  %v786_v48 = vadd.f32 %v777_v42, %v768_v40  ;;  %v790_v52 = vmax.f32 %v784_v46, 0.0 }
 0x14c   : > { %v787_v49 = vadd.f32 %v781_v43, %v769_v41  ;;  %v791_v53 = vmax.f32 %v785_v47, 0.0 }
 0x14d   : > { %v792_v54 = vmax.f32 %v786_v48, 0.0 }
 0x14e   : > { %v793_v55 = vmax.f32 %v787_v49, 0.0  ;;  %v1025_v58 = vpack.c.bf16 %v791_v53, %v790_v52 }
 0x150   : > { %v770_v44 = vld [vmem:[#allocation2 + $0x20] sm:$0xff]  ;;  %v1026_v59 = vpack.c.bf16 %v793_v55, %v792_v54  ;;  %816 = vst [vmem:[%s1358_s3] sm:$0xff] %v1025_v58 }
 0x151   : > { %v771_v45 = vld [vmem:[#allocation2 + $0x28] sm:$0xff]  ;;  %v788_v50 = vadd.f32 %v777_v42, %v770_v44 }
 0x152   : > { %v789_v51 = vadd.f32 %v781_v43, %v771_v45  ;;  %817 = vst [vmem:[%s1358_s3 + $0x8] sm:$0xff] %v1026_v59 }
 0x153   : > { %v794_v56 = vmax.f32 %v788_v50, 0.0 }
 0x154   : > { %v795_v57 = vmax.f32 %v789_v51, 0.0 }
 0x156   : > { %v1027_v60 = vpack.c.bf16 %v795_v57, %v794_v56 }
 0x158   : > { %818 = vst [vmem:[%s1358_s3 + $0x10] sm:$0xff] %v1027_v60 }
 0x159 PF: > { %s13_s16 = sadd.s32 1, %s1193_s16   ;;  %s1359_s12 = smov %s1181_s13 }
 0x15a   : > { %p10_p12 = scmp.ge.s32.totalorder %s13_s16, 8   ;;  %s1360_s13 = smov %s1252_s20 }
 0x15b   : > { %s1361_s14 = smov %s1189_s15  ;;  %s1362_s15 = smov %s1364_s17 }
 0x15c   :  { %12 = sbr.rel (!%p10_p12) target bundleno = 3 (0x3), region = 113 }

// kernel: _lambda_.19
= control target key start
LH: loop header
LB: loop body
LE: loop exit
PB: predicated region body
PF: predicated region fallthrough
CT: control target
= control target key end

     0   :  { %v663_v39 = vmov 0.0   ;;  %vm664_vm0 = vmmov 0   ;;  %s830_s1 = inlined_call_operand.vmem [shape: bf16[512,128], index: 1, kind: input, shape index: {}]   ;;  %s831_s0 = inlined_call_operand.vmem [shape: bf16[8,512], index: 0, kind: input, shape index: {}]   ;;  %s832_s3 = inlined_call_operand.vmem [shape: bf16[128,128], index: 3, kind: input, shape index: {}]   ;;  %s833_s2 = inlined_call_operand.vmem [shape: f32[1,128], index: 2, kind: input, shape index: {}]   ;;  %s834_s4 = inlined_call_operand.vmem [shape: f32[1,128], index: 4, kind: input, shape index: {}]   ;;  %s835_s5 = inlined_call_operand.vmem [shape: f32[8,128], index: 5, kind: output, shape index: {}]  }
   0x1   :  { %v619_v0 = vld [vmem:[%s830_s1 + $0x40] sm:$0xff]   ;;  %v623_v4 = vld [vmem:[%s830_s1 + $0x48] sm:$0xff]   ;;  %v627_v8 = vld [vmem:[%s830_s1 + $0x50] sm:$0xff]  }
   0x2   :  { %v620_v1 = vld [vmem:[%s830_s1 + $0xc0] sm:$0xff]   ;;  %544 = vmatprep.subr.bf16.mxu0 %v619_v0  ;;  %v624_v5 = vld [vmem:[%s830_s1 + $0xc8] sm:$0xff]   ;;  %v628_v9 = vld [vmem:[%s830_s1 + $0xd0] sm:$0xff]  }
   0x3   :  { %v621_v2 = vld [vmem:[%s830_s1] sm:$0xff]   ;;  %566 = vmatprep.subr.bf16.mxu1 %v620_v1  ;;  %v625_v6 = vld [vmem:[%s830_s1 + $0x8] sm:$0xff]   ;;  %v629_v10 = vld [vmem:[%s830_s1 + $0x10] sm:$0xff]  }
   0x4   :  { %v622_v3 = vld [vmem:[%s830_s1 + $0x80] sm:$0xff]   ;;  %545 = vmatpush3.bf16.msra.mxu0 %v621_v2  ;;  %v626_v7 = vld [vmem:[%s830_s1 + $0x88] sm:$0xff]   ;;  %v630_v11 = vld [vmem:[%s830_s1 + $0x90] sm:$0xff]  }
   0x5   :  { %567 = vmatpush3.bf16.msra.mxu1 %v622_v3  ;;  %546 = vmatprep.subr.bf16.mxu0 %v623_v4  ;;  %v631_v12 = vld [vmem:[%s830_s1 + $0x58] sm:$0xff]   ;;  %v635_v16 = vld [vmem:[%s830_s1 + $0x60] sm:$0xff]   ;;  %v639_v20 = vld [vmem:[%s830_s1 + $0x68] sm:$0xff]  }
   0x6   :  { %568 = vmatprep.subr.bf16.mxu1 %v624_v5  ;;  %v632_v13 = vld [vmem:[%s830_s1 + $0xd8] sm:$0xff]   ;;  %v636_v17 = vld [vmem:[%s830_s1 + $0xe0] sm:$0xff]   ;;  %v640_v21 = vld [vmem:[%s830_s1 + $0xe8] sm:$0xff]  }
   0x7   :  { %v633_v14 = vld [vmem:[%s830_s1 + $0x18] sm:$0xff]   ;;  %v637_v18 = vld [vmem:[%s830_s1 + $0x20] sm:$0xff]   ;;  %v641_v22 = vld [vmem:[%s830_s1 + $0x28] sm:$0xff]  }
   0x8   :  { %547 = vmatpush3.bf16.msra.mxu0 %v625_v6  ;;  %v634_v15 = vld [vmem:[%s830_s1 + $0x98] sm:$0xff]   ;;  %v638_v19 = vld [vmem:[%s830_s1 + $0xa0] sm:$0xff]   ;;  %v642_v23 = vld [vmem:[%s830_s1 + $0xa8] sm:$0xff]  }
   0x9   :  { %569 = vmatpush3.bf16.msra.mxu1 %v626_v7  ;;  %548 = vmatprep.subr.bf16.mxu0 %v627_v8  ;;  %v643_v24 = vld [vmem:[%s830_s1 + $0x70] sm:$0xff]   ;;  %v647_v28 = vld [vmem:[%s830_s1 + $0x78] sm:$0xff]   ;;  %v21_v32 = vld [vmem:[%s831_s0] sm:$0xff] }
   0xa   :  { %570 = vmatprep.subr.bf16.mxu1 %v628_v9  ;;  %v644_v25 = vld [vmem:[%s830_s1 + $0xf0] sm:$0xff]   ;;  %v648_v29 = vld [vmem:[%s830_s1 + $0xf8] sm:$0xff]   ;;  %v22_v33 = vld [vmem:[%s831_s0 + $0x8] sm:$0xff]  ;;  %v499_v34 = vcombine.low %v21_v32, %v21_v32  ;;  %v500_v35 = vcombine.high %v21_v32, %v21_v32 }
   0xb   :  { %v645_v26 = vld [vmem:[%s830_s1 + $0x30] sm:$0xff]   ;;  %v649_v30 = vld [vmem:[%s830_s1 + $0x38] sm:$0xff]   ;;  %v501_v36 = vcombine.low %v22_v33, %v22_v33  ;;  %v502_v37 = vcombine.high %v22_v33, %v22_v33  ;;  %v655_v38 = vld [vmem:[%s832_s3] sm:$0xff]  }
   0xc   :  { %549 = vmatpush3.bf16.msra.mxu0 %v629_v10  ;;  %v646_v27 = vld [vmem:[%s830_s1 + $0xb0] sm:$0xff]   ;;  %v650_v31 = vld [vmem:[%s830_s1 + $0xb8] sm:$0xff]   ;;  %332 = vmatprep.mubr.bf16.mxu0 %v500_v35  ;;  %v656_v40 = vld [vmem:[%s832_s3 + $0x8] sm:$0xff]  }
   0xd   :  { %571 = vmatpush3.bf16.msra.mxu1 %v630_v11  ;;  %550 = vmatprep.subr.bf16.mxu0 %v631_v12  ;;  %v657_v41 = vld [vmem:[%s832_s3 + $0x10] sm:$0xff]   ;;  %v658_v42 = vld [vmem:[%s832_s3 + $0x18] sm:$0xff]   ;;  %v659_v43 = vld [vmem:[%s832_s3 + $0x20] sm:$0xff]  }
   0xe   :  { %572 = vmatprep.subr.bf16.mxu1 %v632_v13  ;;  %372 = vmatprep.mubr.bf16.mxu1 %v502_v37  ;;  %v660_v44 = vld [vmem:[%s832_s3 + $0x28] sm:$0xff]   ;;  %v661_v45 = vld [vmem:[%s832_s3 + $0x30] sm:$0xff]   ;;  %v662_v46 = vld [vmem:[%s832_s3 + $0x38] sm:$0xff]  }
   0xf   :  { %v498_v49 = vld [vmem:[%s833_s2] ss:$0 sm:$0xff] }
  0x10   :  { %551 = vmatpush3.bf16.msra.mxu0 %v633_v14  ;;  %v535_v62 = vld [vmem:[%s834_s4] ss:$0 sm:$0xff] }
  0x11   :  { %573 = vmatpush3.bf16.msra.mxu1 %v634_v15  ;;  %552 = vmatprep.subr.bf16.mxu0 %v635_v16 }
  0x12   :  { %574 = vmatprep.subr.bf16.mxu1 %v636_v17 }
  0x14   :  { %553 = vmatpush3.bf16.msra.mxu0 %v637_v18 }
  0x15   :  { %575 = vmatpush3.bf16.msra.mxu1 %v638_v19  ;;  %554 = vmatprep.subr.bf16.mxu0 %v639_v20 }
  0x16   :  { %576 = vmatprep.subr.bf16.mxu1 %v640_v21 }
  0x18   :  { %555 = vmatpush3.bf16.msra.mxu0 %v641_v22 }
  0x19   :  { %577 = vmatpush3.bf16.msra.mxu1 %v642_v23  ;;  %556 = vmatprep.subr.bf16.mxu0 %v643_v24 }
  0x1a   :  { %578 = vmatprep.subr.bf16.mxu1 %v644_v25 }
  0x1c   :  { %557 = vmatpush3.bf16.msra.mxu0 %v645_v26 }
  0x1d   :  { %579 = vmatpush3.bf16.msra.mxu1 %v646_v27  ;;  %558 = vmatprep.subr.bf16.mxu0 %v647_v28 }
  0x1e   :  { %580 = vmatprep.subr.bf16.mxu1 %v648_v29 }
  0x20   :  { %559 = vmatpush3.bf16.msra.mxu0 %v649_v30 }
  0x21   :  { %581 = vmatpush3.bf16.msra.mxu1 %v650_v31  ;;  %597 = vmatprep.subr.bf16.mxu0 %v663_v39 }
  0x23   :  { %333 = vmatmul.mubr.bf16.vlgmr.msra.gmra.mrb[0].mxu0 %v499_v34 }
  0x24   :  { %373 = vmatmul.mubr.bf16.vlgmr.msra.gmra.mrb[0].mxu1 %v501_v36  ;;  %598 = vmatpush3.bf16.msra.mxu0 %v655_v38 }
  0x25   :  { %599 = vmatprep.subr.bf16.mxu0 %v663_v39  ;;  %613 = vmatprep.mubr.msk.bf16.mxu0 %vm664_vm0, %v663_v39 }
  0x28   :  { %600 = vmatpush3.bf16.msra.mxu0 %v656_v40 }
  0x29   :  { %601 = vmatprep.subr.bf16.mxu0 %v663_v39 }
  0x2c   :  { %602 = vmatpush3.bf16.msra.mxu0 %v657_v41 }
  0x2d   :  { %603 = vmatprep.subr.bf16.mxu0 %v663_v39 }
  0x30   :  { %604 = vmatpush3.bf16.msra.mxu0 %v658_v42 }
  0x31   :  { %605 = vmatprep.subr.bf16.mxu0 %v663_v39 }
  0x34   :  { %606 = vmatpush3.bf16.msra.mxu0 %v659_v43 }
  0x35   :  { %607 = vmatprep.subr.bf16.mxu0 %v663_v39 }
  0x38   :  { %608 = vmatpush3.bf16.msra.mxu0 %v660_v44 }
  0x39   :  { %609 = vmatprep.subr.bf16.mxu0 %v663_v39 }
  0x3c   :  { %610 = vmatpush3.bf16.msra.mxu0 %v661_v45 }
  0x3d   :  { %611 = vmatprep.subr.bf16.mxu0 %v663_v39 }
  0x40   :  { %612 = vmatpush3.bf16.msra.mxu0 %v662_v46 }
  0xf6   :  { %v560_v47 = vpop.f32.mrb[0].mxu0 }
  0xf7   :  { %v582_v48 = vpop.f32.mrb[0].mxu1  ;;  %v561_v50 = vpop.f32.mrb[1].mxu0 }
  0xf8   :  { %v583_v51 = vpop.f32.mrb[1].mxu1  ;;  %v562_v52 = vadd.f32 %v561_v50, %v560_v47  ;;  %v563_v54 = vpop.f32.mrb[2].mxu0 }
  0xf9   :  { %v584_v53 = vadd.f32 %v583_v51, %v582_v48  ;;  %v585_v55 = vpop.f32.mrb[2].mxu1  ;;  %v564_v56 = vpop.f32.mrb[3].mxu0 }
  0xfa   :  { %v586_v57 = vpop.f32.mrb[3].mxu1  ;;  %v335_v58 = vadd.f32 %v562_v52, %v498_v49 }
  0xfc   :  { %v375_v59 = vadd.f32 %v584_v53, %v335_v58 }
  0xfe   :  { %v380_v60 = vmax.f32 %v375_v59, 0.0 }
 0x100   :  { %v381_v61 = vpack.c.bf16 %v380_v60, %v380_v60 }
 0x102   :  { %614 = vmatmul.mubr.bf16.vlgmr.msra.gmra.mrb[4].mxu0 %v381_v61 }
 0x1d5   :  { %v487_v63 = vpop.f32.mrb[4].mxu0 }
 0x1d6   :  { %v488_v0 = vadd.f32 %v535_v62, %v487_v63  ;;  %v615_v1 = vpop.f32.mrb[5].mxu0 }
 0x1d7   :  { %v490_v2 = vpop.f32.mrb[6].mxu0 }
 0x1d8   :  { %493 = vst [vmem:[%s835_s5] sm:$0xff] %v488_v0  ;;  %v616_v3 = vpop.f32.mrb[7].mxu0 }

// kernel: _lambda_.18
= control target key start
LH: loop header
LB: loop body
LE: loop exit
PB: predicated region body
PF: predicated region fallthrough
CT: control target
= control target key end

     0   :  { %s2429_s12 = smov 0   ;;  %s2431_s13 = smov 0   ;;  %s2946_s0 = inlined_call_operand.vmem [shape: bf16[8,9216], index: 0, kind: input, shape index: {}]   ;;  %s2947_s1 = inlined_call_operand.vmem [shape: bf16[9216,512], index: 1, kind: input, shape index: {}]   ;;  %s2948_s2 = inlined_call_operand.vmem [shape: f32[1,512], index: 2, kind: input, shape index: {}]   ;;  %s2949_s3 = inlined_call_operand.vmem [shape: bf16[8,512], index: 3, kind: output, shape index: {}]  }
   0x1   :  { %s2433_s14 = smov 0   ;;  %s2435_s15 = smov 0  }
   0x2   :  { %s2437_s16 = smov 0   ;;  %s2439_s17 = smov 0  }
   0x3   :  { %s2441_s18 = smov 0  }
   0x4 LB: > { %s25_s19 = sadd.s32 1, %s2398_s16  ;;  %s28_s20 = sadd.s32 1, %s2402_s17  ;;  %s2406_s18 = sphi %s2441_s18, %s13_s18   ;;  %s2402_s17 = sphi %s2439_s17, %s2955_s17   ;;  %s2398_s16 = sphi %s2437_s16, %s2954_s16   ;;  %s2394_s15 = sphi %s2435_s15, %s2953_s15   ;;  %s2390_s14 = sphi %s2433_s14, %s2952_s14   ;;  %s2386_s13 = sphi %s2431_s13, %s2951_s13   ;;  %s2382_s12 = sphi %s2429_s12, %s2950_s12  }
   0x5   : > { %p26_p0 = scmp.ge.s32.totalorder %s25_s19, 9  ;;  %p76_p1 = scmp.ne.s32.totalorder %s2386_s13, %s2382_s12 }
   0x6   : > { %p77_p2 = scmp.eq.s32.totalorder %s2406_s18, 0  ;;  %s69_s24 = sadd.s32 1, %s2386_s13 }
   0x7   : > { %s2957_s19 = smov (%p26_p0, %s25_s19), 0  ;;  %s2959_s20 = smov (!%p26_p0, %s28_s20), %s2402_s17 }
   0x8   : > { %p78_p3 = por %p77_p2, %p76_p1  ;;  %p30_p4 = scmp.ge.s32.totalorder %s2959_s20, 2 }
   0x9   : > { %s64_s21 = ssub.s32 %s2398_s16, %s2957_s19  ;;  %p1939_p6 = scmp.ge.s32.totalorder %s2406_s18, 18 }
   0xa   : > { %s2961_s20 = smov (%p30_p4, %s2959_s20), 0 }
   0xb   : > { %s65_s22 = ssub.s32 %s2402_s17, %s2961_s20  ;;  %156 = sbr.rel (%p1939_p6) target bundleno = 89 (0x59), region = 16 }
   0xc   : > { %s66_s23 = sor.u32 %s65_s22, %s64_s21 }
   0xd   : > { %p67_p5 = scmp.eq.s32.totalorder %s66_s23, 0 }
   0xf   : > { %s2480_s25 = scalar_select %p67_p5, %s2386_s13, %s69_s24  }
  0x12   : > { %172 = sbr.rel (!%p78_p3) target bundleno = 89 (0x59), region = 24  ;;  %s174_s26 = sand.u32 (%p78_p3), 1, %s2386_s13  }
  0x13   : > { %s1942_s27 = sshll.u32 (%p78_p3), %s2402_s17, 1  ;;  %s1940_s28 = sshll.u32 (%p78_p3), %s174_s26, 10 }
  0x14   : > { %s2093_s29 = sshll.u32 (%p78_p3), %s2398_s16, 9  ;;  %s2494_s8 = scalar_lea.vmem (%p78_p3), [#allocation3], %s1940_s28 }
  0x15   : > { %s180_s30 = sadd.s32 (%p78_p3), %s2093_s29, %s1942_s27 }
  0x16   : > { %s1944_s4 = sshll.u32 (%p78_p3), %s180_s30, 2 }
  0x17   : > { %s2489_s7 = scalar_lea.vmem (%p78_p3), %s2947_s1, %s1944_s4 }
  0x18   : > { %v464_v0 = vld [vmem:[%s2489_s7] sm:$0xff] (%p78_p3)  ;;  %v466_v1 = vld [vmem:[%s2489_s7 + $0x10] sm:$0xff] (%p78_p3) }
  0x19   : > { %v468_v2 = vld [vmem:[%s2489_s7 + $0x20] sm:$0xff]  ;;  %465 = vst [vmem:[%s2494_s8] sm:$0xff] %v464_v0  ;;  %467 = vst [vmem:[%s2494_s8 + $0x8] sm:$0xff] %v466_v1  ;;  %v470_v3 = vld [vmem:[%s2489_s7 + $0x30] sm:$0xff] }
  0x1a   : > { %469 = vst [vmem:[%s2494_s8 + $0x10] sm:$0xff] %v468_v2  ;;  %v472_v4 = vld [vmem:[%s2489_s7 + $0x40] sm:$0xff]  ;;  %v474_v5 = vld [vmem:[%s2489_s7 + $0x50] sm:$0xff]  ;;  %471 = vst [vmem:[%s2494_s8 + $0x18] sm:$0xff] %v470_v3 }
  0x1b   : > { %473 = vst [vmem:[%s2494_s8 + $0x20] sm:$0xff] %v472_v4  ;;  %475 = vst [vmem:[%s2494_s8 + $0x28] sm:$0xff] %v474_v5  ;;  %v476_v6 = vld [vmem:[%s2489_s7 + $0x60] sm:$0xff]  ;;  %v478_v7 = vld [vmem:[%s2489_s7 + $0x70] sm:$0xff] }
  0x1c   : > { %v480_v8 = vld [vmem:[%s2489_s7 + $0x80] sm:$0xff]  ;;  %477 = vst [vmem:[%s2494_s8 + $0x30] sm:$0xff] %v476_v6  ;;  %479 = vst [vmem:[%s2494_s8 + $0x38] sm:$0xff] %v478_v7  ;;  %v482_v9 = vld [vmem:[%s2489_s7 + $0x90] sm:$0xff] }
  0x1d   : > { %481 = vst [vmem:[%s2494_s8 + $0x40] sm:$0xff] %v480_v8  ;;  %v484_v10 = vld [vmem:[%s2489_s7 + $0xa0] sm:$0xff]  ;;  %v486_v11 = vld [vmem:[%s2489_s7 + $0xb0] sm:$0xff]  ;;  %483 = vst [vmem:[%s2494_s8 + $0x48] sm:$0xff] %v482_v9 }
  0x1e   : > { %485 = vst [vmem:[%s2494_s8 + $0x50] sm:$0xff] %v484_v10  ;;  %487 = vst [vmem:[%s2494_s8 + $0x58] sm:$0xff] %v486_v11  ;;  %v488_v12 = vld [vmem:[%s2489_s7 + $0xc0] sm:$0xff]  ;;  %v490_v13 = vld [vmem:[%s2489_s7 + $0xd0] sm:$0xff] }
  0x1f   : > { %v492_v14 = vld [vmem:[%s2489_s7 + $0xe0] sm:$0xff]  ;;  %489 = vst [vmem:[%s2494_s8 + $0x60] sm:$0xff] %v488_v12  ;;  %491 = vst [vmem:[%s2494_s8 + $0x68] sm:$0xff] %v490_v13  ;;  %v494_v15 = vld [vmem:[%s2489_s7 + $0xf0] sm:$0xff] }
  0x20   : > { %493 = vst [vmem:[%s2494_s8 + $0x70] sm:$0xff] %v492_v14  ;;  %v496_v16 = vld [vmem:[%s2489_s7 + $0x100] sm:$0xff]  ;;  %v498_v17 = vld [vmem:[%s2489_s7 + $0x110] sm:$0xff]  ;;  %495 = vst [vmem:[%s2494_s8 + $0x78] sm:$0xff] %v494_v15 }
  0x21   : > { %497 = vst [vmem:[%s2494_s8 + $0x80] sm:$0xff] %v496_v16  ;;  %499 = vst [vmem:[%s2494_s8 + $0x88] sm:$0xff] %v498_v17  ;;  %v500_v18 = vld [vmem:[%s2489_s7 + $0x120] sm:$0xff]  ;;  %v502_v19 = vld [vmem:[%s2489_s7 + $0x130] sm:$0xff] }
  0x22   : > { %v504_v20 = vld [vmem:[%s2489_s7 + $0x140] sm:$0xff]  ;;  %501 = vst [vmem:[%s2494_s8 + $0x90] sm:$0xff] %v500_v18  ;;  %503 = vst [vmem:[%s2494_s8 + $0x98] sm:$0xff] %v502_v19  ;;  %v506_v21 = vld [vmem:[%s2489_s7 + $0x150] sm:$0xff] }
  0x23   : > { %505 = vst [vmem:[%s2494_s8 + $0xa0] sm:$0xff] %v504_v20  ;;  %v508_v22 = vld [vmem:[%s2489_s7 + $0x160] sm:$0xff]  ;;  %v510_v23 = vld [vmem:[%s2489_s7 + $0x170] sm:$0xff]  ;;  %507 = vst [vmem:[%s2494_s8 + $0xa8] sm:$0xff] %v506_v21 }
  0x24   : > { %509 = vst [vmem:[%s2494_s8 + $0xb0] sm:$0xff] %v508_v22  ;;  %511 = vst [vmem:[%s2494_s8 + $0xb8] sm:$0xff] %v510_v23  ;;  %v512_v24 = vld [vmem:[%s2489_s7 + $0x180] sm:$0xff]  ;;  %v514_v25 = vld [vmem:[%s2489_s7 + $0x190] sm:$0xff] }
  0x25   : > { %v516_v26 = vld [vmem:[%s2489_s7 + $0x1a0] sm:$0xff]  ;;  %513 = vst [vmem:[%s2494_s8 + $0xc0] sm:$0xff] %v512_v24  ;;  %515 = vst [vmem:[%s2494_s8 + $0xc8] sm:$0xff] %v514_v25  ;;  %v518_v27 = vld [vmem:[%s2489_s7 + $0x1b0] sm:$0xff] }
  0x26   : > { %517 = vst [vmem:[%s2494_s8 + $0xd0] sm:$0xff] %v516_v26  ;;  %v520_v28 = vld [vmem:[%s2489_s7 + $0x1c0] sm:$0xff]  ;;  %v522_v29 = vld [vmem:[%s2489_s7 + $0x1d0] sm:$0xff]  ;;  %519 = vst [vmem:[%s2494_s8 + $0xd8] sm:$0xff] %v518_v27 }
  0x27   : > { %521 = vst [vmem:[%s2494_s8 + $0xe0] sm:$0xff] %v520_v28  ;;  %523 = vst [vmem:[%s2494_s8 + $0xe8] sm:$0xff] %v522_v29  ;;  %v524_v30 = vld [vmem:[%s2489_s7 + $0x1e0] sm:$0xff]  ;;  %v526_v31 = vld [vmem:[%s2489_s7 + $0x1f0] sm:$0xff] }
  0x28   : > { %v528_v32 = vld [vmem:[%s2489_s7 + $0x200] sm:$0xff]  ;;  %525 = vst [vmem:[%s2494_s8 + $0xf0] sm:$0xff] %v524_v30  ;;  %527 = vst [vmem:[%s2494_s8 + $0xf8] sm:$0xff] %v526_v31  ;;  %v530_v33 = vld [vmem:[%s2489_s7 + $0x210] sm:$0xff] }
  0x29   : > { %529 = vst [vmem:[%s2494_s8 + $0x100] sm:$0xff] %v528_v32  ;;  %v532_v34 = vld [vmem:[%s2489_s7 + $0x220] sm:$0xff]  ;;  %v534_v35 = vld [vmem:[%s2489_s7 + $0x230] sm:$0xff]  ;;  %531 = vst [vmem:[%s2494_s8 + $0x108] sm:$0xff] %v530_v33 }
  0x2a   : > { %533 = vst [vmem:[%s2494_s8 + $0x110] sm:$0xff] %v532_v34  ;;  %535 = vst [vmem:[%s2494_s8 + $0x118] sm:$0xff] %v534_v35  ;;  %v536_v36 = vld [vmem:[%s2489_s7 + $0x240] sm:$0xff]  ;;  %v538_v37 = vld [vmem:[%s2489_s7 + $0x250] sm:$0xff] }
  0x2b   : > { %v540_v38 = vld [vmem:[%s2489_s7 + $0x260] sm:$0xff]  ;;  %537 = vst [vmem:[%s2494_s8 + $0x120] sm:$0xff] %v536_v36  ;;  %539 = vst [vmem:[%s2494_s8 + $0x128] sm:$0xff] %v538_v37  ;;  %v542_v39 = vld [vmem:[%s2489_s7 + $0x270] sm:$0xff] }
  0x2c   : > { %541 = vst [vmem:[%s2494_s8 + $0x130] sm:$0xff] %v540_v38  ;;  %v544_v40 = vld [vmem:[%s2489_s7 + $0x280] sm:$0xff]  ;;  %v546_v41 = vld [vmem:[%s2489_s7 + $0x290] sm:$0xff]  ;;  %543 = vst [vmem:[%s2494_s8 + $0x138] sm:$0xff] %v542_v39 }
  0x2d   : > { %545 = vst [vmem:[%s2494_s8 + $0x140] sm:$0xff] %v544_v40  ;;  %547 = vst [vmem:[%s2494_s8 + $0x148] sm:$0xff] %v546_v41  ;;  %v548_v42 = vld [vmem:[%s2489_s7 + $0x2a0] sm:$0xff]  ;;  %v550_v43 = vld [vmem:[%s2489_s7 + $0x2b0] sm:$0xff] }
  0x2e   : > { %v552_v44 = vld [vmem:[%s2489_s7 + $0x2c0] sm:$0xff]  ;;  %549 = vst [vmem:[%s2494_s8 + $0x150] sm:$0xff] %v548_v42  ;;  %551 = vst [vmem:[%s2494_s8 + $0x158] sm:$0xff] %v550_v43  ;;  %v554_v45 = vld [vmem:[%s2489_s7 + $0x2d0] sm:$0xff] }
  0x2f   : > { %553 = vst [vmem:[%s2494_s8 + $0x160] sm:$0xff] %v552_v44  ;;  %v556_v46 = vld [vmem:[%s2489_s7 + $0x2e0] sm:$0xff]  ;;  %v558_v47 = vld [vmem:[%s2489_s7 + $0x2f0] sm:$0xff]  ;;  %555 = vst [vmem:[%s2494_s8 + $0x168] sm:$0xff] %v554_v45 }
  0x30   : > { %557 = vst [vmem:[%s2494_s8 + $0x170] sm:$0xff] %v556_v46  ;;  %559 = vst [vmem:[%s2494_s8 + $0x178] sm:$0xff] %v558_v47  ;;  %v560_v48 = vld [vmem:[%s2489_s7 + $0x300] sm:$0xff]  ;;  %v562_v49 = vld [vmem:[%s2489_s7 + $0x310] sm:$0xff] }
  0x31   : > { %v564_v50 = vld [vmem:[%s2489_s7 + $0x320] sm:$0xff]  ;;  %561 = vst [vmem:[%s2494_s8 + $0x180] sm:$0xff] %v560_v48  ;;  %563 = vst [vmem:[%s2494_s8 + $0x188] sm:$0xff] %v562_v49  ;;  %v566_v51 = vld [vmem:[%s2489_s7 + $0x330] sm:$0xff] }
  0x32   : > { %565 = vst [vmem:[%s2494_s8 + $0x190] sm:$0xff] %v564_v50  ;;  %v568_v52 = vld [vmem:[%s2489_s7 + $0x340] sm:$0xff]  ;;  %v570_v53 = vld [vmem:[%s2489_s7 + $0x350] sm:$0xff]  ;;  %567 = vst [vmem:[%s2494_s8 + $0x198] sm:$0xff] %v566_v51 }
  0x33   : > { %569 = vst [vmem:[%s2494_s8 + $0x1a0] sm:$0xff] %v568_v52  ;;  %571 = vst [vmem:[%s2494_s8 + $0x1a8] sm:$0xff] %v570_v53  ;;  %v572_v54 = vld [vmem:[%s2489_s7 + $0x360] sm:$0xff]  ;;  %v574_v55 = vld [vmem:[%s2489_s7 + $0x370] sm:$0xff] }
  0x34   : > { %v576_v56 = vld [vmem:[%s2489_s7 + $0x380] sm:$0xff]  ;;  %573 = vst [vmem:[%s2494_s8 + $0x1b0] sm:$0xff] %v572_v54  ;;  %575 = vst [vmem:[%s2494_s8 + $0x1b8] sm:$0xff] %v574_v55  ;;  %v578_v57 = vld [vmem:[%s2489_s7 + $0x390] sm:$0xff] }
  0x35   : > { %577 = vst [vmem:[%s2494_s8 + $0x1c0] sm:$0xff] %v576_v56  ;;  %v580_v58 = vld [vmem:[%s2489_s7 + $0x3a0] sm:$0xff]  ;;  %v582_v59 = vld [vmem:[%s2489_s7 + $0x3b0] sm:$0xff]  ;;  %579 = vst [vmem:[%s2494_s8 + $0x1c8] sm:$0xff] %v578_v57 }
  0x36   : > { %581 = vst [vmem:[%s2494_s8 + $0x1d0] sm:$0xff] %v580_v58  ;;  %583 = vst [vmem:[%s2494_s8 + $0x1d8] sm:$0xff] %v582_v59  ;;  %v584_v60 = vld [vmem:[%s2489_s7 + $0x3c0] sm:$0xff]  ;;  %v586_v61 = vld [vmem:[%s2489_s7 + $0x3d0] sm:$0xff] }
  0x37   : > { %v588_v62 = vld [vmem:[%s2489_s7 + $0x3e0] sm:$0xff]  ;;  %585 = vst [vmem:[%s2494_s8 + $0x1e0] sm:$0xff] %v584_v60  ;;  %587 = vst [vmem:[%s2494_s8 + $0x1e8] sm:$0xff] %v586_v61  ;;  %v590_v63 = vld [vmem:[%s2489_s7 + $0x3f0] sm:$0xff] }
  0x38   : > { %589 = vst [vmem:[%s2494_s8 + $0x1f0] sm:$0xff] %v588_v62  ;;  %v592_v0 = vld [vmem:[%s2489_s7 + $0x400] sm:$0xff]  ;;  %v594_v1 = vld [vmem:[%s2489_s7 + $0x410] sm:$0xff]  ;;  %591 = vst [vmem:[%s2494_s8 + $0x1f8] sm:$0xff] %v590_v63 }
  0x39   : > { %593 = vst [vmem:[%s2494_s8 + $0x200] sm:$0xff] %v592_v0  ;;  %595 = vst [vmem:[%s2494_s8 + $0x208] sm:$0xff] %v594_v1  ;;  %v596_v2 = vld [vmem:[%s2489_s7 + $0x420] sm:$0xff]  ;;  %v598_v3 = vld [vmem:[%s2489_s7 + $0x430] sm:$0xff] }
  0x3a   : > { %v600_v4 = vld [vmem:[%s2489_s7 + $0x440] sm:$0xff]  ;;  %597 = vst [vmem:[%s2494_s8 + $0x210] sm:$0xff] %v596_v2  ;;  %599 = vst [vmem:[%s2494_s8 + $0x218] sm:$0xff] %v598_v3  ;;  %v602_v5 = vld [vmem:[%s2489_s7 + $0x450] sm:$0xff] }
  0x3b   : > { %601 = vst [vmem:[%s2494_s8 + $0x220] sm:$0xff] %v600_v4  ;;  %v604_v6 = vld [vmem:[%s2489_s7 + $0x460] sm:$0xff]  ;;  %v606_v7 = vld [vmem:[%s2489_s7 + $0x470] sm:$0xff]  ;;  %603 = vst [vmem:[%s2494_s8 + $0x228] sm:$0xff] %v602_v5 }
  0x3c   : > { %605 = vst [vmem:[%s2494_s8 + $0x230] sm:$0xff] %v604_v6  ;;  %607 = vst [vmem:[%s2494_s8 + $0x238] sm:$0xff] %v606_v7  ;;  %v608_v8 = vld [vmem:[%s2489_s7 + $0x480] sm:$0xff]  ;;  %v610_v9 = vld [vmem:[%s2489_s7 + $0x490] sm:$0xff] }
  0x3d   : > { %v612_v10 = vld [vmem:[%s2489_s7 + $0x4a0] sm:$0xff]  ;;  %609 = vst [vmem:[%s2494_s8 + $0x240] sm:$0xff] %v608_v8  ;;  %611 = vst [vmem:[%s2494_s8 + $0x248] sm:$0xff] %v610_v9  ;;  %v614_v11 = vld [vmem:[%s2489_s7 + $0x4b0] sm:$0xff] }
  0x3e   : > { %613 = vst [vmem:[%s2494_s8 + $0x250] sm:$0xff] %v612_v10  ;;  %v616_v12 = vld [vmem:[%s2489_s7 + $0x4c0] sm:$0xff]  ;;  %v618_v13 = vld [vmem:[%s2489_s7 + $0x4d0] sm:$0xff]  ;;  %615 = vst [vmem:[%s2494_s8 + $0x258] sm:$0xff] %v614_v11 }
  0x3f   : > { %617 = vst [vmem:[%s2494_s8 + $0x260] sm:$0xff] %v616_v12  ;;  %619 = vst [vmem:[%s2494_s8 + $0x268] sm:$0xff] %v618_v13  ;;  %v620_v14 = vld [vmem:[%s2489_s7 + $0x4e0] sm:$0xff]  ;;  %v622_v15 = vld [vmem:[%s2489_s7 + $0x4f0] sm:$0xff] }
  0x40   : > { %v624_v16 = vld [vmem:[%s2489_s7 + $0x500] sm:$0xff]  ;;  %621 = vst [vmem:[%s2494_s8 + $0x270] sm:$0xff] %v620_v14  ;;  %623 = vst [vmem:[%s2494_s8 + $0x278] sm:$0xff] %v622_v15  ;;  %v626_v17 = vld [vmem:[%s2489_s7 + $0x510] sm:$0xff] }
  0x41   : > { %625 = vst [vmem:[%s2494_s8 + $0x280] sm:$0xff] %v624_v16  ;;  %v628_v18 = vld [vmem:[%s2489_s7 + $0x520] sm:$0xff]  ;;  %v630_v19 = vld [vmem:[%s2489_s7 + $0x530] sm:$0xff]  ;;  %627 = vst [vmem:[%s2494_s8 + $0x288] sm:$0xff] %v626_v17 }
  0x42   : > { %629 = vst [vmem:[%s2494_s8 + $0x290] sm:$0xff] %v628_v18  ;;  %631 = vst [vmem:[%s2494_s8 + $0x298] sm:$0xff] %v630_v19  ;;  %v632_v20 = vld [vmem:[%s2489_s7 + $0x540] sm:$0xff]  ;;  %v634_v21 = vld [vmem:[%s2489_s7 + $0x550] sm:$0xff] }
  0x43   : > { %v636_v22 = vld [vmem:[%s2489_s7 + $0x560] sm:$0xff]  ;;  %633 = vst [vmem:[%s2494_s8 + $0x2a0] sm:$0xff] %v632_v20  ;;  %635 = vst [vmem:[%s2494_s8 + $0x2a8] sm:$0xff] %v634_v21  ;;  %v638_v23 = vld [vmem:[%s2489_s7 + $0x570] sm:$0xff] }
  0x44   : > { %637 = vst [vmem:[%s2494_s8 + $0x2b0] sm:$0xff] %v636_v22  ;;  %v640_v24 = vld [vmem:[%s2489_s7 + $0x580] sm:$0xff]  ;;  %v642_v25 = vld [vmem:[%s2489_s7 + $0x590] sm:$0xff]  ;;  %639 = vst [vmem:[%s2494_s8 + $0x2b8] sm:$0xff] %v638_v23 }
  0x45   : > { %641 = vst [vmem:[%s2494_s8 + $0x2c0] sm:$0xff] %v640_v24  ;;  %643 = vst [vmem:[%s2494_s8 + $0x2c8] sm:$0xff] %v642_v25  ;;  %v644_v26 = vld [vmem:[%s2489_s7 + $0x5a0] sm:$0xff]  ;;  %v646_v27 = vld [vmem:[%s2489_s7 + $0x5b0] sm:$0xff] }
  0x46   : > { %v648_v28 = vld [vmem:[%s2489_s7 + $0x5c0] sm:$0xff]  ;;  %645 = vst [vmem:[%s2494_s8 + $0x2d0] sm:$0xff] %v644_v26  ;;  %647 = vst [vmem:[%s2494_s8 + $0x2d8] sm:$0xff] %v646_v27  ;;  %v650_v29 = vld [vmem:[%s2489_s7 + $0x5d0] sm:$0xff] }
  0x47   : > { %649 = vst [vmem:[%s2494_s8 + $0x2e0] sm:$0xff] %v648_v28  ;;  %v652_v30 = vld [vmem:[%s2489_s7 + $0x5e0] sm:$0xff]  ;;  %v654_v31 = vld [vmem:[%s2489_s7 + $0x5f0] sm:$0xff]  ;;  %651 = vst [vmem:[%s2494_s8 + $0x2e8] sm:$0xff] %v650_v29 }
  0x48   : > { %653 = vst [vmem:[%s2494_s8 + $0x2f0] sm:$0xff] %v652_v30  ;;  %655 = vst [vmem:[%s2494_s8 + $0x2f8] sm:$0xff] %v654_v31  ;;  %v656_v32 = vld [vmem:[%s2489_s7 + $0x600] sm:$0xff]  ;;  %v658_v33 = vld [vmem:[%s2489_s7 + $0x610] sm:$0xff] }
  0x49   : > { %v660_v34 = vld [vmem:[%s2489_s7 + $0x620] sm:$0xff]  ;;  %657 = vst [vmem:[%s2494_s8 + $0x300] sm:$0xff] %v656_v32  ;;  %659 = vst [vmem:[%s2494_s8 + $0x308] sm:$0xff] %v658_v33  ;;  %v662_v35 = vld [vmem:[%s2489_s7 + $0x630] sm:$0xff] }
  0x4a   : > { %661 = vst [vmem:[%s2494_s8 + $0x310] sm:$0xff] %v660_v34  ;;  %v664_v36 = vld [vmem:[%s2489_s7 + $0x640] sm:$0xff]  ;;  %v666_v37 = vld [vmem:[%s2489_s7 + $0x650] sm:$0xff]  ;;  %663 = vst [vmem:[%s2494_s8 + $0x318] sm:$0xff] %v662_v35 }
  0x4b   : > { %665 = vst [vmem:[%s2494_s8 + $0x320] sm:$0xff] %v664_v36  ;;  %667 = vst [vmem:[%s2494_s8 + $0x328] sm:$0xff] %v666_v37  ;;  %v668_v38 = vld [vmem:[%s2489_s7 + $0x660] sm:$0xff]  ;;  %v670_v39 = vld [vmem:[%s2489_s7 + $0x670] sm:$0xff] }
  0x4c   : > { %v672_v40 = vld [vmem:[%s2489_s7 + $0x680] sm:$0xff]  ;;  %669 = vst [vmem:[%s2494_s8 + $0x330] sm:$0xff] %v668_v38  ;;  %671 = vst [vmem:[%s2494_s8 + $0x338] sm:$0xff] %v670_v39  ;;  %v674_v41 = vld [vmem:[%s2489_s7 + $0x690] sm:$0xff] }
  0x4d   : > { %673 = vst [vmem:[%s2494_s8 + $0x340] sm:$0xff] %v672_v40  ;;  %v676_v42 = vld [vmem:[%s2489_s7 + $0x6a0] sm:$0xff]  ;;  %v678_v43 = vld [vmem:[%s2489_s7 + $0x6b0] sm:$0xff]  ;;  %675 = vst [vmem:[%s2494_s8 + $0x348] sm:$0xff] %v674_v41 }
  0x4e   : > { %677 = vst [vmem:[%s2494_s8 + $0x350] sm:$0xff] %v676_v42  ;;  %679 = vst [vmem:[%s2494_s8 + $0x358] sm:$0xff] %v678_v43  ;;  %v680_v44 = vld [vmem:[%s2489_s7 + $0x6c0] sm:$0xff]  ;;  %v682_v45 = vld [vmem:[%s2489_s7 + $0x6d0] sm:$0xff] }
  0x4f   : > { %v684_v46 = vld [vmem:[%s2489_s7 + $0x6e0] sm:$0xff]  ;;  %681 = vst [vmem:[%s2494_s8 + $0x360] sm:$0xff] %v680_v44  ;;  %683 = vst [vmem:[%s2494_s8 + $0x368] sm:$0xff] %v682_v45  ;;  %v686_v47 = vld [vmem:[%s2489_s7 + $0x6f0] sm:$0xff] }
  0x50   : > { %685 = vst [vmem:[%s2494_s8 + $0x370] sm:$0xff] %v684_v46  ;;  %v688_v48 = vld [vmem:[%s2489_s7 + $0x700] sm:$0xff]  ;;  %v690_v49 = vld [vmem:[%s2489_s7 + $0x710] sm:$0xff]  ;;  %687 = vst [vmem:[%s2494_s8 + $0x378] sm:$0xff] %v686_v47 }
  0x51   : > { %689 = vst [vmem:[%s2494_s8 + $0x380] sm:$0xff] %v688_v48  ;;  %691 = vst [vmem:[%s2494_s8 + $0x388] sm:$0xff] %v690_v49  ;;  %v692_v50 = vld [vmem:[%s2489_s7 + $0x720] sm:$0xff]  ;;  %v694_v51 = vld [vmem:[%s2489_s7 + $0x730] sm:$0xff] }
  0x52   : > { %v696_v52 = vld [vmem:[%s2489_s7 + $0x740] sm:$0xff]  ;;  %693 = vst [vmem:[%s2494_s8 + $0x390] sm:$0xff] %v692_v50  ;;  %695 = vst [vmem:[%s2494_s8 + $0x398] sm:$0xff] %v694_v51  ;;  %v698_v53 = vld [vmem:[%s2489_s7 + $0x750] sm:$0xff] }
  0x53   : > { %697 = vst [vmem:[%s2494_s8 + $0x3a0] sm:$0xff] %v696_v52  ;;  %v700_v54 = vld [vmem:[%s2489_s7 + $0x760] sm:$0xff]  ;;  %v702_v55 = vld [vmem:[%s2489_s7 + $0x770] sm:$0xff]  ;;  %699 = vst [vmem:[%s2494_s8 + $0x3a8] sm:$0xff] %v698_v53 }
  0x54   : > { %701 = vst [vmem:[%s2494_s8 + $0x3b0] sm:$0xff] %v700_v54  ;;  %703 = vst [vmem:[%s2494_s8 + $0x3b8] sm:$0xff] %v702_v55  ;;  %v704_v56 = vld [vmem:[%s2489_s7 + $0x780] sm:$0xff]  ;;  %v706_v57 = vld [vmem:[%s2489_s7 + $0x790] sm:$0xff] }
  0x55   : > { %v708_v58 = vld [vmem:[%s2489_s7 + $0x7a0] sm:$0xff]  ;;  %705 = vst [vmem:[%s2494_s8 + $0x3c0] sm:$0xff] %v704_v56  ;;  %707 = vst [vmem:[%s2494_s8 + $0x3c8] sm:$0xff] %v706_v57  ;;  %v710_v59 = vld [vmem:[%s2489_s7 + $0x7b0] sm:$0xff] }
  0x56   : > { %709 = vst [vmem:[%s2494_s8 + $0x3d0] sm:$0xff] %v708_v58  ;;  %v712_v60 = vld [vmem:[%s2489_s7 + $0x7c0] sm:$0xff]  ;;  %v714_v61 = vld [vmem:[%s2489_s7 + $0x7d0] sm:$0xff]  ;;  %711 = vst [vmem:[%s2494_s8 + $0x3d8] sm:$0xff] %v710_v59 }
  0x57   : > { %713 = vst [vmem:[%s2494_s8 + $0x3e0] sm:$0xff] %v712_v60  ;;  %715 = vst [vmem:[%s2494_s8 + $0x3e8] sm:$0xff] %v714_v61  ;;  %v716_v62 = vld [vmem:[%s2489_s7 + $0x7e0] sm:$0xff]  ;;  %v718_v63 = vld [vmem:[%s2489_s7 + $0x7f0] sm:$0xff] }
  0x58   : > { %717 = vst [vmem:[%s2494_s8 + $0x3f0] sm:$0xff] %v716_v62  ;;  %719 = vst [vmem:[%s2494_s8 + $0x3f8] sm:$0xff] %v718_v63 }
  0x59 PF: > { %p1945_p7 = scmp.ge.s32.totalorder %s2406_s18, 1  ;;  %p732_p8 = scmp.lt.s32.totalorder %s2406_s18, 19 }
  0x5b   : > { %p733_p9 = pnand %p1945_p7, %p732_p8 }
  0x5c   : > { %s739_s9 = sand.u32 (!%p733_p9), 1, %s2382_s12   ;;  %s1947_s10 = sshll.u32 (!%p733_p9), %s2390_s14, 3 }
  0x5d   : > { %736 = sbr.rel (%p733_p9) target bundleno = 473 (0x1d9), region = 66  ;;  %s1946_s11 = sshll.u32 (!%p733_p9), %s739_s9, 10 }
  0x5e   : > { %p782_p10 = scmp.lt.s32.totalorder (!%p733_p9), %s1947_s10, 71  ;;  %s1949_s21 = sshll.u32 (!%p733_p9), %s2394_s15, 1 }
  0x5f   : > { %p792_p11 = scmp.lt.s32.totalorder (!%p733_p9), %s1949_s21, 3  ;;  %s2771_s5 = scalar_lea.vmem (!%p733_p9), [#allocation3], %s1946_s11 }
  0x60   : > { %p1952_p12 = scmp.ne.s32.totalorder (!%p733_p9), %s2390_s14, 0 }
  0x64   : > { %s2963_s10 = smov (!%p782_p10, %s1947_s10), 71  ;;  %s2965_s21 = smov (!%p792_p11, %s1949_s21), 3 }
  0x65   : > { %s1948_s22 = sshll.u32 %s2963_s10, 2  ;;  %s794_s12 = scalar_lea.vmem %s2948_s2, %s2965_s21  ;;  %v2408_v0 = vmov (!%p1952_p12), 0.0  }
  0x66   : > { %s2757_s26 = scalar_lea.vmem %s2946_s0, %s1948_s22  ;;  %s1951_s29 = sshll.u32 %s2965_s21, 2  ;;  %810 = vst [vmem:[#allocation2] sm:$0xff] (!%p1952_p12), %v2408_v0  ;;  %811 = vst [vmem:[#allocation2 + $0x8] sm:$0xff] (!%p1952_p12), %v2408_v0 }
  0x67   : > { %s2769_s15 = scalar_lea.vmem %s2949_s3, %s1951_s29  ;;  %809 = sbr.rel (%p1952_p12) target bundleno = 110 (0x6e), region = 74 }
  0x6e PF: > { %v2152_v1 = vld [vmem:[%s2771_s5 + $0x4] ss:$8 sps:$4 sm:$0xff]   ;;  %v2156_v3 = vld [vmem:[%s2771_s5] ss:$8 sps:$4 sm:$0xff]   ;;  %v2158_v5 = vld [vmem:[%s2771_s5 + $0x14] ss:$8 sps:$4 sm:$0xff]  }
  0x6f   : > { %v2154_v2 = vld [vmem:[%s2771_s5 + $0x104] ss:$8 sps:$4 sm:$0xff]   ;;  %1614 = vmatprep.subr.bf16.mxu0 %v2152_v1  ;;  %v2157_v4 = vld [vmem:[%s2771_s5 + $0x100] ss:$8 sps:$4 sm:$0xff]   ;;  %v2160_v6 = vld [vmem:[%s2771_s5 + $0x114] ss:$8 sps:$4 sm:$0xff]  }
  0x70   : > { %1655 = vmatprep.subr.bf16.mxu1 %v2154_v2  ;;  %1615 = vmatpush1.bf16.msra.mxu0 %v2156_v3  ;;  %v2162_v7 = vld [vmem:[%s2771_s5 + $0x10] ss:$8 sps:$4 sm:$0xff]   ;;  %v2164_v9 = vld [vmem:[%s2771_s5 + $0x24] ss:$8 sps:$4 sm:$0xff]   ;;  %v2168_v11 = vld [vmem:[%s2771_s5 + $0x20] ss:$8 sps:$4 sm:$0xff]  }
  0x71   : > { %1656 = vmatpush1.bf16.msra.mxu1 %v2157_v4  ;;  %1616 = vmatprep.subr.bf16.mxu0 %v2158_v5  ;;  %v2163_v8 = vld [vmem:[%s2771_s5 + $0x110] ss:$8 sps:$4 sm:$0xff]   ;;  %v2166_v10 = vld [vmem:[%s2771_s5 + $0x124] ss:$8 sps:$4 sm:$0xff]   ;;  %v2169_v12 = vld [vmem:[%s2771_s5 + $0x120] ss:$8 sps:$4 sm:$0xff]  }
  0x72   : > { %1657 = vmatprep.subr.bf16.mxu1 %v2160_v6  ;;  %v2170_v13 = vld [vmem:[%s2771_s5 + $0x34] ss:$8 sps:$4 sm:$0xff]   ;;  %v2174_v15 = vld [vmem:[%s2771_s5 + $0x30] ss:$8 sps:$4 sm:$0xff]   ;;  %v2176_v17 = vld [vmem:[%s2771_s5 + $0x44] ss:$8 sps:$4 sm:$0xff]  }
  0x73   : > { %v2172_v14 = vld [vmem:[%s2771_s5 + $0x134] ss:$8 sps:$4 sm:$0xff]   ;;  %v2175_v16 = vld [vmem:[%s2771_s5 + $0x130] ss:$8 sps:$4 sm:$0xff]   ;;  %v2178_v18 = vld [vmem:[%s2771_s5 + $0x144] ss:$8 sps:$4 sm:$0xff]  }
  0x74   : > { %1617 = vmatpush1.bf16.msra.mxu0 %v2162_v7  ;;  %v2180_v19 = vld [vmem:[%s2771_s5 + $0x40] ss:$8 sps:$4 sm:$0xff]   ;;  %v2182_v21 = vld [vmem:[%s2771_s5 + $0x54] ss:$8 sps:$4 sm:$0xff]   ;;  %v2186_v23 = vld [vmem:[%s2771_s5 + $0x50] ss:$8 sps:$4 sm:$0xff]  }
  0x75   : > { %1658 = vmatpush1.bf16.msra.mxu1 %v2163_v8  ;;  %1618 = vmatprep.subr.bf16.mxu0 %v2164_v9  ;;  %v2181_v20 = vld [vmem:[%s2771_s5 + $0x140] ss:$8 sps:$4 sm:$0xff]   ;;  %v2184_v22 = vld [vmem:[%s2771_s5 + $0x154] ss:$8 sps:$4 sm:$0xff]   ;;  %v2187_v24 = vld [vmem:[%s2771_s5 + $0x150] ss:$8 sps:$4 sm:$0xff]  }
  0x76   : > { %1659 = vmatprep.subr.bf16.mxu1 %v2166_v10  ;;  %v2188_v25 = vld [vmem:[%s2771_s5 + $0x64] ss:$8 sps:$4 sm:$0xff]   ;;  %v2192_v27 = vld [vmem:[%s2771_s5 + $0x60] ss:$8 sps:$4 sm:$0xff]   ;;  %v2194_v29 = vld [vmem:[%s2771_s5 + $0x74] ss:$8 sps:$4 sm:$0xff]  }
  0x77   : > { %v2190_v26 = vld [vmem:[%s2771_s5 + $0x164] ss:$8 sps:$4 sm:$0xff]   ;;  %v2193_v28 = vld [vmem:[%s2771_s5 + $0x160] ss:$8 sps:$4 sm:$0xff]   ;;  %v2196_v30 = vld [vmem:[%s2771_s5 + $0x174] ss:$8 sps:$4 sm:$0xff]  }
  0x78   : > { %1619 = vmatpush1.bf16.msra.mxu0 %v2168_v11  ;;  %v2198_v31 = vld [vmem:[%s2771_s5 + $0x70] ss:$8 sps:$4 sm:$0xff]   ;;  %v2200_v33 = vld [vmem:[%s2771_s5 + $0x84] ss:$8 sps:$4 sm:$0xff]   ;;  %v2204_v35 = vld [vmem:[%s2771_s5 + $0x80] ss:$8 sps:$4 sm:$0xff]  }
  0x79   : > { %1660 = vmatpush1.bf16.msra.mxu1 %v2169_v12  ;;  %1620 = vmatprep.subr.bf16.mxu0 %v2170_v13  ;;  %v2199_v32 = vld [vmem:[%s2771_s5 + $0x170] ss:$8 sps:$4 sm:$0xff]   ;;  %v2202_v34 = vld [vmem:[%s2771_s5 + $0x184] ss:$8 sps:$4 sm:$0xff]   ;;  %v2205_v36 = vld [vmem:[%s2771_s5 + $0x180] ss:$8 sps:$4 sm:$0xff]  }
  0x7a   : > { %1661 = vmatprep.subr.bf16.mxu1 %v2172_v14  ;;  %v2206_v37 = vld [vmem:[%s2771_s5 + $0x94] ss:$8 sps:$4 sm:$0xff]   ;;  %v2210_v39 = vld [vmem:[%s2771_s5 + $0x90] ss:$8 sps:$4 sm:$0xff]   ;;  %v2212_v41 = vld [vmem:[%s2771_s5 + $0xa4] ss:$8 sps:$4 sm:$0xff]  }
  0x7b   : > { %v2208_v38 = vld [vmem:[%s2771_s5 + $0x194] ss:$8 sps:$4 sm:$0xff]   ;;  %v2211_v40 = vld [vmem:[%s2771_s5 + $0x190] ss:$8 sps:$4 sm:$0xff]   ;;  %v2214_v42 = vld [vmem:[%s2771_s5 + $0x1a4] ss:$8 sps:$4 sm:$0xff]  }
  0x7c   : > { %1621 = vmatpush1.bf16.msra.mxu0 %v2174_v15  ;;  %v2216_v43 = vld [vmem:[%s2771_s5 + $0xa0] ss:$8 sps:$4 sm:$0xff]   ;;  %v2218_v45 = vld [vmem:[%s2771_s5 + $0xb4] ss:$8 sps:$4 sm:$0xff]   ;;  %v2222_v50 = vld [vmem:[%s2771_s5 + $0xb0] ss:$8 sps:$4 sm:$0xff]  }
  0x7d   : > { %1662 = vmatpush1.bf16.msra.mxu1 %v2175_v16  ;;  %1622 = vmatprep.subr.bf16.mxu0 %v2176_v17  ;;  %v2217_v44 = vld [vmem:[%s2771_s5 + $0x1a0] ss:$8 sps:$4 sm:$0xff]   ;;  %v2220_v46 = vld [vmem:[%s2771_s5 + $0x1b4] ss:$8 sps:$4 sm:$0xff]   ;;  %v2223_v51 = vld [vmem:[%s2771_s5 + $0x1b0] ss:$8 sps:$4 sm:$0xff]  }
  0x7e   : > { %1663 = vmatprep.subr.bf16.mxu1 %v2178_v18  ;;  %v814_v47 = vld [vmem:[%s2757_s26] sm:$0xff]  ;;  %v815_v49 = vld [vmem:[%s2757_s26 + $0x8] sm:$0xff]  ;;  %v2224_v53 = vld [vmem:[%s2771_s5 + $0xc4] ss:$8 sps:$4 sm:$0xff]   ;;  %p2089_p13 = scmp.ne.s32.totalorder %s2390_s14, 8 }
  0x7f   : > { %v1954_v48 = vcombine.high %v814_v47, %v814_v47  ;;  %v1956_v52 = vcombine.high %v815_v49, %v815_v49  ;;  %v2226_v54 = vld [vmem:[%s2771_s5 + $0x1c4] ss:$8 sps:$4 sm:$0xff]   ;;  %v2228_v55 = vld [vmem:[%s2771_s5 + $0xc0] ss:$8 sps:$4 sm:$0xff]   ;;  %v2230_v57 = vld [vmem:[%s2771_s5 + $0xd4] ss:$8 sps:$4 sm:$0xff]   ;;  %v1953_v7 = vcombine.low %v814_v47, %v814_v47  ;;  %v1955_v8 = vcombine.low %v815_v49, %v815_v49 }
  0x80   : > { %1623 = vmatpush1.bf16.msra.mxu0 %v2180_v19  ;;  %v2229_v56 = vld [vmem:[%s2771_s5 + $0x1c0] ss:$8 sps:$4 sm:$0xff]   ;;  %v2232_v58 = vld [vmem:[%s2771_s5 + $0x1d4] ss:$8 sps:$4 sm:$0xff]   ;;  %v2234_v59 = vld [vmem:[%s2771_s5 + $0xd0] ss:$8 sps:$4 sm:$0xff]  }
  0x81   : > { %1664 = vmatpush1.bf16.msra.mxu1 %v2181_v20  ;;  %1624 = vmatprep.subr.bf16.mxu0 %v2182_v21  ;;  %v2235_v60 = vld [vmem:[%s2771_s5 + $0x1d0] ss:$8 sps:$4 sm:$0xff]   ;;  %v2236_v61 = vld [vmem:[%s2771_s5 + $0xe4] ss:$8 sps:$4 sm:$0xff]   ;;  %v2240_v63 = vld [vmem:[%s2771_s5 + $0xe0] ss:$8 sps:$4 sm:$0xff]  }
  0x82   : > { %1665 = vmatprep.subr.bf16.mxu1 %v2184_v22  ;;  %1646 = vmatprep.mubr.bf16.mxu0 %v1954_v48  ;;  %v2238_v62 = vld [vmem:[%s2771_s5 + $0x1e4] ss:$8 sps:$4 sm:$0xff]   ;;  %v2241_v0 = vld [vmem:[%s2771_s5 + $0x1e0] ss:$8 sps:$4 sm:$0xff]   ;;  %v2242_v1 = vld [vmem:[%s2771_s5 + $0xf4] ss:$8 sps:$4 sm:$0xff]  }
  0x83   : > { %1687 = vmatprep.mubr.bf16.mxu1 %v1956_v52  ;;  %v2244_v2 = vld [vmem:[%s2771_s5 + $0x1f4] ss:$8 sps:$4 sm:$0xff]   ;;  %v2246_v3 = vld [vmem:[%s2771_s5 + $0xf0] ss:$8 sps:$4 sm:$0xff]   ;;  %v2254_v5 = vld [vmem:[%s2771_s5 + $0x204] ss:$8 sps:$4 sm:$0xff]  }
  0x84   : > { %1625 = vmatpush1.bf16.msra.mxu0 %v2186_v23  ;;  %v2247_v4 = vld [vmem:[%s2771_s5 + $0x1f0] ss:$8 sps:$4 sm:$0xff]   ;;  %v2257_v6 = vld [vmem:[%s2771_s5 + $0x304] ss:$8 sps:$4 sm:$0xff]   ;;  %v2252_v9 = vld [vmem:[%s2771_s5 + $0x200] ss:$8 sps:$4 sm:$0xff]  }
  0x85   : > { %1666 = vmatpush1.bf16.msra.mxu1 %v2187_v24  ;;  %1626 = vmatprep.subr.bf16.mxu0 %v2188_v25  ;;  %v2255_v10 = vld [vmem:[%s2771_s5 + $0x300] ss:$8 sps:$4 sm:$0xff]   ;;  %v2260_v11 = vld [vmem:[%s2771_s5 + $0x214] ss:$8 sps:$4 sm:$0xff]   ;;  %v2258_v13 = vld [vmem:[%s2771_s5 + $0x210] ss:$8 sps:$4 sm:$0xff]  }
  0x86   : > { %1667 = vmatprep.subr.bf16.mxu1 %v2190_v26  ;;  %v2263_v12 = vld [vmem:[%s2771_s5 + $0x314] ss:$8 sps:$4 sm:$0xff]   ;;  %v2261_v14 = vld [vmem:[%s2771_s5 + $0x310] ss:$8 sps:$4 sm:$0xff]   ;;  %v2266_v15 = vld [vmem:[%s2771_s5 + $0x224] ss:$8 sps:$4 sm:$0xff]  }
  0x87   : > { %v2269_v16 = vld [vmem:[%s2771_s5 + $0x324] ss:$8 sps:$4 sm:$0xff]   ;;  %v2264_v17 = vld [vmem:[%s2771_s5 + $0x220] ss:$8 sps:$4 sm:$0xff]   ;;  %v2272_v19 = vld [vmem:[%s2771_s5 + $0x234] ss:$8 sps:$4 sm:$0xff]  }
  0x88   : > { %1627 = vmatpush1.bf16.msra.mxu0 %v2192_v27  ;;  %v2267_v18 = vld [vmem:[%s2771_s5 + $0x320] ss:$8 sps:$4 sm:$0xff]   ;;  %v2275_v20 = vld [vmem:[%s2771_s5 + $0x334] ss:$8 sps:$4 sm:$0xff]   ;;  %v2270_v21 = vld [vmem:[%s2771_s5 + $0x230] ss:$8 sps:$4 sm:$0xff]  }
  0x89   : > { %1668 = vmatpush1.bf16.msra.mxu1 %v2193_v28  ;;  %1628 = vmatprep.subr.bf16.mxu0 %v2194_v29  ;;  %v2273_v22 = vld [vmem:[%s2771_s5 + $0x330] ss:$8 sps:$4 sm:$0xff]   ;;  %v2278_v23 = vld [vmem:[%s2771_s5 + $0x244] ss:$8 sps:$4 sm:$0xff]   ;;  %v2276_v25 = vld [vmem:[%s2771_s5 + $0x240] ss:$8 sps:$4 sm:$0xff]  }
  0x8a   : > { %1669 = vmatprep.subr.bf16.mxu1 %v2196_v30  ;;  %v2281_v24 = vld [vmem:[%s2771_s5 + $0x344] ss:$8 sps:$4 sm:$0xff]   ;;  %v2279_v26 = vld [vmem:[%s2771_s5 + $0x340] ss:$8 sps:$4 sm:$0xff]   ;;  %v2284_v27 = vld [vmem:[%s2771_s5 + $0x254] ss:$8 sps:$4 sm:$0xff]  }
  0x8b   : > { %v2287_v28 = vld [vmem:[%s2771_s5 + $0x354] ss:$8 sps:$4 sm:$0xff]   ;;  %v2282_v29 = vld [vmem:[%s2771_s5 + $0x250] ss:$8 sps:$4 sm:$0xff]   ;;  %v2317_v52 = vld [vmem:[%s2771_s5 + $0x3a4] ss:$8 sps:$4 sm:$0xff]  }
  0x8c   : > { %1629 = vmatpush1.bf16.msra.mxu0 %v2198_v31  ;;  %v2285_v30 = vld [vmem:[%s2771_s5 + $0x350] ss:$8 sps:$4 sm:$0xff]   ;;  %v2290_v31 = vld [vmem:[%s2771_s5 + $0x264] ss:$8 sps:$4 sm:$0xff]   ;;  %v2308_v47 = vld [vmem:[%s2771_s5 + $0x294] ss:$8 sps:$4 sm:$0xff]  }
  0x8d   : > { %1670 = vmatpush1.bf16.msra.mxu1 %v2199_v32  ;;  %1630 = vmatprep.subr.bf16.mxu0 %v2200_v33  ;;  %v2293_v32 = vld [vmem:[%s2771_s5 + $0x364] ss:$8 sps:$4 sm:$0xff]   ;;  %v2311_v48 = vld [vmem:[%s2771_s5 + $0x394] ss:$8 sps:$4 sm:$0xff]   ;;  %v2306_v49 = vld [vmem:[%s2771_s5 + $0x290] ss:$8 sps:$4 sm:$0xff]  }
  0x8e   : > { %1671 = vmatprep.subr.bf16.mxu1 %v2202_v34  ;;  %v2867_v33 = vld [vmem:[%s2757_s26 + $0x10] sm:$0xff]  ;;  %v2870_v34 = vld [vmem:[%s2757_s26 + $0x18] sm:$0xff] }
  0x90   : > { %1631 = vmatpush1.bf16.msra.mxu0 %v2204_v35  ;;  %v1958_v35 = vcombine.high %v2867_v33, %v2867_v33 }
  0x91   : > { %1672 = vmatpush1.bf16.msra.mxu1 %v2205_v36  ;;  %1632 = vmatprep.subr.bf16.mxu0 %v2206_v37  ;;  %v1960_v36 = vcombine.high %v2870_v34, %v2870_v34  ;;  %v2288_v37 = vld [vmem:[%s2771_s5 + $0x260] ss:$8 sps:$4 sm:$0xff]  }
  0x92   : > { %1673 = vmatprep.subr.bf16.mxu1 %v2208_v38  ;;  %v2291_v38 = vld [vmem:[%s2771_s5 + $0x360] ss:$8 sps:$4 sm:$0xff]  }
  0x94   : > { %1633 = vmatpush1.bf16.msra.mxu0 %v2210_v39  ;;  %v2296_v39 = vld [vmem:[%s2771_s5 + $0x274] ss:$8 sps:$4 sm:$0xff]  }
  0x95   : > { %1674 = vmatpush1.bf16.msra.mxu1 %v2211_v40  ;;  %1634 = vmatprep.subr.bf16.mxu0 %v2212_v41  ;;  %v2299_v40 = vld [vmem:[%s2771_s5 + $0x374] ss:$8 sps:$4 sm:$0xff]   ;;  %v2294_v41 = vld [vmem:[%s2771_s5 + $0x270] ss:$8 sps:$4 sm:$0xff]  }
  0x96   : > { %1675 = vmatprep.subr.bf16.mxu1 %v2214_v42  ;;  %v2297_v42 = vld [vmem:[%s2771_s5 + $0x370] ss:$8 sps:$4 sm:$0xff]  }
  0x98   : > { %1635 = vmatpush1.bf16.msra.mxu0 %v2216_v43  ;;  %v2302_v43 = vld [vmem:[%s2771_s5 + $0x284] ss:$8 sps:$4 sm:$0xff]  }
  0x99   : > { %1676 = vmatpush1.bf16.msra.mxu1 %v2217_v44  ;;  %1636 = vmatprep.subr.bf16.mxu0 %v2218_v45  ;;  %v2305_v44 = vld [vmem:[%s2771_s5 + $0x384] ss:$8 sps:$4 sm:$0xff]   ;;  %v2300_v45 = vld [vmem:[%s2771_s5 + $0x280] ss:$8 sps:$4 sm:$0xff]  }
  0x9a   : > { %1677 = vmatprep.subr.bf16.mxu1 %v2220_v46  ;;  %v2303_v46 = vld [vmem:[%s2771_s5 + $0x380] ss:$8 sps:$4 sm:$0xff]  }
  0x9c   : > { %1637 = vmatpush1.bf16.msra.mxu0 %v2222_v50  ;;  %v2309_v50 = vld [vmem:[%s2771_s5 + $0x390] ss:$8 sps:$4 sm:$0xff]  }
  0x9d   : > { %1678 = vmatpush1.bf16.msra.mxu1 %v2223_v51  ;;  %1638 = vmatprep.subr.bf16.mxu0 %v2224_v53  ;;  %v2314_v51 = vld [vmem:[%s2771_s5 + $0x2a4] ss:$8 sps:$4 sm:$0xff]   ;;  %v2312_v53 = vld [vmem:[%s2771_s5 + $0x2a0] ss:$8 sps:$4 sm:$0xff]  }
  0x9e   : > { %1679 = vmatprep.subr.bf16.mxu1 %v2226_v54  ;;  %v2315_v54 = vld [vmem:[%s2771_s5 + $0x3a0] ss:$8 sps:$4 sm:$0xff]  }
  0xa0   : > { %1639 = vmatpush1.bf16.msra.mxu0 %v2228_v55  ;;  %v2320_v55 = vld [vmem:[%s2771_s5 + $0x2b4] ss:$8 sps:$4 sm:$0xff]  }
  0xa1   : > { %1680 = vmatpush1.bf16.msra.mxu1 %v2229_v56  ;;  %1640 = vmatprep.subr.bf16.mxu0 %v2230_v57  ;;  %v2323_v56 = vld [vmem:[%s2771_s5 + $0x3b4] ss:$8 sps:$4 sm:$0xff]   ;;  %v2318_v57 = vld [vmem:[%s2771_s5 + $0x2b0] ss:$8 sps:$4 sm:$0xff]  }
  0xa2   : > { %1681 = vmatprep.subr.bf16.mxu1 %v2232_v58  ;;  %v2321_v58 = vld [vmem:[%s2771_s5 + $0x3b0] ss:$8 sps:$4 sm:$0xff]  }
  0xa4   : > { %1641 = vmatpush1.bf16.msra.mxu0 %v2234_v59  ;;  %v2326_v59 = vld [vmem:[%s2771_s5 + $0x2c4] ss:$8 sps:$4 sm:$0xff]  }
  0xa5   : > { %1682 = vmatpush1.bf16.msra.mxu1 %v2235_v60  ;;  %1642 = vmatprep.subr.bf16.mxu0 %v2236_v61  ;;  %v2329_v60 = vld [vmem:[%s2771_s5 + $0x3c4] ss:$8 sps:$4 sm:$0xff]   ;;  %v2324_v61 = vld [vmem:[%s2771_s5 + $0x2c0] ss:$8 sps:$4 sm:$0xff]  }
  0xa6   : > { %1683 = vmatprep.subr.bf16.mxu1 %v2238_v62  ;;  %v2327_v62 = vld [vmem:[%s2771_s5 + $0x3c0] ss:$8 sps:$4 sm:$0xff]  }
  0xa8   : > { %1643 = vmatpush1.bf16.msra.mxu0 %v2240_v63  ;;  %v2332_v63 = vld [vmem:[%s2771_s5 + $0x2d4] ss:$8 sps:$4 sm:$0xff]  }
  0xa9   : > { %1684 = vmatpush1.bf16.msra.mxu1 %v2241_v0  ;;  %1644 = vmatprep.subr.bf16.mxu0 %v2242_v1  ;;  %v2335_v0 = vld [vmem:[%s2771_s5 + $0x3d4] ss:$8 sps:$4 sm:$0xff]   ;;  %v2330_v1 = vld [vmem:[%s2771_s5 + $0x2d0] ss:$8 sps:$4 sm:$0xff]  }
  0xaa   : > { %1685 = vmatprep.subr.bf16.mxu1 %v2244_v2  ;;  %v2333_v2 = vld [vmem:[%s2771_s5 + $0x3d0] ss:$8 sps:$4 sm:$0xff]  }
  0xac   : > { %1645 = vmatpush1.bf16.msra.mxu0 %v2246_v3  ;;  %v2338_v3 = vld [vmem:[%s2771_s5 + $0x2e4] ss:$8 sps:$4 sm:$0xff]  }
  0xad   : > { %1686 = vmatpush1.bf16.msra.mxu1 %v2247_v4  ;;  %1696 = vmatprep.subr.bf16.mxu0 %v2254_v5  ;;  %v2341_v4 = vld [vmem:[%s2771_s5 + $0x3e4] ss:$8 sps:$4 sm:$0xff]   ;;  %v2336_v5 = vld [vmem:[%s2771_s5 + $0x2e0] ss:$8 sps:$4 sm:$0xff]  }
  0xae   : > { %1737 = vmatprep.subr.bf16.mxu1 %v2257_v6  ;;  %v2339_v6 = vld [vmem:[%s2771_s5 + $0x3e0] ss:$8 sps:$4 sm:$0xff]  }
  0xaf   : > { %1647 = vmatmul.mubr.bf16.vlgmr.msra.gmra.mrb[0].mxu0 %v1953_v7  ;;  %v2344_v7 = vld [vmem:[%s2771_s5 + $0x2f4] ss:$8 sps:$4 sm:$0xff]  }
  0xb0   : > { %1688 = vmatmul.mubr.bf16.vlgmr.msra.gmra.mrb[0].mxu1 %v1955_v8  ;;  %1697 = vmatpush1.bf16.msra.mxu0 %v2252_v9  ;;  %v2347_v8 = vld [vmem:[%s2771_s5 + $0x3f4] ss:$8 sps:$4 sm:$0xff]   ;;  %v2342_v9 = vld [vmem:[%s2771_s5 + $0x2f0] ss:$8 sps:$4 sm:$0xff]  }
  0xb1   : > { %1738 = vmatpush1.bf16.msra.mxu1 %v2255_v10  ;;  %1698 = vmatprep.subr.bf16.mxu0 %v2260_v11  ;;  %v2345_v10 = vld [vmem:[%s2771_s5 + $0x3f0] ss:$8 sps:$4 sm:$0xff]   ;;  %v1957_v11 = vcombine.low %v2867_v33, %v2867_v33 }
  0xb2   : > { %1739 = vmatprep.subr.bf16.mxu1 %v2263_v12  ;;  %1728 = vmatprep.mubr.bf16.mxu0 %v1958_v35  ;;  %v1959_v12 = vcombine.low %v2870_v34, %v2870_v34  ;;  %v813_v33 = vld [vmem:[#allocation2 + $0x8] sm:$0xff] }
  0xb3   : > { %1769 = vmatprep.mubr.bf16.mxu1 %v1960_v36 }
  0xb4   : > { %1699 = vmatpush1.bf16.msra.mxu0 %v2258_v13 }
  0xb5   : > { %1740 = vmatpush1.bf16.msra.mxu1 %v2261_v14  ;;  %1700 = vmatprep.subr.bf16.mxu0 %v2266_v15 }
  0xb6   : > { %1741 = vmatprep.subr.bf16.mxu1 %v2269_v16 }
  0xb8   : > { %1701 = vmatpush1.bf16.msra.mxu0 %v2264_v17 }
  0xb9   : > { %1742 = vmatpush1.bf16.msra.mxu1 %v2267_v18  ;;  %1702 = vmatprep.subr.bf16.mxu0 %v2272_v19 }
  0xba   : > { %1743 = vmatprep.subr.bf16.mxu1 %v2275_v20 }
  0xbc   : > { %1703 = vmatpush1.bf16.msra.mxu0 %v2270_v21 }
  0xbd   : > { %1744 = vmatpush1.bf16.msra.mxu1 %v2273_v22  ;;  %1704 = vmatprep.subr.bf16.mxu0 %v2278_v23 }
  0xbe   : > { %1745 = vmatprep.subr.bf16.mxu1 %v2281_v24 }
  0xc0   : > { %1705 = vmatpush1.bf16.msra.mxu0 %v2276_v25 }
  0xc1   : > { %1746 = vmatpush1.bf16.msra.mxu1 %v2279_v26  ;;  %1706 = vmatprep.subr.bf16.mxu0 %v2284_v27 }
  0xc2   : > { %1747 = vmatprep.subr.bf16.mxu1 %v2287_v28  ;;  %v812_v28 = vld [vmem:[#allocation2] sm:$0xff] }
  0xc4   : > { %1707 = vmatpush1.bf16.msra.mxu0 %v2282_v29 }
  0xc5   : > { %1748 = vmatpush1.bf16.msra.mxu1 %v2285_v30  ;;  %1708 = vmatprep.subr.bf16.mxu0 %v2290_v31 }
  0xc6   : > { %1749 = vmatprep.subr.bf16.mxu1 %v2293_v32 }
  0xc8   : > { %1709 = vmatpush1.bf16.msra.mxu0 %v2288_v37 }
  0xc9   : > { %1750 = vmatpush1.bf16.msra.mxu1 %v2291_v38  ;;  %1710 = vmatprep.subr.bf16.mxu0 %v2296_v39  ;;  %v1790_v39 = vlaneseq (!%p2089_p13) }
  0xca   : > { %1751 = vmatprep.subr.bf16.mxu1 %v2299_v40 }
  0xcb   : > { %v1791_v40 = vshrl.u32 (!%p2089_p13), %v1790_v39, 7 }
  0xcc   : > { %1711 = vmatpush1.bf16.msra.mxu0 %v2294_v41  ;;  %v1788_v41 = vld [vmem:[%s794_s12] sm:$0x3] (!%p2089_p13) }
  0xcd   : > { %1752 = vmatpush1.bf16.msra.mxu1 %v2297_v42  ;;  %1712 = vmatprep.subr.bf16.mxu0 %v2302_v43  ;;  %v1792_v42 = vsub.s32 (!%p2089_p13), 0, %v1791_v40  ;;  %v1796_v43 = vsub.s32 (!%p2089_p13), 1, %v1791_v40 }
  0xce   : > { %1753 = vmatprep.subr.bf16.mxu1 %v2305_v44 }
  0xd0   : > { %1713 = vmatpush1.bf16.msra.mxu0 %v2300_v45 }
  0xd1   : > { %1754 = vmatpush1.bf16.msra.mxu1 %v2303_v46  ;;  %1714 = vmatprep.subr.bf16.mxu0 %v2308_v47  ;;  %v1793_v46 = vrot.slane (!%p2089_p13), %v1788_v41, %v1792_v42  ;;  %v1797_v47 = vrot.slane (!%p2089_p13), %v1788_v41, %v1796_v43 }
  0xd2   : > { %1755 = vmatprep.subr.bf16.mxu1 %v2311_v48 }
  0xd4   : > { %1715 = vmatpush1.bf16.msra.mxu0 %v2306_v49 }
  0xd5   : > { %1756 = vmatpush1.bf16.msra.mxu1 %v2309_v50  ;;  %1716 = vmatprep.subr.bf16.mxu0 %v2314_v51 }
  0xd6   : > { %1757 = vmatprep.subr.bf16.mxu1 %v2317_v52 }
  0xd8   : > { %1717 = vmatpush1.bf16.msra.mxu0 %v2312_v53 }
  0xd9   : > { %1758 = vmatpush1.bf16.msra.mxu1 %v2315_v54  ;;  %1718 = vmatprep.subr.bf16.mxu0 %v2320_v55 }
  0xda   : > { %1759 = vmatprep.subr.bf16.mxu1 %v2323_v56 }
  0xdc   : > { %1719 = vmatpush1.bf16.msra.mxu0 %v2318_v57 }
  0xdd   : > { %1760 = vmatpush1.bf16.msra.mxu1 %v2321_v58  ;;  %1720 = vmatprep.subr.bf16.mxu0 %v2326_v59 }
  0xde   : > { %1761 = vmatprep.subr.bf16.mxu1 %v2329_v60 }
  0xe0   : > { %1721 = vmatpush1.bf16.msra.mxu0 %v2324_v61 }
  0xe1   : > { %1762 = vmatpush1.bf16.msra.mxu1 %v2327_v62  ;;  %1722 = vmatprep.subr.bf16.mxu0 %v2332_v63 }
  0xe2   : > { %1763 = vmatprep.subr.bf16.mxu1 %v2335_v0 }
  0xe4   : > { %1723 = vmatpush1.bf16.msra.mxu0 %v2330_v1 }
  0xe5   : > { %1764 = vmatpush1.bf16.msra.mxu1 %v2333_v2  ;;  %1724 = vmatprep.subr.bf16.mxu0 %v2338_v3 }
  0xe6   : > { %1765 = vmatprep.subr.bf16.mxu1 %v2341_v4 }
  0xe8   : > { %1725 = vmatpush1.bf16.msra.mxu0 %v2336_v5 }
  0xe9   : > { %1766 = vmatpush1.bf16.msra.mxu1 %v2339_v6  ;;  %1726 = vmatprep.subr.bf16.mxu0 %v2344_v7 }
  0xea   : > { %1767 = vmatprep.subr.bf16.mxu1 %v2347_v8 }
  0xec   : > { %1727 = vmatpush1.bf16.msra.mxu0 %v2342_v9 }
  0xed   : > { %1768 = vmatpush1.bf16.msra.mxu1 %v2345_v10 }
  0xef   : > { %1729 = vmatmul.mubr.bf16.vlgmr.msra.gmra.mrb[4].mxu0 %v1957_v11 }
  0xf0   : > { %1770 = vmatmul.mubr.bf16.vlgmr.msra.gmra.mrb[4].mxu1 %v1959_v12 }
 0x182   : > { %v1648_v13 = vpop.f32.mrb[0].mxu0 }
 0x183   : > { %v1689_v14 = vpop.f32.mrb[0].mxu1  ;;  %v1650_v16 = vpop.f32.mrb[1].mxu0 }
 0x184   : > { %v1690_v15 = vadd.f32 %v1689_v14, %v1648_v13  ;;  %v1691_v17 = vpop.f32.mrb[1].mxu1  ;;  %v1652_v19 = vpop.f32.mrb[2].mxu0 }
 0x185   : > { %v1692_v18 = vadd.f32 %v1691_v17, %v1650_v16  ;;  %v1693_v20 = vpop.f32.mrb[2].mxu1  ;;  %v1653_v21 = vpop.f32.mrb[3].mxu0 }
 0x186   : > { %v1694_v22 = vpop.f32.mrb[3].mxu1 }
 0x1c2   : > { %v1730_v23 = vpop.f32.mrb[4].mxu0 }
 0x1c3   : > { %v1771_v24 = vpop.f32.mrb[4].mxu1  ;;  %v1731_v25 = vadd.f32 %v1730_v23, %v1690_v15  ;;  %v1732_v26 = vpop.f32.mrb[5].mxu0 }
 0x1c4   : > { %v1773_v27 = vpop.f32.mrb[5].mxu1  ;;  %v1733_v29 = vadd.f32 %v1732_v26, %v1692_v18  ;;  %v1734_v30 = vpop.f32.mrb[6].mxu0  ;;  %1785 = sbr.rel (%p2089_p13) target bundleno = 473 (0x1d9), region = 78 }
 0x1c5   : > { %v1775_v31 = vpop.f32.mrb[6].mxu1  ;;  %v1772_v32 = vadd.f32 %v1771_v24, %v1731_v25  ;;  %v1735_v34 = vpop.f32.mrb[7].mxu0 }
 0x1c6   : > { %v1776_v35 = vpop.f32.mrb[7].mxu1  ;;  %v1774_v36 = vadd.f32 %v1773_v27, %v1733_v29 }
 0x1c7   : > { %v1778_v37 = vadd.f32 %v1772_v32, %v812_v28 }
 0x1c8   : > { %v1779_v38 = vadd.f32 %v1774_v36, %v813_v33 }
 0x1c9   : > { %1780 = vst [vmem:[#allocation2] sm:$0xff] %v1778_v37 }
 0x1ca   : > { %1781 = vst [vmem:[#allocation2 + $0x8] sm:$0xff] %v1779_v38 }
 0x1d0   : > { %v1786_v44 = vld [vmem:[#allocation2] sm:$0xff] }
 0x1d1   : > { %v1787_v45 = vld [vmem:[#allocation2 + $0x8] sm:$0xff]  ;;  %v1800_v48 = vadd.f32 %v1793_v46, %v1786_v44 }
 0x1d2   : > { %v1801_v49 = vadd.f32 %v1797_v47, %v1787_v45 }
 0x1d3   : > { %v1802_v50 = vmax.f32 %v1800_v48, 0.0 }
 0x1d4   : > { %v1803_v51 = vmax.f32 %v1801_v49, 0.0 }
 0x1d6   : > { %v2094_v52 = vpack.c.bf16 %v1803_v51, %v1802_v50 }
 0x1d8   : > { %1812 = vst [vmem:[%s2769_s15] sm:$0xff] %v2094_v52 }
 0x1d9 PF: > { %s13_s18 = sadd.s32 1, %s2406_s18   ;;  %s2950_s12 = smov %s2386_s13 }
 0x1da   : > { %p10_p0 = scmp.ge.s32.totalorder %s13_s18, 20   ;;  %s2951_s13 = smov %s2480_s25 }
 0x1db   : > { %s2952_s14 = smov %s2398_s16  ;;  %s2953_s15 = smov %s2402_s17 }
 0x1dc   : > { %s2954_s16 = smov %s2957_s19  ;;  %s2955_s17 = smov %s2961_s20 }
 0x1dd   :  { %12 = sbr.rel (!%p10_p0) target bundleno = 4 (0x4), region = 119 }

</bundles_post_ra>
